<compile_context>
chip_gen: v7x
topology: tpu7x:2x2x1
jax: 0.10.0
libtpu: 0.0.40
codegen_flags: <defaults>
</compile_context>

<pallas_src>
import numpy as np
import jax
import jax.numpy as jnp
from jax.experimental import pallas as pl
from jax.experimental.pallas import tpu as pltpu


# ---------------------------------------------------------------------------
# Constant selection / flatten matrices (built once on host, resident in VMEM)
# ---------------------------------------------------------------------------
def _build_constants():
    f32 = np.float32
    # Flatten gadget for a (28, 24) slab -> (1, 672) row-major:
    #   flat = sum_rows((slab @ EYE1) * BLK1)
    EYE1 = np.tile(np.eye(24, dtype=f32), 28)                          # (24, 672)
    BLK1 = np.kron(np.eye(28, dtype=f32), np.ones((1, 24), f32))       # (28, 672)

    # pool1 corner selections: (576 = 24*24) -> (144 = 12*12)
    T1 = np.zeros((4, 576, 144), f32)
    for dy in range(2):
        for dx in range(2):
            d = dy * 2 + dx
            for i in range(12):
                for j in range(12):
                    T1[d, (2 * i + dy) * 24 + (2 * j + dx), i * 12 + j] = 1.0

    # conv2 column-window selections: (144 = 12*12) -> (96 = 12*8), one per kx
    C2 = np.zeros((5, 144, 96), f32)
    for kx in range(5):
        for r in range(12):
            for c in range(8):
                C2[kx, r * 12 + c + kx, r * 8 + c] = 1.0

    # pool2 corner selections: (64 = 8*8) -> (16 = 4*4)
    T2 = np.zeros((4, 64, 16), f32)
    for dy in range(2):
        for dx in range(2):
            d = dy * 2 + dx
            for i in range(4):
                for j in range(4):
                    T2[d, (2 * i + dy) * 8 + (2 * j + dx), i * 4 + j] = 1.0

    # Flatten gadget for the fc input (20, 16) -> (1, 320) (torch .view(-1,320) order)
    EYEF = np.tile(np.eye(16, dtype=f32), 20)                          # (16, 320)
    BLKF = np.kron(np.eye(20, dtype=f32), np.ones((1, 16), f32))       # (20, 320)
    return EYE1, BLK1, T1, C2, T2, EYEF, BLKF


_CONSTS = _build_constants()


# ---------------------------------------------------------------------------
# Fused kernel: one batch sample per grid step
# ---------------------------------------------------------------------------
def _fused_convnet_kernel(x_ref, w1_ref, b1_ref, eye1_ref, blk1_ref, pool1_ref,
                          col2_ref, w2_ref, b2_ref, pool2_ref,
                          eyef_ref, blkf_ref, fcw_ref, fcb_ref,
                          out_ref, p1_scr, p2_scr):
    f32 = jnp.float32

    def flatten_rows(mat, eye_tile, row_blk):
        # (R, C) -> (1, R*C) row-major using only matmul / mul / row-sum.
        expanded = jnp.dot(mat, eye_tile, preferred_element_type=f32)   # (R, R*C)
        return jnp.sum(expanded * row_blk, axis=0, keepdims=True)       # (1, R*C)

    x_img = x_ref[0]                                                    # (28, 28)

    # ---- conv1 (1->10, k=5, valid): in-VMEM im2col then one MXU matmul -----
    eye1 = eye1_ref[...]
    blk1 = blk1_ref[...]
    for kx in range(5):
        slab = x_img[:, kx:kx + 24]                                     # (28, 24)
        flat = flatten_rows(slab, eye1, blk1)                           # (1, 672): [0, r*24+c] = x[r, c+kx]
        for ky in range(5):
            o = ky * 5 + kx
            # P1[o, r*24+c] = x[r+ky, c+kx]
            p1_scr[o:o + 1, :] = flat[:, ky * 24:ky * 24 + 576]

    y1 = jnp.dot(w1_ref[...], p1_scr[...], preferred_element_type=f32)  # (10, 576)
    y1 = jnp.maximum(y1 + b1_ref[...], 0.0)                             # ReLU

    # ---- maxpool 2x2 (24x24 -> 12x12): 4 corner selections + max ----------
    a1 = jnp.dot(y1, pool1_ref[0], preferred_element_type=f32)          # (10, 144)
    for d in range(1, 4):
        a1 = jnp.maximum(a1, jnp.dot(y1, pool1_ref[d], preferred_element_type=f32))

    # ---- conv2 (10->20, k=5, valid): im2col via column-window matmuls ------
    for kx in range(5):
        g2 = jnp.dot(a1, col2_ref[kx], preferred_element_type=f32)      # (10, 96): [ci, r*8+c] = a1[ci, r*12+c+kx]
        for ky in range(5):
            base = (ky * 5 + kx) * 10
            # P2[(ky*5+kx)*10 + ci, r*8+c] = a1[ci, (r+ky)*12 + c+kx]
            p2_scr[base:base + 10, :] = g2[:, ky * 8:ky * 8 + 64]

    y2 = jnp.dot(w2_ref[...], p2_scr[...], preferred_element_type=f32)  # (20, 64)
    y2 = jnp.maximum(y2 + b2_ref[...], 0.0)                             # ReLU

    # ---- maxpool 2x2 (8x8 -> 4x4) ------------------------------------------
    a2 = jnp.dot(y2, pool2_ref[0], preferred_element_type=f32)          # (20, 16)
    for d in range(1, 4):
        a2 = jnp.maximum(a2, jnp.dot(y2, pool2_ref[d], preferred_element_type=f32))

    # ---- fc: flatten (20,16) -> (1,320) in torch .view(-1,320) order, matmul
    flat2 = flatten_rows(a2, eyef_ref[...], blkf_ref[...])              # (1, 320)
    logits = jnp.dot(flat2, fcw_ref[...], preferred_element_type=f32) + fcb_ref[...]
    out_ref[0] = logits                                                 # (1, 10)


def _resident_spec(shape):
    zeros = (0,) * len(shape)
    return pl.BlockSpec(shape, lambda i: zeros)


def simple_convnet_forward(x, params):
    # x: (N, 1, 28, 28) float32 (NCHW, PyTorch convention).
    N = x.shape[0]
    assert x.shape[1:] == (1, 28, 28), "SimpleConvNet requires (N, 1, 28, 28) input"
    x2 = x.reshape(N, 28, 28).astype(jnp.float32)

    # Weight re-layouts (tiny, done once per call on the weights only).
    w1 = params["conv1_w"].reshape(10, 25)                              # cols ordered (ky, kx)
    b1 = params["conv1_b"].reshape(10, 1)
    w2 = jnp.transpose(params["conv2_w"], (0, 2, 3, 1)).reshape(20, 250)  # cols ordered (ky, kx, ci)
    b2 = params["conv2_b"].reshape(20, 1)
    fcw = params["fc_w"].T                                              # (320, 10)
    fcb = params["fc_b"].reshape(1, 10)

    EYE1, BLK1, T1, C2, T2, EYEF, BLKF = (jnp.asarray(c) for c in _CONSTS)

    in_specs = [
        pl.BlockSpec((1, 28, 28), lambda i: (i, 0, 0)),   # x (per-sample block)
        _resident_spec((10, 25)),                         # w1
        _resident_spec((10, 1)),                          # b1
        _resident_spec((24, 672)),                        # EYE1
        _resident_spec((28, 672)),                        # BLK1
        _resident_spec((4, 576, 144)),                    # pool1 selections
        _resident_spec((5, 144, 96)),                     # conv2 column selections
        _resident_spec((20, 250)),                        # w2
        _resident_spec((20, 1)),                          # b2
        _resident_spec((4, 64, 16)),                      # pool2 selections
        _resident_spec((16, 320)),                        # EYEF
        _resident_spec((20, 320)),                        # BLKF
        _resident_spec((320, 10)),                        # fc weight (transposed)
        _resident_spec((1, 10)),                          # fc bias
    ]

    out = pl.pallas_call(
        _fused_convnet_kernel,
        grid=(N,),
        in_specs=in_specs,
        out_specs=pl.BlockSpec((1, 1, 10), lambda i: (i, 0, 0)),
        out_shape=jax.ShapeDtypeStruct((N, 1, 10), jnp.float32),
        scratch_shapes=[
            pltpu.VMEM((25, 576), jnp.float32),   # conv1 patches P1
            pltpu.VMEM((250, 64), jnp.float32),   # conv2 patches P2
        ],
        compiler_params=pltpu.CompilerParams(dimension_semantics=("parallel",)),
    )(x2, w1, b1, EYE1, BLK1, T1, C2, w2, b2, T2, EYEF, BLKF, fcw, fcb)
    return out.reshape(N, 10)


# ---------------------------------------------------------------------------
# Params + pure-XLA reference (for a sanity check only)
# ---------------------------------------------------------------------------
def init_params(key):
    ks = jax.random.split(key, 6)
    return {
        "conv1_w": 0.1 * jax.random.normal(ks[0], (10, 1, 5, 5), jnp.float32),
        "conv1_b": 0.1 * jax.random.normal(ks[1], (10,), jnp.float32),
        "conv2_w": 0.1 * jax.random.normal(ks[2], (20, 10, 5, 5), jnp.float32),
        "conv2_b": 0.1 * jax.random.normal(ks[3], (20,), jnp.float32),
        "fc_w":    0.1 * jax.random.normal(ks[4], (10, 320), jnp.float32),
        "fc_b":    0.1 * jax.random.normal(ks[5], (10,), jnp.float32),
    }


def _reference_forward(x, params):
    dn = ("NCHW", "OIHW", "NCHW")
    hi = jax.lax.Precision.HIGHEST
    y = jax.lax.conv_general_dilated(x, params["conv1_w"], (1, 1), "VALID",
                                     dimension_numbers=dn, precision=hi)
    y = jnp.maximum(y + params["conv1_b"].reshape(1, -1, 1, 1), 0.0)
    y = jax.lax.reduce_window(y, -jnp.inf, jax.lax.max, (1, 1, 2, 2), (1, 1, 2, 2), "VALID")
    y = jax.lax.conv_general_dilated(y, params["conv2_w"], (1, 1), "VALID",
                                     dimension_numbers=dn, precision=hi)
    y = jnp.maximum(y + params["conv2_b"].reshape(1, -1, 1, 1), 0.0)
    y = jax.lax.reduce_window(y, -jnp.inf, jax.lax.max, (1, 1, 2, 2), (1, 1, 2, 2), "VALID")
    flat = y.reshape(x.shape[0], 320)
    return jnp.dot(flat, params["fc_w"].T, precision=hi) + params["fc_b"]


if __name__ == "__main__":
    key = jax.random.PRNGKey(0)
    pkey, xkey = jax.random.split(key)
    params = init_params(pkey)
    x = jax.random.normal(xkey, (2, 1, 28, 28), jnp.float32)  # 28x28 forced by fc in-dim 320

    out = jax.jit(simple_convnet_forward)(x, params)
    jax.block_until_ready(out)
    assert out.shape == (2, 10) and out.dtype == jnp.float32

    ref = jax.jit(_reference_forward)(x, params)
    max_err = float(jnp.max(jnp.abs(out - ref)))
    assert max_err < 1e-1, f"mismatch vs reference: max_err={max_err}"

    print("KERNEL_OK")
</pallas_src>

<mosaic_0001>
module attributes {stable_mosaic.version = 11 : i64} {
  func.func @_fused_convnet_kernel(%arg0: i32, %arg1: memref<1x28x28xf32, #tpu.memory_space<vmem>>, %arg2: memref<10x25xf32, #tpu.memory_space<vmem>>, %arg3: memref<10x1xf32, #tpu.memory_space<vmem>>, %arg4: memref<24x672xf32, #tpu.memory_space<vmem>>, %arg5: memref<28x672xf32, #tpu.memory_space<vmem>>, %arg6: memref<4x576x144xf32, #tpu.memory_space<vmem>>, %arg7: memref<5x144x96xf32, #tpu.memory_space<vmem>>, %arg8: memref<20x250xf32, #tpu.memory_space<vmem>>, %arg9: memref<20x1xf32, #tpu.memory_space<vmem>>, %arg10: memref<4x64x16xf32, #tpu.memory_space<vmem>>, %arg11: memref<16x320xf32, #tpu.memory_space<vmem>>, %arg12: memref<20x320xf32, #tpu.memory_space<vmem>>, %arg13: memref<320x10xf32, #tpu.memory_space<vmem>>, %arg14: memref<1x10xf32, #tpu.memory_space<vmem>>, %arg15: memref<1x1x10xf32, #tpu.memory_space<vmem>>, %arg16: memref<25x576xf32, #tpu.memory_space<vmem>>, %arg17: memref<250x64xf32, #tpu.memory_space<vmem>>) attributes {dimension_semantics = [#tpu.dimension_semantics<parallel>], iteration_bounds = array<i64: 2>, scalar_prefetch = 0 : i64, scratch_operands = 2 : i64, tpu.core_type = #tpu.core_type<tc>, window_params = [{transform_indices = @transform_0, window_bounds = array<i64: 1, 28, 28>}, {pipeline_mode = #tpu.pipeline_mode<synchronous>, transform_indices = @transform_1, window_bounds = array<i64: 10, 25>}, {pipeline_mode = #tpu.pipeline_mode<synchronous>, transform_indices = @transform_2, window_bounds = array<i64: 10, 1>}, {pipeline_mode = #tpu.pipeline_mode<synchronous>, transform_indices = @transform_3, window_bounds = array<i64: 24, 672>}, {pipeline_mode = #tpu.pipeline_mode<synchronous>, transform_indices = @transform_4, window_bounds = array<i64: 28, 672>}, {pipeline_mode = #tpu.pipeline_mode<synchronous>, transform_indices = @transform_5, window_bounds = array<i64: 4, 576, 144>}, {pipeline_mode = #tpu.pipeline_mode<synchronous>, transform_indices = @transform_6, window_bounds = array<i64: 5, 144, 96>}, {pipeline_mode = #tpu.pipeline_mode<synchronous>, transform_indices = @transform_7, window_bounds = array<i64: 20, 250>}, {pipeline_mode = #tpu.pipeline_mode<synchronous>, transform_indices = @transform_8, window_bounds = array<i64: 20, 1>}, {pipeline_mode = #tpu.pipeline_mode<synchronous>, transform_indices = @transform_9, window_bounds = array<i64: 4, 64, 16>}, {pipeline_mode = #tpu.pipeline_mode<synchronous>, transform_indices = @transform_10, window_bounds = array<i64: 16, 320>}, {pipeline_mode = #tpu.pipeline_mode<synchronous>, transform_indices = @transform_11, window_bounds = array<i64: 20, 320>}, {pipeline_mode = #tpu.pipeline_mode<synchronous>, transform_indices = @transform_12, window_bounds = array<i64: 320, 10>}, {pipeline_mode = #tpu.pipeline_mode<synchronous>, transform_indices = @transform_13, window_bounds = array<i64: 1, 10>}, {transform_indices = @transform_14, window_bounds = array<i64: 1, 1, 10>}]} {
    %c0 = arith.constant 0 : index
    %c0_0 = arith.constant 0 : index
    %c0_1 = arith.constant 0 : index
    %0 = vector.load %arg1[%c0, %c0_0, %c0_1] : memref<1x28x28xf32, #tpu.memory_space<vmem>>, vector<1x28x28xf32>
    %1 = vector.shape_cast %0 : vector<1x28x28xf32> to vector<28x28xf32>
    %c0_2 = arith.constant 0 : index
    %c0_3 = arith.constant 0 : index
    %2 = vector.load %arg4[%c0_2, %c0_3] : memref<24x672xf32, #tpu.memory_space<vmem>>, vector<24x672xf32>
    %c0_4 = arith.constant 0 : index
    %c0_5 = arith.constant 0 : index
    %3 = vector.load %arg5[%c0_4, %c0_5] : memref<28x672xf32, #tpu.memory_space<vmem>>, vector<28x672xf32>
    %4 = vector.extract_strided_slice %1 {offsets = [0, 0], sizes = [28, 24], strides = [1, 1]} : vector<28x28xf32> to vector<28x24xf32>
    %cst = arith.constant dense<0.000000e+00> : vector<28x672xf32>
    %5 = tpu.matmul %4, %2, %cst {dimension_numbers = #tpu.dot_dimension_numbers<[1], [0], [0], [1], [0, 0, 1, 1], [], []>} : vector<28x24xf32>, vector<24x672xf32>, vector<28x672xf32> -> vector<28x672xf32>
    %6 = arith.mulf %5, %3 : vector<28x672xf32>
    %cst_6 = arith.constant dense<0.000000e+00> : vector<672xf32>
    %7 = vector.multi_reduction <add>, %6, %cst_6 [0] : vector<28x672xf32> to vector<672xf32>
    %8 = vector.shape_cast %7 : vector<672xf32> to vector<1x672xf32>
    %9 = vector.extract_strided_slice %8 {offsets = [0, 0], sizes = [1, 576], strides = [1, 1]} : vector<1x672xf32> to vector<1x576xf32>
    %c0_7 = arith.constant 0 : index
    %c0_8 = arith.constant 0 : index
    %10 = vector.load %arg16[%c0_7, %c0_8] : memref<25x576xf32, #tpu.memory_space<vmem>>, vector<1x576xf32>
    tpu.vector_store %arg16[%c0_7, %c0_8], %9 {strides = array<i32>} : memref<25x576xf32, #tpu.memory_space<vmem>>, vector<1x576xf32>,
    %11 = vector.extract_strided_slice %8 {offsets = [0, 24], sizes = [1, 576], strides = [1, 1]} : vector<1x672xf32> to vector<1x576xf32>
    %c5 = arith.constant 5 : index
    %c0_9 = arith.constant 0 : index
    %12 = vector.load %arg16[%c5, %c0_9] : memref<25x576xf32, #tpu.memory_space<vmem>>, vector<1x576xf32>
    tpu.vector_store %arg16[%c5, %c0_9], %11 {strides = array<i32>} : memref<25x576xf32, #tpu.memory_space<vmem>>, vector<1x576xf32>,
    %13 = vector.extract_strided_slice %8 {offsets = [0, 48], sizes = [1, 576], strides = [1, 1]} : vector<1x672xf32> to vector<1x576xf32>
    %c10 = arith.constant 10 : index
    %c0_10 = arith.constant 0 : index
    %14 = vector.load %arg16[%c10, %c0_10] : memref<25x576xf32, #tpu.memory_space<vmem>>, vector<1x576xf32>
    tpu.vector_store %arg16[%c10, %c0_10], %13 {strides = array<i32>} : memref<25x576xf32, #tpu.memory_space<vmem>>, vector<1x576xf32>,
    %15 = vector.extract_strided_slice %8 {offsets = [0, 72], sizes = [1, 576], strides = [1, 1]} : vector<1x672xf32> to vector<1x576xf32>
    %c15 = arith.constant 15 : index
    %c0_11 = arith.constant 0 : index
    %16 = vector.load %arg16[%c15, %c0_11] : memref<25x576xf32, #tpu.memory_space<vmem>>, vector<1x576xf32>
    tpu.vector_store %arg16[%c15, %c0_11], %15 {strides = array<i32>} : memref<25x576xf32, #tpu.memory_space<vmem>>, vector<1x576xf32>,
    %17 = vector.extract_strided_slice %8 {offsets = [0, 96], sizes = [1, 576], strides = [1, 1]} : vector<1x672xf32> to vector<1x576xf32>
    %c20 = arith.constant 20 : index
    %c0_12 = arith.constant 0 : index
    %18 = vector.load %arg16[%c20, %c0_12] : memref<25x576xf32, #tpu.memory_space<vmem>>, vector<1x576xf32>
    tpu.vector_store %arg16[%c20, %c0_12], %17 {strides = array<i32>} : memref<25x576xf32, #tpu.memory_space<vmem>>, vector<1x576xf32>,
    %19 = vector.extract_strided_slice %1 {offsets = [0, 1], sizes = [28, 24], strides = [1, 1]} : vector<28x28xf32> to vector<28x24xf32>
    %cst_13 = arith.constant dense<0.000000e+00> : vector<28x672xf32>
    %20 = tpu.matmul %19, %2, %cst_13 {dimension_numbers = #tpu.dot_dimension_numbers<[1], [0], [0], [1], [0, 0, 1, 1], [], []>} : vector<28x24xf32>, vector<24x672xf32>, vector<28x672xf32> -> vector<28x672xf32>
    %21 = arith.mulf %20, %3 : vector<28x672xf32>
    %cst_14 = arith.constant dense<0.000000e+00> : vector<672xf32>
    %22 = vector.multi_reduction <add>, %21, %cst_14 [0] : vector<28x672xf32> to vector<672xf32>
    %23 = vector.shape_cast %22 : vector<672xf32> to vector<1x672xf32>
    %24 = vector.extract_strided_slice %23 {offsets = [0, 0], sizes = [1, 576], strides = [1, 1]} : vector<1x672xf32> to vector<1x576xf32>
    %c1 = arith.constant 1 : index
    %c0_15 = arith.constant 0 : index
    %25 = vector.load %arg16[%c1, %c0_15] : memref<25x576xf32, #tpu.memory_space<vmem>>, vector<1x576xf32>
    tpu.vector_store %arg16[%c1, %c0_15], %24 {strides = array<i32>} : memref<25x576xf32, #tpu.memory_space<vmem>>, vector<1x576xf32>,
    %26 = vector.extract_strided_slice %23 {offsets = [0, 24], sizes = [1, 576], strides = [1, 1]} : vector<1x672xf32> to vector<1x576xf32>
    %c6 = arith.constant 6 : index
    %c0_16 = arith.constant 0 : index
    %27 = vector.load %arg16[%c6, %c0_16] : memref<25x576xf32, #tpu.memory_space<vmem>>, vector<1x576xf32>
    tpu.vector_store %arg16[%c6, %c0_16], %26 {strides = array<i32>} : memref<25x576xf32, #tpu.memory_space<vmem>>, vector<1x576xf32>,
    %28 = vector.extract_strided_slice %23 {offsets = [0, 48], sizes = [1, 576], strides = [1, 1]} : vector<1x672xf32> to vector<1x576xf32>
    %c11 = arith.constant 11 : index
    %c0_17 = arith.constant 0 : index
    %29 = vector.load %arg16[%c11, %c0_17] : memref<25x576xf32, #tpu.memory_space<vmem>>, vector<1x576xf32>
    tpu.vector_store %arg16[%c11, %c0_17], %28 {strides = array<i32>} : memref<25x576xf32, #tpu.memory_space<vmem>>, vector<1x576xf32>,
    %30 = vector.extract_strided_slice %23 {offsets = [0, 72], sizes = [1, 576], strides = [1, 1]} : vector<1x672xf32> to vector<1x576xf32>
    %c16 = arith.constant 16 : index
    %c0_18 = arith.constant 0 : index
    %31 = vector.load %arg16[%c16, %c0_18] : memref<25x576xf32, #tpu.memory_space<vmem>>, vector<1x576xf32>
    tpu.vector_store %arg16[%c16, %c0_18], %30 {strides = array<i32>} : memref<25x576xf32, #tpu.memory_space<vmem>>, vector<1x576xf32>,
    %32 = vector.extract_strided_slice %23 {offsets = [0, 96], sizes = [1, 576], strides = [1, 1]} : vector<1x672xf32> to vector<1x576xf32>
    %c21 = arith.constant 21 : index
    %c0_19 = arith.constant 0 : index
    %33 = vector.load %arg16[%c21, %c0_19] : memref<25x576xf32, #tpu.memory_space<vmem>>, vector<1x576xf32>
    tpu.vector_store %arg16[%c21, %c0_19], %32 {strides = array<i32>} : memref<25x576xf32, #tpu.memory_space<vmem>>, vector<1x576xf32>,
    %34 = vector.extract_strided_slice %1 {offsets = [0, 2], sizes = [28, 24], strides = [1, 1]} : vector<28x28xf32> to vector<28x24xf32>
    %cst_20 = arith.constant dense<0.000000e+00> : vector<28x672xf32>
    %35 = tpu.matmul %34, %2, %cst_20 {dimension_numbers = #tpu.dot_dimension_numbers<[1], [0], [0], [1], [0, 0, 1, 1], [], []>} : vector<28x24xf32>, vector<24x672xf32>, vector<28x672xf32> -> vector<28x672xf32>
    %36 = arith.mulf %35, %3 : vector<28x672xf32>
    %cst_21 = arith.constant dense<0.000000e+00> : vector<672xf32>
    %37 = vector.multi_reduction <add>, %36, %cst_21 [0] : vector<28x672xf32> to vector<672xf32>
    %38 = vector.shape_cast %37 : vector<672xf32> to vector<1x672xf32>
    %39 = vector.extract_strided_slice %38 {offsets = [0, 0], sizes = [1, 576], strides = [1, 1]} : vector<1x672xf32> to vector<1x576xf32>
    %c2 = arith.constant 2 : index
    %c0_22 = arith.constant 0 : index
    %40 = vector.load %arg16[%c2, %c0_22] : memref<25x576xf32, #tpu.memory_space<vmem>>, vector<1x576xf32>
    tpu.vector_store %arg16[%c2, %c0_22], %39 {strides = array<i32>} : memref<25x576xf32, #tpu.memory_space<vmem>>, vector<1x576xf32>,
    %41 = vector.extract_strided_slice %38 {offsets = [0, 24], sizes = [1, 576], strides = [1, 1]} : vector<1x672xf32> to vector<1x576xf32>
    %c7 = arith.constant 7 : index
    %c0_23 = arith.constant 0 : index
    %42 = vector.load %arg16[%c7, %c0_23] : memref<25x576xf32, #tpu.memory_space<vmem>>, vector<1x576xf32>
    tpu.vector_store %arg16[%c7, %c0_23], %41 {strides = array<i32>} : memref<25x576xf32, #tpu.memory_space<vmem>>, vector<1x576xf32>,
    %43 = vector.extract_strided_slice %38 {offsets = [0, 48], sizes = [1, 576], strides = [1, 1]} : vector<1x672xf32> to vector<1x576xf32>
    %c12 = arith.constant 12 : index
    %c0_24 = arith.constant 0 : index
    %44 = vector.load %arg16[%c12, %c0_24] : memref<25x576xf32, #tpu.memory_space<vmem>>, vector<1x576xf32>
    tpu.vector_store %arg16[%c12, %c0_24], %43 {strides = array<i32>} : memref<25x576xf32, #tpu.memory_space<vmem>>, vector<1x576xf32>,
    %45 = vector.extract_strided_slice %38 {offsets = [0, 72], sizes = [1, 576], strides = [1, 1]} : vector<1x672xf32> to vector<1x576xf32>
    %c17 = arith.constant 17 : index
    %c0_25 = arith.constant 0 : index
    %46 = vector.load %arg16[%c17, %c0_25] : memref<25x576xf32, #tpu.memory_space<vmem>>, vector<1x576xf32>
    tpu.vector_store %arg16[%c17, %c0_25], %45 {strides = array<i32>} : memref<25x576xf32, #tpu.memory_space<vmem>>, vector<1x576xf32>,
    %47 = vector.extract_strided_slice %38 {offsets = [0, 96], sizes = [1, 576], strides = [1, 1]} : vector<1x672xf32> to vector<1x576xf32>
    %c22 = arith.constant 22 : index
    %c0_26 = arith.constant 0 : index
    %48 = vector.load %arg16[%c22, %c0_26] : memref<25x576xf32, #tpu.memory_space<vmem>>, vector<1x576xf32>
    tpu.vector_store %arg16[%c22, %c0_26], %47 {strides = array<i32>} : memref<25x576xf32, #tpu.memory_space<vmem>>, vector<1x576xf32>,
    %49 = vector.extract_strided_slice %1 {offsets = [0, 3], sizes = [28, 24], strides = [1, 1]} : vector<28x28xf32> to vector<28x24xf32>
    %cst_27 = arith.constant dense<0.000000e+00> : vector<28x672xf32>
    %50 = tpu.matmul %49, %2, %cst_27 {dimension_numbers = #tpu.dot_dimension_numbers<[1], [0], [0], [1], [0, 0, 1, 1], [], []>} : vector<28x24xf32>, vector<24x672xf32>, vector<28x672xf32> -> vector<28x672xf32>
    %51 = arith.mulf %50, %3 : vector<28x672xf32>
    %cst_28 = arith.constant dense<0.000000e+00> : vector<672xf32>
    %52 = vector.multi_reduction <add>, %51, %cst_28 [0] : vector<28x672xf32> to vector<672xf32>
    %53 = vector.shape_cast %52 : vector<672xf32> to vector<1x672xf32>
    %54 = vector.extract_strided_slice %53 {offsets = [0, 0], sizes = [1, 576], strides = [1, 1]} : vector<1x672xf32> to vector<1x576xf32>
    %c3 = arith.constant 3 : index
    %c0_29 = arith.constant 0 : index
    %55 = vector.load %arg16[%c3, %c0_29] : memref<25x576xf32, #tpu.memory_space<vmem>>, vector<1x576xf32>
    tpu.vector_store %arg16[%c3, %c0_29], %54 {strides = array<i32>} : memref<25x576xf32, #tpu.memory_space<vmem>>, vector<1x576xf32>,
    %56 = vector.extract_strided_slice %53 {offsets = [0, 24], sizes = [1, 576], strides = [1, 1]} : vector<1x672xf32> to vector<1x576xf32>
    %c8 = arith.constant 8 : index
    %c0_30 = arith.constant 0 : index
    %57 = vector.load %arg16[%c8, %c0_30] : memref<25x576xf32, #tpu.memory_space<vmem>>, vector<1x576xf32>
    tpu.vector_store %arg16[%c8, %c0_30], %56 {strides = array<i32>} : memref<25x576xf32, #tpu.memory_space<vmem>>, vector<1x576xf32>,
    %58 = vector.extract_strided_slice %53 {offsets = [0, 48], sizes = [1, 576], strides = [1, 1]} : vector<1x672xf32> to vector<1x576xf32>
    %c13 = arith.constant 13 : index
    %c0_31 = arith.constant 0 : index
    %59 = vector.load %arg16[%c13, %c0_31] : memref<25x576xf32, #tpu.memory_space<vmem>>, vector<1x576xf32>
    tpu.vector_store %arg16[%c13, %c0_31], %58 {strides = array<i32>} : memref<25x576xf32, #tpu.memory_space<vmem>>, vector<1x576xf32>,
    %60 = vector.extract_strided_slice %53 {offsets = [0, 72], sizes = [1, 576], strides = [1, 1]} : vector<1x672xf32> to vector<1x576xf32>
    %c18 = arith.constant 18 : index
    %c0_32 = arith.constant 0 : index
    %61 = vector.load %arg16[%c18, %c0_32] : memref<25x576xf32, #tpu.memory_space<vmem>>, vector<1x576xf32>
    tpu.vector_store %arg16[%c18, %c0_32], %60 {strides = array<i32>} : memref<25x576xf32, #tpu.memory_space<vmem>>, vector<1x576xf32>,
    %62 = vector.extract_strided_slice %53 {offsets = [0, 96], sizes = [1, 576], strides = [1, 1]} : vector<1x672xf32> to vector<1x576xf32>
    %c23 = arith.constant 23 : index
    %c0_33 = arith.constant 0 : index
    %63 = vector.load %arg16[%c23, %c0_33] : memref<25x576xf32, #tpu.memory_space<vmem>>, vector<1x576xf32>
    tpu.vector_store %arg16[%c23, %c0_33], %62 {strides = array<i32>} : memref<25x576xf32, #tpu.memory_space<vmem>>, vector<1x576xf32>,
    %64 = vector.extract_strided_slice %1 {offsets = [0, 4], sizes = [28, 24], strides = [1, 1]} : vector<28x28xf32> to vector<28x24xf32>
    %cst_34 = arith.constant dense<0.000000e+00> : vector<28x672xf32>
    %65 = tpu.matmul %64, %2, %cst_34 {dimension_numbers = #tpu.dot_dimension_numbers<[1], [0], [0], [1], [0, 0, 1, 1], [], []>} : vector<28x24xf32>, vector<24x672xf32>, vector<28x672xf32> -> vector<28x672xf32>
    %66 = arith.mulf %65, %3 : vector<28x672xf32>
    %cst_35 = arith.constant dense<0.000000e+00> : vector<672xf32>
    %67 = vector.multi_reduction <add>, %66, %cst_35 [0] : vector<28x672xf32> to vector<672xf32>
    %68 = vector.shape_cast %67 : vector<672xf32> to vector<1x672xf32>
    %69 = vector.extract_strided_slice %68 {offsets = [0, 0], sizes = [1, 576], strides = [1, 1]} : vector<1x672xf32> to vector<1x576xf32>
    %c4 = arith.constant 4 : index
    %c0_36 = arith.constant 0 : index
    %70 = vector.load %arg16[%c4, %c0_36] : memref<25x576xf32, #tpu.memory_space<vmem>>, vector<1x576xf32>
    tpu.vector_store %arg16[%c4, %c0_36], %69 {strides = array<i32>} : memref<25x576xf32, #tpu.memory_space<vmem>>, vector<1x576xf32>,
    %71 = vector.extract_strided_slice %68 {offsets = [0, 24], sizes = [1, 576], strides = [1, 1]} : vector<1x672xf32> to vector<1x576xf32>
    %c9 = arith.constant 9 : index
    %c0_37 = arith.constant 0 : index
    %72 = vector.load %arg16[%c9, %c0_37] : memref<25x576xf32, #tpu.memory_space<vmem>>, vector<1x576xf32>
    tpu.vector_store %arg16[%c9, %c0_37], %71 {strides = array<i32>} : memref<25x576xf32, #tpu.memory_space<vmem>>, vector<1x576xf32>,
    %73 = vector.extract_strided_slice %68 {offsets = [0, 48], sizes = [1, 576], strides = [1, 1]} : vector<1x672xf32> to vector<1x576xf32>
    %c14 = arith.constant 14 : index
    %c0_38 = arith.constant 0 : index
    %74 = vector.load %arg16[%c14, %c0_38] : memref<25x576xf32, #tpu.memory_space<vmem>>, vector<1x576xf32>
    tpu.vector_store %arg16[%c14, %c0_38], %73 {strides = array<i32>} : memref<25x576xf32, #tpu.memory_space<vmem>>, vector<1x576xf32>,
    %75 = vector.extract_strided_slice %68 {offsets = [0, 72], sizes = [1, 576], strides = [1, 1]} : vector<1x672xf32> to vector<1x576xf32>
    %c19 = arith.constant 19 : index
    %c0_39 = arith.constant 0 : index
    %76 = vector.load %arg16[%c19, %c0_39] : memref<25x576xf32, #tpu.memory_space<vmem>>, vector<1x576xf32>
    tpu.vector_store %arg16[%c19, %c0_39], %75 {strides = array<i32>} : memref<25x576xf32, #tpu.memory_space<vmem>>, vector<1x576xf32>,
    %77 = vector.extract_strided_slice %68 {offsets = [0, 96], sizes = [1, 576], strides = [1, 1]} : vector<1x672xf32> to vector<1x576xf32>
    %c24 = arith.constant 24 : index
    %c0_40 = arith.constant 0 : index
    %78 = vector.load %arg16[%c24, %c0_40] : memref<25x576xf32, #tpu.memory_space<vmem>>, vector<1x576xf32>
    tpu.vector_store %arg16[%c24, %c0_40], %77 {strides = array<i32>} : memref<25x576xf32, #tpu.memory_space<vmem>>, vector<1x576xf32>,
    %c0_41 = arith.constant 0 : index
    %c0_42 = arith.constant 0 : index
    %79 = vector.load %arg2[%c0_41, %c0_42] : memref<10x25xf32, #tpu.memory_space<vmem>>, vector<10x25xf32>
    %c0_43 = arith.constant 0 : index
    %c0_44 = arith.constant 0 : index
    %80 = vector.load %arg16[%c0_43, %c0_44] : memref<25x576xf32, #tpu.memory_space<vmem>>, vector<25x576xf32>
    %cst_45 = arith.constant dense<0.000000e+00> : vector<10x576xf32>
    %81 = tpu.matmul %79, %80, %cst_45 {dimension_numbers = #tpu.dot_dimension_numbers<[1], [0], [0], [1], [0, 0, 1, 1], [], []>} : vector<10x25xf32>, vector<25x576xf32>, vector<10x576xf32> -> vector<10x576xf32>
    %c0_46 = arith.constant 0 : index
    %c0_47 = arith.constant 0 : index
    %82 = vector.load %arg3[%c0_46, %c0_47] : memref<10x1xf32, #tpu.memory_space<vmem>>, vector<10x1xf32>
    %83 = vector.broadcast %82 : vector<10x1xf32> to vector<10x576xf32>
    %84 = arith.addf %81, %83 : vector<10x576xf32>
    %cst_48 = arith.constant 0.000000e+00 : f32
    %85 = vector.broadcast %cst_48 : f32 to vector<10x576xf32>
    %86 = arith.maximumf %84, %85 : vector<10x576xf32>
    %c0_49 = arith.constant 0 : index
    %c0_50 = arith.constant 0 : index
    %c0_51 = arith.constant 0 : index
    %87 = vector.load %arg6[%c0_49, %c0_50, %c0_51] : memref<4x576x144xf32, #tpu.memory_space<vmem>>, vector<1x576x144xf32>
    %88 = vector.shape_cast %87 : vector<1x576x144xf32> to vector<576x144xf32>
    %cst_52 = arith.constant dense<0.000000e+00> : vector<10x144xf32>
    %89 = tpu.matmul %86, %88, %cst_52 {dimension_numbers = #tpu.dot_dimension_numbers<[1], [0], [0], [1], [0, 0, 1, 1], [], []>} : vector<10x576xf32>, vector<576x144xf32>, vector<10x144xf32> -> vector<10x144xf32>
    %c1_53 = arith.constant 1 : index
    %c0_54 = arith.constant 0 : index
    %c0_55 = arith.constant 0 : index
    %90 = vector.load %arg6[%c1_53, %c0_54, %c0_55] : memref<4x576x144xf32, #tpu.memory_space<vmem>>, vector<1x576x144xf32>
    %91 = vector.shape_cast %90 : vector<1x576x144xf32> to vector<576x144xf32>
    %cst_56 = arith.constant dense<0.000000e+00> : vector<10x144xf32>
    %92 = tpu.matmul %86, %91, %cst_56 {dimension_numbers = #tpu.dot_dimension_numbers<[1], [0], [0], [1], [0, 0, 1, 1], [], []>} : vector<10x576xf32>, vector<576x144xf32>, vector<10x144xf32> -> vector<10x144xf32>
    %93 = arith.maximumf %89, %92 : vector<10x144xf32>
    %c2_57 = arith.constant 2 : index
    %c0_58 = arith.constant 0 : index
    %c0_59 = arith.constant 0 : index
    %94 = vector.load %arg6[%c2_57, %c0_58, %c0_59] : memref<4x576x144xf32, #tpu.memory_space<vmem>>, vector<1x576x144xf32>
    %95 = vector.shape_cast %94 : vector<1x576x144xf32> to vector<576x144xf32>
    %cst_60 = arith.constant dense<0.000000e+00> : vector<10x144xf32>
    %96 = tpu.matmul %86, %95, %cst_60 {dimension_numbers = #tpu.dot_dimension_numbers<[1], [0], [0], [1], [0, 0, 1, 1], [], []>} : vector<10x576xf32>, vector<576x144xf32>, vector<10x144xf32> -> vector<10x144xf32>
    %97 = arith.maximumf %93, %96 : vector<10x144xf32>
    %c3_61 = arith.constant 3 : index
    %c0_62 = arith.constant 0 : index
    %c0_63 = arith.constant 0 : index
    %98 = vector.load %arg6[%c3_61, %c0_62, %c0_63] : memref<4x576x144xf32, #tpu.memory_space<vmem>>, vector<1x576x144xf32>
    %99 = vector.shape_cast %98 : vector<1x576x144xf32> to vector<576x144xf32>
    %cst_64 = arith.constant dense<0.000000e+00> : vector<10x144xf32>
    %100 = tpu.matmul %86, %99, %cst_64 {dimension_numbers = #tpu.dot_dimension_numbers<[1], [0], [0], [1], [0, 0, 1, 1], [], []>} : vector<10x576xf32>, vector<576x144xf32>, vector<10x144xf32> -> vector<10x144xf32>
    %101 = arith.maximumf %97, %100 : vector<10x144xf32>
    %c0_65 = arith.constant 0 : index
    %c0_66 = arith.constant 0 : index
    %c0_67 = arith.constant 0 : index
    %102 = vector.load %arg7[%c0_65, %c0_66, %c0_67] : memref<5x144x96xf32, #tpu.memory_space<vmem>>, vector<1x144x96xf32>
    %103 = vector.shape_cast %102 : vector<1x144x96xf32> to vector<144x96xf32>
    %cst_68 = arith.constant dense<0.000000e+00> : vector<10x96xf32>
    %104 = tpu.matmul %101, %103, %cst_68 {dimension_numbers = #tpu.dot_dimension_numbers<[1], [0], [0], [1], [0, 0, 1, 1], [], []>} : vector<10x144xf32>, vector<144x96xf32>, vector<10x96xf32> -> vector<10x96xf32>
    %105 = vector.extract_strided_slice %104 {offsets = [0, 0], sizes = [10, 64], strides = [1, 1]} : vector<10x96xf32> to vector<10x64xf32>
    %c0_69 = arith.constant 0 : index
    %c0_70 = arith.constant 0 : index
    %106 = vector.load %arg17[%c0_69, %c0_70] : memref<250x64xf32, #tpu.memory_space<vmem>>, vector<10x64xf32>
    tpu.vector_store %arg17[%c0_69, %c0_70], %105 {strides = array<i32>} : memref<250x64xf32, #tpu.memory_space<vmem>>, vector<10x64xf32>,
    %107 = vector.extract_strided_slice %104 {offsets = [0, 8], sizes = [10, 64], strides = [1, 1]} : vector<10x96xf32> to vector<10x64xf32>
    %c50 = arith.constant 50 : index
    %c0_71 = arith.constant 0 : index
    %108 = vector.load %arg17[%c50, %c0_71] : memref<250x64xf32, #tpu.memory_space<vmem>>, vector<10x64xf32>
    tpu.vector_store %arg17[%c50, %c0_71], %107 {strides = array<i32>} : memref<250x64xf32, #tpu.memory_space<vmem>>, vector<10x64xf32>,
    %109 = vector.extract_strided_slice %104 {offsets = [0, 16], sizes = [10, 64], strides = [1, 1]} : vector<10x96xf32> to vector<10x64xf32>
    %c100 = arith.constant 100 : index
    %c0_72 = arith.constant 0 : index
    %110 = vector.load %arg17[%c100, %c0_72] : memref<250x64xf32, #tpu.memory_space<vmem>>, vector<10x64xf32>
    tpu.vector_store %arg17[%c100, %c0_72], %109 {strides = array<i32>} : memref<250x64xf32, #tpu.memory_space<vmem>>, vector<10x64xf32>,
    %111 = vector.extract_strided_slice %104 {offsets = [0, 24], sizes = [10, 64], strides = [1, 1]} : vector<10x96xf32> to vector<10x64xf32>
    %c150 = arith.constant 150 : index
    %c0_73 = arith.constant 0 : index
    %112 = vector.load %arg17[%c150, %c0_73] : memref<250x64xf32, #tpu.memory_space<vmem>>, vector<10x64xf32>
    tpu.vector_store %arg17[%c150, %c0_73], %111 {strides = array<i32>} : memref<250x64xf32, #tpu.memory_space<vmem>>, vector<10x64xf32>,
    %113 = vector.extract_strided_slice %104 {offsets = [0, 32], sizes = [10, 64], strides = [1, 1]} : vector<10x96xf32> to vector<10x64xf32>
    %c200 = arith.constant 200 : index
    %c0_74 = arith.constant 0 : index
    %114 = vector.load %arg17[%c200, %c0_74] : memref<250x64xf32, #tpu.memory_space<vmem>>, vector<10x64xf32>
    tpu.vector_store %arg17[%c200, %c0_74], %113 {strides = array<i32>} : memref<250x64xf32, #tpu.memory_space<vmem>>, vector<10x64xf32>,
    %c1_75 = arith.constant 1 : index
    %c0_76 = arith.constant 0 : index
    %c0_77 = arith.constant 0 : index
    %115 = vector.load %arg7[%c1_75, %c0_76, %c0_77] : memref<5x144x96xf32, #tpu.memory_space<vmem>>, vector<1x144x96xf32>
    %116 = vector.shape_cast %115 : vector<1x144x96xf32> to vector<144x96xf32>
    %cst_78 = arith.constant dense<0.000000e+00> : vector<10x96xf32>
    %117 = tpu.matmul %101, %116, %cst_78 {dimension_numbers = #tpu.dot_dimension_numbers<[1], [0], [0], [1], [0, 0, 1, 1], [], []>} : vector<10x144xf32>, vector<144x96xf32>, vector<10x96xf32> -> vector<10x96xf32>
    %118 = vector.extract_strided_slice %117 {offsets = [0, 0], sizes = [10, 64], strides = [1, 1]} : vector<10x96xf32> to vector<10x64xf32>
    %c10_79 = arith.constant 10 : index
    %c0_80 = arith.constant 0 : index
    %119 = vector.load %arg17[%c10_79, %c0_80] : memref<250x64xf32, #tpu.memory_space<vmem>>, vector<10x64xf32>
    tpu.vector_store %arg17[%c10_79, %c0_80], %118 {strides = array<i32>} : memref<250x64xf32, #tpu.memory_space<vmem>>, vector<10x64xf32>,
    %120 = vector.extract_strided_slice %117 {offsets = [0, 8], sizes = [10, 64], strides = [1, 1]} : vector<10x96xf32> to vector<10x64xf32>
    %c60 = arith.constant 60 : index
    %c0_81 = arith.constant 0 : index
    %121 = vector.load %arg17[%c60, %c0_81] : memref<250x64xf32, #tpu.memory_space<vmem>>, vector<10x64xf32>
    tpu.vector_store %arg17[%c60, %c0_81], %120 {strides = array<i32>} : memref<250x64xf32, #tpu.memory_space<vmem>>, vector<10x64xf32>,
    %122 = vector.extract_strided_slice %117 {offsets = [0, 16], sizes = [10, 64], strides = [1, 1]} : vector<10x96xf32> to vector<10x64xf32>
    %c110 = arith.constant 110 : index
    %c0_82 = arith.constant 0 : index
    %123 = vector.load %arg17[%c110, %c0_82] : memref<250x64xf32, #tpu.memory_space<vmem>>, vector<10x64xf32>
    tpu.vector_store %arg17[%c110, %c0_82], %122 {strides = array<i32>} : memref<250x64xf32, #tpu.memory_space<vmem>>, vector<10x64xf32>,
    %124 = vector.extract_strided_slice %117 {offsets = [0, 24], sizes = [10, 64], strides = [1, 1]} : vector<10x96xf32> to vector<10x64xf32>
    %c160 = arith.constant 160 : index
    %c0_83 = arith.constant 0 : index
    %125 = vector.load %arg17[%c160, %c0_83] : memref<250x64xf32, #tpu.memory_space<vmem>>, vector<10x64xf32>
    tpu.vector_store %arg17[%c160, %c0_83], %124 {strides = array<i32>} : memref<250x64xf32, #tpu.memory_space<vmem>>, vector<10x64xf32>,
    %126 = vector.extract_strided_slice %117 {offsets = [0, 32], sizes = [10, 64], strides = [1, 1]} : vector<10x96xf32> to vector<10x64xf32>
    %c210 = arith.constant 210 : index
    %c0_84 = arith.constant 0 : index
    %127 = vector.load %arg17[%c210, %c0_84] : memref<250x64xf32, #tpu.memory_space<vmem>>, vector<10x64xf32>
    tpu.vector_store %arg17[%c210, %c0_84], %126 {strides = array<i32>} : memref<250x64xf32, #tpu.memory_space<vmem>>, vector<10x64xf32>,
    %c2_85 = arith.constant 2 : index
    %c0_86 = arith.constant 0 : index
    %c0_87 = arith.constant 0 : index
    %128 = vector.load %arg7[%c2_85, %c0_86, %c0_87] : memref<5x144x96xf32, #tpu.memory_space<vmem>>, vector<1x144x96xf32>
    %129 = vector.shape_cast %128 : vector<1x144x96xf32> to vector<144x96xf32>
    %cst_88 = arith.constant dense<0.000000e+00> : vector<10x96xf32>
    %130 = tpu.matmul %101, %129, %cst_88 {dimension_numbers = #tpu.dot_dimension_numbers<[1], [0], [0], [1], [0, 0, 1, 1], [], []>} : vector<10x144xf32>, vector<144x96xf32>, vector<10x96xf32> -> vector<10x96xf32>
    %131 = vector.extract_strided_slice %130 {offsets = [0, 0], sizes = [10, 64], strides = [1, 1]} : vector<10x96xf32> to vector<10x64xf32>
    %c20_89 = arith.constant 20 : index
    %c0_90 = arith.constant 0 : index
    %132 = vector.load %arg17[%c20_89, %c0_90] : memref<250x64xf32, #tpu.memory_space<vmem>>, vector<10x64xf32>
    tpu.vector_store %arg17[%c20_89, %c0_90], %131 {strides = array<i32>} : memref<250x64xf32, #tpu.memory_space<vmem>>, vector<10x64xf32>,
    %133 = vector.extract_strided_slice %130 {offsets = [0, 8], sizes = [10, 64], strides = [1, 1]} : vector<10x96xf32> to vector<10x64xf32>
    %c70 = arith.constant 70 : index
    %c0_91 = arith.constant 0 : index
    %134 = vector.load %arg17[%c70, %c0_91] : memref<250x64xf32, #tpu.memory_space<vmem>>, vector<10x64xf32>
    tpu.vector_store %arg17[%c70, %c0_91], %133 {strides = array<i32>} : memref<250x64xf32, #tpu.memory_space<vmem>>, vector<10x64xf32>,
    %135 = vector.extract_strided_slice %130 {offsets = [0, 16], sizes = [10, 64], strides = [1, 1]} : vector<10x96xf32> to vector<10x64xf32>
    %c120 = arith.constant 120 : index
    %c0_92 = arith.constant 0 : index
    %136 = vector.load %arg17[%c120, %c0_92] : memref<250x64xf32, #tpu.memory_space<vmem>>, vector<10x64xf32>
    tpu.vector_store %arg17[%c120, %c0_92], %135 {strides = array<i32>} : memref<250x64xf32, #tpu.memory_space<vmem>>, vector<10x64xf32>,
    %137 = vector.extract_strided_slice %130 {offsets = [0, 24], sizes = [10, 64], strides = [1, 1]} : vector<10x96xf32> to vector<10x64xf32>
    %c170 = arith.constant 170 : index
    %c0_93 = arith.constant 0 : index
    %138 = vector.load %arg17[%c170, %c0_93] : memref<250x64xf32, #tpu.memory_space<vmem>>, vector<10x64xf32>
    tpu.vector_store %arg17[%c170, %c0_93], %137 {strides = array<i32>} : memref<250x64xf32, #tpu.memory_space<vmem>>, vector<10x64xf32>,
    %139 = vector.extract_strided_slice %130 {offsets = [0, 32], sizes = [10, 64], strides = [1, 1]} : vector<10x96xf32> to vector<10x64xf32>
    %c220 = arith.constant 220 : index
    %c0_94 = arith.constant 0 : index
    %140 = vector.load %arg17[%c220, %c0_94] : memref<250x64xf32, #tpu.memory_space<vmem>>, vector<10x64xf32>
    tpu.vector_store %arg17[%c220, %c0_94], %139 {strides = array<i32>} : memref<250x64xf32, #tpu.memory_space<vmem>>, vector<10x64xf32>,
    %c3_95 = arith.constant 3 : index
    %c0_96 = arith.constant 0 : index
    %c0_97 = arith.constant 0 : index
    %141 = vector.load %arg7[%c3_95, %c0_96, %c0_97] : memref<5x144x96xf32, #tpu.memory_space<vmem>>, vector<1x144x96xf32>
    %142 = vector.shape_cast %141 : vector<1x144x96xf32> to vector<144x96xf32>
    %cst_98 = arith.constant dense<0.000000e+00> : vector<10x96xf32>
    %143 = tpu.matmul %101, %142, %cst_98 {dimension_numbers = #tpu.dot_dimension_numbers<[1], [0], [0], [1], [0, 0, 1, 1], [], []>} : vector<10x144xf32>, vector<144x96xf32>, vector<10x96xf32> -> vector<10x96xf32>
    %144 = vector.extract_strided_slice %143 {offsets = [0, 0], sizes = [10, 64], strides = [1, 1]} : vector<10x96xf32> to vector<10x64xf32>
    %c30 = arith.constant 30 : index
    %c0_99 = arith.constant 0 : index
    %145 = vector.load %arg17[%c30, %c0_99] : memref<250x64xf32, #tpu.memory_space<vmem>>, vector<10x64xf32>
    tpu.vector_store %arg17[%c30, %c0_99], %144 {strides = array<i32>} : memref<250x64xf32, #tpu.memory_space<vmem>>, vector<10x64xf32>,
    %146 = vector.extract_strided_slice %143 {offsets = [0, 8], sizes = [10, 64], strides = [1, 1]} : vector<10x96xf32> to vector<10x64xf32>
    %c80 = arith.constant 80 : index
    %c0_100 = arith.constant 0 : index
    %147 = vector.load %arg17[%c80, %c0_100] : memref<250x64xf32, #tpu.memory_space<vmem>>, vector<10x64xf32>
    tpu.vector_store %arg17[%c80, %c0_100], %146 {strides = array<i32>} : memref<250x64xf32, #tpu.memory_space<vmem>>, vector<10x64xf32>,
    %148 = vector.extract_strided_slice %143 {offsets = [0, 16], sizes = [10, 64], strides = [1, 1]} : vector<10x96xf32> to vector<10x64xf32>
    %c130 = arith.constant 130 : index
    %c0_101 = arith.constant 0 : index
    %149 = vector.load %arg17[%c130, %c0_101] : memref<250x64xf32, #tpu.memory_space<vmem>>, vector<10x64xf32>
    tpu.vector_store %arg17[%c130, %c0_101], %148 {strides = array<i32>} : memref<250x64xf32, #tpu.memory_space<vmem>>, vector<10x64xf32>,
    %150 = vector.extract_strided_slice %143 {offsets = [0, 24], sizes = [10, 64], strides = [1, 1]} : vector<10x96xf32> to vector<10x64xf32>
    %c180 = arith.constant 180 : index
    %c0_102 = arith.constant 0 : index
    %151 = vector.load %arg17[%c180, %c0_102] : memref<250x64xf32, #tpu.memory_space<vmem>>, vector<10x64xf32>
    tpu.vector_store %arg17[%c180, %c0_102], %150 {strides = array<i32>} : memref<250x64xf32, #tpu.memory_space<vmem>>, vector<10x64xf32>,
    %152 = vector.extract_strided_slice %143 {offsets = [0, 32], sizes = [10, 64], strides = [1, 1]} : vector<10x96xf32> to vector<10x64xf32>
    %c230 = arith.constant 230 : index
    %c0_103 = arith.constant 0 : index
    %153 = vector.load %arg17[%c230, %c0_103] : memref<250x64xf32, #tpu.memory_space<vmem>>, vector<10x64xf32>
    tpu.vector_store %arg17[%c230, %c0_103], %152 {strides = array<i32>} : memref<250x64xf32, #tpu.memory_space<vmem>>, vector<10x64xf32>,
    %c4_104 = arith.constant 4 : index
    %c0_105 = arith.constant 0 : index
    %c0_106 = arith.constant 0 : index
    %154 = vector.load %arg7[%c4_104, %c0_105, %c0_106] : memref<5x144x96xf32, #tpu.memory_space<vmem>>, vector<1x144x96xf32>
    %155 = vector.shape_cast %154 : vector<1x144x96xf32> to vector<144x96xf32>
    %cst_107 = arith.constant dense<0.000000e+00> : vector<10x96xf32>
    %156 = tpu.matmul %101, %155, %cst_107 {dimension_numbers = #tpu.dot_dimension_numbers<[1], [0], [0], [1], [0, 0, 1, 1], [], []>} : vector<10x144xf32>, vector<144x96xf32>, vector<10x96xf32> -> vector<10x96xf32>
    %157 = vector.extract_strided_slice %156 {offsets = [0, 0], sizes = [10, 64], strides = [1, 1]} : vector<10x96xf32> to vector<10x64xf32>
    %c40 = arith.constant 40 : index
    %c0_108 = arith.constant 0 : index
    %158 = vector.load %arg17[%c40, %c0_108] : memref<250x64xf32, #tpu.memory_space<vmem>>, vector<10x64xf32>
    tpu.vector_store %arg17[%c40, %c0_108], %157 {strides = array<i32>} : memref<250x64xf32, #tpu.memory_space<vmem>>, vector<10x64xf32>,
    %159 = vector.extract_strided_slice %156 {offsets = [0, 8], sizes = [10, 64], strides = [1, 1]} : vector<10x96xf32> to vector<10x64xf32>
    %c90 = arith.constant 90 : index
    %c0_109 = arith.constant 0 : index
    %160 = vector.load %arg17[%c90, %c0_109] : memref<250x64xf32, #tpu.memory_space<vmem>>, vector<10x64xf32>
    tpu.vector_store %arg17[%c90, %c0_109], %159 {strides = array<i32>} : memref<250x64xf32, #tpu.memory_space<vmem>>, vector<10x64xf32>,
    %161 = vector.extract_strided_slice %156 {offsets = [0, 16], sizes = [10, 64], strides = [1, 1]} : vector<10x96xf32> to vector<10x64xf32>
    %c140 = arith.constant 140 : index
    %c0_110 = arith.constant 0 : index
    %162 = vector.load %arg17[%c140, %c0_110] : memref<250x64xf32, #tpu.memory_space<vmem>>, vector<10x64xf32>
    tpu.vector_store %arg17[%c140, %c0_110], %161 {strides = array<i32>} : memref<250x64xf32, #tpu.memory_space<vmem>>, vector<10x64xf32>,
    %163 = vector.extract_strided_slice %156 {offsets = [0, 24], sizes = [10, 64], strides = [1, 1]} : vector<10x96xf32> to vector<10x64xf32>
    %c190 = arith.constant 190 : index
    %c0_111 = arith.constant 0 : index
    %164 = vector.load %arg17[%c190, %c0_111] : memref<250x64xf32, #tpu.memory_space<vmem>>, vector<10x64xf32>
    tpu.vector_store %arg17[%c190, %c0_111], %163 {strides = array<i32>} : memref<250x64xf32, #tpu.memory_space<vmem>>, vector<10x64xf32>,
    %165 = vector.extract_strided_slice %156 {offsets = [0, 32], sizes = [10, 64], strides = [1, 1]} : vector<10x96xf32> to vector<10x64xf32>
    %c240 = arith.constant 240 : index
    %c0_112 = arith.constant 0 : index
    %166 = vector.load %arg17[%c240, %c0_112] : memref<250x64xf32, #tpu.memory_space<vmem>>, vector<10x64xf32>
    tpu.vector_store %arg17[%c240, %c0_112], %165 {strides = array<i32>} : memref<250x64xf32, #tpu.memory_space<vmem>>, vector<10x64xf32>,
    %c0_113 = arith.constant 0 : index
    %c0_114 = arith.constant 0 : index
    %167 = vector.load %arg8[%c0_113, %c0_114] : memref<20x250xf32, #tpu.memory_space<vmem>>, vector<20x250xf32>
    %c0_115 = arith.constant 0 : index
    %c0_116 = arith.constant 0 : index
    %168 = vector.load %arg17[%c0_115, %c0_116] : memref<250x64xf32, #tpu.memory_space<vmem>>, vector<250x64xf32>
    %cst_117 = arith.constant dense<0.000000e+00> : vector<20x64xf32>
    %169 = tpu.matmul %167, %168, %cst_117 {dimension_numbers = #tpu.dot_dimension_numbers<[1], [0], [0], [1], [0, 0, 1, 1], [], []>} : vector<20x250xf32>, vector<250x64xf32>, vector<20x64xf32> -> vector<20x64xf32>
    %c0_118 = arith.constant 0 : index
    %c0_119 = arith.constant 0 : index
    %170 = vector.load %arg9[%c0_118, %c0_119] : memref<20x1xf32, #tpu.memory_space<vmem>>, vector<20x1xf32>
    %171 = vector.broadcast %170 : vector<20x1xf32> to vector<20x64xf32>
    %172 = arith.addf %169, %171 : vector<20x64xf32>
    %cst_120 = arith.constant 0.000000e+00 : f32
    %173 = vector.broadcast %cst_120 : f32 to vector<20x64xf32>
    %174 = arith.maximumf %172, %173 : vector<20x64xf32>
    %c0_121 = arith.constant 0 : index
    %c0_122 = arith.constant 0 : index
    %c0_123 = arith.constant 0 : index
    %175 = vector.load %arg10[%c0_121, %c0_122, %c0_123] : memref<4x64x16xf32, #tpu.memory_space<vmem>>, vector<1x64x16xf32>
    %176 = vector.shape_cast %175 : vector<1x64x16xf32> to vector<64x16xf32>
    %cst_124 = arith.constant dense<0.000000e+00> : vector<20x16xf32>
    %177 = tpu.matmul %174, %176, %cst_124 {dimension_numbers = #tpu.dot_dimension_numbers<[1], [0], [0], [1], [0, 0, 1, 1], [], []>} : vector<20x64xf32>, vector<64x16xf32>, vector<20x16xf32> -> vector<20x16xf32>
    %c1_125 = arith.constant 1 : index
    %c0_126 = arith.constant 0 : index
    %c0_127 = arith.constant 0 : index
    %178 = vector.load %arg10[%c1_125, %c0_126, %c0_127] : memref<4x64x16xf32, #tpu.memory_space<vmem>>, vector<1x64x16xf32>
    %179 = vector.shape_cast %178 : vector<1x64x16xf32> to vector<64x16xf32>
    %cst_128 = arith.constant dense<0.000000e+00> : vector<20x16xf32>
    %180 = tpu.matmul %174, %179, %cst_128 {dimension_numbers = #tpu.dot_dimension_numbers<[1], [0], [0], [1], [0, 0, 1, 1], [], []>} : vector<20x64xf32>, vector<64x16xf32>, vector<20x16xf32> -> vector<20x16xf32>
    %181 = arith.maximumf %177, %180 : vector<20x16xf32>
    %c2_129 = arith.constant 2 : index
    %c0_130 = arith.constant 0 : index
    %c0_131 = arith.constant 0 : index
    %182 = vector.load %arg10[%c2_129, %c0_130, %c0_131] : memref<4x64x16xf32, #tpu.memory_space<vmem>>, vector<1x64x16xf32>
    %183 = vector.shape_cast %182 : vector<1x64x16xf32> to vector<64x16xf32>
    %cst_132 = arith.constant dense<0.000000e+00> : vector<20x16xf32>
    %184 = tpu.matmul %174, %183, %cst_132 {dimension_numbers = #tpu.dot_dimension_numbers<[1], [0], [0], [1], [0, 0, 1, 1], [], []>} : vector<20x64xf32>, vector<64x16xf32>, vector<20x16xf32> -> vector<20x16xf32>
    %185 = arith.maximumf %181, %184 : vector<20x16xf32>
    %c3_133 = arith.constant 3 : index
    %c0_134 = arith.constant 0 : index
    %c0_135 = arith.constant 0 : index
    %186 = vector.load %arg10[%c3_133, %c0_134, %c0_135] : memref<4x64x16xf32, #tpu.memory_space<vmem>>, vector<1x64x16xf32>
    %187 = vector.shape_cast %186 : vector<1x64x16xf32> to vector<64x16xf32>
    %cst_136 = arith.constant dense<0.000000e+00> : vector<20x16xf32>
    %188 = tpu.matmul %174, %187, %cst_136 {dimension_numbers = #tpu.dot_dimension_numbers<[1], [0], [0], [1], [0, 0, 1, 1], [], []>} : vector<20x64xf32>, vector<64x16xf32>, vector<20x16xf32> -> vector<20x16xf32>
    %189 = arith.maximumf %185, %188 : vector<20x16xf32>
    %c0_137 = arith.constant 0 : index
    %c0_138 = arith.constant 0 : index
    %190 = vector.load %arg11[%c0_137, %c0_138] : memref<16x320xf32, #tpu.memory_space<vmem>>, vector<16x320xf32>
    %c0_139 = arith.constant 0 : index
    %c0_140 = arith.constant 0 : index
    %191 = vector.load %arg12[%c0_139, %c0_140] : memref<20x320xf32, #tpu.memory_space<vmem>>, vector<20x320xf32>
    %cst_141 = arith.constant dense<0.000000e+00> : vector<20x320xf32>
    %192 = tpu.matmul %189, %190, %cst_141 {dimension_numbers = #tpu.dot_dimension_numbers<[1], [0], [0], [1], [0, 0, 1, 1], [], []>} : vector<20x16xf32>, vector<16x320xf32>, vector<20x320xf32> -> vector<20x320xf32>
    %193 = arith.mulf %192, %191 : vector<20x320xf32>
    %cst_142 = arith.constant dense<0.000000e+00> : vector<320xf32>
    %194 = vector.multi_reduction <add>, %193, %cst_142 [0] : vector<20x320xf32> to vector<320xf32>
    %195 = vector.shape_cast %194 : vector<320xf32> to vector<1x320xf32>
    %c0_143 = arith.constant 0 : index
    %c0_144 = arith.constant 0 : index
    %196 = vector.load %arg13[%c0_143, %c0_144] : memref<320x10xf32, #tpu.memory_space<vmem>>, vector<320x10xf32>
    %cst_145 = arith.constant dense<0.000000e+00> : vector<1x10xf32>
    %197 = tpu.matmul %195, %196, %cst_145 {dimension_numbers = #tpu.dot_dimension_numbers<[1], [0], [0], [1], [0, 0, 1, 1], [], []>} : vector<1x320xf32>, vector<320x10xf32>, vector<1x10xf32> -> vector<1x10xf32>
    %c0_146 = arith.constant 0 : index
    %c0_147 = arith.constant 0 : index
    %198 = vector.load %arg14[%c0_146, %c0_147] : memref<1x10xf32, #tpu.memory_space<vmem>>, vector<1x10xf32>
    %199 = arith.addf %197, %198 : vector<1x10xf32>
    %c0_148 = arith.constant 0 : index
    %c0_149 = arith.constant 0 : index
    %c0_150 = arith.constant 0 : index
    %200 = vector.load %arg15[%c0_148, %c0_149, %c0_150] : memref<1x1x10xf32, #tpu.memory_space<vmem>>, vector<1x1x10xf32>
    %201 = vector.shape_cast %200 : vector<1x1x10xf32> to vector<1x10xf32>
    %202 = vector.shape_cast %199 : vector<1x10xf32> to vector<1x1x10xf32>
    tpu.vector_store %arg15[%c0_148, %c0_149, %c0_150], %202 {strides = array<i32>} : memref<1x1x10xf32, #tpu.memory_space<vmem>>, vector<1x1x10xf32>,
    return
  }
  func.func @transform_0(%arg0: i32) -> (i32, i32, i32) {
    %c0_i32 = arith.constant 0 : i32
    %c0_i32_0 = arith.constant 0 : i32
    %c0_i32_1 = arith.constant 0 : i32
    return %arg0, %c0_i32, %c0_i32_0 : i32, i32, i32
  }
  func.func @transform_1(%arg0: i32) -> (i32, i32) {
    %c0_i32 = arith.constant 0 : i32
    %c0_i32_0 = arith.constant 0 : i32
    %c0_i32_1 = arith.constant 0 : i32
    return %c0_i32, %c0_i32_0 : i32, i32
  }
  func.func @transform_2(%arg0: i32) -> (i32, i32) {
    %c0_i32 = arith.constant 0 : i32
    %c0_i32_0 = arith.constant 0 : i32
    %c0_i32_1 = arith.constant 0 : i32
    return %c0_i32, %c0_i32_0 : i32, i32
  }
  func.func @transform_3(%arg0: i32) -> (i32, i32) {
    %c0_i32 = arith.constant 0 : i32
    %c0_i32_0 = arith.constant 0 : i32
    %c0_i32_1 = arith.constant 0 : i32
    return %c0_i32, %c0_i32_0 : i32, i32
  }
  func.func @transform_4(%arg0: i32) -> (i32, i32) {
    %c0_i32 = arith.constant 0 : i32
    %c0_i32_0 = arith.constant 0 : i32
    %c0_i32_1 = arith.constant 0 : i32
    return %c0_i32, %c0_i32_0 : i32, i32
  }
  func.func @transform_5(%arg0: i32) -> (i32, i32, i32) {
    %c0_i32 = arith.constant 0 : i32
    %c0_i32_0 = arith.constant 0 : i32
    %c0_i32_1 = arith.constant 0 : i32
    %c0_i32_2 = arith.constant 0 : i32
    return %c0_i32, %c0_i32_0, %c0_i32_1 : i32, i32, i32
  }
  func.func @transform_6(%arg0: i32) -> (i32, i32, i32) {
    %c0_i32 = arith.constant 0 : i32
    %c0_i32_0 = arith.constant 0 : i32
    %c0_i32_1 = arith.constant 0 : i32
    %c0_i32_2 = arith.constant 0 : i32
    return %c0_i32, %c0_i32_0, %c0_i32_1 : i32, i32, i32
  }
  func.func @transform_7(%arg0: i32) -> (i32, i32) {
    %c0_i32 = arith.constant 0 : i32
    %c0_i32_0 = arith.constant 0 : i32
    %c0_i32_1 = arith.constant 0 : i32
    return %c0_i32, %c0_i32_0 : i32, i32
  }
  func.func @transform_8(%arg0: i32) -> (i32, i32) {
    %c0_i32 = arith.constant 0 : i32
    %c0_i32_0 = arith.constant 0 : i32
    %c0_i32_1 = arith.constant 0 : i32
    return %c0_i32, %c0_i32_0 : i32, i32
  }
  func.func @transform_9(%arg0: i32) -> (i32, i32, i32) {
    %c0_i32 = arith.constant 0 : i32
    %c0_i32_0 = arith.constant 0 : i32
    %c0_i32_1 = arith.constant 0 : i32
    %c0_i32_2 = arith.constant 0 : i32
    return %c0_i32, %c0_i32_0, %c0_i32_1 : i32, i32, i32
  }
  func.func @transform_10(%arg0: i32) -> (i32, i32) {
    %c0_i32 = arith.constant 0 : i32
    %c0_i32_0 = arith.constant 0 : i32
    %c0_i32_1 = arith.constant 0 : i32
    return %c0_i32, %c0_i32_0 : i32, i32
  }
  func.func @transform_11(%arg0: i32) -> (i32, i32) {
    %c0_i32 = arith.constant 0 : i32
    %c0_i32_0 = arith.constant 0 : i32
    %c0_i32_1 = arith.constant 0 : i32
    return %c0_i32, %c0_i32_0 : i32, i32
  }
  func.func @transform_12(%arg0: i32) -> (i32, i32) {
    %c0_i32 = arith.constant 0 : i32
    %c0_i32_0 = arith.constant 0 : i32
    %c0_i32_1 = arith.constant 0 : i32
    return %c0_i32, %c0_i32_0 : i32, i32
  }
  func.func @transform_13(%arg0: i32) -> (i32, i32) {
    %c0_i32 = arith.constant 0 : i32
    %c0_i32_0 = arith.constant 0 : i32
    %c0_i32_1 = arith.constant 0 : i32
    return %c0_i32, %c0_i32_0 : i32, i32
  }
  func.func @transform_14(%arg0: i32) -> (i32, i32, i32) {
    %c0_i32 = arith.constant 0 : i32
    %c0_i32_0 = arith.constant 0 : i32
    %c0_i32_1 = arith.constant 0 : i32
    return %arg0, %c0_i32, %c0_i32_0 : i32, i32, i32
  }
}

</mosaic_0001>

<bundles_post_ra>
// kernel: simple_convnet_forward.1
= control target key start
LH: loop header
LB: loop body
LE: loop exit
PB: predicated region body
PF: predicated region fallthrough
CT: control target
= control target key end

     0   :  { %s10078_s0 = inlined_call_operand.vmem [shape: f32[2,28,28], index: 0, kind: input, shape index: {}]   ;;  %s10079_s1 = inlined_call_operand.vmem [shape: f32[10,25], index: 1, kind: input, shape index: {}]   ;;  %s10080_s2 = inlined_call_operand.vmem [shape: f32[10,1], index: 2, kind: input, shape index: {}]   ;;  %s10081_s3 = inlined_call_operand.hbm [shape: f32[24,672], index: 3, kind: input, shape index: {}]   ;;  %s10082_s4 = inlined_call_operand.hbm [shape: f32[28,672], index: 4, kind: input, shape index: {}]   ;;  %s10083_s5 = inlined_call_operand.hbm [shape: f32[4,576,144], index: 5, kind: input, shape index: {}]   ;;  %s10084_s6 = inlined_call_operand.hbm [shape: f32[5,144,96], index: 6, kind: input, shape index: {}]   ;;  %s10085_s7 = inlined_call_operand.vmem [shape: f32[20,250], index: 7, kind: input, shape index: {}]   ;;  %s10086_s8 = inlined_call_operand.vmem [shape: f32[20,1], index: 8, kind: input, shape index: {}]   ;;  %s10087_s9 = inlined_call_operand.hbm [shape: f32[4,64,16], index: 9, kind: input, shape index: {}]   ;;  %s10088_s10 = inlined_call_operand.hbm [shape: f32[16,320], index: 10, kind: input, shape index: {}]   ;;  %s10089_s11 = inlined_call_operand.hbm [shape: f32[20,320], index: 11, kind: input, shape index: {}]   ;;  %s10090_s12 = inlined_call_operand.vmem [shape: f32[320,10], index: 12, kind: input, shape index: {}]   ;;  %s10091_s13 = inlined_call_operand.hbm [shape: f32[1,10], index: 13, kind: input, shape index: {}]   ;;  %s10092_s14 = inlined_call_operand.hbm [shape: f32[2,1,10], index: 14, kind: output, shape index: {}]  }
   0x1   :  { %10113 = sst [smem:[#allocation33_spill]] %s10082_s4 }
   0x2   :  { %10114 = sst [smem:[#allocation34_spill]] %s10084_s6 }
   0x3   :  { %10115 = sst [smem:[#allocation35_spill]] %s10090_s12 }
   0x4   :  { %10116 = sst [smem:[#allocation36_spill]] %s10092_s14 }
   0x5   :  { %19 = vsyncpa [#allocation5], 0 }
   0x6   :  { %20 = vsyncpa [#allocation8], 0 }
   0x7   :  { %21 = vsyncpa [#allocation11], 0 }
   0x8   :  { %22 = vsyncpa [#allocation14], 0 }
   0x9   :  { %23 = vsyncpa [#allocation17], 0 }
   0xa   :  { %24 = vsyncpa [#allocation6], 0 }
   0xb   :  { %26 = vsyncpa [#allocation6 + $0x1], 0  ;;  %s8490_s29 = smov 0   ;;  %s8492_s30 = smov 0  }
   0xc   :  { %s8494_s15 = smov 0   ;;  %s8496_s16 = smov 0  }
   0xd LB: > { %10117 = sst [smem:[#allocation25_spill]] %s8367_s29  ;;  %s8511_s17 = sadd.s32 4294967295, %s8379_s16   ;;  %s8379_s16 = sphi %s8496_s16, %s10162_s16   ;;  %s8375_s15 = sphi %s8494_s15, %s10165_s15   ;;  %s8371_s30 = sphi %s8492_s30, %s10164_s30   ;;  %s8367_s29 = sphi %s8490_s29, %s10163_s29  }
   0xe   : > { %10118 = sst [smem:[#allocation26_spill]] %s8371_s30  ;;  %s6527_s18 = sadd.s32 4294967294, %s8379_s16  }
   0xf   : > { %10119 = sst [smem:[#allocation27_spill]] %s8375_s15  ;;  %s8515_s19 = sadd.s32 1, %s8379_s16  }
  0x10   : > { %10120 = sst [smem:[#allocation28_spill]] %s8379_s16  ;;  %s338_s20 = sadd.s32 1, %s8375_s15 }
  0x11   : > { %10121 = sst [smem:[#allocation29_spill]] %s8515_s19  ;;  %s335_s21 = ssub.s32 %s8379_s16, %s8515_s19 }
  0x12   : > { %p348_p0 = scmp.ne.s32.totalorder %s8375_s15, %s8371_s30  ;;  %p336_p1 = scmp.eq.s32.totalorder %s335_s21, 0 }
  0x13   : > { %p349_p2 = scmp.eq.s32.totalorder %s8511_s17, 1  ;;  %p354_p3 = scmp.ne.s32.totalorder %s8371_s30, %s8367_s29 }
  0x14   : > { %p355_p4 = scmp.eq.s32.totalorder %s6527_s18, 1  ;;  %p6528_p7 = scmp.ge.s32.totalorder %s8379_s16, 1 }
  0x15   : > { %s8526_s22 = scalar_select %p336_p1, %s8375_s15, %s338_s20  }
  0x16   : > { %p8528_p5 = por %p349_p2, %p348_p0  ;;  %p8532_p6 = por %p355_p4, %p354_p3 }
  0x17   : > { %10122 = sst [smem:[#allocation30_spill]] %s8526_s22  ;;  %p362_p8 = scmp.lt.s32.totalorder %s8379_s16, 3 }
  0x18   : > { %s10123_s23 = scalar_select %p8528_p5, 1, 0 }
  0x19   : > { %s10125_s24 = scalar_select %p8532_p6, 1, 0 }
  0x1a   : > { %10124 = sst [smem:[#allocation31_spill]] %s10123_s23  ;;  %p10098_p9 = scmp.eq.s32.totalorder %s8511_s17, 0 }
  0x1b   : > { %10126 = sst [smem:[#allocation32_spill]] %s10125_s24  ;;  %p8539_p10 = pnand %p6528_p7, %p362_p8 }
  0x1c   : > { %s8381_s26 = smov [#allocation7]   ;;  %s8382_s18 = smov [#allocation10]  }
  0x1d   : > { %s10127_s25 = scalar_select %p8539_p10, 1, 0 }
  0x1e   : > { %p7951_p11 = pneg %p8539_p10  ;;  %s393_s27 = sshll.u32 %s8381_s26, 4  ;;  %s394_s27 = int_to_ptr.vmem [resolvable:$true] %s393_s27 }
  0x1f   : > { %s419_s20 = sshll.u32 %s8382_s18, 4  ;;  %s10129_s4 = sld [smem:[#allocation33_spill]]  ;;  %s8551_s20 = int_to_ptr.vmem [resolvable:$true] %s419_s20 }
  0x20   : > { %p8547_p12 = pnand %p10098_p9, %p7951_p11 }
  0x22   : > { %p8561_p0 = pneg %p8547_p12 }
  0x25   : > { %s8073_s15 = scalar_lea.hbm %s10129_s4, 3072 }
  0x26   : > { %p8074_p13 = scmp.ne.s32.totalorder %s10129_s4, %s8073_s15  ;;  %p8080_p3 = scmp.lt.u32.totalorder %s8073_s15, %s10129_s4 }
  0x28   : > { %p8076_p1 = pnand %p8561_p0, %p8074_p13 }
  0x2a   : > { %p8077_p2 = pneg %p8076_p1 }
  0x2c   : > { %p8082_p4 = pnand %p8080_p3, %p8077_p2 }
  0x2e   : > { %8085 = shalt.err (!%p8082_p4)
}
  0x2f   : > { %s8086_s22 = scalar_lea.vmem %s394_s27, 3072  ;;  %p8094_p9 = scmp.lt.s32.totalorder %s394_s27, %s394_s27 }
  0x30   : > { %p8087_p7 = scmp.ne.s32.totalorder %s394_s27, %s8086_s22  ;;  %p8095_p6 = scmp.lt.s32.totalorder %s8086_s22, %s8086_s22 }
  0x32   : > { %p8089_p8 = pnand %p8087_p7, %p8561_p0  ;;  %p8096_p5 = por %p8095_p6, %p8094_p9 }
  0x34   : > { %p8090_p11 = pneg %p8089_p8 }
  0x36   : > { %p8097_p10 = pnand %p8096_p5, %p8090_p11 }
  0x38   : > { %8100 = shalt.err (!%p8097_p10)
}
  0x39   : > { %s10106_s19 = smov 768   ;;  %s10107_s24 = smov 48  }
  0x3a   : > { %7957 = dma.hbm_to_vmem [thread:$0]  (!%p8547_p12), %s10129_s4, 3072, %s394_s27, [#allocation8], %s10106_s19, %s10106_s19, %s10107_s24  }
  0x3b   : > { %s10131_s6 = sld [smem:[#allocation34_spill]] }
  0x41   : > { %s8101_s16 = scalar_lea.hbm %s10131_s6, 11520 }
  0x42   : > { %p8102_p5 = scmp.ne.s32.totalorder %s10131_s6, %s8101_s16  ;;  %p8108_p10 = scmp.lt.u32.totalorder %s8101_s16, %s10131_s6 }
  0x44   : > { %p8104_p6 = pnand %p8102_p5, %p8561_p0 }
  0x46   : > { %p8105_p9 = pneg %p8104_p6 }
  0x48   : > { %p8110_p13 = pnand %p8108_p10, %p8105_p9 }
  0x4a   : > { %8113 = shalt.err (!%p8110_p13)
}
  0x4b   : > { %s8114_s27 = scalar_lea.vmem %s8551_s20, 11520  ;;  %p8122_p4 = scmp.lt.s32.totalorder %s8551_s20, %s8551_s20 }
  0x4c   : > { %p8115_p1 = scmp.ne.s32.totalorder %s8551_s20, %s8114_s27  ;;  %p8123_p7 = scmp.lt.s32.totalorder %s8114_s27, %s8114_s27 }
  0x4e   : > { %p8117_p2 = pnand %p8115_p1, %p8561_p0  ;;  %p8124_p8 = por %p8123_p7, %p8122_p4 }
  0x50   : > { %p8118_p3 = pneg %p8117_p2 }
  0x52   : > { %p8125_p11 = pnand %p8124_p8, %p8118_p3 }
  0x54   : > { %8128 = shalt.err (!%p8125_p11)
}
  0x55   : > { %s10108_s14 = smov 128   ;;  %s10109_s30 = smov 8  }
  0x56   : > { %7963 = dma.hbm_to_vmem [thread:$0]  (!%p8547_p12), %s10131_s6, 11520, %s8551_s20, [#allocation11], %s10108_s14, %s10108_s14, %s10109_s30  }
  0x57   : > { %s8387_s29 = smov [#allocation13]   ;;  %s8129_s22 = scalar_lea.hbm %s10088_s10, 768 }
  0x58   : > { %s451_s15 = sshll.u32 %s8387_s29, 4  ;;  %p8130_p5 = scmp.ne.s32.totalorder %s10088_s10, %s8129_s22  ;;  %s452_s15 = int_to_ptr.vmem [resolvable:$true] %s451_s15 }
  0x59   : > { %p8136_p10 = scmp.lt.u32.totalorder %s8129_s22, %s10088_s10 }
  0x5a   : > { %p8132_p6 = pnand %p8130_p5, %p8561_p0 }
  0x5c   : > { %p8133_p9 = pneg %p8132_p6 }
  0x5e   : > { %p8138_p13 = pnand %p8136_p10, %p8133_p9 }
  0x60   : > { %8141 = shalt.err (!%p8138_p13)
}
  0x61   : > { %s8142_s20 = scalar_lea.vmem %s452_s15, 768  ;;  %p8150_p4 = scmp.lt.s32.totalorder %s452_s15, %s452_s15 }
  0x62   : > { %p8143_p1 = scmp.ne.s32.totalorder %s452_s15, %s8142_s20  ;;  %p8151_p7 = scmp.lt.s32.totalorder %s8142_s20, %s8142_s20 }
  0x64   : > { %p8145_p2 = pnand %p8143_p1, %p8561_p0  ;;  %p8152_p8 = por %p8151_p7, %p8150_p4 }
  0x66   : > { %p8146_p3 = pneg %p8145_p2 }
  0x68   : > { %p8153_p11 = pnand %p8152_p8, %p8146_p3 }
  0x6a   : > { %8156 = shalt.err (!%p8153_p11)
}
  0x6b   : > { %s10111_s19 = smov 384   ;;  %s10112_s16 = smov 24  }
  0x6c   : > { %7969 = dma.hbm_to_vmem [thread:$0]  (!%p8547_p12), %s10088_s10, 768, %s452_s15, [#allocation14], %s10111_s19, %s10111_s19, %s10112_s16  }
  0x6d   : > { %s8390_s23 = smov [#allocation4]   ;;  %s8391_s21 = smov [#allocation9]  }
  0x6e   : > { %s380_s29 = sshll.u32 %s8390_s23, 4  ;;  %s406_s18 = sshll.u32 %s8391_s21, 4  ;;  %s381_s29 = int_to_ptr.vmem [resolvable:$true] %s380_s29  ;;  %s407_s18 = int_to_ptr.vmem [resolvable:$true] %s406_s18 }
  0x6f   : > { %s8157_s20 = scalar_lea.hbm %s10081_s3, 2304 }
  0x70   : > { %p8158_p5 = scmp.ne.s32.totalorder %s10081_s3, %s8157_s20  ;;  %p8164_p10 = scmp.lt.u32.totalorder %s8157_s20, %s10081_s3 }
  0x72   : > { %p8160_p6 = pnand %p8158_p5, %p8561_p0 }
  0x74   : > { %p8161_p9 = pneg %p8160_p6 }
  0x76   : > { %p8166_p13 = pnand %p8164_p10, %p8161_p9 }
  0x78   : > { %8169 = shalt.err (!%p8166_p13)
}
  0x79   : > { %s8170_s15 = scalar_lea.vmem %s381_s29, 2304  ;;  %p8178_p4 = scmp.lt.s32.totalorder %s381_s29, %s381_s29 }
  0x7a   : > { %p8171_p1 = scmp.ne.s32.totalorder %s381_s29, %s8170_s15  ;;  %p8179_p7 = scmp.lt.s32.totalorder %s8170_s15, %s8170_s15 }
  0x7c   : > { %p8173_p2 = pnand %p8171_p1, %p8561_p0  ;;  %p8180_p8 = por %p8179_p7, %p8178_p4 }
  0x7e   : > { %p8174_p3 = pneg %p8173_p2 }
  0x80   : > { %p8181_p11 = pnand %p8180_p8, %p8174_p3 }
  0x82   : > { %8184 = shalt.err (!%p8181_p11)
}
  0x83   : > { %s10132_s14 = smov 48   ;;  %s10133_s30 = smov 768  }
  0x84   : > { %7954 = dma.hbm_to_vmem [thread:$0]  (!%p8547_p12), %s10081_s3, 2304, %s381_s29, [#allocation5], %s10133_s30, %s10133_s30, %s10132_s14  }
  0x85   : > { %s8185_s23 = scalar_lea.hbm %s10083_s5, 73728 }
  0x86   : > { %p8186_p5 = scmp.ne.s32.totalorder %s10083_s5, %s8185_s23  ;;  %p8192_p10 = scmp.lt.u32.totalorder %s8185_s23, %s10083_s5 }
  0x88   : > { %p8188_p6 = pnand %p8186_p5, %p8561_p0 }
  0x8a   : > { %p8189_p9 = pneg %p8188_p6 }
  0x8c   : > { %p8194_p13 = pnand %p8192_p10, %p8189_p9 }
  0x8e   : > { %8197 = shalt.err (!%p8194_p13)
}
  0x8f   : > { %s8198_s15 = scalar_lea.vmem %s407_s18, 73728  ;;  %p8206_p4 = scmp.lt.s32.totalorder %s407_s18, %s407_s18 }
  0x90   : > { %p8199_p1 = scmp.ne.s32.totalorder %s407_s18, %s8198_s15  ;;  %p8207_p7 = scmp.lt.s32.totalorder %s8198_s15, %s8198_s15 }
  0x92   : > { %p8201_p2 = pnand %p8199_p1, %p8561_p0  ;;  %p8208_p8 = por %p8207_p7, %p8206_p4 }
  0x94   : > { %p8202_p3 = pneg %p8201_p2 }
  0x96   : > { %p8209_p11 = pnand %p8208_p8, %p8202_p3 }
  0x98   : > { %8212 = shalt.err (!%p8209_p11)
}
  0x99   : > { %s8392_s29 = smov 256   ;;  %s8393_s14 = smov 16  }
  0x9a   : > { %7960 = dma.hbm_to_vmem [thread:$0]  (!%p8547_p12), %s10083_s5, 73728, %s407_s18, [#allocation8], %s8392_s29, %s8392_s29, %s8393_s14  }
  0x9b   : > { %s8394_s12 = smov [#allocation12]   ;;  %s8395_s24 = smov [#allocation15]  }
  0x9c   : > { %s438_s4 = sshll.u32 %s8394_s12, 4  ;;  %s464_s23 = sshll.u32 %s8395_s24, 4  ;;  %s439_s4 = int_to_ptr.vmem [resolvable:$true] %s438_s4  ;;  %s465_s23 = int_to_ptr.vmem [resolvable:$true] %s464_s23 }
  0x9d   : > { %s8213_s27 = scalar_lea.hbm %s10087_s9, 4096 }
  0x9e   : > { %p8214_p5 = scmp.ne.s32.totalorder %s10087_s9, %s8213_s27  ;;  %p8220_p10 = scmp.lt.u32.totalorder %s8213_s27, %s10087_s9 }
  0xa0   : > { %p8216_p6 = pnand %p8214_p5, %p8561_p0 }
  0xa2   : > { %p8217_p9 = pneg %p8216_p6 }
  0xa4   : > { %p8222_p13 = pnand %p8220_p10, %p8217_p9 }
  0xa6   : > { %8225 = shalt.err (!%p8222_p13)
}
  0xa7   : > { %s8226_s18 = scalar_lea.vmem %s439_s4, 4096  ;;  %p8234_p4 = scmp.lt.s32.totalorder %s439_s4, %s439_s4 }
  0xa8   : > { %p8227_p1 = scmp.ne.s32.totalorder %s439_s4, %s8226_s18  ;;  %p8235_p7 = scmp.lt.s32.totalorder %s8226_s18, %s8226_s18 }
  0xaa   : > { %p8229_p2 = pnand %p8227_p1, %p8561_p0  ;;  %p8236_p8 = por %p8235_p7, %p8234_p4 }
  0xac   : > { %p8230_p3 = pneg %p8229_p2 }
  0xae   : > { %p8237_p11 = pnand %p8236_p8, %p8230_p3 }
  0xb0   : > { %8240 = shalt.err (!%p8237_p11)
}
  0xb1   : > { %s10134_s29 = smov 8   ;;  %s10135_s14 = smov 128  }
  0xb2   : > { %7966 = dma.hbm_to_vmem [thread:$0]  (!%p8547_p12), %s10087_s9, 4096, %s439_s4, [#allocation11], %s10135_s14, %s10135_s14, %s10134_s29  }
  0xb3   : > { %s8241_s12 = scalar_lea.hbm %s10089_s11, 1152 }
  0xb4   : > { %p8242_p5 = scmp.ne.s32.totalorder %s10089_s11, %s8241_s12  ;;  %p8248_p10 = scmp.lt.u32.totalorder %s8241_s12, %s10089_s11 }
  0xb6   : > { %p8244_p6 = pnand %p8242_p5, %p8561_p0 }
  0xb8   : > { %p8245_p9 = pneg %p8244_p6 }
  0xba   : > { %p8250_p13 = pnand %p8248_p10, %p8245_p9 }
  0xbc   : > { %8253 = shalt.err (!%p8250_p13)
}
  0xbd   : > { %s8254_s20 = scalar_lea.vmem %s465_s23, 1152  ;;  %p8262_p4 = scmp.lt.s32.totalorder %s465_s23, %s465_s23 }
  0xbe   : > { %p8255_p1 = scmp.ne.s32.totalorder %s465_s23, %s8254_s20  ;;  %p8263_p7 = scmp.lt.s32.totalorder %s8254_s20, %s8254_s20 }
  0xc0   : > { %p8257_p2 = pnand %p8255_p1, %p8561_p0  ;;  %p8264_p8 = por %p8263_p7, %p8262_p4 }
  0xc2   : > { %p8258_p3 = pneg %p8257_p2 }
  0xc4   : > { %p8265_p11 = pnand %p8264_p8, %p8258_p3 }
  0xc6   : > { %8268 = shalt.err (!%p8265_p11)
}
  0xc7   : > { %s10136_s4 = smov 24   ;;  %s10137_s15 = smov 384  }
  0xc8   : > { %7972 = dma.hbm_to_vmem [thread:$0]  (!%p8547_p12), %s10089_s11, 1152, %s465_s23, [#allocation14], %s10137_s15, %s10137_s15, %s10136_s4  }
  0xc9   : > { %s8396_s14 = smov [#allocation16]   ;;  %s8269_s6 = scalar_lea.hbm %s10091_s13, 16 }
  0xca   : > { %s481_s19 = sshll.u32 %s8396_s14, 4  ;;  %p8270_p5 = scmp.ne.s32.totalorder %s10091_s13, %s8269_s6  ;;  %s482_s19 = int_to_ptr.vmem [resolvable:$true] %s481_s19 }
  0xcb   : > { %p8276_p10 = scmp.lt.u32.totalorder %s8269_s6, %s10091_s13 }
  0xcc   : > { %p8272_p6 = pnand %p8270_p5, %p8561_p0 }
  0xce   : > { %p8273_p9 = pneg %p8272_p6 }
  0xd0   : > { %p8278_p13 = pnand %p8276_p10, %p8273_p9 }
  0xd2   : > { %8281 = shalt.err (!%p8278_p13)
}
  0xd3   : > { %s8282_s23 = scalar_lea.vmem %s482_s19, 16  ;;  %s8289_s27 = scalar_lea.vmem %s482_s19, 32 }
  0xd4   : > { %p8283_p1 = scmp.ne.s32.totalorder %s482_s19, %s8282_s23  ;;  %p8290_p4 = scmp.lt.s32.totalorder %s482_s19, %s482_s19 }
  0xd5   : > { %p8291_p7 = scmp.lt.s32.totalorder %s8289_s27, %s8282_s23 }
  0xd6   : > { %p8285_p2 = pnand %p8283_p1, %p8561_p0 }
  0xd7   : > { %p8292_p8 = por %p8291_p7, %p8290_p4 }
  0xd8   : > { %p8286_p3 = pneg %p8285_p2 }
  0xda   : > { %p8293_p11 = pnand %p8292_p8, %p8286_p3 }
  0xdc   : > { %8296 = shalt.err (!%p8293_p11)
}
  0xdd   : > { %7975 = dma.hbm_to_vmem [thread:$0]  (!%p8547_p12), %s10091_s13, 16, %s482_s19, [#allocation17]  }
  0xde   : > { %p10138_p5 = scmp.ne.s32.totalorder %s10127_s25, 0 }
  0xdf   : > { %p10139_p6 = scmp.eq.s32.totalorder (!%p10138_p5), %s8511_s17, 0 }
  0xe0   : > { %502 = sbr.rel (%p10138_p5) target bundleno = 2872 (0xb38), region = 76 }
  0xe7   : > { %8342 = dma.done.wait (%p10139_p6), [#allocation5], 2304   ;;  %p10140_p0 = pmov %p10139_p6 }
  0xe9   : > { %8344 = vsyncadd (%p10140_p0), [#allocation5], 4294964992  ;;  %p10141_p9 = pmov %p10140_p0 }
  0xea   : > { %p10142_p10 = pmov %p10140_p0 }
  0xeb   : > { %8346 = dma.done.wait (%p10141_p9), [#allocation8], 76800  }
  0xec   : > { %8348 = vsyncadd (%p10142_p10), [#allocation8], 4294890496  ;;  %p10143_p13 = pmov %p10140_p0 }
  0xed   : > { %p10144_p12 = pmov %p10140_p0 }
  0xee   : > { %8350 = dma.done.wait (%p10143_p13), [#allocation11], 15616  }
  0xef   : > { %8352 = vsyncadd (%p10144_p12), [#allocation11], 4294951680  ;;  %p10145_p1 = pmov %p10140_p0 }
  0xf0   : > { %p10146_p2 = pmov %p10140_p0 }
  0xf1   : > { %8354 = dma.done.wait (%p10145_p1), [#allocation14], 1920  }
  0xf2   : > { %8356 = vsyncadd (%p10146_p2), [#allocation14], 4294965376  ;;  %p10147_p3 = pmov %p10140_p0 }
  0xf3   : > { %p10148_p4 = pmov %p10140_p0 }
  0xf4   : > { %8358 = dma.done.wait (%p10147_p3), [#allocation17], 16  }
  0xf5   : > { %8360 = vsyncadd (%p10148_p4), [#allocation17], 4294967280  ;;  %p575_p7 = scmp.lt.s32.totalorder %s8511_s17, 1  ;;  %v8397_v0 = vmov 0.0   ;;  %s8398_s29 = smov 127   ;;  %v585_v4 = vld [vmem:[#allocation4 + $0x8] sm:$0xff] }
  0xf6   : > { %703 = vmatprep.mubr.f32.mxu0 %v8397_v0  ;;  %804 = vmatprep.mubr.f32.mxu1 %v8397_v0  ;;  %v591_v5 = vld [vmem:[#allocation4 + $0x38] sm:$0xff]  ;;  %v584_v8 = vld [vmem:[#allocation4] sm:$0xff]  ;;  %v590_v9 = vld [vmem:[#allocation4 + $0x30] sm:$0xff]  ;;  %vm626_vm0 = vcmask 195584   ;;  %s8399_s14 = smov 126   ;;  %s8400_s19 = smov 125  }
  0xf7   : > { %s576_s25 = scalar_select %p575_p7, %s8511_s17, 1  ;;  %v8765_v7 = vpack.c.bf16 %v591_v5, %v585_v4  ;;  %v8767_v10 = vpack.c.bf16 %v590_v9, %v584_v8  ;;  %v587_v11 = vld [vmem:[#allocation4 + $0x18] sm:$0xff]  ;;  %v593_v12 = vld [vmem:[#allocation4 + $0x48] sm:$0xff]  ;;  %v586_v15 = vld [vmem:[#allocation4 + $0x10] sm:$0xff]  ;;  %vm932_vm1 = vcmask 1043456   ;;  %vm981_vm2 = vcmask 261120  }
  0xf8   : > { %v8770_v13 = vld [vmem:[#allocation4 + $0x68] sm:$0xff]  ;;  %v8772_v14 = vpack.c.bf16 %v593_v12, %v587_v11  ;;  %v592_v16 = vld [vmem:[#allocation4 + $0x40] sm:$0xff]  ;;  %v8783_v19 = vld [vmem:[#allocation4 + $0x78] sm:$0xff]  ;;  %s8401_s16 = smov 124   ;;  %vm987_vm3 = vcmask 257024   ;;  %s8403_s30 = smov 80  }
  0xf9   : > { %s6664_s28 = sshll.u32 %s576_s25, 5  ;;  %6949 = vmatprep.subr.bf16.mxu0 %v8765_v7  ;;  %v8776_v17 = vpack.c.bf16 %v592_v16, %v586_v15  ;;  %v8781_v18 = vld [vmem:[#allocation4 + $0x60] sm:$0xff]  ;;  %v589_v20 = vld [vmem:[#allocation4 + $0x28] sm:$0xff]  ;;  %v595_v21 = vld [vmem:[#allocation4 + $0x58] sm:$0xff]  ;;  %s8404_s6 = smov 104   ;;  %vm1059_vm5 = vcmask 654336  }
  0xfa   : > { %s579_s18 = scalar_lea.vmem %s10078_s0, %s6664_s28  ;;  %6951 = vmatpush1.bf16.msra.mxu0 %v8767_v10  ;;  %7881 = vmatprep.subr.bf16.mxu1 %v8772_v14  ;;  %v8797_v22 = vld [vmem:[#allocation4 + $0x70] sm:$0xff]  ;;  %v8800_v23 = vpack.c.bf16 %v595_v21, %v589_v20  ;;  %v588_v24 = vld [vmem:[#allocation4 + $0x20] sm:$0xff]  ;;  %v8831_v27 = vld [vmem:[#allocation4 + $0x88] sm:$0xff]  ;;  %s8405_s12 = smov 32   ;;  %vm1050_vm6 = vcmask 850944   ;;  %vm1085_vm7 = vcmask 457728  }
  0xfb   : > { %v8755_v1 = vld [vmem:[%s579_s18] sm:$0xff]  ;;  %v8757_v2 = vld [vmem:[%s579_s18 + $0x10] sm:$0xff]  ;;  %v8760_v3 = vld [vmem:[%s579_s18 + $0x8] sm:$0xff]  ;;  %643 = vmatprep.subr.mxu0 %v8770_v13  ;;  %7883 = vmatpush1.bf16.msra.mxu1 %v8776_v17  ;;  %s8406_s24 = smov 56   ;;  %vm3001_vm8 = vcmask 203776   ;;  %vm3008_vm9 = vcmask 1040384  }
  0xfc   : > { %1099 = vrot.lane.b32.xlu0 %v8755_v1, %s8398_s29  ;;  %1103 = vrot.lane.b32.xlu1 %v8757_v2, %s8398_s29  ;;  %v8763_v6 = vld [vmem:[%s579_s18 + $0x18] sm:$0xf]  ;;  %v594_v25 = vld [vmem:[#allocation4 + $0x50] sm:$0xff]  ;;  %v8840_v28 = vld [vmem:[#allocation4 + $0x80] sm:$0xff]  ;;  %vm8408_vm10 = vmmov 1   ;;  %vm3407_vm12 = vcmask 523264  }
  0xfd   : > { %7882 = vmatprep.subr.mxu1 %v8783_v19  ;;  %v8827_v26 = vpack.c.bf16 %v594_v25, %v588_v24  ;;  %v8998_v45 = vld [vmem:[#allocation7] sm:$0xff]  ;;  %v9000_v47 = vld [vmem:[#allocation7 + $0x8] sm:$0xff]  ;;  %v9002_v49 = vld [vmem:[#allocation7 + $0x30] sm:$0xff]  ;;  %vm4803_vm13 = vcmask 130048   ;;  %vm4886_vm14 = vcmask 517120   ;;  %s8410_s26 = smov 96  }
  0xfe   : > { %644 = vmatpush1.msra.mxu0 %v8781_v18  ;;  %v9005_v51 = vld [vmem:[#allocation7 + $0x38] sm:$0xff]  ;;  %v9010_v59 = vld [vmem:[#allocation7 + $0x60] sm:$0xff]  ;;  %v9012_v61 = vld [vmem:[#allocation7 + $0x68] sm:$0xff]  ;;  %s8411_s15 = smov 120   ;;  %s8412_s18 = smov 112   ;;  %vm5498_vm15 = vcmask 998400  }
  0xff   : > { %6549 = vmatmul.mubr.msk.f32.vlgmr.msra.gmra.mrb[0].mxu0 %vm626_vm0, %v8755_v1  ;;  %6953 = vmatprep.subr.bf16.mxu0 %v8772_v14  ;;  %v9018_v8 = vld [vmem:[#allocation7 + $0x98] sm:$0xf]  ;;  %v9030_v24 = vld [vmem:[#allocation7 + $0x40] sm:$0xff]  ;;  %v9032_v25 = vld [vmem:[#allocation7 + $0x70] sm:$0xff]  ;;  %s10154_s21 = sld [smem:[#allocation26_spill]]  ;;  %s10155_s23 = sld [smem:[#allocation31_spill]] }
 0x100   : > { %1101 = vrot.lane.b32.xlu0 %v8760_v3, %s8398_s29  ;;  %1105 = vrot.lane.b32.xlu1 %v8763_v6, %s8398_s29  ;;  %v9026_v20 = vld [vmem:[#allocation7 + $0x18] sm:$0xff]  ;;  %vm9468_vm11 = vmpackc.low %vm3008_vm9, %vm8408_vm10  ;;  %s6661_s27 = sshll.u32 %s8511_s17, 4  ;;  %s8414_s17 = smov [#allocation18]  }
 0x101   : > { %709 = vmatprep.mubr.f32.mxu0 %v8397_v0  ;;  %6955 = vmatpush1.bf16.msra.mxu0 %v8776_v17 }
 0x102   : > { %732 = vmatprep.subr.mxu0 %v8783_v19  ;;  %7884 = vmatpush1.msra.mxu1 %v8797_v22 }
 0x103   : > { %6550 = vmatmul.mubr.msk.f32.gmra.mrb[2].mxu0 %vm626_vm0, %v8760_v3  ;;  %6555 = vmatmul.mubr.msk.f32.vlgmr.msra.gmra.mrb[0].mxu1 %vm626_vm0, %v8757_v2 }
 0x104   : > { %1566 = vrot.lane.b32.xlu0 %v8755_v1, %s8399_s14  ;;  %1568 = vrot.lane.b32.xlu1 %v8760_v3, %s8399_s14 }
 0x105   : > { %715 = vmatprep.mubr.f32.mxu0 %v8397_v0  ;;  %733 = vmatpush1.msra.mxu0 %v8797_v22  ;;  %s573_s22 = sand.u32 1, %s10154_s21   ;;  %p10157_p11 = scmp.ne.s32.totalorder %s10155_s23, 0 }
 0x106   : > { %6957 = vmatprep.subr.bf16.mxu0 %v8800_v23  ;;  %810 = vmatprep.mubr.f32.mxu1 %v8397_v0  ;;  %s574_s20 = scalar_lea.vmem [#allocation18], %s573_s22 }
 0x107   : > { %6551 = vmatmul.mubr.msk.f32.gmra.mrb[4].mxu0 %vm626_vm0, %v8757_v2  ;;  %6556 = vmatmul.mubr.msk.f32.gmra.mrb[2].mxu1 %vm626_vm0, %v8763_v6  ;;  %s6393_s4 = sshll.u32 %s574_s20, 4  ;;  %s10038_s4 = int_to_ptr.vmem [resolvable:$true] %s6393_s4 }
 0x108   : > { %1570 = vrot.lane.b32.xlu0 %v8757_v2, %s8399_s14  ;;  %1572 = vrot.lane.b32.xlu1 %v8763_v6, %s8399_s14  ;;  %s10153_s14 = sld [smem:[#allocation35_spill]]  ;;  %s8297_s29 = scalar_lea.vmem %s10038_s4, 16 }
 0x109   : > { %721 = vmatprep.mubr.f32.mxu0 %v8397_v0  ;;  %6961 = vmatprep.subr.bf16.mxu1 %v8765_v7  ;;  %p8298_p8 = scmp.ne.s32.totalorder %s10038_s4, %s8297_s29 }
 0x10a   : > { %6963 = vmatpush1.bf16.msra.mxu1 %v8767_v10  ;;  %1179 = vmatprep.mubr.f32.mxu1 %v8397_v0 }
 0x10b   : > { %6552 = vmatmul.mubr.msk.f32.gmra.mrb[6].mxu0 %vm626_vm0, %v8763_v6  ;;  %1119 = vmatprep.subr.mxu1 %v8770_v13  ;;  %p8299_p5 = pnand %p8298_p8, %p10157_p11 }
 0x10c   : > { %2033 = vrot.lane.b32.xlu0 %v8755_v1, %s8400_s19  ;;  %2035 = vrot.lane.b32.xlu1 %v8760_v3, %s8400_s19 }
 0x10d   : > { %792 = vmatprep.mubr.f32.mxu0 %v8397_v0  ;;  %p8300_p6 = pneg %p8299_p5 }
 0x10e   : > { %1120 = vmatpush1.msra.mxu1 %v8781_v18 }
 0x10f   : > { %6553 = vmatmul.mubr.msk.f32.vlgmr.msra.gmra.mrb[8].mxu0 %vm626_vm0, %v8755_v1  ;;  %6969 = vmatprep.subr.bf16.mxu1 %v8800_v23 }
 0x110   : > { %2037 = vrot.lane.b32.xlu0 %v8757_v2, %s8400_s19  ;;  %2039 = vrot.lane.b32.xlu1 %v8763_v6, %s8400_s19  ;;  %s8301_s19 = sshll.u32 %s8414_s17, 4  ;;  %s8302_s19 = int_to_ptr.vmem [resolvable:$false] %s8301_s19 }
 0x111   : > { %798 = vmatprep.mubr.f32.mxu0 %v8397_v0  ;;  %6959 = vmatpush1.bf16.msra.mxu0 %v8827_v26  ;;  %p8304_p0 = scmp.lt.s32.totalorder %s10038_s4, %s8302_s19 }
 0x112   : > { %821 = vmatprep.subr.mxu0 %v8831_v27 }
 0x113   : > { %6554 = vmatmul.mubr.msk.f32.gmra.mrb[10].mxu0 %vm626_vm0, %v8760_v3 }
 0x114   : > { %2500 = vrot.lane.b32.xlu0 %v8755_v1, %s8401_s16  ;;  %2502 = vrot.lane.b32.xlu1 %v8760_v3, %s8401_s16 }
 0x115   : > { %822 = vmatpush1.msra.mxu0 %v8840_v28  ;;  %881 = vmatprep.mubr.f32.mxu0 %v8397_v0 }
 0x116   : > { %6965 = vmatprep.subr.bf16.mxu0 %v8772_v14 }
 0x117   : > { %6557 = vmatmul.mubr.msk.f32.vlgmr.msra.gmra.mrb[12].mxu0 %vm626_vm0, %v8755_v1 }
 0x118   : > { %2504 = vrot.lane.b32.xlu0 %v8757_v2, %s8401_s16  ;;  %2506 = vrot.lane.b32.xlu1 %v8763_v6, %s8401_s16  ;;  %s8303_s16 = scalar_lea.vmem %s8302_s19, 32 }
 0x119   : > { %887 = vmatprep.mubr.f32.mxu0 %v8397_v0  ;;  %6967 = vmatpush1.bf16.msra.mxu0 %v8776_v17  ;;  %p8305_p9 = scmp.lt.s32.totalorder %s8303_s16, %s8297_s29 }
 0x11a   : > { %1208 = vmatprep.subr.mxu0 %v8783_v19 }
 0x11b   : > { %6558 = vmatmul.mubr.msk.f32.gmra.mrb[14].mxu0 %vm626_vm0, %v8760_v3  ;;  %p8306_p10 = por %p8305_p9, %p8304_p0 }
 0x11c   : > { %893 = vmatprep.mubr.f32.mxu0 %v8397_v0 }
 0x11d   : > { %1209 = vmatpush1.msra.mxu0 %v8797_v22  ;;  %p8307_p13 = pnand %p8306_p10, %p8300_p6 }
 0x11e   : > { %6973 = vmatprep.subr.bf16.mxu0 %v8765_v7 }
 0x11f   : > { %6559 = vmatmul.mubr.msk.f32.gmra.mrb[16].mxu0 %vm626_vm0, %v8757_v2 }
 0x120   : > { %899 = vmatprep.mubr.f32.mxu0 %v8397_v0 }
 0x123   : > { %6560 = vmatmul.mubr.msk.f32.gmra.mrb[18].mxu0 %vm626_vm0, %v8763_v6  ;;  %v9016_v6 = vld [vmem:[#allocation7 + $0x90] sm:$0xf] }
 0x124   : > { %1268 = vmatprep.mubr.f32.mxu0 %v8397_v0 }
 0x16e   : > { %v1100_v29 = vpop.permute.xlu0 %1099  ;;  %v1104_v31 = vpop.permute.xlu1 %1103 }
 0x16f   : > { %6561 = vmatmul.mubr.msk.f32.vlgmr.msra.gmra.mrb[4].mxu1 %vm626_vm0, %v1100_v29  ;;  %6565 = vmatmul.mubr.msk.f32.vlgmr.msra.gmra.mrb[20].mxu0 %vm626_vm0, %v1100_v29 }
 0x170   : > { %1185 = vmatprep.mubr.f32.mxu1 %v8397_v0  ;;  %1274 = vmatprep.mubr.f32.mxu0 %v8397_v0 }
 0x171   : > { %6971 = vmatpush1.bf16.msra.mxu1 %v8827_v26  ;;  %6975 = vmatpush1.bf16.msra.mxu0 %v8767_v10 }
 0x172   : > { %v1102_v30 = vpop.permute.xlu0 %1101  ;;  %1297 = vmatprep.subr.mxu1 %v8831_v27  ;;  %1586 = vmatprep.subr.mxu0 %v8770_v13  ;;  %v1106_v32 = vpop.permute.xlu1 %1105 }
 0x173   : > { %6562 = vmatmul.mubr.msk.f32.gmra.mrb[6].mxu1 %vm626_vm0, %v1102_v30  ;;  %6566 = vmatmul.mubr.msk.f32.gmra.mrb[22].mxu0 %vm626_vm0, %v1102_v30 }
 0x174   : > { %1191 = vmatprep.mubr.f32.mxu1 %v8397_v0  ;;  %1280 = vmatprep.mubr.f32.mxu0 %v8397_v0 }
 0x175   : > { %1298 = vmatpush1.msra.mxu1 %v8840_v28  ;;  %1587 = vmatpush1.msra.mxu0 %v8781_v18 }
 0x176   : > { %6977 = vmatprep.subr.bf16.mxu1 %v8772_v14  ;;  %6981 = vmatprep.subr.bf16.mxu0 %v8800_v23  ;;  %v1567_v33 = vpop.permute.xlu0 %1566  ;;  %v1569_v34 = vpop.permute.xlu1 %1568 }
 0x177   : > { %6563 = vmatmul.mubr.msk.f32.gmra.mrb[8].mxu1 %vm626_vm0, %v1104_v31  ;;  %6567 = vmatmul.mubr.msk.f32.gmra.mrb[24].mxu0 %vm626_vm0, %v1104_v31 }
 0x178   : > { %1197 = vmatprep.mubr.f32.mxu1 %v8397_v0  ;;  %1286 = vmatprep.mubr.f32.mxu0 %v8397_v0 }
 0x17a   : > { %v1571_v35 = vpop.permute.xlu0 %1570  ;;  %v1573_v36 = vpop.permute.xlu1 %1572 }
 0x17b   : > { %6564 = vmatmul.mubr.msk.f32.gmra.mrb[10].mxu1 %vm626_vm0, %v1106_v32  ;;  %6568 = vmatmul.mubr.msk.f32.gmra.mrb[26].mxu0 %vm626_vm0, %v1106_v32 }
 0x17c   : > { %1357 = vmatprep.mubr.f32.mxu1 %v8397_v0  ;;  %1646 = vmatprep.mubr.f32.mxu0 %v8397_v0 }
 0x17e   : > { %v2034_v37 = vpop.permute.xlu0 %2033  ;;  %v2036_v38 = vpop.permute.xlu1 %2035 }
 0x17f   : > { %6569 = vmatmul.mubr.msk.f32.vlgmr.msra.gmra.mrb[12].mxu1 %vm626_vm0, %v1100_v29  ;;  %6573 = vmatmul.mubr.msk.f32.vlgmr.msra.gmra.mrb[28].mxu0 %vm626_vm0, %v1567_v33  ;;  %v9037_v29 = vld [vmem:[#allocation7 + $0x48] sm:$0xff] }
 0x180   : > { %1363 = vmatprep.mubr.f32.mxu1 %v8397_v0  ;;  %1652 = vmatprep.mubr.f32.mxu0 %v8397_v0 }
 0x181   : > { %6979 = vmatpush1.bf16.msra.mxu1 %v8776_v17  ;;  %6983 = vmatpush1.bf16.msra.mxu0 %v8827_v26 }
 0x182   : > { %1675 = vmatprep.subr.mxu1 %v8783_v19  ;;  %1764 = vmatprep.subr.mxu0 %v8831_v27  ;;  %v2038_v39 = vpop.permute.xlu0 %2037  ;;  %v2040_v40 = vpop.permute.xlu1 %2039 }
 0x183   : > { %6570 = vmatmul.mubr.msk.f32.gmra.mrb[14].mxu1 %vm626_vm0, %v1102_v30  ;;  %6574 = vmatmul.mubr.msk.f32.gmra.mrb[30].mxu0 %vm626_vm0, %v1569_v34  ;;  %v9039_v30 = vld [vmem:[#allocation7 + $0x78] sm:$0xff] }
 0x184   : > { %1369 = vmatprep.mubr.f32.mxu1 %v8397_v0  ;;  %1658 = vmatprep.mubr.f32.mxu0 %v8397_v0 }
 0x185   : > { %1676 = vmatpush1.msra.mxu1 %v8797_v22  ;;  %1765 = vmatpush1.msra.mxu0 %v8840_v28 }
 0x186   : > { %6985 = vmatprep.subr.bf16.mxu1 %v8765_v7  ;;  %6989 = vmatprep.subr.bf16.mxu0 %v8772_v14  ;;  %v2501_v41 = vpop.permute.xlu0 %2500  ;;  %v2503_v42 = vpop.permute.xlu1 %2502 }
 0x187   : > { %6571 = vmatmul.mubr.msk.f32.gmra.mrb[16].mxu1 %vm626_vm0, %v1104_v31  ;;  %6575 = vmatmul.mubr.msk.f32.gmra.mrb[32].mxu0 %vm626_vm0, %v1571_v35 }
 0x188   : > { %1375 = vmatprep.mubr.f32.mxu1 %v8397_v0  ;;  %1664 = vmatprep.mubr.f32.mxu0 %v8397_v0 }
 0x18a   : > { %v2505_v43 = vpop.permute.xlu0 %2504  ;;  %v2507_v44 = vpop.permute.xlu1 %2506 }
 0x18b   : > { %6572 = vmatmul.mubr.msk.f32.gmra.mrb[18].mxu1 %vm626_vm0, %v1106_v32  ;;  %6576 = vmatmul.mubr.msk.f32.gmra.mrb[34].mxu0 %vm626_vm0, %v1573_v36 }
 0x18c   : > { %1735 = vmatprep.mubr.f32.mxu1 %v8397_v0  ;;  %1824 = vmatprep.mubr.f32.mxu0 %v8397_v0 }
 0x18f   : > { %6577 = vmatmul.mubr.msk.f32.vlgmr.msra.gmra.mrb[20].mxu1 %vm626_vm0, %v1567_v33  ;;  %6581 = vmatmul.mubr.msk.f32.vlgmr.msra.gmra.mrb[36].mxu0 %vm626_vm0, %v1567_v33 }
 0x190   : > { %1741 = vmatprep.mubr.f32.mxu1 %v8397_v0  ;;  %1830 = vmatprep.mubr.f32.mxu0 %v8397_v0 }
 0x191   : > { %6987 = vmatpush1.bf16.msra.mxu1 %v8767_v10  ;;  %6991 = vmatpush1.bf16.msra.mxu0 %v8776_v17 }
 0x192   : > { %2053 = vmatprep.subr.mxu1 %v8770_v13  ;;  %2142 = vmatprep.subr.mxu0 %v8783_v19 }
 0x193   : > { %6578 = vmatmul.mubr.msk.f32.gmra.mrb[22].mxu1 %vm626_vm0, %v1569_v34  ;;  %6582 = vmatmul.mubr.msk.f32.gmra.mrb[38].mxu0 %vm626_vm0, %v1569_v34 }
 0x194   : > { %1747 = vmatprep.mubr.f32.mxu1 %v8397_v0  ;;  %1836 = vmatprep.mubr.f32.mxu0 %v8397_v0 }
 0x195   : > { %2054 = vmatpush1.msra.mxu1 %v8781_v18  ;;  %2143 = vmatpush1.msra.mxu0 %v8797_v22 }
 0x196   : > { %6993 = vmatprep.subr.bf16.mxu1 %v8800_v23  ;;  %6997 = vmatprep.subr.bf16.mxu0 %v8765_v7 }
 0x197   : > { %6579 = vmatmul.mubr.msk.f32.gmra.mrb[24].mxu1 %vm626_vm0, %v1571_v35  ;;  %6583 = vmatmul.mubr.msk.f32.gmra.mrb[40].mxu0 %vm626_vm0, %v1571_v35 }
 0x198   : > { %1753 = vmatprep.mubr.f32.mxu1 %v8397_v0  ;;  %1842 = vmatprep.mubr.f32.mxu0 %v8397_v0 }
 0x19b   : > { %6580 = vmatmul.mubr.msk.f32.gmra.mrb[26].mxu1 %vm626_vm0, %v1573_v36  ;;  %6584 = vmatmul.mubr.msk.f32.gmra.mrb[42].mxu0 %vm626_vm0, %v1573_v36 }
 0x19c   : > { %2113 = vmatprep.mubr.f32.mxu1 %v8397_v0  ;;  %2202 = vmatprep.mubr.f32.mxu0 %v8397_v0 }
 0x19f   : > { %6585 = vmatmul.mubr.msk.f32.vlgmr.msra.gmra.mrb[28].mxu1 %vm626_vm0, %v2034_v37  ;;  %6589 = vmatmul.mubr.msk.f32.vlgmr.msra.gmra.mrb[44].mxu0 %vm626_vm0, %v2034_v37 }
 0x1a0   : > { %2119 = vmatprep.mubr.f32.mxu1 %v8397_v0  ;;  %2208 = vmatprep.mubr.f32.mxu0 %v8397_v0 }
 0x1a1   : > { %6995 = vmatpush1.bf16.msra.mxu1 %v8827_v26  ;;  %6999 = vmatpush1.bf16.msra.mxu0 %v8767_v10 }
 0x1a2   : > { %2231 = vmatprep.subr.mxu1 %v8831_v27  ;;  %2520 = vmatprep.subr.mxu0 %v8770_v13 }
 0x1a3   : > { %6586 = vmatmul.mubr.msk.f32.gmra.mrb[30].mxu1 %vm626_vm0, %v2036_v38  ;;  %6590 = vmatmul.mubr.msk.f32.gmra.mrb[46].mxu0 %vm626_vm0, %v2036_v38 }
 0x1a4   : > { %2125 = vmatprep.mubr.f32.mxu1 %v8397_v0  ;;  %2214 = vmatprep.mubr.f32.mxu0 %v8397_v0 }
 0x1a5   : > { %2232 = vmatpush1.msra.mxu1 %v8840_v28  ;;  %2521 = vmatpush1.msra.mxu0 %v8781_v18 }
 0x1a6   : > { %7001 = vmatprep.subr.bf16.mxu1 %v8772_v14  ;;  %7005 = vmatprep.subr.bf16.mxu0 %v8800_v23 }
 0x1a7   : > { %6587 = vmatmul.mubr.msk.f32.gmra.mrb[32].mxu1 %vm626_vm0, %v2038_v39  ;;  %6591 = vmatmul.mubr.msk.f32.gmra.mrb[48].mxu0 %vm626_vm0, %v2038_v39 }
 0x1a8   : > { %2131 = vmatprep.mubr.f32.mxu1 %v8397_v0  ;;  %2220 = vmatprep.mubr.f32.mxu0 %v8397_v0 }
 0x1ab   : > { %6588 = vmatmul.mubr.msk.f32.gmra.mrb[34].mxu1 %vm626_vm0, %v2040_v40  ;;  %6592 = vmatmul.mubr.msk.f32.gmra.mrb[50].mxu0 %vm626_vm0, %v2040_v40 }
 0x1ac   : > { %2291 = vmatprep.mubr.f32.mxu1 %v8397_v0  ;;  %2580 = vmatprep.mubr.f32.mxu0 %v8397_v0 }
 0x1af   : > { %6593 = vmatmul.mubr.msk.f32.vlgmr.msra.gmra.mrb[36].mxu1 %vm626_vm0, %v2034_v37  ;;  %6597 = vmatmul.mubr.msk.f32.vlgmr.msra.gmra.mrb[52].mxu0 %vm626_vm0, %v2501_v41 }
 0x1b0   : > { %2297 = vmatprep.mubr.f32.mxu1 %v8397_v0  ;;  %2586 = vmatprep.mubr.f32.mxu0 %v8397_v0 }
 0x1b1   : > { %7003 = vmatpush1.bf16.msra.mxu1 %v8776_v17  ;;  %7007 = vmatpush1.bf16.msra.mxu0 %v8827_v26  ;;  %v9024_v17 = vld [vmem:[#allocation7 + $0x10] sm:$0xff]  ;;  %v9034_v26 = vld [vmem:[#allocation7 + $0xa8] sm:$0xf] }
 0x1b2   : > { %2609 = vmatprep.subr.mxu1 %v8783_v19  ;;  %2698 = vmatprep.subr.mxu0 %v8831_v27 }
 0x1b3   : > { %6594 = vmatmul.mubr.msk.f32.gmra.mrb[38].mxu1 %vm626_vm0, %v2036_v38  ;;  %6598 = vmatmul.mubr.msk.f32.gmra.mrb[54].mxu0 %vm626_vm0, %v2503_v42 }
 0x1b4   : > { %2303 = vmatprep.mubr.f32.mxu1 %v8397_v0  ;;  %2592 = vmatprep.mubr.f32.mxu0 %v8397_v0 }
 0x1b5   : > { %2610 = vmatpush1.msra.mxu1 %v8797_v22  ;;  %2699 = vmatpush1.msra.mxu0 %v8840_v28  ;;  %v9028_v22 = vld [vmem:[#allocation7 + $0xa0] sm:$0xf] }
 0x1b7   : > { %6595 = vmatmul.mubr.msk.f32.gmra.mrb[40].mxu1 %vm626_vm0, %v2038_v39  ;;  %6599 = vmatmul.mubr.msk.f32.gmra.mrb[56].mxu0 %vm626_vm0, %v2505_v43 }
 0x1b8   : > { %2309 = vmatprep.mubr.f32.mxu1 %v8397_v0  ;;  %2598 = vmatprep.mubr.f32.mxu0 %v8397_v0 }
 0x1bb   : > { %6596 = vmatmul.mubr.msk.f32.gmra.mrb[42].mxu1 %vm626_vm0, %v2040_v40  ;;  %6600 = vmatmul.mubr.msk.f32.gmra.mrb[58].mxu0 %vm626_vm0, %v2507_v44 }
 0x1bc   : > { %2669 = vmatprep.mubr.f32.mxu1 %v8397_v0  ;;  %2758 = vmatprep.mubr.f32.mxu0 %v8397_v0 }
 0x1bf   : > { %6601 = vmatmul.mubr.msk.f32.vlgmr.msra.gmra.mrb[44].mxu1 %vm626_vm0, %v2501_v41  ;;  %6605 = vmatmul.mubr.msk.f32.vlgmr.msra.gmra.mrb[60].mxu0 %vm626_vm0, %v2501_v41 }
 0x1c0   : > { %2675 = vmatprep.mubr.f32.mxu1 %v8397_v0  ;;  %2764 = vmatprep.mubr.f32.mxu0 %v8397_v0 }
 0x1c3   : > { %6602 = vmatmul.mubr.msk.f32.gmra.mrb[46].mxu1 %vm626_vm0, %v2503_v42  ;;  %6606 = vmatmul.mubr.msk.f32.gmra.mrb[62].mxu0 %vm626_vm0, %v2503_v42 }
 0x1c4   : > { %2681 = vmatprep.mubr.f32.mxu1 %v8397_v0  ;;  %2770 = vmatprep.mubr.f32.mxu0 %v8397_v0 }
 0x1c7   : > { %6603 = vmatmul.mubr.msk.f32.gmra.mrb[48].mxu1 %vm626_vm0, %v2505_v43  ;;  %6607 = vmatmul.mubr.msk.f32.gmra.mrb[64].mxu0 %vm626_vm0, %v2505_v43 }
 0x1c8   : > { %2687 = vmatprep.mubr.f32.mxu1 %v8397_v0  ;;  %2776 = vmatprep.mubr.f32.mxu0 %v8397_v0 }
 0x1cb   : > { %6604 = vmatmul.mubr.msk.f32.gmra.mrb[50].mxu1 %vm626_vm0, %v2507_v44  ;;  %6608 = vmatmul.mubr.msk.f32.gmra.mrb[66].mxu0 %vm626_vm0, %v2507_v44  ;;  %vm5508_vm0 = vcmask 1041408  }
 0x1cc   : > { %3088 = vmatprep.mubr.f32.mxu1 %v8397_v0 }
 0x1d2   : > { %v705_v46 = vpop.f32.mrb[0].mxu0 }
 0x1d3   : > { %v707_v48 = vpop.f32.mrb[1].mxu0  ;;  %v906_v50 = vmul.f32 %v705_v46, %v8998_v45  ;;  %v9048_v46 = vld [vmem:[#allocation7 + $0x28] sm:$0xff] }
 0x1d4   : > { %v907_v52 = vmul.f32 %v707_v48, %v9000_v47 }
 0x1d6   : > { %v711_v53 = vpop.f32.mrb[2].mxu0  ;;  %v806_v54 = vpop.f32.mrb[0].mxu1 }
 0x1d7   : > { %v912_v55 = vmul.f32 %v711_v53, %v9002_v49  ;;  %v713_v56 = vpop.f32.mrb[3].mxu0  ;;  %v808_v57 = vpop.f32.mrb[1].mxu1  ;;  %v920_v38 = vmul.f32 %v806_v54, %v9032_v25 }
 0x1d8   : > { %v913_v58 = vmul.f32 %v713_v56, %v9005_v51  ;;  %v921_v42 = vmul.f32 %v808_v57, %v9039_v30 }
 0x1d9   : > { %v930_v60 = vadd.f32 %v912_v55, %v906_v50 }
 0x1da   : > { %v941_v62 = vadd.f32 %v913_v58, %v907_v52  ;;  %v717_v63 = vpop.f32.mrb[4].mxu0  ;;  %v812_v1 = vpop.f32.mrb[2].mxu1  ;;  %v9050_v52 = vld [vmem:[#allocation7 + $0x20] sm:$0xff] }
 0x1db   : > { %v918_v2 = vmul.f32 %v717_v63, %v9010_v59  ;;  %v719_v3 = vpop.f32.mrb[5].mxu0  ;;  %v814_v4 = vpop.f32.mrb[3].mxu1  ;;  %v926_v34 = vmul.f32 %v812_v1, %v9028_v22  ;;  %v9055_v1 = vld [vmem:[#allocation7 + $0x50] sm:$0xff] }
 0x1dc   : > { %v919_v5 = vmul.f32 %v719_v3, %v9012_v61  ;;  %v927_v39 = vmul.f32 %v814_v4, %v9034_v26 }
 0x1dd   : > { %v931_v7 = vadd.f32 %v930_v60, %v918_v2  ;;  %v953_v55 = vsel %vm932_vm1, %v926_v34, 0.0 }
 0x1de   : > { %v942_v9 = vadd.f32 %v941_v62, %v919_v5  ;;  %v723_v10 = vpop.f32.mrb[6].mxu0  ;;  %v963_v60 = vsel %vm932_vm1, %v927_v39, 0.0  ;;  %v9058_v5 = vld [vmem:[#allocation7 + $0x58] sm:$0xff] }
 0x1df   : > { %v924_v11 = vmul.f32 %v723_v10, %v9016_v6  ;;  %v725_v12 = vpop.f32.mrb[7].mxu0 }
 0x1e0   : > { %v925_v13 = vmul.f32 %v725_v12, %v9018_v8 }
 0x1e1   : > { %v933_v14 = vsel %vm932_vm1, %v924_v11, 0.0 }
 0x1e2   : > { %v934_v15 = vadd.f32 %v933_v14, %v931_v7  ;;  %v943_v16 = vsel %vm932_vm1, %v925_v13, 0.0  ;;  %v794_v18 = vpop.f32.mrb[8].mxu0 }
 0x1e3   : > { %v944_v19 = vadd.f32 %v943_v16, %v942_v9  ;;  %v796_v21 = vpop.f32.mrb[9].mxu0  ;;  %v908_v28 = vmul.f32 %v794_v18, %v9024_v17 }
 0x1e4   : > { %v935_v23 = vrot.slane %v934_v15, 4  ;;  %v909_v32 = vmul.f32 %v796_v21, %v9026_v20  ;;  %v9063_v21 = vld [vmem:[#allocation7 + $0x80] sm:$0xff] }
 0x1e5   : > { %v945_v27 = vrot.slane %v944_v19, 4 }
 0x1e6   : > { %v936_v31 = vadd.f32 %v935_v23, %v934_v15  ;;  %v800_v33 = vpop.f32.mrb[10].mxu0  ;;  %v1006_v15 = vlaneseq  ;;  %v8402_v23 = vmov 1966171168  }
 0x1e7   : > { %v946_v35 = vadd.f32 %v945_v27, %v944_v19  ;;  %v914_v36 = vmul.f32 %v800_v33, %v9030_v24  ;;  %v802_v37 = vpop.f32.mrb[11].mxu0  ;;  %v1004_v27 = vunpack.c.l.s4 %v8402_v23  ;;  %v9065_v33 = vld [vmem:[#allocation7 + $0x88] sm:$0xff] }
 0x1e8   : > { %v937_v40 = vrot.slane %v936_v31, 2  ;;  %v915_v41 = vmul.f32 %v802_v37, %v9037_v29  ;;  %vm9088_vm4 = vcmp.lt.s32.totalorder %v1006_v15, 576 }
 0x1e9   : > { %v947_v43 = vrot.slane %v946_v35, 2  ;;  %v951_v44 = vadd.f32 %v914_v36, %v908_v28 }
 0x1ea   : > { %v938_v48 = vadd.f32 %v937_v40, %v936_v31  ;;  %v961_v50 = vadd.f32 %v915_v41, %v909_v32  ;;  %v883_v53 = vpop.f32.mrb[12].mxu0 }
 0x1eb   : > { %v948_v56 = vadd.f32 %v947_v43, %v946_v35  ;;  %v952_v54 = vadd.f32 %v951_v44, %v920_v38  ;;  %v885_v58 = vpop.f32.mrb[13].mxu0  ;;  %v910_v3 = vmul.f32 %v883_v53, %v9050_v52  ;;  %v9070_v43 = vld [vmem:[#allocation7 + $0xb0] sm:$0xf]  ;;  %v1005_v44 = vunpack.c.0.s8 %v1004_v27 }
 0x1ec   : > { %v939_v62 = vrot.slane %v938_v48, 1  ;;  %v962_v63 = vadd.f32 %v961_v50, %v921_v42  ;;  %v911_v57 = vmul.f32 %v885_v58, %v9048_v46 }
 0x1ed   : > { %v949_v2 = vrot.slane %v948_v56, 1  ;;  %v954_v4 = vadd.f32 %v953_v55, %v952_v54  ;;  %v9073_v55 = vld [vmem:[#allocation7 + $0xb8] sm:$0xf] }
 0x1ee   : > { %v940_v7 = vadd.f32 %v939_v62, %v938_v48  ;;  %v964_v9 = vadd.f32 %v963_v60, %v962_v63  ;;  %v889_v10 = vpop.f32.mrb[14].mxu0  ;;  %v982_v16 = vsel %vm981_vm2, %v911_v57, 0.0  ;;  %v1007_v48 = vshrl.u32 %v1006_v15, 7 }
 0x1ef   : > { %v950_v11 = vadd.f32 %v949_v2, %v948_v56  ;;  %v955_v12 = vrot.slane %v954_v4, 4  ;;  %v916_v13 = vmul.f32 %v889_v10, %v9055_v1  ;;  %v891_v14 = vpop.f32.mrb[15].mxu0 }
 0x1f0   : > { %v965_v18 = vrot.slane %v964_v9, 4  ;;  %v917_v19 = vmul.f32 %v891_v14, %v9058_v5 }
 0x1f1   : > { %v1001_v28 = vcombine.low %v940_v7, %v950_v11  ;;  %v956_v31 = vadd.f32 %v955_v12, %v954_v4  ;;  %v971_v32 = vadd.f32 %v916_v13, %v910_v3  ;;  %v9078_v4 = vsub.s32 %v1005_v44, %v1007_v48 }
 0x1f2   : > { %v966_v34 = vadd.f32 %v965_v18, %v964_v9  ;;  %v983_v35 = vsel %vm981_vm2, %v917_v19, 0.0  ;;  %v895_v36 = vpop.f32.mrb[16].mxu0 }
 0x1f3   : > { %v957_v37 = vrot.slane %v956_v31, 2  ;;  %v984_v38 = vadd.f32 %v983_v35, %v982_v16  ;;  %v922_v39 = vmul.f32 %v895_v36, %v9063_v21  ;;  %v897_v40 = vpop.f32.mrb[17].mxu0  ;;  %v1009_v18 = vrot.slane %v1001_v28, %v9078_v4 }
 0x1f4   : > { %v967_v41 = vrot.slane %v966_v34, 2  ;;  %v923_v42 = vmul.f32 %v897_v40, %v9065_v33 }
 0x1f5   : > { %v958_v50 = vadd.f32 %v957_v37, %v956_v31  ;;  %v972_v53 = vadd.f32 %v971_v32, %v922_v39 }
 0x1f6   : > { %v968_v56 = vadd.f32 %v967_v41, %v966_v34  ;;  %v985_v54 = vsel %vm981_vm2, %v923_v42, 0.0  ;;  %v901_v58 = vpop.f32.mrb[18].mxu0 }
 0x1f7   : > { %v959_v60 = vrot.slane %v958_v50, 1  ;;  %v986_v62 = vadd.f32 %v985_v54, %v984_v38  ;;  %v928_v63 = vmul.f32 %v901_v58, %v9070_v43  ;;  %v903_v57 = vpop.f32.mrb[19].mxu0 }
 0x1f8   : > { %v969_v2 = vrot.slane %v968_v56, 1  ;;  %v929_v3 = vmul.f32 %v903_v57, %v9073_v55 }
 0x1f9   : > { %v960_v7 = vadd.f32 %v959_v60, %v958_v50  ;;  %v973_v9 = vsel %vm932_vm1, %v928_v63, 0.0 }
 0x1fa   : > { %v970_v10 = vadd.f32 %v969_v2, %v968_v56  ;;  %v974_v11 = vadd.f32 %v973_v9, %v972_v53  ;;  %v988_v12 = vsel %vm987_vm3, %v929_v3, 0.0 }
 0x1fb   : > { %v989_v13 = vadd.f32 %v988_v12, %v986_v62 }
 0x1fc   : > { %v1002_v14 = vcombine.low %v960_v7, %v970_v10  ;;  %v975_v16 = vrot.slane %v974_v11, 4 }
 0x1fd   : > { %v990_v19 = vrot.slane %v989_v13, 4 }
 0x1fe   : > { %v976_v23 = vadd.f32 %v975_v16, %v974_v11  ;;  %v1016_v27 = vrot.slane %v1002_v14, %v9078_v4 }
 0x1ff   : > { %v991_v31 = vadd.f32 %v990_v19, %v989_v13 }
 0x200   : > { %v977_v32 = vrot.slane %v976_v23, 2  ;;  %v1024_v34 = vcombine.low %v1009_v18, %v1016_v27 }
 0x201   : > { %v992_v35 = vrot.slane %v991_v31, 2 }
 0x202   : > { %v978_v36 = vadd.f32 %v977_v32, %v976_v23  ;;  %v1031_v44 = vrot.slane %v1024_v34, %v9078_v4 }
 0x203   : > { %v993_v37 = vadd.f32 %v992_v35, %v991_v31 }
 0x204   : > { %v979_v38 = vrot.slane %v978_v36, 1 }
 0x205   : > { %v994_v39 = vrot.slane %v993_v37, 1 }
 0x206   : > { %v980_v40 = vadd.f32 %v979_v38, %v978_v36 }
 0x207   : > { %v995_v41 = vadd.f32 %v994_v39, %v993_v37 }
 0x208   : > { %v1023_v42 = vrot.slane %v980_v40, %v9078_v4 }
 0x209   : > { %v1066_v48 = vcombine.low %v980_v40, %v995_v41 }
 0x20a   : > { %v1038_v28 = vrot.slane %v1023_v42, %v9078_v4 }
 0x20b   : > { %v1073_v53 = vrot.slane %v1066_v48, %v9078_v4 }
 0x20c   : > { %v1039_v56 = vcombine.low %v1031_v44, %v1038_v28 }
 0x20d   : > { %v1080_v54 = vrot.slane %v1073_v53, %v9078_v4 }
 0x20e   : > { %1056 = vrot.lane.b32.xlu1 %v1039_v56, %s8403_s30  ;;  %1045 = vst.msk [vmem:[#allocation2] ss:$8 sm:$0xf] %vm9088_vm4, %v1039_v56  ;;  %1046 = vst.msk [vmem:[#allocation2] ss:$8 sm:$0x10] %vm9088_vm4, %v1039_v56  ;;  %1047 = vrot.lane.b32.xlu0 %v1039_v56, %s8404_s6 }
 0x20f   : > { %v1081_v15 = vcombine.low %v1031_v44, %v1080_v54 }
 0x212   : > { %1091 = vrot.lane.b32.xlu1 %v1081_v15, %s8405_s12  ;;  %1082 = vrot.lane.b32.xlu0 %v1081_v15, %s8406_s24 }
 0x242   : > { %v1181_v58 = vpop.f32.mrb[4].mxu1  ;;  %v1270_v60 = vpop.f32.mrb[20].mxu0 }
 0x243   : > { %v1183_v62 = vpop.f32.mrb[5].mxu1  ;;  %v1272_v63 = vpop.f32.mrb[21].mxu0  ;;  %v1382_v3 = vmul.f32 %v1181_v58, %v8998_v45  ;;  %v1384_v7 = vmul.f32 %v1270_v60, %v9024_v17 }
 0x244   : > { %v1383_v13 = vmul.f32 %v1183_v62, %v9000_v47  ;;  %v1385_v14 = vmul.f32 %v1272_v63, %v9026_v20 }
 0x246   : > { %v1187_v57 = vpop.f32.mrb[6].mxu1  ;;  %v1276_v2 = vpop.f32.mrb[22].mxu0 }
 0x247   : > { %v1388_v9 = vmul.f32 %v1187_v57, %v9002_v49  ;;  %v1390_v10 = vmul.f32 %v1276_v2, %v9030_v24  ;;  %v1189_v11 = vpop.f32.mrb[7].mxu1  ;;  %v1278_v12 = vpop.f32.mrb[23].mxu0 }
 0x248   : > { %v1389_v16 = vmul.f32 %v1189_v11, %v9005_v51  ;;  %v1391_v18 = vmul.f32 %v1278_v12, %v9037_v29 }
 0x249   : > { %v1406_v19 = vadd.f32 %v1388_v9, %v1382_v3  ;;  %v1426_v23 = vadd.f32 %v1390_v10, %v1384_v7 }
 0x24a   : > { %v1416_v27 = vadd.f32 %v1389_v16, %v1383_v13  ;;  %v1436_v31 = vadd.f32 %v1391_v18, %v1385_v14  ;;  %v1193_v32 = vpop.f32.mrb[8].mxu1  ;;  %v1282_v34 = vpop.f32.mrb[24].mxu0 }
 0x24b   : > { %v1394_v35 = vmul.f32 %v1193_v32, %v9010_v59  ;;  %v1396_v36 = vmul.f32 %v1282_v34, %v9032_v25  ;;  %v1195_v37 = vpop.f32.mrb[9].mxu1  ;;  %v1284_v38 = vpop.f32.mrb[25].mxu0 }
 0x24c   : > { %v1395_v39 = vmul.f32 %v1195_v37, %v9012_v61  ;;  %v1397_v40 = vmul.f32 %v1284_v38, %v9039_v30 }
 0x24d   : > { %v1407_v41 = vadd.f32 %v1406_v19, %v1394_v35  ;;  %v1427_v42 = vadd.f32 %v1426_v23, %v1396_v36 }
 0x24e   : > { %v1417_v44 = vadd.f32 %v1416_v27, %v1395_v39  ;;  %v1437_v48 = vadd.f32 %v1436_v31, %v1397_v40  ;;  %v1199_v28 = vpop.f32.mrb[10].mxu1  ;;  %v1288_v53 = vpop.f32.mrb[26].mxu0 }
 0x24f   : > { %v1400_v56 = vmul.f32 %v1199_v28, %v9016_v6  ;;  %v1402_v54 = vmul.f32 %v1288_v53, %v9028_v22  ;;  %v1201_v15 = vpop.f32.mrb[11].mxu1  ;;  %v1290_v58 = vpop.f32.mrb[27].mxu0 }
 0x250   : > { %v1401_v60 = vmul.f32 %v1201_v15, %v9018_v8  ;;  %v1403_v62 = vmul.f32 %v1290_v58, %v9034_v26 }
 0x251   : > { %v1408_v63 = vsel %vm932_vm1, %v1400_v56, 0.0  ;;  %v1428_v57 = vsel %vm932_vm1, %v1402_v54, 0.0 }
 0x252   : > { %v1409_v2 = vadd.f32 %v1408_v63, %v1407_v41  ;;  %v1429_v3 = vadd.f32 %v1428_v57, %v1427_v42  ;;  %v1418_v7 = vsel %vm932_vm1, %v1401_v60, 0.0  ;;  %v1438_v9 = vsel %vm932_vm1, %v1403_v62, 0.0  ;;  %v1359_v10 = vpop.f32.mrb[12].mxu1  ;;  %v1648_v11 = vpop.f32.mrb[28].mxu0 }
 0x253   : > { %v1419_v12 = vadd.f32 %v1418_v7, %v1417_v44  ;;  %v1439_v13 = vadd.f32 %v1438_v9, %v1437_v48  ;;  %v1361_v14 = vpop.f32.mrb[13].mxu1  ;;  %v1650_v16 = vpop.f32.mrb[29].mxu0  ;;  %v1386_v32 = vmul.f32 %v1359_v10, %v9050_v52  ;;  %v1849_v34 = vmul.f32 %v1648_v11, %v8998_v45 }
 0x254   : > { %v1410_v18 = vrot.slane %v1409_v2, 4  ;;  %v1430_v19 = vrot.slane %v1429_v3, 4  ;;  %v1387_v23 = vmul.f32 %v1361_v14, %v9048_v46  ;;  %v1850_v38 = vmul.f32 %v1650_v16, %v9000_v47 }
 0x255   : > { %v1420_v27 = vrot.slane %v1419_v12, 4  ;;  %v1440_v31 = vrot.slane %v1439_v13, 4 }
 0x256   : > { %v1411_v35 = vadd.f32 %v1410_v18, %v1409_v2  ;;  %v1431_v36 = vadd.f32 %v1430_v19, %v1429_v3  ;;  %v1456_v37 = vsel %vm981_vm2, %v1387_v23, 0.0  ;;  %v1365_v39 = vpop.f32.mrb[14].mxu1  ;;  %v1654_v40 = vpop.f32.mrb[30].mxu0 }
 0x257   : > { %v1421_v41 = vadd.f32 %v1420_v27, %v1419_v12  ;;  %v1441_v42 = vadd.f32 %v1440_v31, %v1439_v13  ;;  %v1392_v44 = vmul.f32 %v1365_v39, %v9055_v1  ;;  %v1855_v48 = vmul.f32 %v1654_v40, %v9002_v49  ;;  %v1367_v28 = vpop.f32.mrb[15].mxu1  ;;  %v1656_v53 = vpop.f32.mrb[31].mxu0 }
 0x258   : > { %v1412_v56 = vrot.slane %v1411_v35, 2  ;;  %v1432_v54 = vrot.slane %v1431_v36, 2  ;;  %v1393_v15 = vmul.f32 %v1367_v28, %v9058_v5  ;;  %v1856_v58 = vmul.f32 %v1656_v53, %v9005_v51 }
 0x259   : > { %v1422_v60 = vrot.slane %v1421_v41, 2  ;;  %v1442_v62 = vrot.slane %v1441_v42, 2  ;;  %v1446_v63 = vadd.f32 %v1392_v44, %v1386_v32  ;;  %v1873_v57 = vadd.f32 %v1855_v48, %v1849_v34 }
 0x25a   : > { %v1413_v2 = vadd.f32 %v1412_v56, %v1411_v35  ;;  %v1433_v3 = vadd.f32 %v1432_v54, %v1431_v36  ;;  %v1457_v7 = vsel %vm981_vm2, %v1393_v15, 0.0  ;;  %v1883_v9 = vadd.f32 %v1856_v58, %v1850_v38  ;;  %v1371_v10 = vpop.f32.mrb[16].mxu1  ;;  %v1660_v11 = vpop.f32.mrb[32].mxu0 }
 0x25b   : > { %v1423_v12 = vadd.f32 %v1422_v60, %v1421_v41  ;;  %v1443_v13 = vadd.f32 %v1442_v62, %v1441_v42  ;;  %v1458_v14 = vadd.f32 %v1457_v7, %v1456_v37  ;;  %v1398_v16 = vmul.f32 %v1371_v10, %v9063_v21  ;;  %v1373_v18 = vpop.f32.mrb[17].mxu1  ;;  %v1662_v19 = vpop.f32.mrb[33].mxu0 }
 0x25c   : > { %v1414_v23 = vrot.slane %v1413_v2, 1  ;;  %v1434_v27 = vrot.slane %v1433_v3, 1  ;;  %v1861_v31 = vmul.f32 %v1660_v11, %v9010_v59  ;;  %v1399_v32 = vmul.f32 %v1373_v18, %v9065_v33 }
 0x25d   : > { %v1424_v34 = vrot.slane %v1423_v12, 1  ;;  %v1444_v35 = vrot.slane %v1443_v13, 1  ;;  %v1447_v36 = vadd.f32 %v1446_v63, %v1398_v16  ;;  %v1862_v38 = vmul.f32 %v1662_v19, %v9012_v61 }
 0x25e   : > { %v1415_v39 = vadd.f32 %v1414_v23, %v1413_v2  ;;  %v1435_v40 = vadd.f32 %v1434_v27, %v1433_v3  ;;  %v1874_v41 = vadd.f32 %v1873_v57, %v1861_v31  ;;  %v1459_v37 = vsel %vm981_vm2, %v1399_v32, 0.0  ;;  %v1377_v42 = vpop.f32.mrb[18].mxu1  ;;  %v1666_v44 = vpop.f32.mrb[34].mxu0 }
 0x25f   : > { %v1425_v48 = vadd.f32 %v1424_v34, %v1423_v12  ;;  %v1445_v28 = vadd.f32 %v1444_v35, %v1443_v13  ;;  %v1460_v53 = vadd.f32 %v1459_v37, %v1458_v14  ;;  %v1884_v56 = vadd.f32 %v1883_v9, %v1862_v38  ;;  %v1379_v54 = vpop.f32.mrb[19].mxu1  ;;  %v1668_v15 = vpop.f32.mrb[35].mxu0 }
 0x260   : > { %v1404_v58 = vmul.f32 %v1377_v42, %v9070_v43  ;;  %v1867_v60 = vmul.f32 %v1666_v44, %v9016_v6  ;;  %v1405_v62 = vmul.f32 %v1379_v54, %v9073_v55  ;;  %v1868_v63 = vmul.f32 %v1668_v15, %v9018_v8 }
 0x261   : > { %v1474_v2 = vcombine.low %v1415_v39, %v1425_v48  ;;  %v1475_v57 = vcombine.low %v1435_v40, %v1445_v28 }
 0x262   : > { %v1448_v3 = vsel %vm932_vm1, %v1404_v58, 0.0  ;;  %v1875_v7 = vsel %vm932_vm1, %v1867_v60, 0.0  ;;  %v1461_v10 = vsel %vm987_vm3, %v1405_v62, 0.0  ;;  %v1885_v9 = vsel %vm932_vm1, %v1868_v63, 0.0  ;;  %v1737_v11 = vpop.f32.mrb[20].mxu1  ;;  %v1826_v12 = vpop.f32.mrb[36].mxu0 }
 0x263   : > { %v1449_v13 = vadd.f32 %v1448_v3, %v1447_v36  ;;  %v1876_v14 = vadd.f32 %v1875_v7, %v1874_v41  ;;  %v1462_v16 = vadd.f32 %v1461_v10, %v1460_v53  ;;  %v1886_v18 = vadd.f32 %v1885_v9, %v1884_v56  ;;  %v1739_v19 = vpop.f32.mrb[21].mxu1  ;;  %v1828_v23 = vpop.f32.mrb[37].mxu0 }
 0x264   : > { %v1851_v27 = vmul.f32 %v1737_v11, %v9024_v17  ;;  %v1853_v31 = vmul.f32 %v1826_v12, %v9050_v52  ;;  %v1854_v32 = vmul.f32 %v1828_v23, %v9048_v46  ;;  %v1852_v40 = vmul.f32 %v1739_v19, %v9026_v20 }
 0x265   : > { %v1450_v34 = vrot.slane %v1449_v13, 4  ;;  %v1877_v35 = vrot.slane %v1876_v14, 4  ;;  %v1463_v38 = vrot.slane %v1462_v16, 4  ;;  %v1887_v39 = vrot.slane %v1886_v18, 4 }
 0x266   : > { %v1923_v37 = vsel %vm981_vm2, %v1854_v32, 0.0  ;;  %v1743_v36 = vpop.f32.mrb[22].mxu1  ;;  %v1832_v41 = vpop.f32.mrb[38].mxu0  ;;  %v9151_v42 = vrot.slane %v1474_v2, %v9078_v4  ;;  %v9154_v44 = vrot.slane %v1475_v57, %v9078_v4 }
 0x267   : > { %v1451_v48 = vadd.f32 %v1450_v34, %v1449_v13  ;;  %v1878_v28 = vadd.f32 %v1877_v35, %v1876_v14  ;;  %v1464_v53 = vadd.f32 %v1463_v38, %v1462_v16  ;;  %v1888_v56 = vadd.f32 %v1887_v39, %v1886_v18  ;;  %v1745_v54 = vpop.f32.mrb[23].mxu1  ;;  %v1834_v15 = vpop.f32.mrb[39].mxu0 }
 0x268   : > { %v1857_v58 = vmul.f32 %v1743_v36, %v9030_v24  ;;  %v1859_v60 = vmul.f32 %v1832_v41, %v9055_v1  ;;  %v1858_v62 = vmul.f32 %v1745_v54, %v9037_v29  ;;  %v1860_v63 = vmul.f32 %v1834_v15, %v9058_v5 }
 0x269   : > { %v1452_v3 = vrot.slane %v1451_v48, 2  ;;  %v1879_v2 = vrot.slane %v1878_v28, 2  ;;  %v1465_v7 = vrot.slane %v1464_v53, 2  ;;  %v1889_v10 = vrot.slane %v1888_v56, 2 }
 0x26a   : > { %v1893_v57 = vadd.f32 %v1857_v58, %v1851_v27  ;;  %v1913_v9 = vadd.f32 %v1859_v60, %v1853_v31  ;;  %v1903_v11 = vadd.f32 %v1858_v62, %v1852_v40  ;;  %v1924_v12 = vsel %vm981_vm2, %v1860_v63, 0.0  ;;  %v1749_v13 = vpop.f32.mrb[24].mxu1  ;;  %v1838_v14 = vpop.f32.mrb[40].mxu0 }
 0x26b   : > { %v1453_v16 = vadd.f32 %v1452_v3, %v1451_v48  ;;  %v1880_v18 = vadd.f32 %v1879_v2, %v1878_v28  ;;  %v1466_v19 = vadd.f32 %v1465_v7, %v1464_v53  ;;  %v1890_v23 = vadd.f32 %v1889_v10, %v1888_v56  ;;  %v1751_v32 = vpop.f32.mrb[25].mxu1  ;;  %v1840_v34 = vpop.f32.mrb[41].mxu0 }
 0x26c   : > { %v1925_v35 = vadd.f32 %v1924_v12, %v1923_v37  ;;  %v1863_v38 = vmul.f32 %v1749_v13, %v9032_v25  ;;  %v1865_v39 = vmul.f32 %v1838_v14, %v9063_v21  ;;  %v1864_v36 = vmul.f32 %v1751_v32, %v9039_v30 }
 0x26d   : > { %v1454_v27 = vrot.slane %v1453_v16, 1  ;;  %v1881_v31 = vrot.slane %v1880_v18, 1  ;;  %v1467_v40 = vrot.slane %v1466_v19, 1  ;;  %v1891_v41 = vrot.slane %v1890_v23, 1 }
 0x26e   : > { %v1894_v54 = vadd.f32 %v1893_v57, %v1863_v38  ;;  %v1914_v15 = vadd.f32 %v1913_v9, %v1865_v39  ;;  %v1904_v58 = vadd.f32 %v1903_v11, %v1864_v36  ;;  %v1866_v48 = vmul.f32 %v1840_v34, %v9065_v33  ;;  %v1755_v28 = vpop.f32.mrb[26].mxu1  ;;  %v1844_v53 = vpop.f32.mrb[42].mxu0 }
 0x26f   : > { %v9165_v56 = vadd.f32 %v1454_v27, %v1453_v16  ;;  %v9167_v37 = vadd.f32 %v1881_v31, %v1880_v18  ;;  %v9169_v60 = vadd.f32 %v1467_v40, %v1466_v19  ;;  %v9171_v62 = vadd.f32 %v1891_v41, %v1890_v23  ;;  %v1757_v63 = vpop.f32.mrb[27].mxu1  ;;  %v1846_v3 = vpop.f32.mrb[43].mxu0 }
 0x270   : > { %v1926_v2 = vsel %vm981_vm2, %v1866_v48, 0.0  ;;  %v1869_v7 = vmul.f32 %v1755_v28, %v9028_v22  ;;  %v1871_v10 = vmul.f32 %v1844_v53, %v9070_v43  ;;  %v1870_v57 = vmul.f32 %v1757_v63, %v9034_v26 }
 0x271   : > { %v1941_v9 = vcombine.low %v9167_v37, %v9171_v62  ;;  %v1927_v11 = vadd.f32 %v1926_v2, %v1925_v35  ;;  %v1872_v12 = vmul.f32 %v1846_v3, %v9073_v55  ;;  %v1496_v13 = vrot.slane %v9165_v56, %v9078_v4 }
 0x272   : > { %v1895_v14 = vsel %vm932_vm1, %v1869_v7, 0.0  ;;  %v1915_v16 = vsel %vm932_vm1, %v1871_v10, 0.0  ;;  %v1905_v18 = vsel %vm932_vm1, %v1870_v57, 0.0  ;;  %v2115_v19 = vpop.f32.mrb[28].mxu1  ;;  %v2204_v23 = vpop.f32.mrb[44].mxu0  ;;  %v1497_v32 = vcombine.low %v9151_v42, %v9154_v44 }
 0x273   : > { %v1896_v34 = vadd.f32 %v1895_v14, %v1894_v54  ;;  %v1916_v38 = vadd.f32 %v1915_v16, %v1914_v15  ;;  %v1906_v39 = vadd.f32 %v1905_v18, %v1904_v58  ;;  %v1928_v35 = vsel %vm987_vm3, %v1872_v12, 0.0  ;;  %v2117_v36 = vpop.f32.mrb[29].mxu1  ;;  %v2206_v27 = vpop.f32.mrb[45].mxu0 }
 0x274   : > { %v1929_v31 = vadd.f32 %v1928_v35, %v1927_v11  ;;  %v2316_v40 = vmul.f32 %v2115_v19, %v8998_v45  ;;  %v2318_v41 = vmul.f32 %v2204_v23, %v9024_v17  ;;  %v2317_v48 = vmul.f32 %v2117_v36, %v9000_v47 }
 0x275   : > { %v1897_v28 = vrot.slane %v1896_v34, 4  ;;  %v1917_v53 = vrot.slane %v1916_v38, 4  ;;  %v1907_v63 = vrot.slane %v1906_v39, 4  ;;  %v2319_v3 = vmul.f32 %v2206_v27, %v9026_v20 }
 0x276   : > { %v1930_v42 = vrot.slane %v1929_v31, 4  ;;  %v2121_v44 = vpop.f32.mrb[30].mxu1  ;;  %v2210_v54 = vpop.f32.mrb[46].mxu0  ;;  %v1504_v15 = vrot.slane %v1497_v32, %v9078_v4  ;;  %v1511_v58 = vrot.slane %v1496_v13, %v9078_v4  ;;  %v1534_v2 = vcombine.low %v9165_v56, %v9169_v60 }
 0x277   : > { %v1898_v7 = vadd.f32 %v1897_v28, %v1896_v34  ;;  %v1918_v10 = vadd.f32 %v1917_v53, %v1916_v38  ;;  %v1908_v17 = vadd.f32 %v1907_v63, %v1906_v39  ;;  %v2322_v57 = vmul.f32 %v2121_v44, %v9002_v49  ;;  %v2123_v11 = vpop.f32.mrb[31].mxu1  ;;  %v2212_v12 = vpop.f32.mrb[47].mxu0 }
 0x278   : > { %v1931_v14 = vadd.f32 %v1930_v42, %v1929_v31  ;;  %v2324_v20 = vmul.f32 %v2210_v54, %v9030_v24  ;;  %v1512_v16 = vcombine.low %v1504_v15, %v1511_v58  ;;  %v2323_v18 = vmul.f32 %v2123_v11, %v9005_v51 }
 0x279   : > { %v1899_v19 = vrot.slane %v1898_v7, 2  ;;  %v1919_v23 = vrot.slane %v1918_v10, 2  ;;  %v1909_v32 = vrot.slane %v1908_v17, 2  ;;  %v2340_v13 = vadd.f32 %v2322_v57, %v2316_v40 }
 0x27a   : > { %v1932_v35 = vrot.slane %v1931_v14, 2  ;;  %v2360_v36 = vadd.f32 %v2324_v20, %v2318_v41  ;;  %1515 = vst.msk [vmem:[#allocation2 + $0x1] ss:$8 sm:$0xf] %vm9088_vm4, %v1512_v16  ;;  %1517 = vrot.lane.b32.xlu1 %v1512_v16, %s8404_s6  ;;  %1525 = vrot.lane.b32.xlu0 %v1512_v16, %s8403_s30  ;;  %v2350_v24 = vadd.f32 %v2323_v18, %v2317_v48  ;;  %v2127_v60 = vpop.f32.mrb[32].mxu1  ;;  %v2216_v34 = vpop.f32.mrb[48].mxu0 }
 0x27b   : > { %1516 = vst.msk [vmem:[#allocation2 + $0x1] ss:$8 sm:$0x10] %vm9088_vm4, %v1512_v16  ;;  %v2325_v56 = vmul.f32 %v2212_v12, %v9037_v29  ;;  %v1900_v38 = vadd.f32 %v1899_v19, %v1898_v7  ;;  %v1920_v39 = vadd.f32 %v1919_v23, %v1918_v10  ;;  %v1910_v27 = vadd.f32 %v1909_v32, %v1908_v17  ;;  %v2129_v40 = vpop.f32.mrb[33].mxu1  ;;  %v2218_v41 = vpop.f32.mrb[49].mxu0 }
 0x27c   : > { %v2328_v31 = vmul.f32 %v2127_v60, %v9010_v59  ;;  %v1933_v28 = vadd.f32 %v1932_v35, %v1931_v14  ;;  %v2330_v63 = vmul.f32 %v2216_v34, %v9032_v25  ;;  %v1541_v42 = vrot.slane %v1534_v2, %v9078_v4 }
 0x27d   : > { %v2370_v53 = vadd.f32 %v2325_v56, %v2319_v3  ;;  %v1901_v44 = vrot.slane %v1900_v38, 1  ;;  %v1921_v54 = vrot.slane %v1920_v39, 1  ;;  %v1911_v48 = vrot.slane %v1910_v27, 1 }
 0x27e   : > { %v2341_v58 = vadd.f32 %v2340_v13, %v2328_v31  ;;  %v1934_v29 = vrot.slane %v1933_v28, 1  ;;  %v2361_v57 = vadd.f32 %v2360_v36, %v2330_v63  ;;  %v1548_v7 = vrot.slane %v1541_v42, %v9078_v4  ;;  %v2133_v17 = vpop.f32.mrb[34].mxu1  ;;  %v2222_v11 = vpop.f32.mrb[50].mxu0 }
 0x27f   : > { %v2329_v10 = vmul.f32 %v2129_v40, %v9012_v61  ;;  %v1902_v12 = vadd.f32 %v1901_v44, %v1900_v38  ;;  %v9211_v20 = vadd.f32 %v1921_v54, %v1920_v39  ;;  %v1912_v3 = vadd.f32 %v1911_v48, %v1910_v27  ;;  %v2135_v14 = vpop.f32.mrb[35].mxu1  ;;  %v2224_v2 = vpop.f32.mrb[51].mxu0 }
 0x280   : > { %v2331_v25 = vmul.f32 %v2218_v41, %v9039_v30  ;;  %v9214_v16 = vadd.f32 %v1934_v29, %v1933_v28  ;;  %v1549_v18 = vcombine.low %v1504_v15, %v1548_v7  ;;  %v2334_v23 = vmul.f32 %v2133_v17, %v9016_v6 }
 0x281   : > { %v2351_v19 = vadd.f32 %v2350_v24, %v2329_v10  ;;  %v1942_v32 = vcombine.low %v1902_v12, %v1912_v3  ;;  %v2336_v35 = vmul.f32 %v2222_v11, %v9028_v22  ;;  %v2335_v36 = vmul.f32 %v2135_v14, %v9018_v8 }
 0x282   : > { %v2371_v13 = vadd.f32 %v2370_v53, %v2331_v25  ;;  %1558 = vrot.lane.b32.xlu1 %v1549_v18, %s8405_s12  ;;  %1550 = vrot.lane.b32.xlu0 %v1549_v18, %s8406_s24  ;;  %v2342_v30 = vsel %vm932_vm1, %v2334_v23, 0.0  ;;  %v2337_v56 = vmul.f32 %v2224_v2, %v9034_v26  ;;  %v2293_v60 = vpop.f32.mrb[36].mxu1  ;;  %v2582_v34 = vpop.f32.mrb[52].mxu0  ;;  %v9227_v15 = vrot.slane %v1941_v9, %v9078_v4 }
 0x283   : > { %v1963_v22 = vrot.slane %v9211_v20, %v9078_v4  ;;  %v2343_v24 = vadd.f32 %v2342_v30, %v2341_v58  ;;  %v2362_v38 = vsel %vm932_vm1, %v2336_v35, 0.0  ;;  %v2352_v39 = vsel %vm932_vm1, %v2335_v36, 0.0  ;;  %v2295_v31 = vpop.f32.mrb[37].mxu1  ;;  %v2584_v26 = vpop.f32.mrb[53].mxu0 }
 0x284   : > { %v2320_v27 = vmul.f32 %v2293_v60, %v9050_v52  ;;  %v2363_v40 = vadd.f32 %v2362_v38, %v2361_v57  ;;  %v2353_v41 = vadd.f32 %v2352_v39, %v2351_v19  ;;  %v2372_v28 = vsel %vm932_vm1, %v2337_v56, 0.0 }
 0x285   : > { %v2321_v37 = vmul.f32 %v2295_v31, %v9048_v46  ;;  %v2344_v62 = vrot.slane %v2343_v24, 4  ;;  %v2373_v9 = vadd.f32 %v2372_v28, %v2371_v13  ;;  %v2783_v53 = vmul.f32 %v2582_v34, %v8998_v45 }
 0x286   : > { %v2784_v63 = vmul.f32 %v2584_v26, %v9000_v47  ;;  %v2364_v42 = vrot.slane %v2363_v40, 4  ;;  %v2354_v44 = vrot.slane %v2353_v41, 4  ;;  %v2299_v48 = vpop.f32.mrb[38].mxu1  ;;  %v2588_v58 = vpop.f32.mrb[54].mxu0  ;;  %v1956_v29 = vrot.slane %v1942_v32, %v9078_v4 }
 0x287   : > { %v2390_v54 = vsel %vm981_vm2, %v2321_v37, 0.0  ;;  %v2345_v57 = vadd.f32 %v2344_v62, %v2343_v24  ;;  %v2374_v7 = vrot.slane %v2373_v9, 4  ;;  %v2326_v10 = vmul.f32 %v2299_v48, %v9055_v1  ;;  %v2301_v11 = vpop.f32.mrb[39].mxu1  ;;  %v2590_v12 = vpop.f32.mrb[55].mxu0 }
 0x288   : > { %v2789_v17 = vmul.f32 %v2588_v58, %v9002_v49  ;;  %v2365_v3 = vadd.f32 %v2364_v42, %v2363_v40  ;;  %v2355_v45 = vadd.f32 %v2354_v44, %v2353_v41  ;;  %v2327_v47 = vmul.f32 %v2301_v11, %v9058_v5 }
 0x289   : > { %v2790_v25 = vmul.f32 %v2590_v12, %v9005_v51  ;;  %v2346_v14 = vrot.slane %v2345_v57, 2  ;;  %v2375_v2 = vadd.f32 %v2374_v7, %v2373_v9  ;;  %v2380_v18 = vadd.f32 %v2326_v10, %v2320_v27 }
 0x28a   : > { %v2807_v19 = vadd.f32 %v2789_v17, %v2783_v53  ;;  %v2366_v23 = vrot.slane %v2365_v3, 2  ;;  %v2356_v32 = vrot.slane %v2355_v45, 2  ;;  %v2391_v13 = vsel %vm981_vm2, %v2327_v47, 0.0  ;;  %v2305_v36 = vpop.f32.mrb[40].mxu1  ;;  %v2594_v30 = vpop.f32.mrb[56].mxu0 }
 0x28b   : > { %v2817_v35 = vadd.f32 %v2790_v25, %v2784_v63  ;;  %v2347_v49 = vadd.f32 %v2346_v14, %v2345_v57  ;;  %v2376_v56 = vrot.slane %v2375_v2, 2  ;;  %v2392_v60 = vadd.f32 %v2391_v13, %v2390_v54  ;;  %v2307_v24 = vpop.f32.mrb[41].mxu1  ;;  %v2596_v38 = vpop.f32.mrb[57].mxu0 }
 0x28c   : > { %v2332_v34 = vmul.f32 %v2305_v36, %v9063_v21  ;;  %v2367_v39 = vadd.f32 %v2366_v23, %v2365_v3  ;;  %v2357_v51 = vadd.f32 %v2356_v32, %v2355_v45  ;;  %v2795_v31 = vmul.f32 %v2594_v30, %v9010_v59 }
 0x28d   : > { %v2333_v27 = vmul.f32 %v2307_v24, %v9065_v33  ;;  %v2348_v26 = vrot.slane %v2347_v49, 1  ;;  %v2377_v40 = vadd.f32 %v2376_v56, %v2375_v2  ;;  %v2796_v28 = vmul.f32 %v2596_v38, %v9012_v61 }
 0x28e   : > { %v2381_v41 = vadd.f32 %v2380_v18, %v2332_v34  ;;  %v2368_v37 = vrot.slane %v2367_v39, 1  ;;  %v2358_v62 = vrot.slane %v2357_v51, 1  ;;  %v2808_v9 = vadd.f32 %v2807_v19, %v2795_v31  ;;  %v2311_v63 = vpop.f32.mrb[42].mxu1  ;;  %v2600_v42 = vpop.f32.mrb[58].mxu0  ;;  %v8065_v31 = vld [vmem:[#allocation7 + $0x18] sm:$0xff] }
 0x28f   : > { %v2393_v53 = vsel %vm981_vm2, %v2333_v27, 0.0  ;;  %v9250_v44 = vadd.f32 %v2348_v26, %v2347_v49  ;;  %v2378_v54 = vrot.slane %v2377_v40, 1  ;;  %v2818_v58 = vadd.f32 %v2817_v35, %v2796_v28  ;;  %v2313_v59 = vpop.f32.mrb[43].mxu1  ;;  %v2602_v57 = vpop.f32.mrb[59].mxu0  ;;  %v8066_v26 = vld [vmem:[#allocation7 + $0x40] sm:$0xff] }
 0x290   : > { %v2394_v48 = vadd.f32 %v2393_v53, %v2392_v60  ;;  %v9252_v33 = vadd.f32 %v2368_v37, %v2367_v39  ;;  %v9254_v7 = vadd.f32 %v2358_v62, %v2357_v51  ;;  %v1964_v61 = vcombine.low %v9227_v15, %v1956_v29 }
 0x291   : > { %v1978_v10 = vrot.slane %v1963_v22, %v9078_v4  ;;  %v9261_v17 = vadd.f32 %v2378_v54, %v2377_v40  ;;  %v2338_v11 = vmul.f32 %v2311_v63, %v9070_v43  ;;  %v2801_v12 = vmul.f32 %v2600_v42, %v9016_v6 }
 0x292   : > { %v2339_v3 = vmul.f32 %v2313_v59, %v9073_v55  ;;  %v2408_v45 = vcombine.low %v9250_v44, %v9254_v7  ;;  %v1971_v47 = vrot.slane %v1964_v61, %v9078_v4  ;;  %v2802_v15 = vmul.f32 %v2602_v57, %v9018_v8  ;;  %v2671_v25 = vpop.f32.mrb[44].mxu1  ;;  %v2760_v22 = vpop.f32.mrb[60].mxu0 }
 0x293   : > { %v2001_v29 = vcombine.low %v9211_v20, %v9214_v16  ;;  %v2409_v14 = vcombine.low %v9252_v33, %v9261_v17  ;;  %v2382_v2 = vsel %vm932_vm1, %v2338_v11, 0.0  ;;  %v2809_v6 = vsel %vm932_vm1, %v2801_v12, 0.0  ;;  %v2673_v19 = vpop.f32.mrb[45].mxu1  ;;  %v2762_v23 = vpop.f32.mrb[61].mxu0  ;;  %v8064_v16 = vld [vmem:[#allocation7 + $0x10] sm:$0xff] }
 0x294   : > { %v2395_v18 = vsel %vm987_vm3, %v2339_v3, 0.0  ;;  %v1979_v32 = vcombine.low %v1971_v47, %v1978_v10  ;;  %v2383_v13 = vadd.f32 %v2382_v2, %v2381_v41  ;;  %v2810_v35 = vadd.f32 %v2809_v6, %v2808_v9  ;;  %v8067_v3 = vld [vmem:[#allocation7 + $0x48] sm:$0xff] }
 0x295   : > { %v2396_v8 = vadd.f32 %v2395_v18, %v2394_v48  ;;  %v2819_v36 = vsel %vm932_vm1, %v2802_v15, 0.0  ;;  %v2008_v20 = vrot.slane %v2001_v29, %v9078_v4  ;;  %v2785_v30 = vmul.f32 %v8064_v16, %v2671_v25 }
 0x296   : > { %v2787_v49 = vmul.f32 %v2760_v22, %v9050_v52  ;;  %1982 = vst.msk [vmem:[#allocation2 + $0x2] ss:$8 sm:$0xf] %vm9088_vm4, %v1979_v32  ;;  %1983 = vst.msk [vmem:[#allocation2 + $0x2] ss:$8 sm:$0x10] %vm9088_vm4, %v1979_v32  ;;  %1984 = vrot.lane.b32.xlu1 %v1979_v32, %s8404_s6  ;;  %1992 = vrot.lane.b32.xlu0 %v1979_v32, %s8403_s30  ;;  %v2820_v24 = vadd.f32 %v2819_v36, %v2818_v58  ;;  %v1057_v58 = vpop.permute.xlu1 %1056 }
 0x297   : > { %v2384_v56 = vrot.slane %v2383_v13, 4  ;;  %v2811_v60 = vrot.slane %v2810_v35, 4  ;;  %v2397_v34 = vrot.slane %v2396_v8, 4  ;;  %v2677_v38 = vpop.f32.mrb[46].mxu1  ;;  %v2766_v39 = vpop.f32.mrb[62].mxu0  ;;  %v2015_v51 = vrot.slane %v2008_v20, %v9078_v4  ;;  %v8068_v32 = vld [vmem:[#allocation7 + $0x70] sm:$0xff] }
 0x298   : > { %v2786_v52 = vmul.f32 %v8065_v31, %v2673_v19  ;;  %v2788_v27 = vmul.f32 %v2762_v23, %v9048_v46  ;;  %v2791_v40 = vmul.f32 %v8066_v26, %v2677_v38  ;;  %v2679_v41 = vpop.f32.mrb[47].mxu1  ;;  %v2768_v28 = vpop.f32.mrb[63].mxu0  ;;  %v2821_v53 = vrot.slane %v2820_v24, 4 }
 0x299   : > { %v2385_v37 = vadd.f32 %v2384_v56, %v2383_v13  ;;  %v2812_v62 = vadd.f32 %v2811_v60, %v2810_v35  ;;  %v2398_v9 = vadd.f32 %v2397_v34, %v2396_v8  ;;  %v2016_v63 = vcombine.low %v1971_v47, %v2015_v51  ;;  %v1048_v8 = vpop.permute.xlu0 %1047 }
 0x29a   : > { %v2857_v42 = vsel %vm981_vm2, %v2788_v27, 0.0  ;;  %v2827_v54 = vadd.f32 %v2791_v40, %v2785_v30  ;;  %v2793_v48 = vmul.f32 %v2766_v39, %v9055_v1  ;;  %v2822_v46 = vadd.f32 %v2821_v53, %v2820_v24  ;;  %v2683_v10 = vpop.f32.mrb[48].mxu1  ;;  %v2772_v11 = vpop.f32.mrb[64].mxu0  ;;  %v8069_v24 = vld [vmem:[#allocation7 + $0x78] sm:$0xff]  ;;  %v8070_v40 = vld [vmem:[#allocation7 + $0x88] sm:$0xff] }
 0x29b   : > { %v2386_v59 = vrot.slane %v2385_v37, 2  ;;  %v2813_v57 = vrot.slane %v2812_v62, 2  ;;  %v2399_v61 = vrot.slane %v2398_v9, 2  ;;  %2025 = vrot.lane.b32.xlu1 %v2016_v63, %s8405_s12  ;;  %2017 = vrot.lane.b32.xlu0 %v2016_v63, %s8406_s24  ;;  %v2792_v47 = vmul.f32 %v8067_v3, %v2679_v41  ;;  %v2685_v29 = vpop.f32.mrb[49].mxu1  ;;  %v2774_v25 = vpop.f32.mrb[65].mxu0 }
 0x29c   : > { %v2847_v12 = vadd.f32 %v2793_v48, %v2787_v49  ;;  %v2794_v15 = vmul.f32 %v2768_v28, %v9058_v5  ;;  %v1058_v1 = vrot.slane %v1057_v58, 1  ;;  %v2823_v18 = vrot.slane %v2822_v46, 2  ;;  %v8071_v28 = vld [vmem:[#allocation7 + $0xa0] sm:$0xf]  ;;  %v8072_v53 = vld [vmem:[#allocation7 + $0xa8] sm:$0xf] }
 0x29d   : > { %v2387_v22 = vadd.f32 %v2386_v59, %v2385_v37  ;;  %v2814_v2 = vadd.f32 %v2813_v57, %v2812_v62  ;;  %v2400_v6 = vadd.f32 %v2399_v61, %v2398_v9  ;;  %v2837_v19 = vadd.f32 %v2792_v47, %v2786_v52 }
 0x29e   : > { %v2858_v23 = vsel %vm981_vm2, %v2794_v15, 0.0  ;;  %v2797_v13 = vmul.f32 %v8068_v32, %v2683_v10  ;;  %v2799_v35 = vmul.f32 %v2772_v11, %v9063_v21  ;;  %v2824_v30 = vadd.f32 %v2823_v18, %v2822_v46  ;;  %v2689_v5 = vpop.f32.mrb[50].mxu1  ;;  %v2778_v49 = vpop.f32.mrb[66].mxu0 }
 0x29f   : > { %v2388_v36 = vrot.slane %v2387_v22, 1  ;;  %v2815_v20 = vrot.slane %v2814_v2, 1  ;;  %v2401_v16 = vrot.slane %v2400_v6, 1  ;;  %v2859_v56 = vadd.f32 %v2858_v23, %v2857_v42  ;;  %v2691_v39 = vpop.f32.mrb[51].mxu1  ;;  %v2780_v51 = vpop.f32.mrb[67].mxu0 }
 0x2a0   : > { %v2828_v60 = vadd.f32 %v2827_v54, %v2797_v13  ;;  %v2848_v34 = vadd.f32 %v2847_v12, %v2799_v35  ;;  %v2798_v38 = vmul.f32 %v8069_v24, %v2685_v29  ;;  %v2825_v27 = vrot.slane %v2824_v30, 1  ;;  %v1083_v11 = vpop.permute.xlu0 %1082 }
 0x2a1   : > { %v9295_v31 = vadd.f32 %v2388_v36, %v2387_v22  ;;  %v9297_v52 = vadd.f32 %v2815_v20, %v2814_v2  ;;  %v9299_v21 = vadd.f32 %v2401_v16, %v2400_v6  ;;  %v2800_v41 = vmul.f32 %v8070_v40, %v2774_v25 }
 0x2a2   : > { %v2838_v26 = vadd.f32 %v2837_v19, %v2798_v38  ;;  %v2803_v37 = vmul.f32 %v8071_v28, %v2689_v5  ;;  %v2805_v62 = vmul.f32 %v2778_v49, %v9070_v43  ;;  %v9302_v9 = vadd.f32 %v2825_v27, %v2824_v30 }
 0x2a3   : > { %v2804_v63 = vmul.f32 %v8072_v53, %v2691_v39  ;;  %v2806_v42 = vmul.f32 %v2780_v51, %v9073_v55  ;;  %v1060_v54 = vsel %vm1059_vm5, %v1057_v58, %v1058_v1  ;;  %v2860_v48 = vsel %vm981_vm2, %v2800_v41, 0.0  ;;  %v1092_v58 = vpop.permute.xlu1 %1091 }
 0x2a4   : > { %v2829_v59 = vsel %vm932_vm1, %v2803_v37, 0.0  ;;  %v2849_v57 = vsel %vm932_vm1, %v2805_v62, 0.0  ;;  %1063 = vst.msk [vmem:[#allocation2 + $0x2a] ss:$8 sm:$0xf] %vm9088_vm4, %v1060_v54  ;;  %v1049_v43 = vrot.slane %v1048_v8, 1  ;;  %v2875_v61 = vcombine.low %v9297_v52, %v9302_v9 }
 0x2a5   : > { %1064 = vst.msk [vmem:[#allocation2 + $0x2a] ss:$8 sm:$0x10] %vm9088_vm4, %v1060_v54  ;;  %v2861_v46 = vadd.f32 %v2860_v48, %v2859_v56  ;;  %v2830_v55 = vadd.f32 %v2829_v59, %v2828_v60  ;;  %v2850_v10 = vadd.f32 %v2849_v57, %v2848_v34  ;;  %v2839_v12 = vsel %vm932_vm1, %v2804_v63, 0.0  ;;  %v2989_v52 = vld [vmem:[%s10080_s2] sm:$0xff] }
 0x2a6   : > { %v2862_v3 = vsel %vm987_vm3, %v2806_v42, 0.0  ;;  %v1051_v47 = vsel %vm1050_vm6, %v1048_v8, %v1049_v43  ;;  %v2416_v15 = vrot.slane %v2408_v45, %v9078_v4  ;;  %v2840_v1 = vadd.f32 %v2839_v12, %v2838_v26  ;;  %v2990_v9 = vld [vmem:[%s10080_s2 + $0x8] sm:$0x3] }
 0x2a7   : > { %v2831_v29 = vrot.slane %v2830_v55, 4  ;;  %v2851_v25 = vrot.slane %v2850_v10, 4  ;;  %v2863_v22 = vadd.f32 %v2862_v3, %v2861_v46  ;;  %1054 = vst.msk [vmem:[#allocation2 + $0x5] ss:$8 sm:$0xf] %vm9088_vm4, %v1051_v47  ;;  %v2423_v2 = vrot.slane %v2409_v14, %v9078_v4 }
 0x2a8   : > { %1055 = vst.msk [vmem:[#allocation2 + $0x5] ss:$8 sm:$0x10] %vm9088_vm4, %v1051_v47  ;;  %v2430_v6 = vrot.slane %v9295_v31, %v9078_v4  ;;  %v1093_v44 = vrot.slane %v1092_v58, 1  ;;  %v1084_v7 = vrot.slane %v1083_v11, 1  ;;  %v2841_v19 = vrot.slane %v2840_v1, 4 }
 0x2a9   : > { %v2832_v45 = vadd.f32 %v2831_v29, %v2830_v55  ;;  %v2852_v18 = vadd.f32 %v2851_v25, %v2850_v10  ;;  %v2864_v23 = vrot.slane %v2863_v22, 4  ;;  %v2431_v32 = vcombine.low %v2416_v15, %v2423_v2 }
 0x2aa   : > { %v2445_v13 = vrot.slane %v2430_v6, %v9078_v4  ;;  %v1094_v35 = vsel %vm981_vm2, %v1092_v58, %v1093_v44  ;;  %v1086_v8 = vsel %vm1085_vm7, %v1083_v11, %v1084_v7  ;;  %v2842_v33 = vadd.f32 %v2841_v19, %v2840_v1 }
 0x2ab   : > { %v2833_v36 = vrot.slane %v2832_v45, 2  ;;  %v2853_v20 = vrot.slane %v2852_v18, 2  ;;  %v2865_v17 = vadd.f32 %v2864_v23, %v2863_v22  ;;  %1097 = vst.msk [vmem:[#allocation2 + $0x54] ss:$8 sm:$0xf] %vm9088_vm4, %v1094_v35  ;;  %v2438_v14 = vrot.slane %v2431_v32, %v9078_v4 }
 0x2ac   : > { %1098 = vst.msk [vmem:[#allocation2 + $0x54] ss:$8 sm:$0x10] %vm9088_vm4, %v1094_v35  ;;  %1089 = vst.msk [vmem:[#allocation2 + $0x2f] ss:$8 sm:$0xf] %vm9088_vm4, %v1086_v8  ;;  %v2468_v16 = vcombine.low %v9295_v31, %v9299_v21  ;;  %v2883_v63 = vrot.slane %v2875_v61, %v9078_v4 }
 0x2ad   : > { %1090 = vst.msk [vmem:[#allocation2 + $0x2f] ss:$8 sm:$0x10] %vm9088_vm4, %v1086_v8  ;;  %v2834_v30 = vadd.f32 %v2833_v36, %v2832_v45  ;;  %v2854_v5 = vadd.f32 %v2853_v20, %v2852_v18  ;;  %v2843_v49 = vrot.slane %v2842_v33, 2  ;;  %v2866_v56 = vrot.slane %v2865_v17, 2 }
 0x2ae   : > { %v2446_v60 = vcombine.low %v2438_v14, %v2445_v13  ;;  %v2475_v34 = vrot.slane %v2468_v16, %v9078_v4  ;;  %v8407_v61 = vmov 0   ;;  %vm8413_vm3 = vmmov 0  }
 0x2af   : > { %v2835_v24 = vrot.slane %v2834_v30, 1  ;;  %v2855_v38 = vrot.slane %v2854_v5, 1  ;;  %v2844_v39 = vadd.f32 %v2843_v49, %v2842_v33  ;;  %v2867_v51 = vadd.f32 %v2866_v56, %v2865_v17  ;;  %8062 = vset.pattern.permute.xlu0 %v8407_v61  ;;  %8063 = vset.pattern.permute.xlu1 %v8407_v61 }
 0x2b0   : > { %2449 = vst.msk [vmem:[#allocation2 + $0x3] ss:$8 sm:$0xf] %vm9088_vm4, %v2446_v60  ;;  %2450 = vst.msk [vmem:[#allocation2 + $0x3] ss:$8 sm:$0x10] %vm9088_vm4, %v2446_v60  ;;  %2451 = vrot.lane.b32.xlu1 %v2446_v60, %s8404_s6  ;;  %2459 = vrot.lane.b32.xlu0 %v2446_v60, %s8403_s30  ;;  %v2482_v31 = vrot.slane %v2475_v34, %v9078_v4 }
 0x2b1   : > { %v2836_v21 = vadd.f32 %v2835_v24, %v2834_v30  ;;  %v2856_v27 = vadd.f32 %v2855_v38, %v2854_v5  ;;  %v2845_v26 = vrot.slane %v2844_v39, 1  ;;  %v2868_v40 = vrot.slane %v2867_v51, 1 }
 0x2b2   : > { %v2483_v41 = vcombine.low %v2438_v14, %v2482_v31 }
 0x2b3   : > { %v2846_v28 = vadd.f32 %v2845_v26, %v2844_v39  ;;  %v2869_v37 = vadd.f32 %v2868_v40, %v2867_v51  ;;  %v2897_v54 = vrot.slane %v2856_v27, %v9078_v4 }
 0x2b4   : > { %2492 = vrot.lane.b32.xlu1 %v2483_v41, %s8405_s12  ;;  %2484 = vrot.lane.b32.xlu0 %v2483_v41, %s8406_s24 }
 0x2b5   : > { %v2876_v62 = vcombine.low %v2836_v21, %v2846_v28  ;;  %v2935_v53 = vcombine.low %v2856_v27, %v2869_v37  ;;  %v2912_v43 = vrot.slane %v2897_v54, %v9078_v4 }
 0x2b7   : > { %v2890_v42 = vrot.slane %v2876_v62, %v9078_v4  ;;  %v2942_v48 = vrot.slane %v2935_v53, %v9078_v4 }
 0x2b9   : > { %v2898_v59 = vcombine.low %v2883_v63, %v2890_v42  ;;  %v2949_v46 = vrot.slane %v2942_v48, %v9078_v4 }
 0x2bb   : > { %v2905_v57 = vrot.slane %v2898_v59, %v9078_v4  ;;  %v9377_v4 = vld [vmem:[%s10079_s1] sm:$0xff] }
 0x2bc   : > { %6813 = vmatprep.mubr.msk.f32.mxu0 %vm3001_vm8, %v9377_v4 }
 0x2bd   : > { %v2913_v55 = vcombine.low %v2905_v57, %v2912_v43  ;;  %v2950_v10 = vcombine.low %v2905_v57, %v2949_v46 }
 0x2bf   : > { %2916 = vst.msk [vmem:[#allocation2 + $0x4] ss:$8 sm:$0xf] %vm9088_vm4, %v2913_v55  ;;  %2917 = vst.msk [vmem:[#allocation2 + $0x4] ss:$8 sm:$0x10] %vm9088_vm4, %v2913_v55  ;;  %2918 = vrot.lane.b32.xlu1 %v2913_v55, %s8404_s6  ;;  %2926 = vrot.lane.b32.xlu0 %v2913_v55, %s8403_s30 }
 0x2c3   : > { %2959 = vrot.lane.b32.xlu1 %v2950_v10, %s8405_s12  ;;  %2951 = vrot.lane.b32.xlu0 %v2950_v10, %s8406_s24 }
 0x2c7   : > { %2993 = vperm.xlu0 %8062, %v2989_v52   ;;  %2998 = vperm.xlu1 %8063, %v2990_v9   ;;  %v3647_v52 = vld [vmem:[#allocation9 + $0x488] sm:$0xff]  ;;  %v3649_v9 = vld [vmem:[#allocation9 + $0x498] sm:$0xff] }
 0x2ec   : > { %v1518_v58 = vpop.permute.xlu1 %1517  ;;  %v1526_v11 = vpop.permute.xlu0 %1525 }
 0x2ed   : > { %v1519_v12 = vrot.slane %v1518_v58, 1  ;;  %v1527_v3 = vrot.slane %v1526_v11, 1 }
 0x2ef   : > { %v1520_v47 = vsel %vm1050_vm6, %v1518_v58, %v1519_v12  ;;  %v1528_v15 = vsel %vm1059_vm5, %v1526_v11, %v1527_v3 }
 0x2f0   : > { %1523 = vst.msk [vmem:[#allocation2 + $0x6] ss:$8 sm:$0xf] %vm9088_vm4, %v1520_v47  ;;  %1524 = vst.msk [vmem:[#allocation2 + $0x6] ss:$8 sm:$0x10] %vm9088_vm4, %v1520_v47 }
 0x2f1   : > { %1531 = vst.msk [vmem:[#allocation2 + $0x2b] ss:$8 sm:$0xf] %vm9088_vm4, %v1528_v15  ;;  %1532 = vst.msk [vmem:[#allocation2 + $0x2b] ss:$8 sm:$0x10] %vm9088_vm4, %v1528_v15 }
 0x2f4   : > { %v1559_v29 = vpop.permute.xlu1 %1558  ;;  %v1551_v25 = vpop.permute.xlu0 %1550 }
 0x2f5   : > { %v1560_v1 = vrot.slane %v1559_v29, 1  ;;  %v1552_v22 = vrot.slane %v1551_v25, 1 }
 0x2f7   : > { %v1561_v2 = vsel %vm981_vm2, %v1559_v29, %v1560_v1  ;;  %v1553_v6 = vsel %vm1085_vm7, %v1551_v25, %v1552_v22  ;;  %v7182_v22 = vpack.c.bf16 %v3649_v9, %v3647_v52  ;;  %v3273_v52 = vld [vmem:[#allocation9 + $0x50] sm:$0xff]  ;;  %v3276_v9 = vld [vmem:[#allocation9 + $0x68] sm:$0xff] }
 0x2f8   : > { %1564 = vst.msk [vmem:[#allocation2 + $0x55] ss:$8 sm:$0xf] %vm9088_vm4, %v1561_v2  ;;  %1565 = vst.msk [vmem:[#allocation2 + $0x55] ss:$8 sm:$0x10] %vm9088_vm4, %v1561_v2 }
 0x2f9   : > { %1556 = vst.msk [vmem:[#allocation2 + $0x50] ss:$8 sm:$0xf] %vm9088_vm4, %v1553_v6  ;;  %1557 = vst.msk [vmem:[#allocation2 + $0x50] ss:$8 sm:$0x10] %vm9088_vm4, %v1553_v6 }
 0x2fa   : > { %v3646_v2 = vld [vmem:[#allocation9 + $0x480] sm:$0xff] }
 0x308   : > { %v1985_v44 = vpop.permute.xlu1 %1984  ;;  %v1993_v7 = vpop.permute.xlu0 %1992 }
 0x309   : > { %v1986_v45 = vrot.slane %v1985_v44, 1  ;;  %v1994_v18 = vrot.slane %v1993_v7, 1 }
 0x30b   : > { %v1987_v19 = vsel %vm1050_vm6, %v1985_v44, %v1986_v45  ;;  %v1995_v23 = vsel %vm1059_vm5, %v1993_v7, %v1994_v18  ;;  %v3648_v7 = vld [vmem:[#allocation9 + $0x490] sm:$0xff]  ;;  %v3651_v45 = vld [vmem:[#allocation9 + $0x4a8] sm:$0xff] }
 0x30c   : > { %1990 = vst.msk [vmem:[#allocation2 + $0x7] ss:$8 sm:$0xf] %vm9088_vm4, %v1987_v19  ;;  %1991 = vst.msk [vmem:[#allocation2 + $0x7] ss:$8 sm:$0x10] %vm9088_vm4, %v1987_v19 }
 0x30d   : > { %1998 = vst.msk [vmem:[#allocation2 + $0x2c] ss:$8 sm:$0xf] %vm9088_vm4, %v1995_v23  ;;  %1999 = vst.msk [vmem:[#allocation2 + $0x2c] ss:$8 sm:$0x10] %vm9088_vm4, %v1995_v23  ;;  %v2026_v32 = vpop.permute.xlu1 %2025  ;;  %v2018_v13 = vpop.permute.xlu0 %2017 }
 0x30e   : > { %v2027_v35 = vrot.slane %v2026_v32, 1  ;;  %v2019_v8 = vrot.slane %v2018_v13, 1  ;;  %v3653_v23 = vld [vmem:[#allocation9 + $0x4b8] sm:$0xff] }
 0x310   : > { %v2028_v36 = vsel %vm981_vm2, %v2026_v32, %v2027_v35  ;;  %v2020_v20 = vsel %vm1085_vm7, %v2018_v13, %v2019_v8  ;;  %v9483_v13 = vld [vmem:[%s10079_s1 + $0x8] sm:$0x3]  ;;  %v3264_v8 = vld [vmem:[#allocation9 + $0x8] sm:$0xff] }
 0x311   : > { %2031 = vst.msk [vmem:[#allocation2 + $0x56] ss:$8 sm:$0xf] %vm9088_vm4, %v2028_v36  ;;  %2032 = vst.msk [vmem:[#allocation2 + $0x56] ss:$8 sm:$0x10] %vm9088_vm4, %v2028_v36 }
 0x312   : > { %2023 = vst.msk [vmem:[#allocation2 + $0x51] ss:$8 sm:$0xf] %vm9088_vm4, %v2020_v20  ;;  %2024 = vst.msk [vmem:[#allocation2 + $0x51] ss:$8 sm:$0x10] %vm9088_vm4, %v2020_v20  ;;  %v7184_v20 = vpack.c.bf16 %v3648_v7, %v3646_v2 }
 0x313   : > { %v2970_v63 = vld [vmem:[#allocation2 + $0x8] sm:$0xff]  ;;  %v2973_v42 = vld [vmem:[#allocation2 + $0x20] sm:$0xff]  ;;  %v2972_v1 = vld [vmem:[#allocation2 + $0x18] sm:$0xff] }
 0x314   : > { %v2969_v54 = vld [vmem:[#allocation2] sm:$0xff]  ;;  %v2971_v32 = vld [vmem:[#allocation2 + $0x10] sm:$0xff]  ;;  %v3266_v36 = vld [vmem:[#allocation9 + $0x18] sm:$0xff] }
 0x315   : > { %v3282_v2 = vld [vmem:[#allocation9 + $0x98] sm:$0xff]  ;;  %v3666_v7 = vld [vmem:[#allocation9 + $0x520] sm:$0xff] }
 0x322   : > { %v2452_v33 = vpop.permute.xlu1 %2451  ;;  %v2460_v17 = vpop.permute.xlu0 %2459 }
 0x323   : > { %v2453_v14 = vrot.slane %v2452_v33, 1  ;;  %v2461_v16 = vrot.slane %v2460_v17, 1 }
 0x325   : > { %v2454_v30 = vsel %vm1050_vm6, %v2452_v33, %v2453_v14  ;;  %v2462_v5 = vsel %vm1059_vm5, %v2460_v17, %v2461_v16  ;;  %v3650_v33 = vld [vmem:[#allocation9 + $0x4a0] sm:$0xff] }
 0x326   : > { %2457 = vst.msk [vmem:[#allocation2 + $0x28] ss:$8 sm:$0xf] %vm9088_vm4, %v2454_v30  ;;  %2458 = vst.msk [vmem:[#allocation2 + $0x28] ss:$8 sm:$0x10] %vm9088_vm4, %v2454_v30  ;;  %v2493_v49 = vpop.permute.xlu1 %2492  ;;  %v2485_v56 = vpop.permute.xlu0 %2484  ;;  %v7186_v30 = vpack.c.bf16 %v3653_v23, %v3651_v45 }
 0x327   : > { %2465 = vst.msk [vmem:[#allocation2 + $0x2d] ss:$8 sm:$0xf] %vm9088_vm4, %v2462_v5  ;;  %2466 = vst.msk [vmem:[#allocation2 + $0x2d] ss:$8 sm:$0x10] %vm9088_vm4, %v2462_v5 }
 0x328   : > { %v2494_v60 = vrot.slane %v2493_v49, 1  ;;  %v2486_v34 = vrot.slane %v2485_v56, 1  ;;  %v3652_v5 = vld [vmem:[#allocation9 + $0x4b0] sm:$0xff]  ;;  %v3673_v23 = vld [vmem:[#allocation9 + $0x558] sm:$0xff] }
 0x329   : > { %v3668_v45 = vld [vmem:[#allocation9 + $0x530] sm:$0xff] }
 0x32a   : > { %v2495_v24 = vsel %vm981_vm2, %v2493_v49, %v2494_v60  ;;  %v2487_v38 = vsel %vm1085_vm7, %v2485_v56, %v2486_v34  ;;  %v3655_v49 = vld [vmem:[#allocation9 + $0x4c8] sm:$0xff]  ;;  %v3657_v56 = vld [vmem:[#allocation9 + $0x4d8] sm:$0xff]  ;;  %v7038_v60 = vpack.c.bf16 %v3266_v36, %v3264_v8  ;;  %v3263_v34 = vld [vmem:[#allocation9] sm:$0xff] }
 0x32b   : > { %2498 = vst.msk [vmem:[#allocation2 + $0x57] ss:$8 sm:$0xf] %vm9088_vm4, %v2495_v24  ;;  %2499 = vst.msk [vmem:[#allocation2 + $0x57] ss:$8 sm:$0x10] %vm9088_vm4, %v2495_v24 }
 0x32c   : > { %2490 = vst.msk [vmem:[#allocation2 + $0x52] ss:$8 sm:$0xf] %vm9088_vm4, %v2487_v38  ;;  %2491 = vst.msk [vmem:[#allocation2 + $0x52] ss:$8 sm:$0x10] %vm9088_vm4, %v2487_v38 }
 0x32d   : > { %v3265_v24 = vld [vmem:[#allocation9 + $0x10] sm:$0xff]  ;;  %v3284_v8 = vld [vmem:[#allocation9 + $0xa8] sm:$0xff]  ;;  %v3286_v36 = vld [vmem:[#allocation9 + $0xb8] sm:$0xff] }
 0x331   : > { %v2919_v39 = vpop.permute.xlu1 %2918  ;;  %v2927_v51 = vpop.permute.xlu0 %2926 }
 0x332   : > { %v2920_v31 = vrot.slane %v2919_v39, 1  ;;  %v2928_v21 = vrot.slane %v2927_v51, 1 }
 0x334   : > { %v2921_v27 = vsel %vm1050_vm6, %v2919_v39, %v2920_v31  ;;  %v2929_v26 = vsel %vm1059_vm5, %v2927_v51, %v2928_v21  ;;  %v3268_v39 = vld [vmem:[#allocation9 + $0x28] sm:$0xff]  ;;  %v3270_v51 = vld [vmem:[#allocation9 + $0x38] sm:$0xff]  ;;  %v7188_v31 = vpack.c.bf16 %v3652_v5, %v3650_v33  ;;  %v7190_v21 = vpack.c.bf16 %v3657_v56, %v3655_v49  ;;  %v3283_v56 = vld [vmem:[#allocation9 + $0xa0] sm:$0xff] }
 0x335   : > { %2924 = vst.msk [vmem:[#allocation2 + $0x29] ss:$8 sm:$0xf] %vm9088_vm4, %v2921_v27  ;;  %2925 = vst.msk [vmem:[#allocation2 + $0x29] ss:$8 sm:$0x10] %vm9088_vm4, %v2921_v27  ;;  %v2960_v40 = vpop.permute.xlu1 %2959  ;;  %v2952_v41 = vpop.permute.xlu0 %2951  ;;  %v7058_v49 = vpack.c.bf16 %v3286_v36, %v3284_v8 }
 0x336   : > { %2932 = vst.msk [vmem:[#allocation2 + $0x2e] ss:$8 sm:$0xf] %vm9088_vm4, %v2929_v26  ;;  %2933 = vst.msk [vmem:[#allocation2 + $0x2e] ss:$8 sm:$0x10] %vm9088_vm4, %v2929_v26 }
 0x337   : > { %v2961_v28 = vrot.slane %v2960_v40, 1  ;;  %v2953_v37 = vrot.slane %v2952_v41, 1  ;;  %v3654_v27 = vld [vmem:[#allocation9 + $0x4c0] sm:$0xff]  ;;  %v3656_v26 = vld [vmem:[#allocation9 + $0x4d0] sm:$0xff]  ;;  %v3677_v5 = vld [vmem:[#allocation9 + $0x578] sm:$0xff] }
 0x338   : > { %v3690_v36 = vld [vmem:[#allocation9 + $0x5e0] sm:$0xff] }
 0x339   : > { %v2962_v62 = vsel %vm981_vm2, %v2960_v40, %v2961_v28  ;;  %v2954_v53 = vsel %vm1085_vm7, %v2952_v41, %v2953_v37  ;;  %v7040_v40 = vpack.c.bf16 %v3265_v24, %v3263_v34  ;;  %v3659_v41 = vld [vmem:[#allocation9 + $0x4e8] sm:$0xff]  ;;  %v3661_v28 = vld [vmem:[#allocation9 + $0x4f8] sm:$0xff]  ;;  %v7042_v37 = vpack.c.bf16 %v3270_v51, %v3268_v39  ;;  %v3674_v51 = vld [vmem:[#allocation9 + $0x560] sm:$0xff] }
 0x33a   : > { %2965 = vst.msk [vmem:[#allocation2 + $0x78] ss:$8 sm:$0xf] %vm9088_vm4, %v2962_v62  ;;  %2966 = vst.msk [vmem:[#allocation2 + $0x78] ss:$8 sm:$0x10] %vm9088_vm4, %v2962_v62 }
 0x33b   : > { %2957 = vst.msk [vmem:[#allocation2 + $0x53] ss:$8 sm:$0xf] %vm9088_vm4, %v2954_v53  ;;  %2958 = vst.msk [vmem:[#allocation2 + $0x53] ss:$8 sm:$0x10] %vm9088_vm4, %v2954_v53 }
 0x33c   : > { %v3267_v62 = vld [vmem:[#allocation9 + $0x20] sm:$0xff]  ;;  %v3269_v53 = vld [vmem:[#allocation9 + $0x30] sm:$0xff]  ;;  %v3288_v34 = vld [vmem:[#allocation9 + $0xc8] sm:$0xff]  ;;  %vm6185_vm4 = vcmask 519168  }
 0x33d   : > { %v2975_v48 = vld [vmem:[#allocation2 + $0x30] sm:$0xff]  ;;  %v2978_v59 = vld [vmem:[#allocation2 + $0x48] sm:$0xff]  ;;  %v2977_v50 = vld [vmem:[#allocation2 + $0x40] sm:$0xff] }
 0x33e   : > { %v2974_v57 = vld [vmem:[#allocation2 + $0x28] sm:$0xff]  ;;  %v7008_v43 = vpack.c.bf16 %v2975_v48, %v2970_v63  ;;  %v7028_v46 = vpack.c.bf16 %v2978_v59, %v2973_v42  ;;  %v7018_v6 = vpack.c.bf16 %v2977_v50, %v2972_v1  ;;  %v2976_v44 = vld [vmem:[#allocation2 + $0x38] sm:$0xff]  ;;  %v7194_v48 = vpack.c.bf16 %v3661_v28, %v3659_v41  ;;  %v3658_v59 = vld [vmem:[#allocation9 + $0x4e0] sm:$0xff] }
 0x33f   : > { %v7010_v55 = vpack.c.bf16 %v2974_v57, %v2969_v54  ;;  %v7020_v35 = vpack.c.bf16 %v2976_v44, %v2971_v32  ;;  %v3272_v63 = vld [vmem:[#allocation9 + $0x48] sm:$0xff]  ;;  %v3274_v42 = vld [vmem:[#allocation9 + $0x58] sm:$0xff]  ;;  %v7192_v54 = vpack.c.bf16 %v3656_v26, %v3654_v27  ;;  %v3660_v57 = vld [vmem:[#allocation9 + $0x4f0] sm:$0xff] }
 0x340   : > { %7009 = vmatprep.subr.bf16.mxu1 %v7008_v43  ;;  %7029 = vmatprep.subr.bf16.mxu0 %v7028_v46  ;;  %v7044_v43 = vpack.c.bf16 %v3269_v53, %v3267_v62  ;;  %v7046_v10 = vpack.c.bf16 %v3274_v42, %v3272_v63  ;;  %v3271_v50 = vld [vmem:[#allocation9 + $0x40] sm:$0xff]  ;;  %v3277_v1 = vld [vmem:[#allocation9 + $0x70] sm:$0xff]  ;;  %v3290_v24 = vld [vmem:[#allocation9 + $0xd8] sm:$0xff] }
 0x341   : > { %7011 = vmatpush1.bf16.msra.mxu1 %v7010_v55  ;;  %7031 = vmatpush3.bf16.msra.mxu0 %v7028_v46  ;;  %v2985_v58 = vld [vmem:[#allocation2 + $0x80] sm:$0x1]  ;;  %v2988_v3 = vld [vmem:[#allocation2 + $0x98] sm:$0x1]  ;;  %v2987_v19 = vld [vmem:[#allocation2 + $0x90] sm:$0x1] }
 0x342   : > { %v2980_v61 = vld [vmem:[#allocation2 + $0x58] sm:$0xff]  ;;  %v2983_v11 = vld [vmem:[#allocation2 + $0x70] sm:$0xff]  ;;  %v2982_v18 = vld [vmem:[#allocation2 + $0x68] sm:$0xff] }
 0x343   : > { %v7012_v12 = vpack.c.bf16 %v2985_v58, %v2980_v61  ;;  %v2979_v47 = vld [vmem:[#allocation2 + $0x50] sm:$0xff]  ;;  %v2984_v15 = vld [vmem:[#allocation2 + $0x78] sm:$0x1]  ;;  %v7032_v29 = vpack.c.bf16 %v2988_v3, %v2983_v11  ;;  %v7022_v17 = vpack.c.bf16 %v2987_v19, %v2982_v18  ;;  %v2981_v14 = vld [vmem:[#allocation2 + $0x60] sm:$0xff]  ;;  %v7196_v58 = vpack.c.bf16 %v3660_v57, %v3658_v59 }
 0x344   : > { %v7015_v25 = vpack.c.bf16 %v2984_v15, %v2979_v47  ;;  %v2986_v16 = vld [vmem:[#allocation2 + $0x88] sm:$0x1]  ;;  %v3663_v46 = vld [vmem:[#allocation9 + $0x508] sm:$0xff]  ;;  %v3662_v11 = vld [vmem:[#allocation9 + $0x500] sm:$0xff]  ;;  %v7048_v3 = vpack.c.bf16 %v3273_v52, %v3271_v50 }
 0x345   : > { %7014 = vmatprep.subr.msk.bf16.mxu1 %vm9468_vm11, %v7012_v12  ;;  %7034 = vmatprep.subr.msk.bf16.mxu0 %vm9468_vm11, %v7032_v29  ;;  %v7025_v38 = vpack.c.bf16 %v2986_v16, %v2981_v14  ;;  %v3665_v55 = vld [vmem:[#allocation9 + $0x518] sm:$0xff]  ;;  %v3664_v12 = vld [vmem:[#allocation9 + $0x510] sm:$0xff]  ;;  %v3667_v47 = vld [vmem:[#allocation9 + $0x528] sm:$0xff] }
 0x346   : > { %7017 = vmatpush1.bf16.msk.msra.mxu1 %vm9468_vm11, %v7015_v25  ;;  %7037 = vmatpush3.bf16.msk.msra.mxu0 %vm9468_vm11, %v7032_v29  ;;  %v3278_v61 = vld [vmem:[#allocation9 + $0x78] sm:$0xff]  ;;  %v3275_v25 = vld [vmem:[#allocation9 + $0x60] sm:$0xff]  ;;  %v3671_v19 = vld [vmem:[#allocation9 + $0x548] sm:$0xff] }
 0x347   : > { %7019 = vmatprep.subr.bf16.mxu1 %v7018_v6  ;;  %7183 = vmatprep.subr.bf16.mxu0 %v7182_v22  ;;  %v3669_v15 = vld [vmem:[#allocation9 + $0x538] sm:$0xff]  ;;  %v7050_v29 = vpack.c.bf16 %v3278_v61, %v3276_v9  ;;  %v3280_v22 = vld [vmem:[#allocation9 + $0x88] sm:$0xff]  ;;  %v7200_v6 = vpack.c.bf16 %v3664_v12, %v3662_v11  ;;  %v7052_v18 = vpack.c.bf16 %v3277_v1, %v3275_v25  ;;  %v3672_v14 = vld [vmem:[#allocation9 + $0x550] sm:$0xff] }
 0x348   : > { %v7202_v44 = vpack.c.bf16 %v3669_v15, %v3667_v47  ;;  %v7054_v32 = vpack.c.bf16 %v3282_v2, %v3280_v22  ;;  %v7206_v33 = vpack.c.bf16 %v3673_v23, %v3671_v19  ;;  %v3679_v27 = vld [vmem:[#allocation9 + $0x588] sm:$0xff]  ;;  %v3681_v26 = vld [vmem:[#allocation9 + $0x598] sm:$0xff]  ;;  %v3287_v41 = vld [vmem:[#allocation9 + $0xc0] sm:$0xff] }
 0x349   : > { %6611 = vmatmul.mubr.msk.f32.vlgmr.msra.gmra.mrb[52].mxu1 %vm3001_vm8, %v9377_v4  ;;  %6814 = vmatmul.mubr.msk.f32.vlgmr.msra.gmra.mrb[68].mxu0 %vm3001_vm8, %v9483_v13  ;;  %v3289_v28 = vld [vmem:[#allocation9 + $0xd0] sm:$0xff]  ;;  %v3294_v62 = vld [vmem:[#allocation9 + $0xf8] sm:$0xff]  ;;  %v7214_v63 = vpack.c.bf16 %v3681_v26, %v3679_v27  ;;  %v3678_v42 = vld [vmem:[#allocation9 + $0x580] sm:$0xff] }
 0x34a   : > { %7021 = vmatpush1.bf16.msra.mxu1 %v7020_v35  ;;  %3094 = vmatprep.mubr.f32.mxu1 %v8397_v0  ;;  %v3281_v35 = vld [vmem:[#allocation9 + $0x90] sm:$0xff]  ;;  %v3683_v59 = vld [vmem:[#allocation9 + $0x5a8] sm:$0xff]  ;;  %v3685_v57 = vld [vmem:[#allocation9 + $0x5b8] sm:$0xff] }
 0x34b   : > { %7024 = vmatprep.subr.msk.bf16.mxu1 %vm9468_vm11, %v7022_v17  ;;  %7185 = vmatpush1.bf16.msra.mxu0 %v7184_v20  ;;  %v7204_v20 = vpack.c.bf16 %v3668_v45, %v3666_v7  ;;  %v3670_v17 = vld [vmem:[#allocation9 + $0x540] sm:$0xff]  ;;  %v3298_v50 = vld [vmem:[#allocation9 + $0x118] sm:$0xff]  ;;  %v7218_v9 = vpack.c.bf16 %v3685_v57, %v3683_v59  ;;  %v3687_v11 = vld [vmem:[#allocation9 + $0x5c8] sm:$0xff] }
 0x34c   : > { %7187 = vmatprep.subr.bf16.mxu0 %v7186_v30  ;;  %v3675_v30 = vld [vmem:[#allocation9 + $0x568] sm:$0xff]  ;;  %v3682_v61 = vld [vmem:[#allocation9 + $0x5a0] sm:$0xff]  ;;  %v3689_v12 = vld [vmem:[#allocation9 + $0x5d8] sm:$0xff] }
 0x34d   : > { %6612 = vmatmul.mubr.msk.f32.gmra.mrb[54].mxu1 %vm3001_vm8, %v9483_v13  ;;  %v7210_v39 = vpack.c.bf16 %v3677_v5, %v3675_v30  ;;  %v3295_v47 = vld [vmem:[#allocation9 + $0x100] sm:$0xff]  ;;  %v3297_v15 = vld [vmem:[#allocation9 + $0x110] sm:$0xff]  ;;  %v3302_v25 = vld [vmem:[#allocation9 + $0x138] sm:$0xff]  ;;  %v7222_v22 = vpack.c.bf16 %v3689_v12, %v3687_v11 }
 0x34e   : > { %7027 = vmatpush1.bf16.msk.msra.mxu1 %vm9468_vm11, %v7025_v38  ;;  %3165 = vmatprep.mubr.f32.mxu1 %v8397_v0  ;;  %v7208_v38 = vpack.c.bf16 %v3672_v14, %v3670_v17  ;;  %v3686_v2 = vld [vmem:[#allocation9 + $0x5c0] sm:$0xff]  ;;  %v3691_v7 = vld [vmem:[#allocation9 + $0x5e8] sm:$0xff]  ;;  %v3693_v45 = vld [vmem:[#allocation9 + $0x5f8] sm:$0xff] }
 0x34f   : > { %7039 = vmatprep.subr.bf16.mxu1 %v7038_v60  ;;  %7189 = vmatpush1.bf16.msra.mxu0 %v7188_v31  ;;  %v3285_v60 = vld [vmem:[#allocation9 + $0xb0] sm:$0xff]  ;;  %v3299_v19 = vld [vmem:[#allocation9 + $0x120] sm:$0xff]  ;;  %v7226_v8 = vpack.c.bf16 %v3693_v45, %v3691_v7  ;;  %v3695_v17 = vld [vmem:[#allocation9 + $0x608] sm:$0xff] }
 0x350   : > { %7191 = vmatprep.subr.bf16.mxu0 %v7190_v21  ;;  %v3676_v31 = vld [vmem:[#allocation9 + $0x570] sm:$0xff]  ;;  %v7060_v21 = vpack.c.bf16 %v3285_v60, %v3283_v56  ;;  %v3697_v14 = vld [vmem:[#allocation9 + $0x618] sm:$0xff]  ;;  %v3303_v30 = vld [vmem:[#allocation9 + $0x140] sm:$0xff] }
 0x351   : > { %6615 = vmatmul.mubr.msk.f32.vlgmr.msra.gmra.mrb[56].mxu1 %vm3001_vm8, %v9377_v4  ;;  %v7198_v4 = vpack.c.bf16 %v3665_v55, %v3663_v46  ;;  %v7212_v53 = vpack.c.bf16 %v3676_v31, %v3674_v51  ;;  %v3291_v46 = vld [vmem:[#allocation9 + $0xe0] sm:$0xff]  ;;  %v3293_v55 = vld [vmem:[#allocation9 + $0xf0] sm:$0xff]  ;;  %v3310_v56 = vld [vmem:[#allocation9 + $0x178] sm:$0xff] }
 0x352   : > { %3171 = vmatprep.mubr.f32.mxu1 %v8397_v0  ;;  %7041 = vmatpush1.bf16.msra.mxu1 %v7040_v40  ;;  %v7062_v40 = vpack.c.bf16 %v3290_v24, %v3288_v34  ;;  %v3301_v23 = vld [vmem:[#allocation9 + $0x130] sm:$0xff]  ;;  %v7230_v34 = vpack.c.bf16 %v3697_v14, %v3695_v17  ;;  %v3694_v24 = vld [vmem:[#allocation9 + $0x600] sm:$0xff]  ;;  %v3699_v51 = vld [vmem:[#allocation9 + $0x628] sm:$0xff] }
 0x353   : > { %7043 = vmatprep.subr.bf16.mxu1 %v7042_v37  ;;  %7193 = vmatpush1.bf16.msra.mxu0 %v7192_v54  ;;  %v3292_v37 = vld [vmem:[#allocation9 + $0xe8] sm:$0xff]  ;;  %v3680_v54 = vld [vmem:[#allocation9 + $0x590] sm:$0xff]  ;;  %v3701_v31 = vld [vmem:[#allocation9 + $0x638] sm:$0xff] }
 0x354   : > { %7195 = vmatprep.subr.bf16.mxu0 %v7194_v48  ;;  %v7064_v48 = vpack.c.bf16 %v3289_v28, %v3287_v41  ;;  %v7216_v52 = vpack.c.bf16 %v3680_v54, %v3678_v42  ;;  %v3305_v5 = vld [vmem:[#allocation9 + $0x150] sm:$0xff]  ;;  %v3307_v27 = vld [vmem:[#allocation9 + $0x160] sm:$0xff]  ;;  %v3314_v41 = vld [vmem:[#allocation9 + $0x198] sm:$0xff] }
 0x355   : > { %6616 = vmatmul.mubr.msk.f32.gmra.mrb[58].mxu1 %vm3001_vm8, %v9483_v13  ;;  %v3279_v13 = vld [vmem:[#allocation9 + $0x80] sm:$0xff]  ;;  %v3309_v26 = vld [vmem:[#allocation9 + $0x170] sm:$0xff]  ;;  %v3703_v42 = vld [vmem:[#allocation9 + $0x648] sm:$0xff] }
 0x356   : > { %7045 = vmatpush1.bf16.msra.mxu1 %v7044_v43  ;;  %v7056_v16 = vpack.c.bf16 %v3281_v35, %v3279_v13  ;;  %v7066_v43 = vpack.c.bf16 %v3294_v62, %v3292_v37  ;;  %v3306_v13 = vld [vmem:[#allocation9 + $0x158] sm:$0xff]  ;;  %v7234_v37 = vpack.c.bf16 %v3701_v31, %v3699_v51  ;;  %v3698_v62 = vld [vmem:[#allocation9 + $0x620] sm:$0xff]  ;;  %v3313_v57 = vld [vmem:[#allocation9 + $0x190] sm:$0xff]  ;;  %v9506_v51 = vpop.permute.xlu1 %2998 }
 0x357   : > { %7047 = vmatprep.subr.bf16.mxu1 %v7046_v10  ;;  %7197 = vmatpush1.bf16.msra.mxu0 %v7196_v58  ;;  %v3296_v10 = vld [vmem:[#allocation9 + $0x108] sm:$0xff]  ;;  %v3684_v58 = vld [vmem:[#allocation9 + $0x5b0] sm:$0xff]  ;;  %v3705_v54 = vld [vmem:[#allocation9 + $0x658] sm:$0xff] }
 0x358   : > { %7199 = vmatprep.subr.bf16.mxu0 %v7198_v4  ;;  %v7068_v4 = vpack.c.bf16 %v3293_v55, %v3291_v46  ;;  %v7220_v1 = vpack.c.bf16 %v3684_v58, %v3682_v61  ;;  %v3311_v59 = vld [vmem:[#allocation9 + $0x180] sm:$0xff]  ;;  %v3318_v46 = vld [vmem:[#allocation9 + $0x1b8] sm:$0xff]  ;;  %v3320_v11 = vld [vmem:[#allocation9 + $0x1c8] sm:$0xff] }
 0x359   : > { %v3315_v58 = vld [vmem:[#allocation9 + $0x1a0] sm:$0xff]  ;;  %v3322_v12 = vld [vmem:[#allocation9 + $0x1d8] sm:$0xff]  ;;  %vm7778_vm2 = vmpackc.low %vm5508_vm0, %vm8408_vm10 }
 0x35a   : > { %7049 = vmatpush1.bf16.msra.mxu1 %v7048_v3  ;;  %v7070_v3 = vpack.c.bf16 %v3298_v50, %v3296_v10  ;;  %v7238_v10 = vpack.c.bf16 %v3705_v54, %v3703_v42  ;;  %v3702_v50 = vld [vmem:[#allocation9 + $0x640] sm:$0xff]  ;;  %v3709_v7 = vld [vmem:[#allocation9 + $0x678] sm:$0xff] }
 0x35b   : > { %7051 = vmatprep.subr.bf16.mxu1 %v7050_v29  ;;  %7201 = vmatpush1.bf16.msra.mxu0 %v7200_v6  ;;  %v3300_v29 = vld [vmem:[#allocation9 + $0x128] sm:$0xff]  ;;  %v3688_v6 = vld [vmem:[#allocation9 + $0x5d0] sm:$0xff]  ;;  %v3323_v45 = vld [vmem:[#allocation9 + $0x1e0] sm:$0xff] }
 0x35c   : > { %7203 = vmatprep.subr.bf16.mxu0 %v7202_v44  ;;  %v7072_v44 = vpack.c.bf16 %v3297_v15, %v3295_v47  ;;  %v7224_v35 = vpack.c.bf16 %v3688_v6, %v3686_v2  ;;  %v7094_v15 = vpack.c.bf16 %v3322_v12, %v3320_v11  ;;  %v3326_v2 = vld [vmem:[#allocation9 + $0x1f8] sm:$0xff]  ;;  %v3707_v6 = vld [vmem:[#allocation9 + $0x668] sm:$0xff] }
 0x35d   : > { %v3713_v17 = vld [vmem:[#allocation9 + $0x698] sm:$0xff] }
 0x35e   : > { %7053 = vmatpush1.bf16.msra.mxu1 %v7052_v18  ;;  %v7074_v18 = vpack.c.bf16 %v3302_v25, %v3300_v29  ;;  %v3319_v29 = vld [vmem:[#allocation9 + $0x1c0] sm:$0xff]  ;;  %v3321_v25 = vld [vmem:[#allocation9 + $0x1d0] sm:$0xff] }
 0x35f   : > { %7055 = vmatprep.subr.bf16.mxu1 %v7054_v32  ;;  %7205 = vmatpush1.bf16.msra.mxu0 %v7204_v20  ;;  %v3304_v32 = vld [vmem:[#allocation9 + $0x148] sm:$0xff]  ;;  %v3692_v20 = vld [vmem:[#allocation9 + $0x5f0] sm:$0xff] }
 0x360   : > { %7207 = vmatprep.subr.bf16.mxu0 %v7206_v33  ;;  %v7076_v33 = vpack.c.bf16 %v3301_v23, %v3299_v19  ;;  %v7228_v60 = vpack.c.bf16 %v3692_v20, %v3690_v36  ;;  %v7242_v19 = vpack.c.bf16 %v3709_v7, %v3707_v6  ;;  %v3330_v36 = vld [vmem:[#allocation9 + $0x218] sm:$0xff]  ;;  %v3711_v20 = vld [vmem:[#allocation9 + $0x688] sm:$0xff] }
 0x361   : > { %v7246_v14 = vpack.c.bf16 %v3713_v17, %v3711_v20  ;;  %v3723_v7 = vld [vmem:[#allocation9 + $0x6e8] sm:$0xff]  ;;  %v3722_v20 = vld [vmem:[#allocation9 + $0x6e0] sm:$0xff] }
 0x362   : > { %7057 = vmatpush1.bf16.msra.mxu1 %v7056_v16  ;;  %v7078_v16 = vpack.c.bf16 %v3306_v13, %v3304_v32  ;;  %v3706_v32 = vld [vmem:[#allocation9 + $0x660] sm:$0xff]  ;;  %v3708_v13 = vld [vmem:[#allocation9 + $0x670] sm:$0xff]  ;;  %v3344_v17 = vld [vmem:[#allocation9 + $0x288] sm:$0xff] }
 0x363   : > { %7059 = vmatprep.subr.bf16.mxu1 %v7058_v49  ;;  %7209 = vmatpush1.bf16.msra.mxu0 %v7208_v38  ;;  %v3308_v49 = vld [vmem:[#allocation9 + $0x168] sm:$0xff]  ;;  %v3696_v38 = vld [vmem:[#allocation9 + $0x610] sm:$0xff] }
 0x364   : > { %7211 = vmatprep.subr.bf16.mxu0 %v7210_v39  ;;  %v7080_v39 = vpack.c.bf16 %v3305_v5, %v3303_v30  ;;  %v7232_v28 = vpack.c.bf16 %v3696_v38, %v3694_v24  ;;  %v3327_v5 = vld [vmem:[#allocation9 + $0x200] sm:$0xff]  ;;  %v3712_v24 = vld [vmem:[#allocation9 + $0x690] sm:$0xff]  ;;  %v3332_v38 = vld [vmem:[#allocation9 + $0x228] sm:$0xff] }
 0x366   : > { %7061 = vmatpush1.bf16.msra.mxu1 %v7060_v21  ;;  %v7082_v21 = vpack.c.bf16 %v3310_v56, %v3308_v49  ;;  %v3329_v49 = vld [vmem:[#allocation9 + $0x210] sm:$0xff] }
 0x367   : > { %7063 = vmatprep.subr.bf16.mxu1 %v7062_v40  ;;  %7213 = vmatpush1.bf16.msra.mxu0 %v7212_v53  ;;  %v3312_v40 = vld [vmem:[#allocation9 + $0x188] sm:$0xff]  ;;  %v3700_v53 = vld [vmem:[#allocation9 + $0x630] sm:$0xff] }
 0x368   : > { %7215 = vmatprep.subr.bf16.mxu0 %v7214_v63  ;;  %v7084_v63 = vpack.c.bf16 %v3309_v26, %v3307_v27  ;;  %v7236_v55 = vpack.c.bf16 %v3700_v53, %v3698_v62  ;;  %v3715_v27 = vld [vmem:[#allocation9 + $0x6a8] sm:$0xff]  ;;  %v3717_v26 = vld [vmem:[#allocation9 + $0x6b8] sm:$0xff]  ;;  %v3331_v53 = vld [vmem:[#allocation9 + $0x220] sm:$0xff] }
 0x36a   : > { %7065 = vmatpush1.bf16.msra.mxu1 %v7064_v48  ;;  %v7086_v48 = vpack.c.bf16 %v3314_v41, %v3312_v40 }
 0x36b   : > { %7067 = vmatprep.subr.bf16.mxu1 %v7066_v43  ;;  %7217 = vmatpush1.bf16.msra.mxu0 %v7216_v52  ;;  %v3316_v43 = vld [vmem:[#allocation9 + $0x1a8] sm:$0xff]  ;;  %v3704_v52 = vld [vmem:[#allocation9 + $0x650] sm:$0xff] }
 0x36c   : > { %7219 = vmatprep.subr.bf16.mxu0 %v7218_v9  ;;  %v7088_v9 = vpack.c.bf16 %v3313_v57, %v3311_v59  ;;  %v7090_v61 = vpack.c.bf16 %v3318_v46, %v3316_v43  ;;  %v7250_v59 = vpack.c.bf16 %v3717_v26, %v3715_v27  ;;  %v3714_v57 = vld [vmem:[#allocation9 + $0x6a0] sm:$0xff]  ;;  %v3716_v43 = vld [vmem:[#allocation9 + $0x6b0] sm:$0xff]  ;;  %v3348_v26 = vld [vmem:[#allocation9 + $0x2a8] sm:$0xff] }
 0x36d   : > { %v7252_v12 = vpack.c.bf16 %v3716_v43, %v3714_v57  ;;  %v3728_v27 = vld [vmem:[#allocation9 + $0x710] sm:$0xff]  ;;  %v3730_v43 = vld [vmem:[#allocation9 + $0x720] sm:$0xff] }
 0x36e   : > { %7069 = vmatpush1.bf16.msra.mxu1 %v7068_v4  ;;  %v3317_v4 = vld [vmem:[#allocation9 + $0x1b0] sm:$0xff] }
 0x36f   : > { %7071 = vmatprep.subr.bf16.mxu1 %v7070_v3  ;;  %7221 = vmatpush1.bf16.msra.mxu0 %v7220_v1  ;;  %v7240_v3 = vpack.c.bf16 %v3704_v52, %v3702_v50  ;;  %v7092_v47 = vpack.c.bf16 %v3317_v4, %v3315_v58  ;;  %v7096_v1 = vpack.c.bf16 %v3321_v25, %v3319_v29  ;;  %v3338_v50 = vld [vmem:[#allocation9 + $0x258] sm:$0xff]  ;;  %v3719_v52 = vld [vmem:[#allocation9 + $0x6c8] sm:$0xff] }
 0x370   : > { %7223 = vmatprep.subr.bf16.mxu0 %v7222_v22  ;;  %v3324_v22 = vld [vmem:[#allocation9 + $0x1e8] sm:$0xff] }
 0x372   : > { %7073 = vmatpush1.bf16.msra.mxu1 %v7072_v44  ;;  %v7098_v44 = vpack.c.bf16 %v3326_v2, %v3324_v22  ;;  %v3720_v22 = vld [vmem:[#allocation9 + $0x6d0] sm:$0xff]  ;;  %v3340_v2 = vld [vmem:[#allocation9 + $0x268] sm:$0xff] }
 0x373   : > { %7075 = vmatprep.subr.bf16.mxu1 %v7074_v18  ;;  %7225 = vmatpush1.bf16.msra.mxu0 %v7224_v35  ;;  %v3325_v18 = vld [vmem:[#allocation9 + $0x1f0] sm:$0xff]  ;;  %v7244_v35 = vpack.c.bf16 %v3708_v13, %v3706_v32  ;;  %v3339_v32 = vld [vmem:[#allocation9 + $0x260] sm:$0xff] }
 0x374   : > { %7227 = vmatprep.subr.bf16.mxu0 %v7226_v8  ;;  %v7100_v23 = vpack.c.bf16 %v3325_v18, %v3323_v45  ;;  %v3328_v8 = vld [vmem:[#allocation9 + $0x208] sm:$0xff]  ;;  %v3725_v45 = vld [vmem:[#allocation9 + $0x6f8] sm:$0xff]  ;;  %v3341_v13 = vld [vmem:[#allocation9 + $0x270] sm:$0xff] }
 0x376   : > { %7077 = vmatpush1.bf16.msra.mxu1 %v7076_v33  ;;  %v7102_v33 = vpack.c.bf16 %v3330_v36, %v3328_v8  ;;  %v7258_v36 = vpack.c.bf16 %v3725_v45, %v3723_v7  ;;  %v3355_v45 = vld [vmem:[#allocation9 + $0x2e0] sm:$0xff] }
 0x377   : > { %7079 = vmatprep.subr.bf16.mxu1 %v7078_v16  ;;  %7229 = vmatpush1.bf16.msra.mxu0 %v7228_v60  ;;  %v9502_v16 = vpop.permute.xlu0 %2993 }
 0x378   : > { %7231 = vmatprep.subr.bf16.mxu0 %v7230_v34  ;;  %v3710_v34 = vld [vmem:[#allocation9 + $0x680] sm:$0xff] }
 0x379   : > { %v7248_v62 = vpack.c.bf16 %v3712_v24, %v3710_v34  ;;  %v3343_v34 = vld [vmem:[#allocation9 + $0x280] sm:$0xff]  ;;  %v3345_v24 = vld [vmem:[#allocation9 + $0x290] sm:$0xff] }
 0x37a   : > { %7081 = vmatpush1.bf16.msra.mxu1 %v7080_v39 }
 0x37b   : > { %7083 = vmatprep.subr.bf16.mxu1 %v7082_v21  ;;  %7233 = vmatpush1.bf16.msra.mxu0 %v7232_v28  ;;  %v3334_v21 = vld [vmem:[#allocation9 + $0x238] sm:$0xff] }
 0x37c   : > { %7235 = vmatprep.subr.bf16.mxu0 %v7234_v37  ;;  %v7104_v37 = vpack.c.bf16 %v3329_v49, %v3327_v5  ;;  %v3727_v5 = vld [vmem:[#allocation9 + $0x708] sm:$0xff]  ;;  %v3729_v49 = vld [vmem:[#allocation9 + $0x718] sm:$0xff] }
 0x37e   : > { %7085 = vmatpush1.bf16.msra.mxu1 %v7084_v63  ;;  %v3333_v63 = vld [vmem:[#allocation9 + $0x230] sm:$0xff] }
 0x37f   : > { %7087 = vmatprep.subr.bf16.mxu1 %v7086_v48  ;;  %7237 = vmatpush1.bf16.msra.mxu0 %v7236_v55  ;;  %v7106_v48 = vpack.c.bf16 %v3334_v21, %v3332_v38  ;;  %v3336_v55 = vld [vmem:[#allocation9 + $0x248] sm:$0xff]  ;;  %v7108_v11 = vpack.c.bf16 %v3333_v63, %v3331_v53  ;;  %v3726_v21 = vld [vmem:[#allocation9 + $0x700] sm:$0xff]  ;;  %v7120_v53 = vpack.c.bf16 %v3345_v24, %v3343_v34 }
 0x380   : > { %7239 = vmatprep.subr.bf16.mxu0 %v7238_v10  ;;  %v7110_v29 = vpack.c.bf16 %v3338_v50, %v3336_v55  ;;  %v7264_v63 = vpack.c.bf16 %v3728_v27, %v3726_v21  ;;  %v3352_v55 = vld [vmem:[#allocation9 + $0x2c8] sm:$0xff]  ;;  %v3742_v24 = vld [vmem:[#allocation9 + $0x780] sm:$0xff]  ;;  %v3366_v21 = vld [vmem:[#allocation9 + $0x338] sm:$0xff] }
 0x381   : > { %v3735_v50 = vld [vmem:[#allocation9 + $0x748] sm:$0xff] }
 0x382   : > { %7089 = vmatpush1.bf16.msra.mxu1 %v7088_v9  ;;  %v3721_v9 = vld [vmem:[#allocation9 + $0x6d8] sm:$0xff]  ;;  %v3747_v27 = vld [vmem:[#allocation9 + $0x7a8] sm:$0xff] }
 0x383   : > { %7091 = vmatprep.subr.bf16.mxu1 %v7090_v61  ;;  %7241 = vmatpush1.bf16.msra.mxu0 %v7240_v3  ;;  %v3335_v3 = vld [vmem:[#allocation9 + $0x240] sm:$0xff]  ;;  %v7254_v25 = vpack.c.bf16 %v3721_v9, %v3719_v52  ;;  %v3737_v52 = vld [vmem:[#allocation9 + $0x758] sm:$0xff] }
 0x384   : > { %7243 = vmatprep.subr.bf16.mxu0 %v7242_v19 }
 0x386   : > { %7093 = vmatpush1.bf16.msra.mxu1 %v7092_v47  ;;  %v3337_v47 = vld [vmem:[#allocation9 + $0x250] sm:$0xff] }
 0x387   : > { %7095 = vmatprep.subr.bf16.mxu1 %v7094_v15  ;;  %7245 = vmatpush1.bf16.msra.mxu0 %v7244_v35  ;;  %v7112_v19 = vpack.c.bf16 %v3337_v47, %v3335_v3  ;;  %v3353_v3 = vld [vmem:[#allocation9 + $0x2d0] sm:$0xff] }
 0x388   : > { %7247 = vmatprep.subr.bf16.mxu0 %v7246_v14 }
 0x38a   : > { %7097 = vmatpush1.bf16.msra.mxu1 %v7096_v1  ;;  %v3718_v1 = vld [vmem:[#allocation9 + $0x6c0] sm:$0xff] }
 0x38b   : > { %7099 = vmatprep.subr.bf16.mxu1 %v7098_v44  ;;  %v3342_v44 = vld [vmem:[#allocation9 + $0x278] sm:$0xff] }
 0x38c   : > { %v7114_v8 = vpack.c.bf16 %v3342_v44, %v3340_v2  ;;  %v3739_v2 = vld [vmem:[#allocation9 + $0x768] sm:$0xff] }
 0x38e   : > { %7101 = vmatpush1.bf16.msra.mxu1 %v7100_v23  ;;  %v7256_v23 = vpack.c.bf16 %v3720_v22, %v3718_v1  ;;  %v3356_v1 = vld [vmem:[#allocation9 + $0x2e8] sm:$0xff]  ;;  %v3358_v22 = vld [vmem:[#allocation9 + $0x2f8] sm:$0xff] }
 0x38f   : > { %7103 = vmatprep.subr.bf16.mxu1 %v7102_v33  ;;  %v3724_v33 = vld [vmem:[#allocation9 + $0x6f0] sm:$0xff] }
 0x41c   : > { %v3090_v30 = vpop.f32.mrb[52].mxu1  ;;  %v9508_v31 = vpop.f32.mrb[68].mxu0 }
 0x41d   : > { %v3092_v56 = vpop.f32.mrb[53].mxu1  ;;  %v3091_v60 = vadd.f32 %v3090_v30, %v9502_v16  ;;  %v9510_v40 = vpop.f32.mrb[69].mxu0  ;;  %v3346_v30 = vld [vmem:[#allocation9 + $0x298] sm:$0xff] }
 0x41e   : > { %v3093_v39 = vadd.f32 %v3092_v56, %v9502_v16  ;;  %v7116_v56 = vpack.c.bf16 %v3341_v13, %v3339_v32  ;;  %v7118_v38 = vpack.c.bf16 %v3346_v30, %v3344_v17  ;;  %v3738_v13 = vld [vmem:[#allocation9 + $0x760] sm:$0xff]  ;;  %v3745_v17 = vld [vmem:[#allocation9 + $0x798] sm:$0xff] }
 0x41f   : > { %v9514_v42 = vmax.f32 %v3091_v60, 0.0  ;;  %v7260_v60 = vpack.c.bf16 %v3724_v33, %v3722_v20  ;;  %v3362_v20 = vld [vmem:[#allocation9 + $0x318] sm:$0xff]  ;;  %v3743_v33 = vld [vmem:[#allocation9 + $0x788] sm:$0xff] }
 0x420   : > { %v9512_v41 = vmax.f32 %v3093_v39, 0.0  ;;  %v3096_v28 = vpop.f32.mrb[54].mxu1  ;;  %v7262_v39 = vpack.c.bf16 %v3729_v49, %v3727_v5  ;;  %v3359_v49 = vld [vmem:[#allocation9 + $0x300] sm:$0xff]  ;;  %v7278_v34 = vpack.c.bf16 %v3745_v17, %v3743_v33 }
 0x421   : > { %v3098_v54 = vpop.f32.mrb[55].mxu1  ;;  %v3097_v46 = vadd.f32 %v3096_v28, %v9506_v51  ;;  %v3350_v28 = vld [vmem:[#allocation9 + $0x2b8] sm:$0xff]  ;;  %v3375_v17 = vld [vmem:[#allocation9 + $0x380] sm:$0xff] }
 0x422   : > { %3478 = vmatprep.mubr.f32.mxu1 %v9512_v41  ;;  %3854 = vmatprep.mubr.f32.mxu0 %v9512_v41  ;;  %v3099_v10 = vadd.f32 %v3098_v54, %v9506_v51  ;;  %v3347_v54 = vld [vmem:[#allocation9 + $0x2a0] sm:$0xff] }
 0x423   : > { %3479 = vmatmul.mubr.f32.vlgmr.msra.gmra.mrb[60].mxu1 %v9514_v42  ;;  %3855 = vmatmul.mubr.f32.vlgmr.msra.gmra.mrb[70].mxu0 %v9514_v42  ;;  %v9522_v61 = vmax.f32 %v3097_v46, 0.0  ;;  %v3732_v46 = vld [vmem:[#allocation9 + $0x730] sm:$0xff] }
 0x424   : > { %7105 = vmatpush1.bf16.msra.mxu1 %v7104_v37  ;;  %7249 = vmatpush1.bf16.msra.mxu0 %v7248_v62  ;;  %v9524_v58 = vmax.f32 %v3099_v10, 0.0  ;;  %v9526_v4 = vpop.f32.mrb[56].mxu1  ;;  %v3731_v37 = vld [vmem:[#allocation9 + $0x728] sm:$0xff]  ;;  %v3733_v62 = vld [vmem:[#allocation9 + $0x738] sm:$0xff] }
 0x425   : > { %v3169_v15 = vpop.f32.mrb[57].mxu1  ;;  %7107 = vmatprep.subr.bf16.mxu1 %v7106_v48  ;;  %7251 = vmatprep.subr.bf16.mxu0 %v7250_v59  ;;  %v3349_v48 = vld [vmem:[#allocation9 + $0x2b0] sm:$0xff]  ;;  %v7122_v59 = vpack.c.bf16 %v3350_v28, %v3348_v26  ;;  %v7266_v57 = vpack.c.bf16 %v3733_v62, %v3731_v37  ;;  %v3354_v10 = vld [vmem:[#allocation9 + $0x2d8] sm:$0xff]  ;;  %v3363_v62 = vld [vmem:[#allocation9 + $0x320] sm:$0xff] }
 0x426   : > { %v3170_v6 = vadd.f32 %v3169_v15, %v9502_v16  ;;  %3484 = vmatprep.mubr.f32.mxu1 %v9524_v58  ;;  %3860 = vmatprep.mubr.f32.mxu0 %v9524_v58  ;;  %v7124_v9 = vpack.c.bf16 %v3349_v48, %v3347_v54  ;;  %v7126_v47 = vpack.c.bf16 %v3354_v10, %v3352_v55  ;;  %v3749_v26 = vld [vmem:[#allocation9 + $0x7b8] sm:$0xff]  ;;  %v3746_v48 = vld [vmem:[#allocation9 + $0x7a0] sm:$0xff] }
 0x427   : > { %3485 = vmatmul.mubr.f32.gmra.mrb[62].mxu1 %v9522_v61  ;;  %3861 = vmatmul.mubr.f32.gmra.mrb[72].mxu0 %v9522_v61  ;;  %v7270_v15 = vpack.c.bf16 %v3737_v52, %v3735_v50  ;;  %v7282_v54 = vpack.c.bf16 %v3749_v26, %v3747_v27  ;;  %v3753_v55 = vld [vmem:[#allocation9 + $0x7d8] sm:$0xff]  ;;  %v3367_v52 = vld [vmem:[#allocation9 + $0x340] sm:$0xff] }
 0x428   : > { %v9533_v18 = vmax.f32 %v3170_v6, 0.0  ;;  %7109 = vmatpush1.bf16.msra.mxu1 %v7108_v11  ;;  %7253 = vmatpush1.bf16.msra.mxu0 %v7252_v12  ;;  %v9535_v35 = vpop.f32.mrb[58].mxu1  ;;  %v7268_v11 = vpack.c.bf16 %v3732_v46, %v3730_v43  ;;  %v3351_v12 = vld [vmem:[#allocation9 + $0x2c0] sm:$0xff]  ;;  %v3741_v6 = vld [vmem:[#allocation9 + $0x778] sm:$0xff]  ;;  %v3751_v46 = vld [vmem:[#allocation9 + $0x7c8] sm:$0xff] }
 0x429   : > { %7111 = vmatprep.subr.bf16.mxu1 %v7110_v29  ;;  %7255 = vmatprep.subr.bf16.mxu0 %v7254_v25  ;;  %v9537_v14 = vpop.f32.mrb[59].mxu1  ;;  %v3734_v29 = vld [vmem:[#allocation9 + $0x740] sm:$0xff]  ;;  %v3736_v25 = vld [vmem:[#allocation9 + $0x750] sm:$0xff]  ;;  %v7128_v44 = vpack.c.bf16 %v3353_v3, %v3351_v12  ;;  %v7274_v32 = vpack.c.bf16 %v3741_v6, %v3739_v2  ;;  %v3370_v43 = vld [vmem:[#allocation9 + $0x358] sm:$0xff]  ;;  %v7286_v12 = vpack.c.bf16 %v3753_v55, %v3751_v46 }
 0x42a   : > { %3555 = vmatprep.mubr.f32.mxu1 %v9533_v18  ;;  %3931 = vmatprep.mubr.f32.mxu0 %v9533_v18  ;;  %v7272_v7 = vpack.c.bf16 %v3736_v25, %v3734_v29  ;;  %v3750_v3 = vld [vmem:[#allocation9 + $0x7c0] sm:$0xff]  ;;  %v3374_v29 = vld [vmem:[#allocation9 + $0x378] sm:$0xff]  ;;  %v3755_v25 = vld [vmem:[#allocation9 + $0x7e8] sm:$0xff] }
 0x42b   : > { %v3371_v6 = vld [vmem:[#allocation9 + $0x360] sm:$0xff] }
 0x42c   : > { %7113 = vmatpush1.bf16.msra.mxu1 %v7112_v19  ;;  %7257 = vmatpush1.bf16.msra.mxu0 %v7256_v23  ;;  %v3357_v19 = vld [vmem:[#allocation9 + $0x2f0] sm:$0xff]  ;;  %v7130_v23 = vpack.c.bf16 %v3358_v22, %v3356_v1  ;;  %v3757_v1 = vld [vmem:[#allocation9 + $0x7f8] sm:$0xff]  ;;  %v3379_v26 = vld [vmem:[#allocation9 + $0x3a0] sm:$0xff] }
 0x42d   : > { %7115 = vmatprep.subr.bf16.mxu1 %v7114_v8  ;;  %7259 = vmatprep.subr.bf16.mxu0 %v7258_v36  ;;  %v3740_v8 = vld [vmem:[#allocation9 + $0x770] sm:$0xff]  ;;  %v3360_v36 = vld [vmem:[#allocation9 + $0x308] sm:$0xff]  ;;  %v7132_v30 = vpack.c.bf16 %v3357_v19, %v3355_v45  ;;  %v7290_v45 = vpack.c.bf16 %v3757_v1, %v3755_v25  ;;  %v3754_v19 = vld [vmem:[#allocation9 + $0x7e0] sm:$0xff] }
 0x42e   : > { %v7276_v5 = vpack.c.bf16 %v3740_v8, %v3738_v13  ;;  %v3378_v13 = vld [vmem:[#allocation9 + $0x398] sm:$0xff]  ;;  %v3759_v8 = vld [vmem:[#allocation9 + $0x808] sm:$0xff]  ;;  %v3383_v55 = vld [vmem:[#allocation9 + $0x3c0] sm:$0xff] }
 0x42f   : > { %v3387_v1 = vld [vmem:[#allocation9 + $0x3e0] sm:$0xff] }
 0x430   : > { %7117 = vmatpush1.bf16.msra.mxu1 %v7116_v56  ;;  %7261 = vmatpush1.bf16.msra.mxu0 %v7260_v60  ;;  %v3361_v56 = vld [vmem:[#allocation9 + $0x310] sm:$0xff]  ;;  %v7134_v60 = vpack.c.bf16 %v3362_v20, %v3360_v36  ;;  %v3761_v36 = vld [vmem:[#allocation9 + $0x818] sm:$0xff] }
 0x431   : > { %7119 = vmatprep.subr.bf16.mxu1 %v7118_v38  ;;  %7263 = vmatprep.subr.bf16.mxu0 %v7262_v39  ;;  %v3744_v38 = vld [vmem:[#allocation9 + $0x790] sm:$0xff]  ;;  %v3364_v39 = vld [vmem:[#allocation9 + $0x328] sm:$0xff]  ;;  %v7136_v28 = vpack.c.bf16 %v3361_v56, %v3359_v49  ;;  %v7294_v49 = vpack.c.bf16 %v3761_v36, %v3759_v8  ;;  %v3758_v56 = vld [vmem:[#allocation9 + $0x800] sm:$0xff] }
 0x432   : > { %v7280_v37 = vpack.c.bf16 %v3744_v38, %v3742_v24  ;;  %v3382_v24 = vld [vmem:[#allocation9 + $0x3b8] sm:$0xff]  ;;  %v3763_v38 = vld [vmem:[#allocation9 + $0x828] sm:$0xff]  ;;  %v3391_v36 = vld [vmem:[#allocation9 + $0x400] sm:$0xff] }
 0x434   : > { %7121 = vmatpush1.bf16.msra.mxu1 %v7120_v53  ;;  %7265 = vmatpush1.bf16.msra.mxu0 %v7264_v63  ;;  %v3365_v53 = vld [vmem:[#allocation9 + $0x330] sm:$0xff]  ;;  %v7138_v63 = vpack.c.bf16 %v3366_v21, %v3364_v39  ;;  %v3765_v39 = vld [vmem:[#allocation9 + $0x838] sm:$0xff] }
 0x435   : > { %7123 = vmatprep.subr.bf16.mxu1 %v7122_v59  ;;  %7267 = vmatprep.subr.bf16.mxu0 %v7266_v57  ;;  %v3748_v59 = vld [vmem:[#allocation9 + $0x7b0] sm:$0xff]  ;;  %v3368_v57 = vld [vmem:[#allocation9 + $0x348] sm:$0xff]  ;;  %v7140_v10 = vpack.c.bf16 %v3365_v53, %v3363_v62  ;;  %v7298_v62 = vpack.c.bf16 %v3765_v39, %v3763_v38  ;;  %v3762_v53 = vld [vmem:[#allocation9 + $0x820] sm:$0xff] }
 0x436   : > { %v7284_v50 = vpack.c.bf16 %v3748_v59, %v3746_v48  ;;  %v3386_v48 = vld [vmem:[#allocation9 + $0x3d8] sm:$0xff]  ;;  %v3767_v59 = vld [vmem:[#allocation9 + $0x848] sm:$0xff] }
 0x437   : > { %v3781_v38 = vld [vmem:[#allocation9 + $0x8b8] sm:$0xff] }
 0x438   : > { %7125 = vmatpush1.bf16.msra.mxu1 %v7124_v9  ;;  %7269 = vmatpush1.bf16.msra.mxu0 %v7268_v11  ;;  %v3369_v9 = vld [vmem:[#allocation9 + $0x350] sm:$0xff]  ;;  %v7142_v11 = vpack.c.bf16 %v3370_v43, %v3368_v57  ;;  %v3769_v57 = vld [vmem:[#allocation9 + $0x858] sm:$0xff] }
 0x439   : > { %7127 = vmatprep.subr.bf16.mxu1 %v7126_v47  ;;  %7271 = vmatprep.subr.bf16.mxu0 %v7270_v15  ;;  %v3752_v47 = vld [vmem:[#allocation9 + $0x7d0] sm:$0xff]  ;;  %v3372_v15 = vld [vmem:[#allocation9 + $0x368] sm:$0xff]  ;;  %v7144_v22 = vpack.c.bf16 %v3369_v9, %v3367_v52  ;;  %v7302_v52 = vpack.c.bf16 %v3769_v57, %v3767_v59  ;;  %v3766_v9 = vld [vmem:[#allocation9 + $0x840] sm:$0xff] }
 0x43a   : > { %v7288_v2 = vpack.c.bf16 %v3752_v47, %v3750_v3  ;;  %v3390_v3 = vld [vmem:[#allocation9 + $0x3f8] sm:$0xff]  ;;  %v3771_v47 = vld [vmem:[#allocation9 + $0x868] sm:$0xff] }
 0x43b   : > { %v3785_v59 = vld [vmem:[#allocation9 + $0x8d8] sm:$0xff] }
 0x43c   : > { %7129 = vmatpush1.bf16.msra.mxu1 %v7128_v44  ;;  %7273 = vmatpush1.bf16.msra.mxu0 %v7272_v7  ;;  %v3373_v44 = vld [vmem:[#allocation9 + $0x370] sm:$0xff]  ;;  %v7146_v7 = vpack.c.bf16 %v3374_v29, %v3372_v15  ;;  %v3773_v15 = vld [vmem:[#allocation9 + $0x878] sm:$0xff] }
 0x43d   : > { %7131 = vmatprep.subr.bf16.mxu1 %v7130_v23  ;;  %7275 = vmatprep.subr.bf16.mxu0 %v7274_v32  ;;  %v3756_v23 = vld [vmem:[#allocation9 + $0x7f0] sm:$0xff]  ;;  %v3376_v32 = vld [vmem:[#allocation9 + $0x388] sm:$0xff]  ;;  %v7148_v20 = vpack.c.bf16 %v3373_v44, %v3371_v6  ;;  %v7306_v6 = vpack.c.bf16 %v3773_v15, %v3771_v47  ;;  %v3770_v44 = vld [vmem:[#allocation9 + $0x860] sm:$0xff] }
 0x43e   : > { %v7292_v33 = vpack.c.bf16 %v3756_v23, %v3754_v19  ;;  %v3394_v19 = vld [vmem:[#allocation9 + $0x418] sm:$0xff]  ;;  %v3775_v23 = vld [vmem:[#allocation9 + $0x888] sm:$0xff] }
 0x43f   : > { %v3787_v47 = vld [vmem:[#allocation9 + $0x8e8] sm:$0xff]  ;;  %v3789_v15 = vld [vmem:[#allocation9 + $0x8f8] sm:$0xff] }
 0x440   : > { %7133 = vmatpush1.bf16.msra.mxu1 %v7132_v30  ;;  %7277 = vmatpush1.bf16.msra.mxu0 %v7276_v5  ;;  %v3377_v30 = vld [vmem:[#allocation9 + $0x390] sm:$0xff]  ;;  %v7150_v5 = vpack.c.bf16 %v3378_v13, %v3376_v32  ;;  %v3777_v32 = vld [vmem:[#allocation9 + $0x898] sm:$0xff] }
 0x441   : > { %7135 = vmatprep.subr.bf16.mxu1 %v7134_v60  ;;  %7279 = vmatprep.subr.bf16.mxu0 %v7278_v34  ;;  %v3760_v60 = vld [vmem:[#allocation9 + $0x810] sm:$0xff]  ;;  %v3380_v34 = vld [vmem:[#allocation9 + $0x3a8] sm:$0xff]  ;;  %v7152_v21 = vpack.c.bf16 %v3377_v30, %v3375_v17  ;;  %v7310_v17 = vpack.c.bf16 %v3777_v32, %v3775_v23  ;;  %v4409_v32 = vld [vmem:[#allocation9 + $0xd98] sm:$0xff] }
 0x442   : > { %v7296_v27 = vpack.c.bf16 %v3760_v60, %v3758_v56  ;;  %v3393_v30 = vld [vmem:[#allocation9 + $0x410] sm:$0xff]  ;;  %v3396_v56 = vld [vmem:[#allocation9 + $0x428] sm:$0xff]  ;;  %v3398_v60 = vld [vmem:[#allocation9 + $0x438] sm:$0xff] }
 0x443   : > { %v7168_v39 = vpack.c.bf16 %v3393_v30, %v3391_v36  ;;  %v4407_v23 = vld [vmem:[#allocation9 + $0xd88] sm:$0xff]  ;;  %v4026_v36 = vld [vmem:[#allocation9 + $0x900] sm:$0xff]  ;;  %v4028_v30 = vld [vmem:[#allocation9 + $0x910] sm:$0xff] }
 0x444   : > { %7137 = vmatpush1.bf16.msra.mxu1 %v7136_v28  ;;  %7281 = vmatpush1.bf16.msra.mxu0 %v7280_v37  ;;  %v3381_v28 = vld [vmem:[#allocation9 + $0x3b0] sm:$0xff]  ;;  %v7154_v37 = vpack.c.bf16 %v3382_v24, %v3380_v34  ;;  %v3176_v34 = vadd.f32 %v9537_v14, %v9506_v51  ;;  %v3779_v24 = vld [vmem:[#allocation9 + $0x8a8] sm:$0xff] }
 0x445   : > { %7139 = vmatprep.subr.bf16.mxu1 %v7138_v63  ;;  %7283 = vmatprep.subr.bf16.mxu0 %v7282_v54  ;;  %v3764_v63 = vld [vmem:[#allocation9 + $0x830] sm:$0xff]  ;;  %v3384_v54 = vld [vmem:[#allocation9 + $0x3c8] sm:$0xff]  ;;  %v7156_v43 = vpack.c.bf16 %v3381_v28, %v3379_v26  ;;  %v3174_v28 = vadd.f32 %v9535_v35, %v9506_v51  ;;  %v7314_v14 = vpack.c.bf16 %v3781_v38, %v3779_v24  ;;  %v4413_v24 = vld [vmem:[#allocation9 + $0xdb8] sm:$0xff] }
 0x446   : > { %v7300_v46 = vpack.c.bf16 %v3764_v63, %v3762_v53  ;;  %v3780_v53 = vld [vmem:[#allocation9 + $0x8b0] sm:$0xff]  ;;  %v3400_v63 = vld [vmem:[#allocation9 + $0x448] sm:$0xff]  ;;  %v9549_v57 = vmax.f32 %v3176_v34, 0.0  ;;  %v7328_v38 = vpack.c.bf16 %v4028_v30, %v4026_v36 }
 0x447   : > { %v4411_v34 = vld [vmem:[#allocation9 + $0xda8] sm:$0xff] }
 0x448   : > { %7141 = vmatpush1.bf16.msra.mxu1 %v7140_v10  ;;  %7285 = vmatpush1.bf16.msra.mxu0 %v7284_v50  ;;  %v3385_v10 = vld [vmem:[#allocation9 + $0x3d0] sm:$0xff]  ;;  %v7158_v50 = vpack.c.bf16 %v3386_v48, %v3384_v54  ;;  %v3402_v54 = vld [vmem:[#allocation9 + $0x458] sm:$0xff]  ;;  %v3783_v48 = vld [vmem:[#allocation9 + $0x8c8] sm:$0xff] }
 0x449   : > { %7143 = vmatprep.subr.bf16.mxu1 %v7142_v11  ;;  %7287 = vmatprep.subr.bf16.mxu0 %v7286_v12  ;;  %v3768_v11 = vld [vmem:[#allocation9 + $0x850] sm:$0xff]  ;;  %v3388_v12 = vld [vmem:[#allocation9 + $0x3e8] sm:$0xff]  ;;  %v7160_v29 = vpack.c.bf16 %v3385_v10, %v3383_v55  ;;  %v9553_v10 = vmax.f32 %v3174_v28, 0.0  ;;  %v7474_v28 = vpack.c.bf16 %v4413_v24, %v4411_v34  ;;  %v4046_v34 = vld [vmem:[#allocation9 + $0x9a0] sm:$0xff] }
 0x44a   : > { %v7304_v25 = vpack.c.bf16 %v3768_v11, %v3766_v9  ;;  %v3401_v55 = vld [vmem:[#allocation9 + $0x450] sm:$0xff]  ;;  %v3782_v9 = vld [vmem:[#allocation9 + $0x8c0] sm:$0xff]  ;;  %v4427_v30 = vld [vmem:[#allocation9 + $0xe28] sm:$0xff] }
 0x44b   : > { %v3784_v11 = vld [vmem:[#allocation9 + $0x8d0] sm:$0xff] }
 0x44c   : > { %7145 = vmatpush1.bf16.msra.mxu1 %v7144_v22  ;;  %7289 = vmatpush1.bf16.msra.mxu0 %v7288_v2  ;;  %v3389_v22 = vld [vmem:[#allocation9 + $0x3f0] sm:$0xff]  ;;  %v7162_v2 = vpack.c.bf16 %v3390_v3, %v3388_v12  ;;  %v3404_v12 = vld [vmem:[#allocation9 + $0x468] sm:$0xff]  ;;  %v3406_v3 = vld [vmem:[#allocation9 + $0x478] sm:$0xff] }
 0x44d   : > { %7147 = vmatprep.subr.bf16.mxu1 %v7146_v7  ;;  %7291 = vmatprep.subr.bf16.mxu0 %v7290_v45  ;;  %v3772_v7 = vld [vmem:[#allocation9 + $0x870] sm:$0xff]  ;;  %v3392_v45 = vld [vmem:[#allocation9 + $0x408] sm:$0xff]  ;;  %v7164_v13 = vpack.c.bf16 %v3389_v22, %v3387_v1  ;;  %v3403_v1 = vld [vmem:[#allocation9 + $0x460] sm:$0xff] }
 0x44e   : > { %v7308_v8 = vpack.c.bf16 %v3772_v7, %v3770_v44  ;;  %v3405_v22 = vld [vmem:[#allocation9 + $0x470] sm:$0xff]  ;;  %v3786_v44 = vld [vmem:[#allocation9 + $0x8e0] sm:$0xff] }
 0x44f   : > { %v3788_v7 = vld [vmem:[#allocation9 + $0x8f0] sm:$0xff] }
 0x450   : > { %7149 = vmatpush1.bf16.msra.mxu1 %v7148_v20  ;;  %7293 = vmatpush1.bf16.msra.mxu0 %v7292_v33  ;;  %v3168_v20 = vadd.f32 %v9526_v4, %v9502_v16  ;;  %v7166_v33 = vpack.c.bf16 %v3394_v19, %v3392_v45  ;;  %v3397_v4 = vld [vmem:[#allocation9 + $0x430] sm:$0xff]  ;;  %v4027_v45 = vld [vmem:[#allocation9 + $0x908] sm:$0xff]  ;;  %v4029_v19 = vld [vmem:[#allocation9 + $0x918] sm:$0xff] }
 0x451   : > { %7151 = vmatprep.subr.bf16.mxu1 %v7150_v5  ;;  %7295 = vmatprep.subr.bf16.mxu0 %v7294_v49  ;;  %v3774_v5 = vld [vmem:[#allocation9 + $0x880] sm:$0xff]  ;;  %v3776_v49 = vld [vmem:[#allocation9 + $0x890] sm:$0xff] }
 0x452   : > { %v9545_v26 = vmax.f32 %v3168_v20, 0.0  ;;  %v3245_v20 = vadd.f32 %v9510_v40, %v9502_v16  ;;  %v4030_v40 = vld [vmem:[#allocation9 + $0x920] sm:$0xff]  ;;  %v4048_v24 = vld [vmem:[#allocation9 + $0x9b0] sm:$0xff] }
 0x454   : > { %7153 = vmatpush1.bf16.msra.mxu1 %v7152_v21  ;;  %7297 = vmatpush1.bf16.msra.mxu0 %v7296_v27  ;;  %v7312_v21 = vpack.c.bf16 %v3776_v49, %v3774_v5  ;;  %v3395_v27 = vld [vmem:[#allocation9 + $0x420] sm:$0xff]  ;;  %v4408_v49 = vld [vmem:[#allocation9 + $0xd90] sm:$0xff]  ;;  %v9565_v16 = vmax.f32 %v3245_v20, 0.0 }
 0x455   : > { %7155 = vmatprep.subr.bf16.mxu1 %v7154_v37  ;;  %7299 = vmatprep.subr.bf16.mxu0 %v7298_v62  ;;  %v7170_v37 = vpack.c.bf16 %v3398_v60, %v3396_v56  ;;  %v3778_v62 = vld [vmem:[#allocation9 + $0x8a0] sm:$0xff]  ;;  %v4031_v56 = vld [vmem:[#allocation9 + $0x928] sm:$0xff]  ;;  %v4033_v60 = vld [vmem:[#allocation9 + $0x938] sm:$0xff] }
 0x456   : > { %v7316_v35 = vpack.c.bf16 %v3780_v53, %v3778_v62  ;;  %v4406_v5 = vld [vmem:[#allocation9 + $0xd80] sm:$0xff]  ;;  %v4412_v62 = vld [vmem:[#allocation9 + $0xdb0] sm:$0xff]  ;;  %v4035_v53 = vld [vmem:[#allocation9 + $0x948] sm:$0xff] }
 0x457   : > { %v4424_v20 = vld [vmem:[#allocation9 + $0xe10] sm:$0xff] }
 0x458   : > { %7157 = vmatpush1.bf16.msra.mxu1 %v7156_v43  ;;  %7301 = vmatpush1.bf16.msra.mxu0 %v7300_v46  ;;  %v7172_v43 = vpack.c.bf16 %v3397_v4, %v3395_v27  ;;  %v3399_v46 = vld [vmem:[#allocation9 + $0x440] sm:$0xff]  ;;  %v4032_v27 = vld [vmem:[#allocation9 + $0x930] sm:$0xff]  ;;  %v7330_v4 = vpack.c.bf16 %v4033_v60, %v4031_v56 }
 0x459   : > { %7159 = vmatprep.subr.bf16.mxu1 %v7158_v50  ;;  %7303 = vmatprep.subr.bf16.mxu0 %v7302_v52  ;;  %v7174_v50 = vpack.c.bf16 %v3402_v54, %v3400_v63  ;;  %v7318_v52 = vpack.c.bf16 %v3785_v59, %v3783_v48  ;;  %v4037_v63 = vld [vmem:[#allocation9 + $0x958] sm:$0xff]  ;;  %v4034_v59 = vld [vmem:[#allocation9 + $0x940] sm:$0xff] }
 0x45c   : > { %7161 = vmatpush1.bf16.msra.mxu1 %v7160_v29  ;;  %7305 = vmatpush1.bf16.msra.mxu0 %v7304_v25  ;;  %v7176_v29 = vpack.c.bf16 %v3401_v55, %v3399_v46  ;;  %v7320_v25 = vpack.c.bf16 %v3784_v11, %v3782_v9  ;;  %v7334_v46 = vpack.c.bf16 %v4037_v63, %v4035_v53  ;;  %v4041_v9 = vld [vmem:[#allocation9 + $0x978] sm:$0xff]  ;;  %v4419_v11 = vld [vmem:[#allocation9 + $0xde8] sm:$0xff]  ;;  %v4050_v63 = vld [vmem:[#allocation9 + $0x9c0] sm:$0xff] }
 0x45d   : > { %7163 = vmatprep.subr.bf16.mxu1 %v7162_v2  ;;  %7307 = vmatprep.subr.bf16.mxu0 %v7306_v6  ;;  %v7178_v2 = vpack.c.bf16 %v3406_v3, %v3404_v12  ;;  %v7322_v6 = vpack.c.bf16 %v3789_v15, %v3787_v47  ;;  %v4421_v12 = vld [vmem:[#allocation9 + $0xdf8] sm:$0xff] }
 0x460   : > { %7165 = vmatpush1.bf16.msra.mxu1 %v7164_v13  ;;  %7309 = vmatpush1.bf16.msra.mxu0 %v7308_v8  ;;  %v7180_v13 = vpack.c.bf16 %v3405_v22, %v3403_v1  ;;  %v7324_v8 = vpack.c.bf16 %v3788_v7, %v3786_v44  ;;  %v4418_v1 = vld [vmem:[#allocation9 + $0xde0] sm:$0xff]  ;;  %v7482_v22 = vpack.c.bf16 %v4421_v12, %v4419_v11  ;;  %v4045_v44 = vld [vmem:[#allocation9 + $0x998] sm:$0xff]  ;;  %v4423_v7 = vld [vmem:[#allocation9 + $0xe08] sm:$0xff] }
 0x461   : > { %7167 = vmatprep.subr.bf16.mxu1 %v7166_v33  ;;  %7311 = vmatprep.subr.bf16.mxu0 %v7310_v17  ;;  %v7326_v33 = vpack.c.bf16 %v4029_v19, %v4027_v45  ;;  %v7470_v17 = vpack.c.bf16 %v4409_v32, %v4407_v23  ;;  %v4425_v45 = vld [vmem:[#allocation9 + $0xe18] sm:$0xff]  ;;  %v4056_v11 = vld [vmem:[#allocation9 + $0x9f0] sm:$0xff]  ;;  %v4434_v12 = vld [vmem:[#allocation9 + $0xe60] sm:$0xff] }
 0x462   : > { %v7486_v36 = vpack.c.bf16 %v4425_v45, %v4423_v7  ;;  %v4060_v7 = vld [vmem:[#allocation9 + $0xa10] sm:$0xff]  ;;  %v4438_v45 = vld [vmem:[#allocation9 + $0xe80] sm:$0xff] }
 0x463   : > { %3556 = vmatmul.mubr.f32.vlgmr.msra.gmra.mrb[60].mxu1 %v9545_v26  ;;  %3932 = vmatmul.mubr.f32.vlgmr.msra.gmra.mrb[70].mxu0 %v9545_v26 }
 0x464   : > { %7169 = vmatpush1.bf16.msra.mxu1 %v7168_v39  ;;  %7313 = vmatpush1.bf16.msra.mxu0 %v7312_v21  ;;  %v7472_v39 = vpack.c.bf16 %v4408_v49, %v4406_v5  ;;  %v3250_v21 = vadd.f32 %v9508_v31, %v9506_v51  ;;  %v4417_v51 = vld [vmem:[#allocation9 + $0xdd8] sm:$0xff]  ;;  %v7332_v31 = vpack.c.bf16 %v4032_v27, %v4030_v40  ;;  %v4051_v40 = vld [vmem:[#allocation9 + $0x9c8] sm:$0xff] }
 0x465   : > { %3561 = vmatprep.mubr.f32.mxu1 %v9549_v57  ;;  %7171 = vmatprep.subr.bf16.mxu1 %v7170_v37  ;;  %v4410_v37 = vld [vmem:[#allocation9 + $0xda0] sm:$0xff]  ;;  %v4429_v5 = vld [vmem:[#allocation9 + $0xe38] sm:$0xff] }
 0x466   : > { %3937 = vmatprep.mubr.f32.mxu0 %v9549_v57  ;;  %7315 = vmatprep.subr.bf16.mxu0 %v7314_v14  ;;  %v4415_v14 = vld [vmem:[#allocation9 + $0xdc8] sm:$0xff]  ;;  %v9571_v54 = vmax.f32 %v3250_v21, 0.0  ;;  %v7476_v48 = vpack.c.bf16 %v4412_v62, %v4410_v37  ;;  %v4428_v21 = vld [vmem:[#allocation9 + $0xe30] sm:$0xff]  ;;  %v4053_v27 = vld [vmem:[#allocation9 + $0x9d8] sm:$0xff]  ;;  %v7348_v37 = vpack.c.bf16 %v4048_v24, %v4046_v34 }
 0x467   : > { %3562 = vmatmul.mubr.f32.gmra.mrb[62].mxu1 %v9553_v10  ;;  %3938 = vmatmul.mubr.f32.gmra.mrb[72].mxu0 %v9553_v10  ;;  %v7478_v55 = vpack.c.bf16 %v4417_v51, %v4415_v14  ;;  %v7350_v53 = vpack.c.bf16 %v4053_v27, %v4051_v40  ;;  %v4052_v14 = vld [vmem:[#allocation9 + $0x9d0] sm:$0xff]  ;;  %v4430_v51 = vld [vmem:[#allocation9 + $0xe40] sm:$0xff]  ;;  %v4069_v34 = vld [vmem:[#allocation9 + $0xa58] sm:$0xff] }
 0x468   : > { %7173 = vmatpush1.bf16.msra.mxu1 %v7172_v43  ;;  %7317 = vmatpush1.bf16.msra.mxu0 %v7316_v35  ;;  %v4036_v43 = vld [vmem:[#allocation9 + $0x950] sm:$0xff]  ;;  %v4414_v35 = vld [vmem:[#allocation9 + $0xdc0] sm:$0xff]  ;;  %v4447_v24 = vld [vmem:[#allocation9 + $0xec8] sm:$0xff] }
 0x469   : > { %7175 = vmatprep.subr.bf16.mxu1 %v7174_v50  ;;  %7319 = vmatprep.subr.bf16.mxu0 %v7318_v52  ;;  %v4416_v50 = vld [vmem:[#allocation9 + $0xdd0] sm:$0xff]  ;;  %v4039_v52 = vld [vmem:[#allocation9 + $0x968] sm:$0xff]  ;;  %v7336_v3 = vpack.c.bf16 %v4036_v43, %v4034_v59  ;;  %v4057_v43 = vld [vmem:[#allocation9 + $0x9f8] sm:$0xff] }
 0x46a   : > { %3632 = vmatprep.mubr.f32.mxu1 %v8397_v0  ;;  %4008 = vmatprep.mubr.f32.mxu0 %v8397_v0  ;;  %v7480_v47 = vpack.c.bf16 %v4416_v50, %v4414_v35  ;;  %v7338_v15 = vpack.c.bf16 %v4041_v9, %v4039_v52  ;;  %v4055_v59 = vld [vmem:[#allocation9 + $0x9e8] sm:$0xff]  ;;  %v4054_v9 = vld [vmem:[#allocation9 + $0x9e0] sm:$0xff] }
 0x46b   : > { %v4435_v35 = vld [vmem:[#allocation9 + $0xe68] sm:$0xff]  ;;  %v7354_v52 = vpack.c.bf16 %v4057_v43, %v4055_v59  ;;  %v4066_v27 = vld [vmem:[#allocation9 + $0xa40] sm:$0xff] }
 0x46c   : > { %7177 = vmatpush1.bf16.msra.mxu1 %v7176_v29  ;;  %7321 = vmatpush1.bf16.msra.mxu0 %v7320_v25  ;;  %v4038_v29 = vld [vmem:[#allocation9 + $0x960] sm:$0xff]  ;;  %v4040_v25 = vld [vmem:[#allocation9 + $0x970] sm:$0xff] }
 0x46d   : > { %7179 = vmatprep.subr.bf16.mxu1 %v7178_v2  ;;  %7323 = vmatprep.subr.bf16.mxu0 %v7322_v6  ;;  %v4420_v2 = vld [vmem:[#allocation9 + $0xdf0] sm:$0xff]  ;;  %v4043_v6 = vld [vmem:[#allocation9 + $0x988] sm:$0xff]  ;;  %v7340_v19 = vpack.c.bf16 %v4040_v25, %v4038_v29  ;;  %v4061_v29 = vld [vmem:[#allocation9 + $0xa18] sm:$0xff] }
 0x46e   : > { %v7484_v23 = vpack.c.bf16 %v4420_v2, %v4418_v1  ;;  %v7342_v32 = vpack.c.bf16 %v4045_v44, %v4043_v6  ;;  %v4439_v25 = vld [vmem:[#allocation9 + $0xe88] sm:$0xff]  ;;  %v4441_v1 = vld [vmem:[#allocation9 + $0xe98] sm:$0xff]  ;;  %v4058_v44 = vld [vmem:[#allocation9 + $0xa00] sm:$0xff] }
 0x46f   : > { %v4070_v43 = vld [vmem:[#allocation9 + $0xa60] sm:$0xff] }
 0x470   : > { %7181 = vmatpush1.bf16.msra.mxu1 %v7180_v13  ;;  %7325 = vmatpush1.bf16.msra.mxu0 %v7324_v8  ;;  %v4044_v13 = vld [vmem:[#allocation9 + $0x990] sm:$0xff]  ;;  %v4422_v8 = vld [vmem:[#allocation9 + $0xe00] sm:$0xff] }
 0x471   : > { %7327 = vmatprep.subr.bf16.mxu1 %v7326_v33  ;;  %7471 = vmatprep.subr.bf16.mxu0 %v7470_v17  ;;  %v4047_v33 = vld [vmem:[#allocation9 + $0x9a8] sm:$0xff]  ;;  %v4049_v17 = vld [vmem:[#allocation9 + $0x9b8] sm:$0xff]  ;;  %v7488_v56 = vpack.c.bf16 %v4424_v20, %v4422_v8 }
 0x472   : > { %v7346_v60 = vpack.c.bf16 %v4049_v17, %v4047_v33  ;;  %v4445_v8 = vld [vmem:[#allocation9 + $0xeb8] sm:$0xff]  ;;  %v4062_v17 = vld [vmem:[#allocation9 + $0xa20] sm:$0xff] }
 0x473   : > { %6620 = vmatmul.mubr.msk.f32.vlgmr.msra.gmra.mrb[60].mxu1 %vm3407_vm12, %v9565_v16  ;;  %6622 = vmatmul.mubr.msk.f32.vlgmr.msra.gmra.mrb[70].mxu0 %vm3407_vm12, %v9565_v16 }
 0x474   : > { %7329 = vmatpush1.bf16.msra.mxu1 %v7328_v38  ;;  %7473 = vmatpush1.bf16.msra.mxu0 %v7472_v39  ;;  %v4426_v38 = vld [vmem:[#allocation9 + $0xe20] sm:$0xff]  ;;  %v7490_v39 = vpack.c.bf16 %v4429_v5, %v4427_v30  ;;  %v4064_v30 = vld [vmem:[#allocation9 + $0xa30] sm:$0xff] }
 0x475   : > { %3638 = vmatprep.mubr.f32.mxu1 %v8397_v0  ;;  %4014 = vmatprep.mubr.f32.mxu0 %v8397_v0  ;;  %v7492_v62 = vpack.c.bf16 %v4428_v21, %v4426_v38  ;;  %v4442_v5 = vld [vmem:[#allocation9 + $0xea0] sm:$0xff]  ;;  %v4449_v38 = vld [vmem:[#allocation9 + $0xed8] sm:$0xff] }
 0x476   : > { %7331 = vmatprep.subr.bf16.mxu1 %v7330_v4  ;;  %7475 = vmatprep.subr.bf16.mxu0 %v7474_v28  ;;  %v4431_v4 = vld [vmem:[#allocation9 + $0xe48] sm:$0xff]  ;;  %v4433_v28 = vld [vmem:[#allocation9 + $0xe58] sm:$0xff] }
 0x477   : > { %6621 = vmatmul.mubr.msk.f32.gmra.mrb[62].mxu1 %vm3407_vm12, %v9571_v54  ;;  %6623 = vmatmul.mubr.msk.f32.gmra.mrb[72].mxu0 %vm3407_vm12, %v9571_v54 }
 0x478   : > { %7333 = vmatpush1.bf16.msra.mxu1 %v7332_v31  ;;  %4234 = vmatprep.mubr.f32.mxu1 %v9512_v41  ;;  %v7494_v31 = vpack.c.bf16 %v4433_v28, %v4431_v4  ;;  %v4068_v4 = vld [vmem:[#allocation9 + $0xa50] sm:$0xff]  ;;  %v4446_v28 = vld [vmem:[#allocation9 + $0xec0] sm:$0xff] }
 0x479   : > { %7477 = vmatpush1.bf16.msra.mxu0 %v7476_v48  ;;  %4614 = vmatprep.mubr.f32.mxu0 %v9512_v41  ;;  %v4042_v41 = vld [vmem:[#allocation9 + $0x980] sm:$0xff]  ;;  %v4432_v48 = vld [vmem:[#allocation9 + $0xe50] sm:$0xff] }
 0x47a   : > { %7335 = vmatprep.subr.bf16.mxu1 %v7334_v46  ;;  %7479 = vmatprep.subr.bf16.mxu0 %v7478_v55  ;;  %v7344_v49 = vpack.c.bf16 %v4044_v13, %v4042_v41  ;;  %v4437_v46 = vld [vmem:[#allocation9 + $0xe78] sm:$0xff]  ;;  %v7352_v55 = vpack.c.bf16 %v4052_v14, %v4050_v63  ;;  %v7496_v50 = vpack.c.bf16 %v4432_v48, %v4430_v51  ;;  %v4443_v13 = vld [vmem:[#allocation9 + $0xea8] sm:$0xff] }
 0x47b   : > { %v4065_v41 = vld [vmem:[#allocation9 + $0xa38] sm:$0xff]  ;;  %v4451_v14 = vld [vmem:[#allocation9 + $0xee8] sm:$0xff] }
 0x47c   : > { %7337 = vmatpush1.bf16.msra.mxu1 %v7336_v3  ;;  %v7498_v3 = vpack.c.bf16 %v4437_v46, %v4435_v35  ;;  %v4073_v63 = vld [vmem:[#allocation9 + $0xa78] sm:$0xff]  ;;  %v4072_v35 = vld [vmem:[#allocation9 + $0xa70] sm:$0xff]  ;;  %v4450_v46 = vld [vmem:[#allocation9 + $0xee0] sm:$0xff] }
 0x47d   : > { %7481 = vmatpush1.bf16.msra.mxu0 %v7480_v47  ;;  %7339 = vmatprep.subr.bf16.mxu1 %v7338_v15  ;;  %v4436_v47 = vld [vmem:[#allocation9 + $0xe70] sm:$0xff]  ;;  %v4059_v15 = vld [vmem:[#allocation9 + $0xa08] sm:$0xff]  ;;  %v4453_v51 = vld [vmem:[#allocation9 + $0xef8] sm:$0xff] }
 0x47e   : > { %7483 = vmatprep.subr.bf16.mxu0 %v7482_v22  ;;  %v7356_v22 = vpack.c.bf16 %v4056_v11, %v4054_v9  ;;  %v7500_v2 = vpack.c.bf16 %v4436_v47, %v4434_v12  ;;  %v7358_v6 = vpack.c.bf16 %v4061_v29, %v4059_v15  ;;  %v4077_v9 = vld [vmem:[#allocation9 + $0xa98] sm:$0xff]  ;;  %v4455_v11 = vld [vmem:[#allocation9 + $0xf08] sm:$0xff]  ;;  %v4074_v29 = vld [vmem:[#allocation9 + $0xa80] sm:$0xff] }
 0x47f   : > { %v4457_v12 = vld [vmem:[#allocation9 + $0xf18] sm:$0xff] }
 0x480   : > { %7341 = vmatpush1.bf16.msra.mxu1 %v7340_v19  ;;  %v7502_v19 = vpack.c.bf16 %v4441_v1, %v4439_v25  ;;  %v4076_v25 = vld [vmem:[#allocation9 + $0xa90] sm:$0xff]  ;;  %v4454_v1 = vld [vmem:[#allocation9 + $0xf00] sm:$0xff] }
 0x481   : > { %7485 = vmatpush1.bf16.msra.mxu0 %v7484_v23  ;;  %7343 = vmatprep.subr.bf16.mxu1 %v7342_v32  ;;  %v4440_v23 = vld [vmem:[#allocation9 + $0xe90] sm:$0xff]  ;;  %v4063_v32 = vld [vmem:[#allocation9 + $0xa28] sm:$0xff] }
 0x482   : > { %7487 = vmatprep.subr.bf16.mxu0 %v7486_v36  ;;  %v7360_v36 = vpack.c.bf16 %v4060_v7, %v4058_v44  ;;  %v7504_v20 = vpack.c.bf16 %v4440_v23, %v4438_v45  ;;  %v7362_v33 = vpack.c.bf16 %v4065_v41, %v4063_v32  ;;  %v4081_v44 = vld [vmem:[#allocation9 + $0xab8] sm:$0xff]  ;;  %v4459_v7 = vld [vmem:[#allocation9 + $0xf28] sm:$0xff]  ;;  %v4078_v41 = vld [vmem:[#allocation9 + $0xaa0] sm:$0xff] }
 0x483   : > { %v4461_v45 = vld [vmem:[#allocation9 + $0xf38] sm:$0xff] }
 0x484   : > { %7345 = vmatpush1.bf16.msra.mxu1 %v7344_v49  ;;  %v7506_v49 = vpack.c.bf16 %v4445_v8, %v4443_v13  ;;  %v4080_v13 = vld [vmem:[#allocation9 + $0xab0] sm:$0xff]  ;;  %v4458_v8 = vld [vmem:[#allocation9 + $0xf20] sm:$0xff] }
 0x485   : > { %7489 = vmatpush1.bf16.msra.mxu0 %v7488_v56  ;;  %7347 = vmatprep.subr.bf16.mxu1 %v7346_v60  ;;  %v4444_v56 = vld [vmem:[#allocation9 + $0xeb0] sm:$0xff]  ;;  %v4067_v60 = vld [vmem:[#allocation9 + $0xa48] sm:$0xff] }
 0x486   : > { %7491 = vmatprep.subr.bf16.mxu0 %v7490_v39  ;;  %v7364_v39 = vpack.c.bf16 %v4064_v30, %v4062_v17  ;;  %v7508_v21 = vpack.c.bf16 %v4444_v56, %v4442_v5  ;;  %v7366_v40 = vpack.c.bf16 %v4069_v34, %v4067_v60  ;;  %v4085_v17 = vld [vmem:[#allocation9 + $0xad8] sm:$0xff]  ;;  %v4463_v30 = vld [vmem:[#allocation9 + $0xf48] sm:$0xff]  ;;  %v4082_v34 = vld [vmem:[#allocation9 + $0xac0] sm:$0xff] }
 0x487   : > { %v4465_v5 = vld [vmem:[#allocation9 + $0xf58] sm:$0xff] }
 0x488   : > { %7349 = vmatpush1.bf16.msra.mxu1 %v7348_v37  ;;  %v7510_v37 = vpack.c.bf16 %v4449_v38, %v4447_v24  ;;  %v4084_v24 = vld [vmem:[#allocation9 + $0xad0] sm:$0xff]  ;;  %v4462_v38 = vld [vmem:[#allocation9 + $0xf40] sm:$0xff] }
 0x489   : > { %7493 = vmatpush1.bf16.msra.mxu0 %v7492_v62  ;;  %7351 = vmatprep.subr.bf16.mxu1 %v7350_v53  ;;  %v4448_v62 = vld [vmem:[#allocation9 + $0xed0] sm:$0xff]  ;;  %v4071_v53 = vld [vmem:[#allocation9 + $0xa68] sm:$0xff] }
 0x48a   : > { %7495 = vmatprep.subr.bf16.mxu0 %v7494_v31  ;;  %v7368_v31 = vpack.c.bf16 %v4068_v4, %v4066_v27  ;;  %v7512_v48 = vpack.c.bf16 %v4448_v62, %v4446_v28  ;;  %v7370_v59 = vpack.c.bf16 %v4073_v63, %v4071_v53  ;;  %v4089_v27 = vld [vmem:[#allocation9 + $0xaf8] sm:$0xff]  ;;  %v4467_v4 = vld [vmem:[#allocation9 + $0xf68] sm:$0xff]  ;;  %v4086_v63 = vld [vmem:[#allocation9 + $0xae0] sm:$0xff] }
 0x48b   : > { %v4469_v28 = vld [vmem:[#allocation9 + $0xf78] sm:$0xff] }
 0x48c   : > { %7353 = vmatpush1.bf16.msra.mxu1 %v7352_v55  ;;  %v7514_v55 = vpack.c.bf16 %v4453_v51, %v4451_v14  ;;  %v4088_v14 = vld [vmem:[#allocation9 + $0xaf0] sm:$0xff]  ;;  %v4466_v51 = vld [vmem:[#allocation9 + $0xf60] sm:$0xff] }
 0x48d   : > { %7497 = vmatpush1.bf16.msra.mxu0 %v7496_v50  ;;  %7355 = vmatprep.subr.bf16.mxu1 %v7354_v52  ;;  %v4452_v50 = vld [vmem:[#allocation9 + $0xef0] sm:$0xff]  ;;  %v4075_v52 = vld [vmem:[#allocation9 + $0xa88] sm:$0xff] }
 0x48e   : > { %7499 = vmatprep.subr.bf16.mxu0 %v7498_v3  ;;  %v7372_v3 = vpack.c.bf16 %v4072_v35, %v4070_v43  ;;  %v7516_v47 = vpack.c.bf16 %v4452_v50, %v4450_v46  ;;  %v7374_v15 = vpack.c.bf16 %v4077_v9, %v4075_v52  ;;  %v4093_v43 = vld [vmem:[#allocation9 + $0xb18] sm:$0xff]  ;;  %v4471_v35 = vld [vmem:[#allocation9 + $0xf88] sm:$0xff] }
 0x48f   : > { %v4473_v46 = vld [vmem:[#allocation9 + $0xf98] sm:$0xff] }
 0x490   : > { %7357 = vmatpush1.bf16.msra.mxu1 %v7356_v22  ;;  %v7518_v22 = vpack.c.bf16 %v4457_v12, %v4455_v11  ;;  %v7534_v9 = vpack.c.bf16 %v4473_v46, %v4471_v35  ;;  %v4090_v11 = vld [vmem:[#allocation9 + $0xb00] sm:$0xff]  ;;  %v4092_v12 = vld [vmem:[#allocation9 + $0xb10] sm:$0xff]  ;;  %v4111_v35 = vld [vmem:[#allocation9 + $0xba8] sm:$0xff] }
 0x491   : > { %7501 = vmatpush1.bf16.msra.mxu0 %v7500_v2  ;;  %7359 = vmatprep.subr.bf16.mxu1 %v7358_v6  ;;  %v4456_v2 = vld [vmem:[#allocation9 + $0xf10] sm:$0xff]  ;;  %v4079_v6 = vld [vmem:[#allocation9 + $0xaa8] sm:$0xff]  ;;  %v4113_v46 = vld [vmem:[#allocation9 + $0xbb8] sm:$0xff] }
 0x492   : > { %7503 = vmatprep.subr.bf16.mxu0 %v7502_v19  ;;  %v7376_v19 = vpack.c.bf16 %v4076_v25, %v4074_v29  ;;  %v7520_v23 = vpack.c.bf16 %v4456_v2, %v4454_v1  ;;  %v7378_v32 = vpack.c.bf16 %v4081_v44, %v4079_v6  ;;  %v4097_v29 = vld [vmem:[#allocation9 + $0xb38] sm:$0xff]  ;;  %v4475_v25 = vld [vmem:[#allocation9 + $0xfa8] sm:$0xff]  ;;  %v4094_v44 = vld [vmem:[#allocation9 + $0xb20] sm:$0xff] }
 0x493   : > { %v4477_v1 = vld [vmem:[#allocation9 + $0xfb8] sm:$0xff] }
 0x494   : > { %7361 = vmatpush1.bf16.msra.mxu1 %v7360_v36  ;;  %v7522_v36 = vpack.c.bf16 %v4461_v45, %v4459_v7  ;;  %v4096_v7 = vld [vmem:[#allocation9 + $0xb30] sm:$0xff]  ;;  %v4474_v45 = vld [vmem:[#allocation9 + $0xfa0] sm:$0xff] }
 0x495   : > { %7505 = vmatpush1.bf16.msra.mxu0 %v7504_v20  ;;  %7363 = vmatprep.subr.bf16.mxu1 %v7362_v33  ;;  %v4460_v20 = vld [vmem:[#allocation9 + $0xf30] sm:$0xff]  ;;  %v4083_v33 = vld [vmem:[#allocation9 + $0xac8] sm:$0xff] }
 0x496   : > { %7507 = vmatprep.subr.bf16.mxu0 %v7506_v49  ;;  %v7380_v49 = vpack.c.bf16 %v4080_v13, %v4078_v41  ;;  %v7524_v56 = vpack.c.bf16 %v4460_v20, %v4458_v8  ;;  %v7382_v60 = vpack.c.bf16 %v4085_v17, %v4083_v33  ;;  %v4101_v41 = vld [vmem:[#allocation9 + $0xb58] sm:$0xff]  ;;  %v4479_v13 = vld [vmem:[#allocation9 + $0xfc8] sm:$0xff]  ;;  %v4098_v17 = vld [vmem:[#allocation9 + $0xb40] sm:$0xff] }
 0x497   : > { %v4481_v8 = vld [vmem:[#allocation9 + $0xfd8] sm:$0xff] }
 0x498   : > { %7365 = vmatpush1.bf16.msra.mxu1 %v7364_v39  ;;  %v7526_v39 = vpack.c.bf16 %v4465_v5, %v4463_v30  ;;  %v4100_v30 = vld [vmem:[#allocation9 + $0xb50] sm:$0xff]  ;;  %v4478_v5 = vld [vmem:[#allocation9 + $0xfc0] sm:$0xff] }
 0x499   : > { %7509 = vmatpush1.bf16.msra.mxu0 %v7508_v21  ;;  %7367 = vmatprep.subr.bf16.mxu1 %v7366_v40  ;;  %v4464_v21 = vld [vmem:[#allocation9 + $0xf50] sm:$0xff]  ;;  %v4087_v40 = vld [vmem:[#allocation9 + $0xae8] sm:$0xff] }
 0x49a   : > { %7511 = vmatprep.subr.bf16.mxu0 %v7510_v37  ;;  %v7384_v37 = vpack.c.bf16 %v4084_v24, %v4082_v34  ;;  %v7528_v62 = vpack.c.bf16 %v4464_v21, %v4462_v38  ;;  %v7386_v53 = vpack.c.bf16 %v4089_v27, %v4087_v40  ;;  %v4485_v34 = vld [vmem:[#allocation9 + $0xff8] sm:$0xff]  ;;  %v7400_v24 = vpack.c.bf16 %v4100_v30, %v4098_v17  ;;  %v4102_v21 = vld [vmem:[#allocation9 + $0xb60] sm:$0xff]  ;;  %v4104_v40 = vld [vmem:[#allocation9 + $0xb70] sm:$0xff] }
 0x49b   : > { %v4482_v27 = vld [vmem:[#allocation9 + $0xfe0] sm:$0xff] }
 0x49c   : > { %7369 = vmatpush1.bf16.msra.mxu1 %v7368_v31  ;;  %v7530_v31 = vpack.c.bf16 %v4469_v28, %v4467_v4  ;;  %v4484_v28 = vld [vmem:[#allocation9 + $0xff0] sm:$0xff] }
 0x49d   : > { %7513 = vmatpush1.bf16.msra.mxu0 %v7512_v48  ;;  %7371 = vmatprep.subr.bf16.mxu1 %v7370_v59  ;;  %v4468_v48 = vld [vmem:[#allocation9 + $0xf70] sm:$0xff]  ;;  %v4091_v59 = vld [vmem:[#allocation9 + $0xb08] sm:$0xff] }
 0x49e   : > { %7515 = vmatprep.subr.bf16.mxu0 %v7514_v55  ;;  %v7388_v55 = vpack.c.bf16 %v4088_v14, %v4086_v63  ;;  %v7532_v50 = vpack.c.bf16 %v4468_v48, %v4466_v51  ;;  %v7390_v52 = vpack.c.bf16 %v4093_v43, %v4091_v59  ;;  %v7404_v63 = vpack.c.bf16 %v4104_v40, %v4102_v21  ;;  %v4106_v51 = vld [vmem:[#allocation9 + $0xb80] sm:$0xff]  ;;  %v4488_v43 = vld [vmem:[#allocation9 + $0x1010] sm:$0xff] }
 0x49f   : > { %v4486_v48 = vld [vmem:[#allocation9 + $0x1000] sm:$0xff] }
 0x4a0   : > { %7373 = vmatpush1.bf16.msra.mxu1 %v7372_v3  ;;  %v4470_v3 = vld [vmem:[#allocation9 + $0xf80] sm:$0xff] }
 0x4a1   : > { %7517 = vmatpush1.bf16.msra.mxu0 %v7516_v47  ;;  %7375 = vmatprep.subr.bf16.mxu1 %v7374_v15  ;;  %v4472_v47 = vld [vmem:[#allocation9 + $0xf90] sm:$0xff]  ;;  %v4095_v15 = vld [vmem:[#allocation9 + $0xb28] sm:$0xff] }
 0x4a2   : > { %7519 = vmatprep.subr.bf16.mxu0 %v7518_v22  ;;  %v7392_v22 = vpack.c.bf16 %v4092_v12, %v4090_v11  ;;  %v7536_v2 = vpack.c.bf16 %v4472_v47, %v4470_v3  ;;  %v7394_v6 = vpack.c.bf16 %v4097_v29, %v4095_v15  ;;  %v7410_v11 = vpack.c.bf16 %v4113_v46, %v4111_v35  ;;  %v4110_v12 = vld [vmem:[#allocation9 + $0xba0] sm:$0xff]  ;;  %v4112_v3 = vld [vmem:[#allocation9 + $0xbb0] sm:$0xff] }
 0x4a3   : > { %v4490_v47 = vld [vmem:[#allocation9 + $0x1020] sm:$0xff]  ;;  %v4492_v29 = vld [vmem:[#allocation9 + $0x1030] sm:$0xff] }
 0x4a4   : > { %7377 = vmatpush1.bf16.msra.mxu1 %v7376_v19  ;;  %v7538_v19 = vpack.c.bf16 %v4477_v1, %v4475_v25  ;;  %v4115_v25 = vld [vmem:[#allocation9 + $0xbc8] sm:$0xff]  ;;  %v4117_v1 = vld [vmem:[#allocation9 + $0xbd8] sm:$0xff]  ;;  %v4508_v46 = vld [vmem:[#allocation9 + $0x10b0] sm:$0xff] }
 0x4a5   : > { %7521 = vmatpush1.bf16.msra.mxu0 %v7520_v23  ;;  %7379 = vmatprep.subr.bf16.mxu1 %v7378_v32  ;;  %v4476_v23 = vld [vmem:[#allocation9 + $0xfb0] sm:$0xff]  ;;  %v4099_v32 = vld [vmem:[#allocation9 + $0xb48] sm:$0xff] }
 0x4a6   : > { %7523 = vmatprep.subr.bf16.mxu0 %v7522_v36  ;;  %v7396_v36 = vpack.c.bf16 %v4096_v7, %v4094_v44  ;;  %v7540_v20 = vpack.c.bf16 %v4476_v23, %v4474_v45  ;;  %v7398_v33 = vpack.c.bf16 %v4101_v41, %v4099_v32  ;;  %v7556_v44 = vpack.c.bf16 %v4492_v29, %v4490_v47  ;;  %v4114_v45 = vld [vmem:[#allocation9 + $0xbc0] sm:$0xff]  ;;  %v4496_v41 = vld [vmem:[#allocation9 + $0x1050] sm:$0xff] }
 0x4a7   : > { %v7414_v7 = vpack.c.bf16 %v4117_v1, %v4115_v25  ;;  %v4494_v23 = vld [vmem:[#allocation9 + $0x1040] sm:$0xff]  ;;  %v4512_v1 = vld [vmem:[#allocation9 + $0x10d0] sm:$0xff] }
 0x4a8   : > { %7381 = vmatpush1.bf16.msra.mxu1 %v7380_v49  ;;  %v7542_v49 = vpack.c.bf16 %v4481_v8, %v4479_v13  ;;  %v4119_v13 = vld [vmem:[#allocation9 + $0xbe8] sm:$0xff]  ;;  %v4121_v8 = vld [vmem:[#allocation9 + $0xbf8] sm:$0xff]  ;;  %v7560_v17 = vpack.c.bf16 %v4496_v41, %v4494_v23  ;;  %v4130_v47 = vld [vmem:[#allocation9 + $0xc40] sm:$0xff] }
 0x4a9   : > { %7525 = vmatpush1.bf16.msra.mxu0 %v7524_v56  ;;  %7383 = vmatprep.subr.bf16.mxu1 %v7382_v60  ;;  %v4103_v56 = vld [vmem:[#allocation9 + $0xb68] sm:$0xff]  ;;  %v4105_v60 = vld [vmem:[#allocation9 + $0xb78] sm:$0xff]  ;;  %v7418_v30 = vpack.c.bf16 %v4121_v8, %v4119_v13  ;;  %v4510_v29 = vld [vmem:[#allocation9 + $0x10c0] sm:$0xff] }
 0x4aa   : > { %7527 = vmatprep.subr.bf16.mxu0 %v7526_v39  ;;  %v7402_v39 = vpack.c.bf16 %v4105_v60, %v4103_v56  ;;  %v4500_v60 = vld [vmem:[#allocation9 + $0x1070] sm:$0xff]  ;;  %v4134_v23 = vld [vmem:[#allocation9 + $0xc60] sm:$0xff] }
 0x4ab   : > { %v4514_v41 = vld [vmem:[#allocation9 + $0x10e0] sm:$0xff]  ;;  %v4516_v8 = vld [vmem:[#allocation9 + $0x10f0] sm:$0xff] }
 0x4ac   : > { %7385 = vmatpush1.bf16.msra.mxu1 %v7384_v37  ;;  %v4107_v37 = vld [vmem:[#allocation9 + $0xb88] sm:$0xff] }
 0x4ad   : > { %7529 = vmatpush1.bf16.msra.mxu0 %v7528_v62  ;;  %7387 = vmatprep.subr.bf16.mxu1 %v7386_v53  ;;  %v4487_v62 = vld [vmem:[#allocation9 + $0x1008] sm:$0xff]  ;;  %v4489_v53 = vld [vmem:[#allocation9 + $0x1018] sm:$0xff] }
 0x4ae   : > { %7531 = vmatprep.subr.bf16.mxu0 %v7530_v31  ;;  %v4108_v31 = vld [vmem:[#allocation9 + $0xb90] sm:$0xff]  ;;  %v7550_v59 = vpack.c.bf16 %v4489_v53, %v4487_v62  ;;  %v4127_v62 = vld [vmem:[#allocation9 + $0xc28] sm:$0xff]  ;;  %v4129_v53 = vld [vmem:[#allocation9 + $0xc38] sm:$0xff] }
 0x4b0   : > { %7389 = vmatpush1.bf16.msra.mxu1 %v7388_v55  ;;  %v4491_v55 = vld [vmem:[#allocation9 + $0x1028] sm:$0xff] }
 0x4b1   : > { %7533 = vmatpush1.bf16.msra.mxu0 %v7532_v50  ;;  %7391 = vmatprep.subr.bf16.mxu1 %v7390_v52  ;;  %v4493_v50 = vld [vmem:[#allocation9 + $0x1038] sm:$0xff]  ;;  %v7408_v52 = vpack.c.bf16 %v4108_v31, %v4106_v51  ;;  %v7426_v31 = vpack.c.bf16 %v4129_v53, %v4127_v62  ;;  %v4524_v53 = vld [vmem:[#allocation9 + $0x1130] sm:$0xff] }
 0x4b2   : > { %7535 = vmatprep.subr.bf16.mxu0 %v7534_v9  ;;  %v7552_v9 = vpack.c.bf16 %v4488_v43, %v4486_v48  ;;  %v7554_v15 = vpack.c.bf16 %v4493_v50, %v4491_v55  ;;  %v4126_v48 = vld [vmem:[#allocation9 + $0xc20] sm:$0xff]  ;;  %v4131_v55 = vld [vmem:[#allocation9 + $0xc48] sm:$0xff]  ;;  %v4133_v50 = vld [vmem:[#allocation9 + $0xc58] sm:$0xff] }
 0x4b3   : > { %4235 = vmatmul.mubr.f32.vlgmr.msra.gmra.mrb[64].mxu1 %v9514_v42  ;;  %v4506_v43 = vld [vmem:[#allocation9 + $0x10a0] sm:$0xff] }
 0x4b4   : > { %4615 = vmatmul.mubr.f32.vlgmr.msra.gmra.mrb[74].mxu0 %v9514_v42  ;;  %4240 = vmatprep.mubr.f32.mxu1 %v9524_v58  ;;  %v4480_v42 = vld [vmem:[#allocation9 + $0xfd0] sm:$0xff] }
 0x4b5   : > { %7393 = vmatpush1.bf16.msra.mxu1 %v7392_v22  ;;  %4620 = vmatprep.mubr.f32.mxu0 %v9524_v58  ;;  %v4483_v58 = vld [vmem:[#allocation9 + $0xfe8] sm:$0xff]  ;;  %v7544_v38 = vpack.c.bf16 %v4480_v42, %v4478_v5  ;;  %v4118_v5 = vld [vmem:[#allocation9 + $0xbe0] sm:$0xff] }
 0x4b6   : > { %7537 = vmatpush1.bf16.msra.mxu0 %v7536_v2  ;;  %7395 = vmatprep.subr.bf16.mxu1 %v7394_v6  ;;  %v7546_v4 = vpack.c.bf16 %v4485_v34, %v4483_v58  ;;  %v4495_v22 = vld [vmem:[#allocation9 + $0x1048] sm:$0xff]  ;;  %v4497_v2 = vld [vmem:[#allocation9 + $0x1058] sm:$0xff]  ;;  %v7412_v6 = vpack.c.bf16 %v4112_v3, %v4110_v12  ;;  %v4498_v42 = vld [vmem:[#allocation9 + $0x1060] sm:$0xff]  ;;  %v7572_v12 = vpack.c.bf16 %v4508_v46, %v4506_v43 }
 0x4b7   : > { %4241 = vmatmul.mubr.f32.gmra.mrb[66].mxu1 %v9522_v61  ;;  %7539 = vmatprep.subr.bf16.mxu0 %v7538_v19  ;;  %v4116_v19 = vld [vmem:[#allocation9 + $0xbd0] sm:$0xff]  ;;  %v7558_v32 = vpack.c.bf16 %v4497_v2, %v4495_v22  ;;  %v4123_v58 = vld [vmem:[#allocation9 + $0xc08] sm:$0xff]  ;;  %v4125_v34 = vld [vmem:[#allocation9 + $0xc18] sm:$0xff]  ;;  %v7564_v21 = vpack.c.bf16 %v4500_v60, %v4498_v42  ;;  %v7430_v3 = vpack.c.bf16 %v4133_v50, %v4131_v55 }
 0x4b8   : > { %4621 = vmatmul.mubr.f32.gmra.mrb[76].mxu0 %v9522_v61  ;;  %4311 = vmatprep.mubr.f32.mxu1 %v9533_v18  ;;  %v4109_v61 = vld [vmem:[#allocation9 + $0xb98] sm:$0xff]  ;;  %v7422_v40 = vpack.c.bf16 %v4125_v34, %v4123_v58  ;;  %v4135_v22 = vld [vmem:[#allocation9 + $0xc68] sm:$0xff]  ;;  %v4138_v42 = vld [vmem:[#allocation9 + $0xc80] sm:$0xff] }
 0x4b9   : > { %7397 = vmatpush1.bf16.msra.mxu1 %v7396_v36  ;;  %4691 = vmatprep.mubr.f32.mxu0 %v9533_v18  ;;  %v7548_v18 = vpack.c.bf16 %v4484_v28, %v4482_v27  ;;  %v7406_v14 = vpack.c.bf16 %v4109_v61, %v4107_v37  ;;  %v4499_v36 = vld [vmem:[#allocation9 + $0x1068] sm:$0xff]  ;;  %v4122_v27 = vld [vmem:[#allocation9 + $0xc00] sm:$0xff]  ;;  %v4504_v61 = vld [vmem:[#allocation9 + $0x1090] sm:$0xff] }
 0x4ba   : > { %7541 = vmatpush1.bf16.msra.mxu0 %v7540_v20  ;;  %7399 = vmatprep.subr.bf16.mxu1 %v7398_v33  ;;  %v4501_v20 = vld [vmem:[#allocation9 + $0x1078] sm:$0xff]  ;;  %v7416_v33 = vpack.c.bf16 %v4116_v19, %v4114_v45  ;;  %v4502_v28 = vld [vmem:[#allocation9 + $0x1080] sm:$0xff]  ;;  %v7576_v45 = vpack.c.bf16 %v4512_v1, %v4510_v29  ;;  %v4520_v34 = vld [vmem:[#allocation9 + $0x1110] sm:$0xff] }
 0x4bb   : > { %7543 = vmatprep.subr.bf16.mxu0 %v7542_v49  ;;  %v4120_v49 = vld [vmem:[#allocation9 + $0xbf0] sm:$0xff]  ;;  %v7562_v56 = vpack.c.bf16 %v4501_v20, %v4499_v36  ;;  %v7568_v51 = vpack.c.bf16 %v4504_v61, %v4502_v28  ;;  %v4137_v2 = vld [vmem:[#allocation9 + $0xc78] sm:$0xff]  ;;  %v4139_v36 = vld [vmem:[#allocation9 + $0xc88] sm:$0xff] }
 0x4bc   : > { %v7434_v19 = vpack.c.bf16 %v4137_v2, %v4135_v22  ;;  %v4141_v20 = vld [vmem:[#allocation9 + $0xc98] sm:$0xff]  ;;  %v4518_v60 = vld [vmem:[#allocation9 + $0x1100] sm:$0xff]  ;;  %v4528_v50 = vld [vmem:[#allocation9 + $0x1150] sm:$0xff] }
 0x4bd   : > { %7401 = vmatpush1.bf16.msra.mxu1 %v7400_v24  ;;  %v4503_v24 = vld [vmem:[#allocation9 + $0x1088] sm:$0xff]  ;;  %v4142_v28 = vld [vmem:[#allocation9 + $0xca0] sm:$0xff]  ;;  %v4532_v2 = vld [vmem:[#allocation9 + $0x1170] sm:$0xff] }
 0x4be   : > { %7545 = vmatpush1.bf16.msra.mxu0 %v7544_v38  ;;  %7403 = vmatprep.subr.bf16.mxu1 %v7402_v39  ;;  %v4505_v38 = vld [vmem:[#allocation9 + $0x1098] sm:$0xff]  ;;  %v7420_v39 = vpack.c.bf16 %v4120_v49, %v4118_v5  ;;  %v7580_v5 = vpack.c.bf16 %v4516_v8, %v4514_v41  ;;  %v7438_v49 = vpack.c.bf16 %v4141_v20, %v4139_v36  ;;  %v4522_v61 = vld [vmem:[#allocation9 + $0x1120] sm:$0xff]  ;;  %v4156_v8 = vld [vmem:[#allocation9 + $0xd10] sm:$0xff] }
 0x4bf   : > { %7547 = vmatprep.subr.bf16.mxu0 %v7546_v4  ;;  %v4124_v4 = vld [vmem:[#allocation9 + $0xc10] sm:$0xff]  ;;  %v7566_v37 = vpack.c.bf16 %v4505_v38, %v4503_v24  ;;  %v4143_v24 = vld [vmem:[#allocation9 + $0xca8] sm:$0xff]  ;;  %v4145_v38 = vld [vmem:[#allocation9 + $0xcb8] sm:$0xff] }
 0x4c0   : > { %v4146_v43 = vld [vmem:[#allocation9 + $0xcc0] sm:$0xff]  ;;  %v4536_v20 = vld [vmem:[#allocation9 + $0x1190] sm:$0xff] }
 0x4c1   : > { %7405 = vmatpush1.bf16.msra.mxu1 %v7404_v63  ;;  %v4507_v63 = vld [vmem:[#allocation9 + $0x10a8] sm:$0xff]  ;;  %v4526_v46 = vld [vmem:[#allocation9 + $0x1140] sm:$0xff] }
 0x4c2   : > { %7549 = vmatpush1.bf16.msra.mxu0 %v7548_v18  ;;  %7407 = vmatprep.subr.bf16.mxu1 %v7406_v14  ;;  %v4509_v18 = vld [vmem:[#allocation9 + $0x10b8] sm:$0xff]  ;;  %v7424_v14 = vpack.c.bf16 %v4124_v4, %v4122_v27  ;;  %v7584_v27 = vpack.c.bf16 %v4520_v34, %v4518_v60  ;;  %v7442_v4 = vpack.c.bf16 %v4145_v38, %v4143_v24  ;;  %v4150_v29 = vld [vmem:[#allocation9 + $0xce0] sm:$0xff]  ;;  %v4540_v38 = vld [vmem:[#allocation9 + $0x11b0] sm:$0xff] }
 0x4c3   : > { %7551 = vmatprep.subr.bf16.mxu0 %v7550_v59  ;;  %v4128_v59 = vld [vmem:[#allocation9 + $0xc30] sm:$0xff]  ;;  %v7570_v35 = vpack.c.bf16 %v4509_v18, %v4507_v63  ;;  %v4147_v63 = vld [vmem:[#allocation9 + $0xcc8] sm:$0xff]  ;;  %v4149_v18 = vld [vmem:[#allocation9 + $0xcd8] sm:$0xff] }
 0x4c4   : > { %v4530_v1 = vld [vmem:[#allocation9 + $0x1160] sm:$0xff] }
 0x4c5   : > { %7409 = vmatpush1.bf16.msra.mxu1 %v7408_v52  ;;  %v4511_v52 = vld [vmem:[#allocation9 + $0x10c8] sm:$0xff]  ;;  %v4534_v36 = vld [vmem:[#allocation9 + $0x1180] sm:$0xff] }
 0x4c6   : > { %7553 = vmatpush1.bf16.msra.mxu0 %v7552_v9  ;;  %7411 = vmatprep.subr.bf16.mxu1 %v7410_v11  ;;  %v4513_v9 = vld [vmem:[#allocation9 + $0x10d8] sm:$0xff]  ;;  %v7428_v11 = vpack.c.bf16 %v4128_v59, %v4126_v48  ;;  %v7588_v48 = vpack.c.bf16 %v4524_v53, %v4522_v61  ;;  %v7446_v59 = vpack.c.bf16 %v4149_v18, %v4147_v63  ;;  %v4158_v60 = vld [vmem:[#allocation9 + $0xd20] sm:$0xff]  ;;  %v4167_v18 = vld [vmem:[#allocation9 + $0xd68] sm:$0xff] }
 0x4c7   : > { %7555 = vmatprep.subr.bf16.mxu0 %v7554_v15  ;;  %v4132_v15 = vld [vmem:[#allocation9 + $0xc50] sm:$0xff]  ;;  %v7574_v25 = vpack.c.bf16 %v4513_v9, %v4511_v52  ;;  %v4151_v52 = vld [vmem:[#allocation9 + $0xce8] sm:$0xff]  ;;  %v4153_v9 = vld [vmem:[#allocation9 + $0xcf8] sm:$0xff] }
 0x4c8   : > { %v4538_v34 = vld [vmem:[#allocation9 + $0x11a0] sm:$0xff] }
 0x4c9   : > { %7413 = vmatpush1.bf16.msra.mxu1 %v7412_v6  ;;  %v4515_v6 = vld [vmem:[#allocation9 + $0x10e8] sm:$0xff]  ;;  %v4162_v61 = vld [vmem:[#allocation9 + $0xd40] sm:$0xff] }
 0x4ca   : > { %7557 = vmatpush1.bf16.msra.mxu0 %v7556_v44  ;;  %7415 = vmatprep.subr.bf16.mxu1 %v7414_v7  ;;  %v4517_v44 = vld [vmem:[#allocation9 + $0x10f8] sm:$0xff]  ;;  %v7432_v7 = vpack.c.bf16 %v4132_v15, %v4130_v47  ;;  %v7592_v47 = vpack.c.bf16 %v4528_v50, %v4526_v46  ;;  %v7450_v15 = vpack.c.bf16 %v4153_v9, %v4151_v52  ;;  %v4542_v53 = vld [vmem:[#allocation9 + $0x11c0] sm:$0xff]  ;;  %v4548_v50 = vld [vmem:[#allocation9 + $0x11f0] sm:$0xff] }
 0x4cb   : > { %7559 = vmatprep.subr.bf16.mxu0 %v7558_v32  ;;  %v4136_v32 = vld [vmem:[#allocation9 + $0xc70] sm:$0xff]  ;;  %v7578_v13 = vpack.c.bf16 %v4517_v44, %v4515_v6  ;;  %v4155_v6 = vld [vmem:[#allocation9 + $0xd08] sm:$0xff]  ;;  %v4157_v44 = vld [vmem:[#allocation9 + $0xd18] sm:$0xff] }
 0x4cc   : > { %v4785_v9 = vld [vmem:[#allocation10] sm:$0xff] }
 0x4cd   : > { %7417 = vmatpush1.bf16.msra.mxu1 %v7416_v33  ;;  %v4519_v33 = vld [vmem:[#allocation9 + $0x1108] sm:$0xff] }
 0x4ce   : > { %7561 = vmatpush1.bf16.msra.mxu0 %v7560_v17  ;;  %7419 = vmatprep.subr.bf16.mxu1 %v7418_v30  ;;  %v4521_v17 = vld [vmem:[#allocation9 + $0x1118] sm:$0xff]  ;;  %v7436_v30 = vpack.c.bf16 %v4136_v32, %v4134_v23  ;;  %v7596_v23 = vpack.c.bf16 %v4532_v2, %v4530_v1  ;;  %v7454_v32 = vpack.c.bf16 %v4157_v44, %v4155_v6  ;;  %v4926_v2 = vld [vmem:[#allocation10 + $0xa8] sm:$0xff] }
 0x4cf   : > { %7563 = vmatprep.subr.bf16.mxu0 %v7562_v56  ;;  %v4140_v56 = vld [vmem:[#allocation9 + $0xc90] sm:$0xff]  ;;  %v7582_v58 = vpack.c.bf16 %v4521_v17, %v4519_v33  ;;  %v4159_v33 = vld [vmem:[#allocation9 + $0xd28] sm:$0xff]  ;;  %v4161_v17 = vld [vmem:[#allocation9 + $0xd38] sm:$0xff] }
 0x4d0   : > { %v4788_v1 = vld [vmem:[#allocation10 + $0x18] sm:$0xff] }
 0x4d1   : > { %7421 = vmatpush1.bf16.msra.mxu1 %v7420_v39  ;;  %v4523_v39 = vld [vmem:[#allocation9 + $0x1128] sm:$0xff] }
 0x4d2   : > { %7565 = vmatpush1.bf16.msra.mxu0 %v7564_v21  ;;  %7423 = vmatprep.subr.bf16.mxu1 %v7422_v40  ;;  %v4525_v21 = vld [vmem:[#allocation9 + $0x1138] sm:$0xff]  ;;  %v7440_v40 = vpack.c.bf16 %v4140_v56, %v4138_v42  ;;  %v7600_v42 = vpack.c.bf16 %v4536_v20, %v4534_v36  ;;  %v7458_v56 = vpack.c.bf16 %v4161_v17, %v4159_v33  ;;  %v4930_v36 = vld [vmem:[#allocation10 + $0xc8] sm:$0xff]  ;;  %v4793_v17 = vld [vmem:[#allocation10 + $0x40] sm:$0xff] }
 0x4d3   : > { %7567 = vmatprep.subr.bf16.mxu0 %v7566_v37  ;;  %v4144_v37 = vld [vmem:[#allocation9 + $0xcb0] sm:$0xff]  ;;  %v7586_v62 = vpack.c.bf16 %v4525_v21, %v4523_v39  ;;  %v4163_v39 = vld [vmem:[#allocation9 + $0xd48] sm:$0xff]  ;;  %v4165_v21 = vld [vmem:[#allocation9 + $0xd58] sm:$0xff] }
 0x4d5   : > { %7425 = vmatpush1.bf16.msra.mxu1 %v7424_v14  ;;  %v4527_v14 = vld [vmem:[#allocation9 + $0x1148] sm:$0xff] }
 0x4d6   : > { %7569 = vmatpush1.bf16.msra.mxu0 %v7568_v51  ;;  %7427 = vmatprep.subr.bf16.mxu1 %v7426_v31  ;;  %v4529_v51 = vld [vmem:[#allocation9 + $0x1158] sm:$0xff]  ;;  %v7444_v31 = vpack.c.bf16 %v4144_v37, %v4142_v28  ;;  %v7604_v28 = vpack.c.bf16 %v4540_v38, %v4538_v34  ;;  %v7462_v37 = vpack.c.bf16 %v4165_v21, %v4163_v39  ;;  %v4934_v34 = vld [vmem:[#allocation10 + $0xe8] sm:$0xff]  ;;  %v4797_v39 = vld [vmem:[#allocation10 + $0x60] sm:$0xff] }
 0x4d7   : > { %7571 = vmatprep.subr.bf16.mxu0 %v7570_v35  ;;  %v4148_v35 = vld [vmem:[#allocation9 + $0xcd0] sm:$0xff]  ;;  %v7590_v55 = vpack.c.bf16 %v4529_v51, %v4527_v14  ;;  %v4169_v14 = vld [vmem:[#allocation9 + $0xd78] sm:$0xff]  ;;  %v4547_v51 = vld [vmem:[#allocation9 + $0x11e8] sm:$0xff] }
 0x4d8   : > { %v4798_v21 = vld [vmem:[#allocation10 + $0x68] sm:$0xff] }
 0x4d9   : > { %7429 = vmatpush1.bf16.msra.mxu1 %v7428_v11  ;;  %v4531_v11 = vld [vmem:[#allocation9 + $0x1168] sm:$0xff] }
 0x4da   : > { %7573 = vmatpush1.bf16.msra.mxu0 %v7572_v12  ;;  %7431 = vmatprep.subr.bf16.mxu1 %v7430_v3  ;;  %v4533_v12 = vld [vmem:[#allocation9 + $0x1178] sm:$0xff]  ;;  %v7448_v3 = vpack.c.bf16 %v4148_v35, %v4146_v43  ;;  %v4166_v43 = vld [vmem:[#allocation9 + $0xd60] sm:$0xff]  ;;  %v4168_v35 = vld [vmem:[#allocation9 + $0xd70] sm:$0xff] }
 0x4db   : > { %7575 = vmatprep.subr.bf16.mxu0 %v7574_v25  ;;  %v4152_v25 = vld [vmem:[#allocation9 + $0xcf0] sm:$0xff]  ;;  %v7594_v22 = vpack.c.bf16 %v4533_v12, %v4531_v11  ;;  %v4786_v11 = vld [vmem:[#allocation10 + $0x8] sm:$0xff] }
 0x4dc   : > { %v4923_v12 = vld [vmem:[#allocation10 + $0x90] sm:$0xff] }
 0x4dd   : > { %7433 = vmatpush1.bf16.msra.mxu1 %v7432_v7  ;;  %v4535_v7 = vld [vmem:[#allocation9 + $0x1188] sm:$0xff] }
 0x4de   : > { %7577 = vmatpush1.bf16.msra.mxu0 %v7576_v45  ;;  %7435 = vmatprep.subr.bf16.mxu1 %v7434_v19  ;;  %v4537_v45 = vld [vmem:[#allocation9 + $0x1198] sm:$0xff]  ;;  %v7452_v19 = vpack.c.bf16 %v4152_v25, %v4150_v29  ;;  %v4787_v25 = vld [vmem:[#allocation10 + $0x10] sm:$0xff] }
 0x4df   : > { %7579 = vmatprep.subr.bf16.mxu0 %v7578_v13  ;;  %v7598_v41 = vpack.c.bf16 %v4537_v45, %v4535_v7  ;;  %v4154_v13 = vld [vmem:[#allocation9 + $0xd00] sm:$0xff]  ;;  %v7618_v6 = vpack.c.bf16 %v4788_v1, %v4787_v25  ;;  %v4790_v45 = vld [vmem:[#allocation10 + $0x28] sm:$0xff] }
 0x4e0   : > { %v4789_v7 = vld [vmem:[#allocation10 + $0x20] sm:$0xff] }
 0x4e1   : > { %7437 = vmatpush1.bf16.msra.mxu1 %v7436_v30  ;;  %v4539_v30 = vld [vmem:[#allocation9 + $0x11a8] sm:$0xff] }
 0x4e2   : > { %7581 = vmatpush1.bf16.msra.mxu0 %v7580_v5  ;;  %7439 = vmatprep.subr.bf16.mxu1 %v7438_v49  ;;  %v4541_v5 = vld [vmem:[#allocation9 + $0x11b8] sm:$0xff]  ;;  %v7456_v49 = vpack.c.bf16 %v4156_v8, %v4154_v13  ;;  %v4929_v8 = vld [vmem:[#allocation10 + $0xc0] sm:$0xff] }
 0x4e3   : > { %7583 = vmatprep.subr.bf16.mxu0 %v7582_v58  ;;  %v4160_v58 = vld [vmem:[#allocation9 + $0xd30] sm:$0xff]  ;;  %v7602_v24 = vpack.c.bf16 %v4541_v5, %v4539_v30  ;;  %v4792_v13 = vld [vmem:[#allocation10 + $0x38] sm:$0xff]  ;;  %v7651_v33 = vpack.c.bf16 %v4930_v36, %v4929_v8 }
 0x4e4   : > { %v4931_v30 = vld [vmem:[#allocation10 + $0xd0] sm:$0xff]  ;;  %v4932_v5 = vld [vmem:[#allocation10 + $0xd8] sm:$0xff] }
 0x4e5   : > { %7441 = vmatpush1.bf16.msra.mxu1 %v7440_v40  ;;  %v4543_v40 = vld [vmem:[#allocation9 + $0x11c8] sm:$0xff] }
 0x4e6   : > { %7585 = vmatpush1.bf16.msra.mxu0 %v7584_v27  ;;  %7443 = vmatprep.subr.bf16.mxu1 %v7442_v4  ;;  %v4545_v27 = vld [vmem:[#allocation9 + $0x11d8] sm:$0xff]  ;;  %v7460_v4 = vpack.c.bf16 %v4160_v58, %v4158_v60  ;;  %v4933_v58 = vld [vmem:[#allocation10 + $0xe0] sm:$0xff] }
 0x4e7   : > { %7587 = vmatprep.subr.bf16.mxu0 %v7586_v62  ;;  %v4164_v62 = vld [vmem:[#allocation9 + $0xd50] sm:$0xff]  ;;  %v7606_v63 = vpack.c.bf16 %v4545_v27, %v4543_v40  ;;  %v4796_v60 = vld [vmem:[#allocation10 + $0x58] sm:$0xff]  ;;  %v7657_v38 = vpack.c.bf16 %v4934_v34, %v4933_v58  ;;  %v5057_v58 = vld [vmem:[#allocation10 + $0x140] sm:$0xff] }
 0x4e8   : > { %v4935_v40 = vld [vmem:[#allocation10 + $0xf0] sm:$0xff]  ;;  %v4936_v27 = vld [vmem:[#allocation10 + $0xf8] sm:$0xff]  ;;  %v5058_v34 = vld [vmem:[#allocation10 + $0x148] sm:$0xff] }
 0x4e9   : > { %7445 = vmatpush1.bf16.msra.mxu1 %v7444_v31  ;;  %v4549_v31 = vld [vmem:[#allocation9 + $0x11f8] sm:$0xff] }
 0x4ea   : > { %7589 = vmatpush1.bf16.msra.mxu0 %v7588_v48  ;;  %7447 = vmatprep.subr.bf16.mxu1 %v7446_v59  ;;  %v7466_v59 = vpack.c.bf16 %v4169_v14, %v4167_v18  ;;  %v7610_v46 = vpack.c.bf16 %v4549_v31, %v4547_v51 }
 0x4eb   : > { %7591 = vmatprep.subr.bf16.mxu0 %v7590_v55  ;;  %v4546_v55 = vld [vmem:[#allocation9 + $0x11e0] sm:$0xff] }
 0x4ec   : > { %v7612_v52 = vpack.c.bf16 %v4548_v50, %v4546_v55 }
 0x4ed   : > { %7449 = vmatpush1.bf16.msra.mxu1 %v7448_v3  ;;  %v4924_v3 = vld [vmem:[#allocation10 + $0x98] sm:$0xff] }
 0x4ee   : > { %7593 = vmatpush1.bf16.msra.mxu0 %v7592_v47  ;;  %7451 = vmatprep.subr.bf16.mxu1 %v7450_v15  ;;  %v8409_v47 = vmov 0.0|0.0   ;;  %v7615_v15 = vpack.c.bf16 %v4786_v11, %v4785_v9  ;;  %v7642_v29 = vpack.c.bf16 %v4924_v3, %v4923_v12  ;;  %v4939_v9 = vld [vmem:[#allocation10 + $0x110] sm:$0xff]  ;;  %v4940_v12 = vld [vmem:[#allocation10 + $0x118] sm:$0xff] }
 0x4ef   : > { %7595 = vmatprep.subr.bf16.mxu0 %v7594_v22  ;;  %v4925_v22 = vld [vmem:[#allocation10 + $0xa0] sm:$0xff]  ;;  %v7666_v3 = vpack.c.bf16 %v4940_v12, %v4939_v9  ;;  %v5067_v9 = vld [vmem:[#allocation10 + $0x190] sm:$0xff] }
 0x4f0   : > { %v7645_v44 = vpack.c.bf16 %v4926_v2, %v4925_v22  ;;  %v5054_v2 = vld [vmem:[#allocation10 + $0x128] sm:$0xff]  ;;  %v5197_v12 = vld [vmem:[#allocation10 + $0x220] sm:$0xff] }
 0x4f1   : > { %7453 = vmatpush1.bf16.msra.mxu1 %v7452_v19  ;;  %v4927_v19 = vld [vmem:[#allocation10 + $0xb0] sm:$0xff] }
 0x4f2   : > { %7597 = vmatpush1.bf16.msra.mxu0 %v7596_v23  ;;  %7455 = vmatprep.subr.bf16.mxu1 %v7454_v32  ;;  %v4928_v23 = vld [vmem:[#allocation10 + $0xb8] sm:$0xff] }
 0x4f3   : > { %7599 = vmatprep.subr.bf16.mxu0 %v7598_v41  ;;  %v7648_v32 = vpack.c.bf16 %v4928_v23, %v4927_v19  ;;  %v4791_v41 = vld [vmem:[#allocation10 + $0x30] sm:$0xff] }
 0x4f4   : > { %4312 = vmatmul.mubr.f32.vlgmr.msra.gmra.mrb[64].mxu1 %v9545_v26  ;;  %v7624_v20 = vpack.c.bf16 %v4792_v13, %v4791_v41  ;;  %v5055_v13 = vld [vmem:[#allocation10 + $0x130] sm:$0xff] }
 0x4f5   : > { %4692 = vmatmul.mubr.f32.vlgmr.msra.gmra.mrb[74].mxu0 %v9545_v26  ;;  %4317 = vmatprep.mubr.f32.mxu1 %v9549_v57  ;;  %v4544_v26 = vld [vmem:[#allocation9 + $0x11d0] sm:$0xff] }
 0x4f6   : > { %7457 = vmatpush1.bf16.msra.mxu1 %v7456_v49  ;;  %4697 = vmatprep.mubr.f32.mxu0 %v9549_v57  ;;  %v7464_v57 = vpack.c.bf16 %v4164_v62, %v4162_v61  ;;  %v7608_v48 = vpack.c.bf16 %v4544_v26, %v4542_v53  ;;  %v4800_v61 = vld [vmem:[#allocation10 + $0x78] sm:$0xff]  ;;  %v4937_v62 = vld [vmem:[#allocation10 + $0x100] sm:$0xff]  ;;  %v4938_v53 = vld [vmem:[#allocation10 + $0x108] sm:$0xff] }
 0x4f7   : > { %7601 = vmatpush1.bf16.msra.mxu0 %v7600_v42  ;;  %7459 = vmatprep.subr.bf16.mxu1 %v7458_v56  ;;  %v7654_v42 = vpack.c.bf16 %v4932_v5, %v4931_v30  ;;  %v4795_v56 = vld [vmem:[#allocation10 + $0x50] sm:$0xff]  ;;  %v7663_v26 = vpack.c.bf16 %v4938_v53, %v4937_v62  ;;  %v5061_v62 = vld [vmem:[#allocation10 + $0x160] sm:$0xff]  ;;  %v5062_v53 = vld [vmem:[#allocation10 + $0x168] sm:$0xff] }
 0x4f8   : > { %4318 = vmatmul.mubr.f32.gmra.mrb[66].mxu1 %v9553_v10  ;;  %7603 = vmatprep.subr.bf16.mxu0 %v7602_v24  ;;  %v7630_v24 = vpack.c.bf16 %v4796_v60, %v4795_v56 }
 0x4f9   : > { %4698 = vmatmul.mubr.f32.gmra.mrb[76].mxu0 %v9553_v10  ;;  %4388 = vmatprep.mubr.f32.mxu1 %v8397_v0  ;;  %v7468_v10 = vpack.c.bf16 %v4168_v35, %v4166_v43 }
 0x4fa   : > { %7461 = vmatpush1.bf16.msra.mxu1 %v7460_v4  ;;  %4768 = vmatprep.mubr.f32.mxu0 %v8397_v0  ;;  %v7633_v4 = vpack.c.bf16 %v4798_v21, %v4797_v39  ;;  %v7675_v39 = vpack.c.bf16 %v5058_v34, %v5057_v58  ;;  %v5324_v58 = vld [vmem:[#allocation10 + $0x298] sm:$0xff]  ;;  %v5325_v34 = vld [vmem:[#allocation10 + $0x2a0] sm:$0xff] }
 0x4fb   : > { %7605 = vmatpush1.bf16.msra.mxu0 %v7604_v28  ;;  %7463 = vmatprep.subr.bf16.mxu1 %v7462_v37  ;;  %v7660_v28 = vpack.c.bf16 %v4936_v27, %v4935_v40  ;;  %v4799_v37 = vld [vmem:[#allocation10 + $0x70] sm:$0xff]  ;;  %v5060_v27 = vld [vmem:[#allocation10 + $0x158] sm:$0xff] }
 0x4fc   : > { %7607 = vmatprep.subr.bf16.mxu0 %v7606_v63  ;;  %v7636_v63 = vpack.c.bf16 %v4800_v61, %v4799_v37  ;;  %v5059_v40 = vld [vmem:[#allocation10 + $0x150] sm:$0xff] }
 0x4fd   : > { %v7678_v37 = vpack.c.bf16 %v5060_v27, %v5059_v40  ;;  %v5329_v27 = vld [vmem:[#allocation10 + $0x2c0] sm:$0xff] }
 0x4fe   : > { %7465 = vmatpush1.bf16.msra.mxu1 %v7464_v57 }
 0x4ff   : > { %7609 = vmatpush1.bf16.msra.mxu0 %v7608_v48  ;;  %7467 = vmatprep.subr.bf16.mxu1 %v7466_v59 }
 0x500   : > { %7611 = vmatprep.subr.bf16.mxu0 %v7610_v46 }
 0x502   : > { %7469 = vmatpush1.bf16.msra.mxu1 %v7468_v10  ;;  %v4801_v10 = vld [vmem:[#allocation10 + $0x80] sm:$0xff] }
 0x503   : > { %7613 = vmatpush1.bf16.msra.mxu0 %v7612_v52  ;;  %7614 = vmatprep.subr.bf16.mxu1 %v8409_v47  ;;  %v4802_v52 = vld [vmem:[#allocation10 + $0x88] sm:$0xff] }
 0x504   : > { %7641 = vmatprep.subr.bf16.mxu0 %v8409_v47  ;;  %v7639_v11 = vpack.c.bf16 %v4802_v52, %v4801_v10 }
 0x505   : > { %6624 = vmatmul.mubr.msk.f32.vlgmr.msra.gmra.mrb[64].mxu1 %vm3407_vm12, %v9565_v16 }
 0x506   : > { %6626 = vmatmul.mubr.msk.f32.vlgmr.msra.gmra.mrb[74].mxu0 %vm3407_vm12, %v9565_v16  ;;  %4394 = vmatprep.mubr.f32.mxu1 %v8397_v0  ;;  %v7621_v16 = vpack.c.bf16 %v4790_v45, %v4789_v7 }
 0x507   : > { %4774 = vmatprep.mubr.f32.mxu0 %v8397_v0  ;;  %7616 = vmatpush1.bf16.msra.mxu1 %v7615_v15 }
 0x508   : > { %7643 = vmatpush1.bf16.msra.mxu0 %v7642_v29  ;;  %7617 = vmatprep.subr.bf16.mxu1 %v8409_v47  ;;  %v5053_v29 = vld [vmem:[#allocation10 + $0x120] sm:$0xff] }
 0x509   : > { %6625 = vmatmul.mubr.msk.f32.gmra.mrb[66].mxu1 %vm3407_vm12, %v9571_v54  ;;  %7644 = vmatprep.subr.bf16.mxu0 %v8409_v47 }
 0x50a   : > { %6627 = vmatmul.mubr.msk.f32.gmra.mrb[76].mxu0 %vm3407_vm12, %v9571_v54  ;;  %v4794_v54 = vld [vmem:[#allocation10 + $0x48] sm:$0xff] }
 0x50b   : > { %7619 = vmatpush1.bf16.msra.mxu1 %v7618_v6  ;;  %v7627_v49 = vpack.c.bf16 %v4794_v54, %v4793_v17  ;;  %v5183_v6 = vld [vmem:[#allocation10 + $0x1b0] sm:$0xff]  ;;  %v5185_v17 = vld [vmem:[#allocation10 + $0x1c0] sm:$0xff]  ;;  %v5186_v54 = vld [vmem:[#allocation10 + $0x1c8] sm:$0xff] }
 0x50c   : > { %7646 = vmatpush1.bf16.msra.mxu0 %v7645_v44  ;;  %7620 = vmatprep.subr.bf16.mxu1 %v8409_v47  ;;  %v5184_v44 = vld [vmem:[#allocation10 + $0x1b8] sm:$0xff]  ;;  %v7699_v60 = vpack.c.bf16 %v5186_v54, %v5185_v17 }
 0x50d   : > { %7647 = vmatprep.subr.bf16.mxu0 %v8409_v47  ;;  %v7696_v41 = vpack.c.bf16 %v5184_v44, %v5183_v6  ;;  %v5320_v17 = vld [vmem:[#allocation10 + $0x278] sm:$0xff] }
 0x50f   : > { %7622 = vmatpush1.bf16.msra.mxu1 %v7621_v16 }
 0x510   : > { %7649 = vmatpush1.bf16.msra.mxu0 %v7648_v32  ;;  %7623 = vmatprep.subr.bf16.mxu1 %v8409_v47  ;;  %v7669_v32 = vpack.c.bf16 %v5054_v2, %v5053_v29  ;;  %v5200_v2 = vld [vmem:[#allocation10 + $0x238] sm:$0xff] }
 0x511   : > { %7650 = vmatprep.subr.bf16.mxu0 %v8409_v47 }
 0x513   : > { %7625 = vmatpush1.bf16.msra.mxu1 %v7624_v20 }
 0x514   : > { %7652 = vmatpush1.bf16.msra.mxu0 %v7651_v33  ;;  %7626 = vmatprep.subr.bf16.mxu1 %v8409_v47  ;;  %v5056_v33 = vld [vmem:[#allocation10 + $0x138] sm:$0xff] }
 0x515   : > { %7653 = vmatprep.subr.bf16.mxu0 %v8409_v47  ;;  %v7672_v56 = vpack.c.bf16 %v5056_v33, %v5055_v13  ;;  %v5319_v33 = vld [vmem:[#allocation10 + $0x270] sm:$0xff] }
 0x516   : > { %v7732_v54 = vpack.c.bf16 %v5320_v17, %v5319_v33 }
 0x517   : > { %7628 = vmatpush1.bf16.msra.mxu1 %v7627_v49 }
 0x518   : > { %7655 = vmatpush1.bf16.msra.mxu0 %v7654_v42  ;;  %7629 = vmatprep.subr.bf16.mxu1 %v8409_v47 }
 0x519   : > { %7656 = vmatprep.subr.bf16.mxu0 %v8409_v47 }
 0x51b   : > { %7631 = vmatpush1.bf16.msra.mxu1 %v7630_v24  ;;  %v5187_v24 = vld [vmem:[#allocation10 + $0x1d0] sm:$0xff] }
 0x51c   : > { %7658 = vmatpush1.bf16.msra.mxu0 %v7657_v38  ;;  %7632 = vmatprep.subr.bf16.mxu1 %v8409_v47  ;;  %v5188_v38 = vld [vmem:[#allocation10 + $0x1d8] sm:$0xff] }
 0x51d   : > { %7659 = vmatprep.subr.bf16.mxu0 %v8409_v47  ;;  %v7702_v21 = vpack.c.bf16 %v5188_v38, %v5187_v24  ;;  %v5326_v24 = vld [vmem:[#allocation10 + $0x2a8] sm:$0xff] }
 0x51e   : > { %v7741_v38 = vpack.c.bf16 %v5326_v24, %v5325_v34 }
 0x51f   : > { %7634 = vmatpush1.bf16.msra.mxu1 %v7633_v4  ;;  %v5189_v4 = vld [vmem:[#allocation10 + $0x1e0] sm:$0xff] }
 0x520   : > { %7661 = vmatpush1.bf16.msra.mxu0 %v7660_v28  ;;  %7635 = vmatprep.subr.bf16.mxu1 %v8409_v47  ;;  %v5190_v28 = vld [vmem:[#allocation10 + $0x1e8] sm:$0xff] }
 0x521   : > { %7662 = vmatprep.subr.bf16.mxu0 %v8409_v47  ;;  %v7705_v61 = vpack.c.bf16 %v5190_v28, %v5189_v4  ;;  %v5330_v4 = vld [vmem:[#allocation10 + $0x2c8] sm:$0xff] }
 0x522   : > { %v7747_v28 = vpack.c.bf16 %v5330_v4, %v5329_v27 }
 0x523   : > { %7637 = vmatpush1.bf16.msra.mxu1 %v7636_v63  ;;  %v5191_v63 = vld [vmem:[#allocation10 + $0x1f0] sm:$0xff] }
 0x524   : > { %7664 = vmatpush1.bf16.msra.mxu0 %v7663_v26  ;;  %7638 = vmatprep.subr.bf16.mxu1 %v8409_v47  ;;  %v5192_v26 = vld [vmem:[#allocation10 + $0x1f8] sm:$0xff] }
 0x525   : > { %7665 = vmatprep.subr.bf16.mxu0 %v8409_v47 }
 0x527   : > { %7640 = vmatpush1.bf16.msra.mxu1 %v7639_v11  ;;  %v5068_v11 = vld [vmem:[#allocation10 + $0x198] sm:$0xff] }
 0x528   : > { %7667 = vmatpush1.bf16.msra.mxu0 %v7666_v3  ;;  %7668 = vmatprep.subr.bf16.mxu1 %v8409_v47  ;;  %v5198_v3 = vld [vmem:[#allocation10 + $0x228] sm:$0xff] }
 0x529   : > { %7695 = vmatprep.subr.bf16.mxu0 %v8409_v47  ;;  %v7717_v29 = vpack.c.bf16 %v5198_v3, %v5197_v12  ;;  %v5596_v12 = vld [vmem:[#allocation12 + $0x8] sm:$0xff] }
 0x546   : > { %v3634_v18 = vpop.f32.mrb[60].mxu1  ;;  %v4010_v14 = vpop.f32.mrb[70].mxu0 }
 0x547   : > { %v4021_v51 = vmax.f32 %v3634_v18, %v4010_v14  ;;  %v3636_v31 = vpop.f32.mrb[61].mxu1  ;;  %v4012_v57 = vpop.f32.mrb[71].mxu0  ;;  %v7681_v18 = vpack.c.bf16 %v5062_v53, %v5061_v62  ;;  %v7708_v14 = vpack.c.bf16 %v5192_v26, %v5191_v63 }
 0x548   : > { %v4022_v48 = vmax.f32 %v3636_v31, %v4012_v57  ;;  %v5064_v31 = vld [vmem:[#allocation10 + $0x178] sm:$0xff]  ;;  %v5193_v57 = vld [vmem:[#allocation10 + $0x200] sm:$0xff] }
 0x54a   : > { %v3640_v59 = vpop.f32.mrb[62].mxu1  ;;  %v4016_v43 = vpop.f32.mrb[72].mxu0 }
 0x54b   : > { %v4023_v35 = vmax.f32 %v3640_v59, %v4016_v43  ;;  %v3642_v46 = vpop.f32.mrb[63].mxu1  ;;  %v4018_v55 = vpop.f32.mrb[73].mxu0 }
 0x54c   : > { %v4024_v50 = vmax.f32 %v3642_v46, %v4018_v55  ;;  %v5066_v46 = vld [vmem:[#allocation10 + $0x188] sm:$0xff]  ;;  %v5195_v55 = vld [vmem:[#allocation10 + $0x210] sm:$0xff] }
 0x5d8   : > { %v4390_v15 = vpop.f32.mrb[64].mxu1 }
 0x5d9   : > { %v4401_v25 = vmax.f32 %v4021_v51, %v4390_v15  ;;  %v4770_v1 = vpop.f32.mrb[74].mxu0  ;;  %v4392_v22 = vpop.f32.mrb[65].mxu1  ;;  %v5063_v51 = vld [vmem:[#allocation10 + $0x170] sm:$0xff]  ;;  %v7690_v15 = vpack.c.bf16 %v5068_v11, %v5067_v9  ;;  %v5482_v9 = vld [vmem:[%s10086_s8 + $0x10] sm:$0xf] }
 0x5da   : > { %v4402_v7 = vmax.f32 %v4022_v48, %v4392_v22  ;;  %v4772_v45 = vpop.f32.mrb[75].mxu0  ;;  %v5194_v48 = vld [vmem:[#allocation10 + $0x208] sm:$0xff]  ;;  %v7684_v59 = vpack.c.bf16 %v5064_v31, %v5063_v51  ;;  %v5199_v22 = vld [vmem:[#allocation10 + $0x230] sm:$0xff] }
 0x5db   : > { %v9627_v19 = vmax.f32 %v4401_v25, %v4770_v1  ;;  %v7711_v43 = vpack.c.bf16 %v5194_v48, %v5193_v57  ;;  %v5069_v25 = vld [vmem:[#allocation10 + $0x1a0] sm:$0xff]  ;;  %v5070_v1 = vld [vmem:[#allocation10 + $0x1a8] sm:$0xff]  ;;  %v7720_v44 = vpack.c.bf16 %v5200_v2, %v5199_v22  ;;  %v5595_v11 = vld [vmem:[#allocation12] sm:$0xff] }
 0x5dc   : > { %v9629_v23 = vmax.f32 %v4402_v7, %v4772_v45  ;;  %v4396_v16 = vpop.f32.mrb[66].mxu1  ;;  %v7693_v6 = vpack.c.bf16 %v5070_v1, %v5069_v25  ;;  %v5313_v7 = vld [vmem:[#allocation10 + $0x240] sm:$0xff]  ;;  %v5314_v45 = vld [vmem:[#allocation10 + $0x248] sm:$0xff] }
 0x5dd   : > { %v4403_v8 = vmax.f32 %v4023_v35, %v4396_v16  ;;  %v4776_v36 = vpop.f32.mrb[76].mxu0  ;;  %v4398_v20 = vpop.f32.mrb[67].mxu1  ;;  %v5065_v35 = vld [vmem:[#allocation10 + $0x180] sm:$0xff]  ;;  %v7723_v16 = vpack.c.bf16 %v5314_v45, %v5313_v7  ;;  %v5598_v1 = vld [vmem:[#allocation12 + $0x18] sm:$0xff] }
 0x5de   : > { %v4404_v30 = vmax.f32 %v4024_v50, %v4398_v20  ;;  %v4778_v5 = vpop.f32.mrb[77].mxu0  ;;  %6628 = vmatprep.mubr.msk.f32.mxu1 %vm4803_vm13, %v9629_v23  ;;  %6630 = vmatprep.mubr.msk.f32.mxu0 %vm4803_vm13, %v9629_v23  ;;  %v5196_v50 = vld [vmem:[#allocation10 + $0x218] sm:$0xff]  ;;  %v7687_v10 = vpack.c.bf16 %v5066_v46, %v5065_v35  ;;  %v5597_v25 = vld [vmem:[#allocation12 + $0x10] sm:$0xff] }
 0x5df   : > { %v9635_v49 = vmax.f32 %v4403_v8, %v4776_v36  ;;  %4875 = vmatmul.mubr.f32.vlgmr.msra.gmra.mrb[68].mxu1 %v9627_v19  ;;  %5006 = vmatmul.mubr.f32.vlgmr.msra.gmra.mrb[78].mxu0 %v9627_v19  ;;  %v7714_v52 = vpack.c.bf16 %v5196_v50, %v5195_v55  ;;  %v5317_v8 = vld [vmem:[#allocation10 + $0x260] sm:$0xff]  ;;  %v5318_v36 = vld [vmem:[#allocation10 + $0x268] sm:$0xff]  ;;  %v5443_v50 = vld [vmem:[%s10085_s7 + $0x8] sm:$0xff]  ;;  %v7786_v22 = vpack.c.bf16 %v5598_v1, %v5597_v25 }
 0x5e0   : > { %v9639_v42 = vmax.f32 %v4404_v30, %v4778_v5  ;;  %7670 = vmatpush1.bf16.msra.mxu1 %v7669_v32  ;;  %7697 = vmatpush1.bf16.msra.mxu0 %v7696_v41  ;;  %v5315_v32 = vld [vmem:[#allocation10 + $0x250] sm:$0xff]  ;;  %v5316_v41 = vld [vmem:[#allocation10 + $0x258] sm:$0xff]  ;;  %v7729_v20 = vpack.c.bf16 %v5318_v36, %v5317_v8  ;;  %v5321_v30 = vld [vmem:[#allocation10 + $0x280] sm:$0xff] }
 0x5e1   : > { %7671 = vmatprep.subr.bf16.mxu1 %v8409_v47  ;;  %7698 = vmatprep.subr.bf16.mxu0 %v8409_v47  ;;  %v7726_v13 = vpack.c.bf16 %v5316_v41, %v5315_v32  ;;  %v5322_v5 = vld [vmem:[#allocation10 + $0x288] sm:$0xff] }
 0x5e2   : > { %6629 = vmatprep.mubr.msk.f32.mxu1 %vm4803_vm13, %v9639_v42  ;;  %6631 = vmatprep.mubr.msk.f32.mxu0 %vm4803_vm13, %v9639_v42 }
 0x5e3   : > { %4880 = vmatmul.mubr.f32.gmra.mrb[70].mxu1 %v9635_v49  ;;  %5011 = vmatmul.mubr.f32.gmra.mrb[80].mxu0 %v9635_v49 }
 0x5e4   : > { %7673 = vmatpush1.bf16.msra.mxu1 %v7672_v56  ;;  %7700 = vmatpush1.bf16.msra.mxu0 %v7699_v60  ;;  %v7735_v56 = vpack.c.bf16 %v5322_v5, %v5321_v30  ;;  %v5323_v60 = vld [vmem:[#allocation10 + $0x290] sm:$0xff] }
 0x5e5   : > { %6632 = vmatprep.mubr.msk.f32.mxu1 %vm4803_vm13, %v9629_v23  ;;  %6634 = vmatprep.mubr.msk.f32.mxu0 %vm4803_vm13, %v9629_v23 }
 0x5e6   : > { %7674 = vmatprep.subr.bf16.mxu1 %v8409_v47  ;;  %7701 = vmatprep.subr.bf16.mxu0 %v8409_v47 }
 0x5e8   : > { %7676 = vmatpush1.bf16.msra.mxu1 %v7675_v39  ;;  %7703 = vmatpush1.bf16.msra.mxu0 %v7702_v21  ;;  %v5327_v39 = vld [vmem:[#allocation10 + $0x2b0] sm:$0xff]  ;;  %v5328_v21 = vld [vmem:[#allocation10 + $0x2b8] sm:$0xff] }
 0x5e9   : > { %7677 = vmatprep.subr.bf16.mxu1 %v8409_v47  ;;  %7704 = vmatprep.subr.bf16.mxu0 %v8409_v47  ;;  %v7744_v40 = vpack.c.bf16 %v5328_v21, %v5327_v39 }
 0x5ec   : > { %7679 = vmatpush1.bf16.msra.mxu1 %v7678_v37  ;;  %7706 = vmatpush1.bf16.msra.mxu0 %v7705_v61 }
 0x5ed   : > { %7680 = vmatprep.subr.bf16.mxu1 %v8409_v47  ;;  %7707 = vmatprep.subr.bf16.mxu0 %v8409_v47 }
 0x5f0   : > { %7682 = vmatpush1.bf16.msra.mxu1 %v7681_v18  ;;  %7709 = vmatpush1.bf16.msra.mxu0 %v7708_v14 }
 0x5f1   : > { %7683 = vmatprep.subr.bf16.mxu1 %v8409_v47  ;;  %7710 = vmatprep.subr.bf16.mxu0 %v8409_v47 }
 0x5f4   : > { %7685 = vmatpush1.bf16.msra.mxu1 %v7684_v59  ;;  %7712 = vmatpush1.bf16.msra.mxu0 %v7711_v43 }
 0x5f5   : > { %7686 = vmatprep.subr.bf16.mxu1 %v8409_v47  ;;  %7713 = vmatprep.subr.bf16.mxu0 %v8409_v47 }
 0x5f8   : > { %7688 = vmatpush1.bf16.msra.mxu1 %v7687_v10  ;;  %7715 = vmatpush1.bf16.msra.mxu0 %v7714_v52  ;;  %v5481_v10 = vld [vmem:[%s10086_s8 + $0x8] sm:$0xff]  ;;  %v5480_v52 = vld [vmem:[%s10086_s8] sm:$0xff] }
 0x5f9   : > { %7689 = vmatprep.subr.bf16.mxu1 %v8409_v47  ;;  %7716 = vmatprep.subr.bf16.mxu0 %v8409_v47 }
 0x5fc   : > { %7691 = vmatpush1.bf16.msra.mxu1 %v7690_v15  ;;  %7718 = vmatpush1.bf16.msra.mxu0 %v7717_v29  ;;  %v7783_v29 = vpack.c.bf16 %v5596_v12, %v5595_v11 }
 0x5fd   : > { %7692 = vmatprep.subr.bf16.mxu1 %v8409_v47  ;;  %7719 = vmatprep.subr.bf16.mxu0 %v8409_v47 }
 0x600   : > { %7694 = vmatpush1.bf16.msra.mxu1 %v7693_v6  ;;  %7721 = vmatpush1.bf16.msra.mxu0 %v7720_v44 }
 0x601   : > { %7722 = vmatprep.subr.bf16.mxu1 %v8409_v47 }
 0x603   : > { %5136 = vmatmul.mubr.f32.vlgmr.msra.gmra.mrb[72].mxu1 %v9627_v19  ;;  %5266 = vmatmul.mubr.f32.vlgmr.msra.gmra.mrb[82].mxu0 %v9627_v19 }
 0x604   : > { %6633 = vmatprep.mubr.msk.f32.mxu1 %vm4803_vm13, %v9639_v42  ;;  %6635 = vmatprep.mubr.msk.f32.mxu0 %vm4803_vm13, %v9639_v42 }
 0x605   : > { %7724 = vmatpush1.bf16.msra.mxu1 %v7723_v16 }
 0x606   : > { %7725 = vmatprep.subr.bf16.mxu1 %v8409_v47 }
 0x607   : > { %5141 = vmatmul.mubr.f32.gmra.mrb[74].mxu1 %v9635_v49  ;;  %5271 = vmatmul.mubr.f32.gmra.mrb[84].mxu0 %v9635_v49 }
 0x608   : > { %6636 = vmatprep.mubr.msk.f32.mxu1 %vm4803_vm13, %v9629_v23  ;;  %v7738_v23 = vpack.c.bf16 %v5324_v58, %v5323_v60  ;;  %6639 = vmatprep.mubr.msk.f32.mxu0 %vm5498_vm15, %v5443_v50 }
 0x609   : > { %7727 = vmatpush1.bf16.msra.mxu1 %v7726_v13 }
 0x60a   : > { %7728 = vmatprep.subr.bf16.mxu1 %v8409_v47 }
 0x60d   : > { %7730 = vmatpush1.bf16.msra.mxu1 %v7729_v20 }
 0x60e   : > { %7731 = vmatprep.subr.bf16.mxu1 %v8409_v47 }
 0x611   : > { %7733 = vmatpush1.bf16.msra.mxu1 %v7732_v54 }
 0x612   : > { %7734 = vmatprep.subr.bf16.mxu1 %v8409_v47 }
 0x615   : > { %7736 = vmatpush1.bf16.msra.mxu1 %v7735_v56 }
 0x616   : > { %7737 = vmatprep.subr.bf16.mxu1 %v8409_v47 }
 0x619   : > { %7739 = vmatpush1.bf16.msra.mxu1 %v7738_v23 }
 0x61a   : > { %7740 = vmatprep.subr.bf16.mxu1 %v8409_v47 }
 0x61d   : > { %7742 = vmatpush1.bf16.msra.mxu1 %v7741_v38 }
 0x61e   : > { %7743 = vmatprep.subr.bf16.mxu1 %v8409_v47 }
 0x621   : > { %7745 = vmatpush1.bf16.msra.mxu1 %v7744_v40 }
 0x622   : > { %7746 = vmatprep.subr.bf16.mxu1 %v8409_v47 }
 0x625   : > { %7748 = vmatpush1.bf16.msra.mxu1 %v7747_v28 }
 0x626   : > { %7782 = vmatprep.subr.bf16.mxu1 %v8409_v47 }
 0x628   : > { %5396 = vmatmul.mubr.f32.vlgmr.msra.gmra.mrb[76].mxu1 %v9627_v19 }
 0x629   : > { %6637 = vmatprep.mubr.msk.f32.mxu1 %vm4803_vm13, %v9639_v42  ;;  %7784 = vmatpush3.bf16.msra.mxu1 %v7783_v29 }
 0x62a   : > { %7785 = vmatprep.subr.bf16.mxu1 %v8409_v47 }
 0x62c   : > { %5401 = vmatmul.mubr.f32.gmra.mrb[78].mxu1 %v9635_v49 }
 0x62d   : > { %7787 = vmatpush3.bf16.msra.mxu1 %v7786_v22  ;;  %6832 = vmatprep.mubr.msk.f32.mxu1 %vm8413_vm3, %v8397_v0 }
 0x62e   : > { %7788 = vmatprep.subr.bf16.mxu1 %v8409_v47 }
 0x6b2   : > { %v9691_v37 = vpop.f32.mrb[68].mxu1  ;;  %v9693_v61 = vpop.f32.mrb[78].mxu0 }
 0x6b3   : > { %4885 = vst.msk [vmem:[#allocation3] sm:$0xff] %vm3407_vm12, %v9691_v37  ;;  %5016 = vst.msk [vmem:[#allocation3 + $0xa] sm:$0xff] %vm3407_vm12, %v9693_v61  ;;  %5036 = vrot.lane.b32.xlu0 %v9693_v61, %s8404_s6  ;;  %v5009_v62 = vpop.f32.mrb[79].mxu0  ;;  %4906 = vrot.lane.b32.xlu1 %v9691_v37, %s8404_s6  ;;  %v4878_v19 = vpop.f32.mrb[69].mxu1 }
 0x6b6   : > { %v4881_v49 = vpop.f32.mrb[70].mxu1  ;;  %v9703_v42 = vpop.f32.mrb[80].mxu0 }
 0x6b7   : > { %4887 = vst.msk [vmem:[#allocation3 + $0x8] sm:$0x3] %vm4886_vm14, %v4881_v49  ;;  %5017 = vst.msk [vmem:[#allocation3 + $0x12] sm:$0x3] %vm4886_vm14, %v9703_v42  ;;  %4914 = vrot.lane.b32.xlu0 %v9691_v37, %s8410_s26  ;;  %4890 = vrot.lane.b32.xlu1 %v9691_v37, %s8411_s15  ;;  %v4883_v53 = vpop.f32.mrb[71].mxu1  ;;  %v5014_v63 = vpop.f32.mrb[81].mxu0 }
 0x6bb   : > { %5044 = vrot.lane.b32.xlu0 %v9693_v61, %s8410_s26  ;;  %5020 = vrot.lane.b32.xlu1 %v9693_v61, %s8411_s15 }
 0x6be   : > { %v5449_v39 = vld [vmem:[#allocation3 + $0x8] sm:$0xff] }
 0x6bf   : > { %5038 = vrot.lane.b32.xlu1 %v9703_v42, %s8404_s6  ;;  %4908 = vrot.lane.b32.xlu0 %v4881_v49, %s8404_s6 }
 0x6c3   : > { %4916 = vrot.lane.b32.xlu1 %v4881_v49, %s8410_s26  ;;  %4892 = vrot.lane.b32.xlu0 %v4881_v49, %s8411_s15 }
 0x6c7   : > { %5046 = vrot.lane.b32.xlu1 %v9703_v42, %s8410_s26  ;;  %5022 = vrot.lane.b32.xlu0 %v9703_v42, %s8411_s15 }
 0x6d6   : > { %v5137_v26 = vpop.f32.mrb[72].mxu1  ;;  %v5267_v18 = vpop.f32.mrb[82].mxu0 }
 0x6d7   : > { %5146 = vst.msk [vmem:[#allocation3 + $0x14] sm:$0xff] %vm3407_vm12, %v5137_v26  ;;  %5276 = vst.msk [vmem:[#allocation3 + $0x1e] sm:$0xff] %vm3407_vm12, %v5267_v18  ;;  %v5269_v14 = vpop.f32.mrb[83].mxu0  ;;  %5288 = vrot.lane.b32.xlu0 %v5267_v18, %s8412_s18  ;;  %5150 = vrot.lane.b32.xlu1 %v5137_v26, %s8411_s15  ;;  %v5139_v51 = vpop.f32.mrb[73].mxu1 }
 0x6da   : > { %v5142_v31 = vpop.f32.mrb[74].mxu1  ;;  %v5272_v57 = vpop.f32.mrb[84].mxu0 }
 0x6db   : > { %5147 = vst.msk [vmem:[#allocation3 + $0x1c] sm:$0x3] %vm4886_vm14, %v5142_v31  ;;  %5277 = vst.msk [vmem:[#allocation3 + $0x26] sm:$0x3] %vm4886_vm14, %v5272_v57  ;;  %v5274_v48 = vpop.f32.mrb[85].mxu0  ;;  %5280 = vrot.lane.b32.xlu1 %v5267_v18, %s8411_s15  ;;  %5166 = vrot.lane.b32.xlu0 %v5137_v26, %s8404_s6  ;;  %v5144_v59 = vpop.f32.mrb[75].mxu1 }
 0x6df   : > { %5296 = vrot.lane.b32.xlu0 %v5267_v18, %s8404_s6  ;;  %5160 = vrot.lane.b32.xlu1 %v5142_v31, %s8412_s18 }
 0x6e2   : > { %v5451_v62 = vld [vmem:[#allocation3 + $0x18] sm:$0xff] }
 0x6e3   : > { %5174 = vrot.lane.b32.xlu0 %v5137_v26, %s8410_s26  ;;  %5290 = vrot.lane.b32.xlu1 %v5272_v57, %s8412_s18 }
 0x6e7   : > { %5152 = vrot.lane.b32.xlu0 %v5142_v31, %s8411_s15  ;;  %5168 = vrot.lane.b32.xlu1 %v5142_v31, %s8404_s6 }
 0x6eb   : > { %5298 = vrot.lane.b32.xlu1 %v5272_v57, %s8404_s6 }
 0x6fb   : > { %v5397_v43 = vpop.f32.mrb[76].mxu1 }
 0x6fc   : > { %5406 = vst.msk [vmem:[#allocation3 + $0x28] sm:$0xff] %vm3407_vm12, %v5397_v43  ;;  %5418 = vrot.lane.b32.xlu0 %v5397_v43, %s8412_s18  ;;  %v5399_v35 = vpop.f32.mrb[77].mxu1 }
 0x6fd   : > { %v5452_v35 = vld [vmem:[#allocation3 + $0x20] sm:$0xff] }
 0x6ff   : > { %v5402_v46 = vpop.f32.mrb[78].mxu1 }
 0x700   : > { %5407 = vst.msk [vmem:[#allocation3 + $0x30] sm:$0x3] %vm4886_vm14, %v5402_v46  ;;  %5282 = vrot.lane.b32.xlu0 %v5272_v57, %s8411_s15  ;;  %5420 = vrot.lane.b32.xlu1 %v5402_v46, %s8412_s18  ;;  %v5404_v55 = vpop.f32.mrb[79].mxu1 }
 0x704   : > { %5426 = vrot.lane.b32.xlu0 %v5397_v43, %s8404_s6  ;;  %5410 = vrot.lane.b32.xlu1 %v5397_v43, %s8411_s15 }
 0x708   : > { %5176 = vrot.lane.b32.xlu0 %v5142_v31, %s8410_s26  ;;  %5304 = vrot.lane.b32.xlu1 %v5267_v18, %s8410_s26  ;;  %v5450_v18 = vld [vmem:[#allocation3 + $0x10] sm:$0xff] }
 0x709   : > { %v7755_v14 = vpack.c.bf16 %v5451_v62, %v5450_v18  ;;  %v5698_v18 = vld [vmem:[#allocation12 + $0x68] sm:$0xff] }
 0x70c   : > { %5306 = vrot.lane.b32.xlu0 %v5272_v57, %s8410_s26  ;;  %5428 = vrot.lane.b32.xlu1 %v5402_v46, %s8404_s6  ;;  %v5453_v57 = vld [vmem:[#allocation3 + $0x28] sm:$0xff] }
 0x710   : > { %4900 = vrot.lane.b32.xlu0 %v4881_v49, %s8412_s18  ;;  %4898 = vrot.lane.b32.xlu1 %v9691_v37, %s8412_s18  ;;  %v5448_v37 = vld [vmem:[#allocation3] sm:$0xff] }
 0x714   : > { %5412 = vrot.lane.b32.xlu0 %v5402_v46, %s8411_s15  ;;  %5028 = vrot.lane.b32.xlu1 %v9693_v61, %s8412_s18  ;;  %v7751_v61 = vpack.c.bf16 %v5449_v39, %v5448_v37  ;;  %v5694_v39 = vld [vmem:[#allocation12 + $0x48] sm:$0xff]  ;;  %v5696_v37 = vld [vmem:[#allocation12 + $0x58] sm:$0xff] }
 0x718   : > { %5436 = vrot.lane.b32.xlu0 %v5402_v46, %s8410_s26  ;;  %5434 = vrot.lane.b32.xlu1 %v5397_v43, %s8410_s26  ;;  %v7759_v46 = vpack.c.bf16 %v5453_v57, %v5452_v35  ;;  %v5699_v57 = vld [vmem:[#allocation12 + $0x70] sm:$0xff]  ;;  %s10156_s26 = sld [smem:[#allocation36_spill]] }
 0x71c   : > { %5158 = vrot.lane.b32.xlu0 %v5137_v26, %s8412_s18  ;;  %5030 = vrot.lane.b32.xlu1 %v9703_v42, %s8412_s18  ;;  %s6381_s18 = scalar_lea.sflag [#allocation6], %s573_s22 }
 0x71e   : > { %s10036_s15 = scalar_lea.hbm %s10156_s26, %s6661_s27 }
 0x720   : > { %5490 = vperm.xlu0 %8062, %v5481_v10   ;;  %5485 = vperm.xlu1 %8063, %v5480_v52  }
 0x724   : > { %5495 = vperm.xlu1 %8063, %v5482_v9  }
 0x725   : > { %v5037_v3 = vpop.permute.xlu0 %5036  ;;  %v4907_v15 = vpop.permute.xlu1 %4906 }
 0x726   : > { %5042 = vst.msk [vmem:[#allocation3 + $0xa0] sm:$0xff] %vm3407_vm12, %v5037_v3  ;;  %4912 = vst.msk [vmem:[#allocation3 + $0x96] sm:$0xff] %vm3407_vm12, %v4907_v15 }
 0x729   : > { %v4915_v2 = vpop.permute.xlu0 %4914  ;;  %v4891_v6 = vpop.permute.xlu1 %4890 }
 0x72a   : > { %4920 = vst.msk [vmem:[#allocation3 + $0xc8] sm:$0xff] %vm3407_vm12, %v4915_v2  ;;  %4896 = vst.msk [vmem:[#allocation3 + $0x32] sm:$0xff] %vm3407_vm12, %v4891_v6 }
 0x72d   : > { %v5045_v44 = vpop.permute.xlu0 %5044  ;;  %v5021_v7 = vpop.permute.xlu1 %5020  ;;  %v5468_v51 = vld [vmem:[#allocation3 + $0xa0] sm:$0xff] }
 0x72e   : > { %5050 = vst.msk [vmem:[#allocation3 + $0xd2] sm:$0xff] %vm3407_vm12, %v5045_v44  ;;  %5026 = vst.msk [vmem:[#allocation3 + $0x3c] sm:$0xff] %vm3407_vm12, %v5021_v7 }
 0x731   : > { %v5039_v45 = vpop.permute.xlu1 %5038  ;;  %v4909_v16 = vpop.permute.xlu0 %4908  ;;  %v5454_v11 = vld [vmem:[#allocation3 + $0x30] sm:$0xff]  ;;  %v5473_v1 = vld [vmem:[#allocation3 + $0xc8] sm:$0xff] }
 0x732   : > { %5043 = vst.msk [vmem:[#allocation3 + $0xa8] sm:$0x3] %vm4886_vm14, %v5039_v45  ;;  %4913 = vst.msk [vmem:[#allocation3 + $0x9e] sm:$0x3] %vm4886_vm14, %v4909_v16 }
 0x735   : > { %v4917_v32 = vpop.permute.xlu1 %4916  ;;  %v4893_v41 = vpop.permute.xlu0 %4892 }
 0x736   : > { %4921 = vst.msk [vmem:[#allocation3 + $0xd0] sm:$0x3] %vm4886_vm14, %v4917_v32  ;;  %4897 = vst.msk [vmem:[#allocation3 + $0x3a] sm:$0x3] %vm4886_vm14, %v4893_v41 }
 0x739   : > { %v5047_v13 = vpop.permute.xlu1 %5046  ;;  %v5023_v8 = vpop.permute.xlu0 %5022  ;;  %v5467_v53 = vld [vmem:[#allocation3 + $0x98] sm:$0xff] }
 0x73a   : > { %5051 = vst.msk [vmem:[#allocation3 + $0xda] sm:$0x3] %vm4886_vm14, %v5047_v13  ;;  %5027 = vst.msk [vmem:[#allocation3 + $0x44] sm:$0x3] %vm4886_vm14, %v5023_v8 }
 0x73d   : > { %v5455_v10 = vld [vmem:[#allocation3 + $0x38] sm:$0xff]  ;;  %v5474_v7 = vld [vmem:[#allocation3 + $0xd0] sm:$0xff] }
 0x73e   : > { %v7763_v12 = vpack.c.bf16 %v5455_v10, %v5454_v11  ;;  %v5786_v10 = vld [vmem:[#allocation12 + $0x88] sm:$0xff] }
 0x749   : > { %v5289_v36 = vpop.permute.xlu0 %5288  ;;  %v5151_v20 = vpop.permute.xlu1 %5150 }
 0x74a   : > { %5294 = vst.msk [vmem:[#allocation3 + $0x82] sm:$0xff] %vm3407_vm12, %v5289_v36  ;;  %5156 = vst.msk [vmem:[#allocation3 + $0x46] sm:$0xff] %vm3407_vm12, %v5151_v20 }
 0x74d   : > { %v5281_v33 = vpop.permute.xlu1 %5280  ;;  %v5167_v17 = vpop.permute.xlu0 %5166 }
 0x74e   : > { %5286 = vst.msk [vmem:[#allocation3 + $0x50] sm:$0xff] %vm3407_vm12, %v5281_v33  ;;  %5172 = vst.msk [vmem:[#allocation3 + $0xaa] sm:$0xff] %vm3407_vm12, %v5167_v17 }
 0x751   : > { %v5297_v54 = vpop.permute.xlu0 %5296  ;;  %v5161_v30 = vpop.permute.xlu1 %5160  ;;  %v5456_v6 = vld [vmem:[#allocation3 + $0x40] sm:$0xff] }
 0x752   : > { %5302 = vst.msk [vmem:[#allocation3 + $0xb4] sm:$0xff] %vm3407_vm12, %v5297_v54 }
 0x753   : > { %5165 = vst.msk [vmem:[#allocation3 + $0x80] sm:$0x3] %vm4886_vm14, %v5161_v30 }
 0x755   : > { %v5175_v5 = vpop.permute.xlu0 %5174  ;;  %v5291_v56 = vpop.permute.xlu1 %5290  ;;  %v5469_v63 = vld [vmem:[#allocation3 + $0xa8] sm:$0xff]  ;;  %v5458_v8 = vld [vmem:[#allocation3 + $0x50] sm:$0xff] }
 0x756   : > { %5180 = vst.msk [vmem:[#allocation3 + $0xdc] sm:$0xff] %vm3407_vm12, %v5175_v5  ;;  %v7757_v31 = vpack.c.bf16 %v5469_v63, %v5468_v51  ;;  %v5697_v63 = vld [vmem:[#allocation12 + $0x60] sm:$0xff]  ;;  %v5601_v51 = vld [vmem:[#allocation12 + $0x30] sm:$0xff] }
 0x757   : > { %5295 = vst.msk [vmem:[#allocation3 + $0x8a] sm:$0x3] %vm4886_vm14, %v5291_v56 }
 0x759   : > { %v5153_v60 = vpop.permute.xlu0 %5152  ;;  %v5169_v58 = vpop.permute.xlu1 %5168 }
 0x75a   : > { %5157 = vst.msk [vmem:[#allocation3 + $0x4e] sm:$0x3] %vm4886_vm14, %v5153_v60  ;;  %5173 = vst.msk [vmem:[#allocation3 + $0xb2] sm:$0x3] %vm4886_vm14, %v5169_v58  ;;  %v5464_v27 = vld [vmem:[#allocation3 + $0x80] sm:$0xff] }
 0x75d   : > { %v5299_v23 = vpop.permute.xlu1 %5298  ;;  %v5475_v22 = vld [vmem:[#allocation3 + $0xd8] sm:$0xff] }
 0x75e   : > { %5303 = vst.msk [vmem:[#allocation3 + $0xbc] sm:$0x3] %vm4886_vm14, %v5299_v23  ;;  %v7769_v45 = vpack.c.bf16 %v5475_v22, %v5474_v7  ;;  %v5880_v7 = vld [vmem:[#allocation12 + $0xd8] sm:$0xff] }
 0x761   : > { %v5470_v55 = vld [vmem:[#allocation3 + $0xb0] sm:$0xff]  ;;  %v5457_v3 = vld [vmem:[#allocation3 + $0x48] sm:$0xff] }
 0x762   : > { %v7767_v44 = vpack.c.bf16 %v5457_v3, %v5456_v6  ;;  %v5788_v6 = vld [vmem:[#allocation12 + $0x98] sm:$0xff] }
 0x76e   : > { %v5419_v34 = vpop.permute.xlu0 %5418 }
 0x76f   : > { %5424 = vst.msk [vmem:[#allocation3 + $0x8c] sm:$0xff] %vm3407_vm12, %v5419_v34  ;;  %v5693_v34 = vld [vmem:[#allocation12 + $0x40] sm:$0xff] }
 0x772   : > { %v5283_v24 = vpop.permute.xlu0 %5282  ;;  %v5421_v38 = vpop.permute.xlu1 %5420 }
 0x773   : > { %5287 = vst.msk [vmem:[#allocation3 + $0x58] sm:$0x3] %vm4886_vm14, %v5283_v24  ;;  %5425 = vst.msk [vmem:[#allocation3 + $0x94] sm:$0x3] %vm4886_vm14, %v5421_v38 }
 0x776   : > { %v5427_v21 = vpop.permute.xlu0 %5426  ;;  %v5411_v40 = vpop.permute.xlu1 %5410  ;;  %v5465_v4 = vld [vmem:[#allocation3 + $0x88] sm:$0xff] }
 0x777   : > { %5432 = vst.msk [vmem:[#allocation3 + $0xbe] sm:$0xff] %vm3407_vm12, %v5427_v21  ;;  %5416 = vst.msk [vmem:[#allocation3 + $0x5a] sm:$0xff] %vm3407_vm12, %v5411_v40  ;;  %v7749_v28 = vpack.c.bf16 %v5465_v4, %v5464_v27  ;;  %v5442_v40 = vld [vmem:[%s10085_s7] sm:$0xff]  ;;  %v7795_v27 = vpack.c.bf16 %v5694_v39, %v5693_v34  ;;  %v5445_v4 = vld [vmem:[%s10085_s7 + $0x18] sm:$0xff] }
 0x778   : > { %v5884_v39 = vld [vmem:[#allocation12 + $0xf8] sm:$0xff] }
 0x779   : > { %7750 = vmatprep.subr.bf16.mxu0 %v7749_v28  ;;  %v5695_v28 = vld [vmem:[#allocation12 + $0x50] sm:$0xff] }
 0x77a   : > { %7752 = vmatpush3.bf16.msra.mxu0 %v7751_v61  ;;  %v5177_v19 = vpop.permute.xlu0 %5176  ;;  %v5305_v49 = vpop.permute.xlu1 %5304  ;;  %v5466_v42 = vld [vmem:[#allocation3 + $0x90] sm:$0xff]  ;;  %v7798_v62 = vpack.c.bf16 %v5696_v37, %v5695_v28  ;;  %v5968_v28 = vld [vmem:[#allocation13] sm:$0xff] }
 0x77b   : > { %5181 = vst.msk [vmem:[#allocation3 + $0xe4] sm:$0x3] %vm4886_vm14, %v5177_v19  ;;  %v7753_v26 = vpack.c.bf16 %v5467_v53, %v5466_v42  ;;  %v5444_v61 = vld [vmem:[%s10085_s7 + $0x10] sm:$0xff]  ;;  %v5447_v19 = vld [vmem:[%s10085_s7 + $0x28] sm:$0xf]  ;;  %v5599_v42 = vld [vmem:[#allocation12 + $0x20] sm:$0xff] }
 0x77c   : > { %5310 = vst.msk [vmem:[#allocation3 + $0xe6] sm:$0xff] %vm3407_vm12, %v5305_v49  ;;  %v5446_v49 = vld [vmem:[%s10085_s7 + $0x20] sm:$0xf]  ;;  %v5600_v53 = vld [vmem:[#allocation12 + $0x28] sm:$0xff] }
 0x77d   : > { %7754 = vmatprep.subr.bf16.mxu0 %v7753_v26  ;;  %v7789_v26 = vpack.c.bf16 %v5600_v53, %v5599_v42  ;;  %v6210_v53 = vld [vmem:[%s10153_s14 + $0x80] sm:$0xff] }
 0x77e   : > { %v5307_v48 = vpop.permute.xlu0 %5306  ;;  %7756 = vmatpush3.bf16.msra.mxu0 %v7755_v14  ;;  %v5429_v59 = vpop.permute.xlu1 %5428  ;;  %v5471_v43 = vld [vmem:[#allocation3 + $0xb8] sm:$0xff]  ;;  %v7801_v14 = vpack.c.bf16 %v5698_v18, %v5697_v63  ;;  %v6211_v63 = vld [vmem:[%s10153_s14 + $0x88] sm:$0xff] }
 0x77f   : > { %5311 = vst.msk [vmem:[#allocation3 + $0xee] sm:$0x3] %vm4886_vm14, %v5307_v48  ;;  %5433 = vst.msk [vmem:[#allocation3 + $0xc6] sm:$0x3] %vm4886_vm14, %v5429_v59  ;;  %7758 = vmatprep.subr.bf16.mxu0 %v7757_v31  ;;  %v7761_v50 = vpack.c.bf16 %v5471_v43, %v5470_v55  ;;  %v5459_v16 = vld [vmem:[#allocation3 + $0x58] sm:$0xff]  ;;  %7790 = vmatpush3.bf16.msra.mxu1 %v7789_v26  ;;  %v5785_v55 = vld [vmem:[#allocation12 + $0x80] sm:$0xff]  ;;  %v7837_v26 = vpack.c.bf16 %v6211_v63, %v6210_v53 }
 0x780   : > { %v7771_v36 = vpack.c.bf16 %v5459_v16, %v5458_v8  ;;  %7791 = vmatprep.subr.bf16.mxu1 %v8409_v47  ;;  %v5602_v31 = vld [vmem:[#allocation12 + $0x38] sm:$0xff]  ;;  %v6202_v53 = vld [vmem:[%s10153_s14 + $0x40] sm:$0xff]  ;;  %v6203_v63 = vld [vmem:[%s10153_s14 + $0x48] sm:$0xff] }
 0x781   : > { %v7792_v48 = vpack.c.bf16 %v5602_v31, %v5601_v51  ;;  %v5700_v59 = vld [vmem:[#allocation12 + $0x78] sm:$0xff] }
 0x782   : > { %v4901_v52 = vpop.permute.xlu0 %4900  ;;  %7760 = vmatpush3.bf16.msra.mxu0 %v7759_v46  ;;  %v4899_v9 = vpop.permute.xlu1 %4898  ;;  %v7804_v43 = vpack.c.bf16 %v5700_v59, %v5699_v57 }
 0x783   : > { %4905 = vst.msk [vmem:[#allocation3 + $0x6c] sm:$0x3] %vm4886_vm14, %v4901_v52  ;;  %7762 = vmatprep.subr.bf16.mxu0 %v7761_v50  ;;  %v5476_v20 = vld [vmem:[#allocation3 + $0xe0] sm:$0xff]  ;;  %7793 = vmatpush3.bf16.msra.mxu1 %v7792_v48 }
 0x784   : > { %4904 = vst.msk [vmem:[#allocation3 + $0x64] sm:$0xff] %vm3407_vm12, %v4899_v9  ;;  %7806 = vmatprep.subr.bf16.mxu1 %v8409_v47  ;;  %v5877_v52 = vld [vmem:[#allocation12 + $0xc0] sm:$0xff]  ;;  %v5878_v9 = vld [vmem:[#allocation12 + $0xc8] sm:$0xff] }
 0x786   : > { %v5413_v15 = vpop.permute.xlu0 %5412  ;;  %v5029_v29 = vpop.permute.xlu1 %5028  ;;  %7764 = vmatpush3.bf16.msra.mxu0 %v7763_v12  ;;  %v5472_v25 = vld [vmem:[#allocation3 + $0xc0] sm:$0xff]  ;;  %v5477_v13 = vld [vmem:[#allocation3 + $0xe8] sm:$0xff] }
 0x787   : > { %5417 = vst.msk [vmem:[#allocation3 + $0x62] sm:$0x3] %vm4886_vm14, %v5413_v15  ;;  %v7765_v2 = vpack.c.bf16 %v5473_v1, %v5472_v25  ;;  %v7773_v33 = vpack.c.bf16 %v5477_v13, %v5476_v20  ;;  %v7819_v25 = vpack.c.bf16 %v5878_v9, %v5877_v52  ;;  %v5787_v1 = vld [vmem:[#allocation12 + $0x90] sm:$0xff] }
 0x788   : > { %5034 = vst.msk [vmem:[#allocation3 + $0x6e] sm:$0xff] %vm3407_vm12, %v5029_v29  ;;  %v7807_v29 = vpack.c.bf16 %v5786_v10, %v5785_v55  ;;  %v7810_v13 = vpack.c.bf16 %v5788_v6, %v5787_v1 }
 0x789   : > { %7766 = vmatprep.subr.bf16.mxu0 %v7765_v2 }
 0x78a   : > { %v5437_v32 = vpop.permute.xlu0 %5436  ;;  %v5435_v41 = vpop.permute.xlu1 %5434  ;;  %7768 = vmatpush3.bf16.msra.mxu0 %v7767_v44  ;;  %v5879_v44 = vld [vmem:[#allocation12 + $0xd0] sm:$0xff] }
 0x78b   : > { %5441 = vst.msk [vmem:[#allocation3 + $0xf8] sm:$0x3] %vm4886_vm14, %v5437_v32  ;;  %7770 = vmatprep.subr.bf16.mxu0 %v7769_v45  ;;  %v7822_v8 = vpack.c.bf16 %v5880_v7, %v5879_v44 }
 0x78c   : > { %5440 = vst.msk [vmem:[#allocation3 + $0xf0] sm:$0xff] %vm3407_vm12, %v5435_v41 }
 0x78e   : > { %v5159_v17 = vpop.permute.xlu0 %5158  ;;  %v5031_v54 = vpop.permute.xlu1 %5030  ;;  %7772 = vmatpush3.bf16.msra.mxu0 %v7771_v36  ;;  %v5460_v30 = vld [vmem:[#allocation3 + $0x60] sm:$0xff] }
 0x78f   : > { %v5461_v5 = vld [vmem:[#allocation3 + $0x68] sm:$0xff]  ;;  %5164 = vst.msk [vmem:[#allocation3 + $0x78] sm:$0xff] %vm3407_vm12, %v5159_v17  ;;  %7774 = vmatprep.subr.bf16.mxu0 %v7773_v33  ;;  %v5789_v36 = vld [vmem:[#allocation12 + $0xa0] sm:$0xff] }
 0x790   : > { %5035 = vst.msk [vmem:[#allocation3 + $0x76] sm:$0x3] %vm4886_vm14, %v5031_v54  ;;  %v7775_v56 = vpack.c.bf16 %v5461_v5, %v5460_v30  ;;  %v5790_v17 = vld [vmem:[#allocation12 + $0xa8] sm:$0xff]  ;;  %v5881_v54 = vld [vmem:[#allocation12 + $0xe0] sm:$0xff] }
 0x791   : > { %v5882_v30 = vld [vmem:[#allocation12 + $0xe8] sm:$0xff] }
 0x792   : > { %7776 = vmatpush3.bf16.msra.mxu0 %v7775_v56  ;;  %v5479_v58 = vld [vmem:[#allocation3 + $0xf8] sm:$0x3] }
 0x793   : > { %v5478_v60 = vld [vmem:[#allocation3 + $0xf0] sm:$0xff] }
 0x794   : > { %v7777_v23 = vpack.c.bf16 %v5479_v58, %v5478_v60  ;;  %v7813_v60 = vpack.c.bf16 %v5790_v17, %v5789_v36  ;;  %v7825_v58 = vpack.c.bf16 %v5882_v30, %v5881_v54  ;;  %v6212_v17 = vld [vmem:[%s10153_s14 + $0x90] sm:$0xff]  ;;  %v6213_v54 = vld [vmem:[%s10153_s14 + $0x98] sm:$0xff] }
 0x795   : > { %v7841_v30 = vpack.c.bf16 %v6213_v54, %v6212_v17  ;;  %v5975_v17 = vld [vmem:[#allocation15 + $0x8] sm:$0xff]  ;;  %v5978_v54 = vld [vmem:[#allocation15 + $0x20] sm:$0xff] }
 0x796   : > { %7779 = vmatprep.subr.msk.bf16.mxu0 %vm7778_vm2, %v7777_v23  ;;  %v5463_v38 = vld [vmem:[#allocation3 + $0x78] sm:$0xff]  ;;  %v5791_v23 = vld [vmem:[#allocation12 + $0xb0] sm:$0xff] }
 0x797   : > { %v5462_v24 = vld [vmem:[#allocation3 + $0x70] sm:$0xff] }
 0x798   : > { %v7780_v21 = vpack.c.bf16 %v5463_v38, %v5462_v24  ;;  %v5792_v24 = vld [vmem:[#allocation12 + $0xb8] sm:$0xff]  ;;  %v5883_v38 = vld [vmem:[#allocation12 + $0xf0] sm:$0xff] }
 0x79a   : > { %7781 = vmatpush3.bf16.msra.mxu0 %v7780_v21  ;;  %v7816_v21 = vpack.c.bf16 %v5792_v24, %v5791_v23  ;;  %v6199_v24 = vld [vmem:[%s10153_s14 + $0x28] sm:$0xff] }
 0x79b   : > { %7794 = vmatprep.subr.bf16.mxu0 %v8409_v47 }
 0x79d   : > { %5577 = vmatmul.mubr.f32.vlgmr.msra.gmra.mrb[86].mxu0 %v5442_v40  ;;  %v7828_v40 = vpack.c.bf16 %v5884_v39, %v5883_v38  ;;  %v6216_v39 = vld [vmem:[%s10153_s14 + $0xb0] sm:$0xff] }
 0x79e   : > { %6640 = vmatprep.mubr.msk.f32.mxu0 %vm5498_vm15, %v5445_v4  ;;  %7796 = vmatpush3.bf16.msra.mxu0 %v7795_v27  ;;  %v5969_v27 = vld [vmem:[#allocation13 + $0x8] sm:$0xff]  ;;  %v5972_v4 = vld [vmem:[#allocation13 + $0x20] sm:$0xff] }
 0x79f   : > { %7797 = vmatprep.subr.bf16.mxu0 %v8409_v47  ;;  %v5486_v11 = vpop.permute.xlu1 %5485  ;;  %v5491_v45 = vpop.permute.xlu0 %5490  ;;  %v7830_v37 = vpack.c.bf16 %v5972_v4, %v5969_v27  ;;  %v6200_v27 = vld [vmem:[%s10153_s14 + $0x30] sm:$0xff]  ;;  %v6201_v4 = vld [vmem:[%s10153_s14 + $0x38] sm:$0xff] }
 0x7a1   : > { %5582 = vmatmul.mubr.f32.gmra.mrb[88].mxu0 %v5444_v61  ;;  %v5971_v61 = vld [vmem:[#allocation13 + $0x18] sm:$0xff] }
 0x7a2   : > { %6641 = vmatprep.mubr.msk.f32.mxu0 %vm5498_vm15, %v5447_v19  ;;  %7799 = vmatpush3.bf16.msra.mxu0 %v7798_v62  ;;  %v5970_v62 = vld [vmem:[#allocation13 + $0x10] sm:$0xff]  ;;  %v5973_v19 = vld [vmem:[#allocation13 + $0x28] sm:$0xff] }
 0x7a3   : > { %7800 = vmatprep.subr.bf16.mxu0 %v8409_v47  ;;  %v5496_v5 = vpop.permute.xlu1 %5495  ;;  %v7835_v42 = vpack.c.bf16 %v5973_v19, %v5970_v62  ;;  %v6218_v19 = vld [vmem:[%s10153_s14 + $0xc0] sm:$0xff] }
 0x7a5   : > { %5587 = vmatmul.mubr.f32.gmra.mrb[90].mxu0 %v5446_v49  ;;  %v7832_v49 = vpack.c.bf16 %v5971_v61, %v5968_v28  ;;  %v7851_v28 = vpack.c.bf16 %v6201_v4, %v6200_v27  ;;  %v6227_v61 = vld [vmem:[%s10153_s14 + $0x108] sm:$0xff] }
 0x7a6   : > { %7802 = vmatpush3.bf16.msra.mxu0 %v7801_v14  ;;  %6857 = vmatprep.mubr.msk.f32.mxu0 %vm8413_vm3, %v8397_v0  ;;  %v5981_v27 = vld [vmem:[#allocation15 + $0x38] sm:$0xf] }
 0x7a7   : > { %7803 = vmatprep.subr.bf16.mxu0 %v8409_v47 }
 0x7aa   : > { %7805 = vmatpush3.bf16.msra.mxu0 %v7804_v43 }
 0x7ab   : > { %7818 = vmatprep.subr.bf16.mxu0 %v8409_v47 }
 0x870   : > { %v6703_v35 = vpop.f32.mrb[86].mxu0 }
 0x871   : > { %v6704_v46 = vpop.f32.mrb[87].mxu0 }
 0x872   : > { %v6705_v50 = vadd.f32 %v6704_v46, %v6703_v35 }
 0x874   : > { %v5579_v12 = vadd.f32 %v6705_v50, %v5486_v11  ;;  %v6706_v3 = vpop.f32.mrb[88].mxu0 }
 0x875   : > { %v6707_v15 = vpop.f32.mrb[89].mxu0 }
 0x876   : > { %v5592_v22 = vmax.f32 %v5579_v12, 0.0  ;;  %v6708_v2 = vadd.f32 %v6707_v15, %v6706_v3  ;;  %v6194_v3 = vld [vmem:[%s10153_s14] sm:$0xff]  ;;  %v6195_v15 = vld [vmem:[%s10153_s14 + $0x8] sm:$0xff] }
 0x878   : > { %v5584_v16 = vadd.f32 %v6708_v2, %v5491_v45  ;;  %v6709_v32 = vpop.f32.mrb[90].mxu0  ;;  %6833 = vmatmul.mubr.msk.f32.vlgmr.msra.gmra.mrb[80].mxu1 %vm3407_vm12, %v5592_v22  ;;  %6858 = vmatmul.mubr.msk.f32.vlgmr.msra.gmra.mrb[92].mxu0 %vm3407_vm12, %v5592_v22  ;;  %v7839_v2 = vpack.c.bf16 %v6195_v15, %v6194_v3  ;;  %v6232_v3 = vld [vmem:[%s10153_s14 + $0x130] sm:$0xff]  ;;  %v6233_v15 = vld [vmem:[%s10153_s14 + $0x138] sm:$0xff] }
 0x879   : > { %7808 = vmatpush3.bf16.msra.mxu1 %v7807_v29  ;;  %7820 = vmatpush3.bf16.msra.mxu0 %v7819_v25  ;;  %v6710_v41 = vpop.f32.mrb[91].mxu0 }
 0x87a   : > { %v5593_v20 = vmax.f32 %v5584_v16, 0.0  ;;  %v6711_v33 = vadd.f32 %v6710_v41, %v6709_v32  ;;  %6835 = vmatprep.mubr.msk.f32.mxu1 %vm8413_vm3, %v8397_v0  ;;  %6860 = vmatprep.mubr.msk.f32.mxu0 %vm8413_vm3, %v8397_v0 }
 0x87b   : > { %7809 = vmatprep.subr.bf16.mxu1 %v8409_v47  ;;  %7821 = vmatprep.subr.bf16.mxu0 %v8409_v47 }
 0x87c   : > { %v5589_v56 = vadd.f32 %v6711_v33, %v5496_v5  ;;  %6836 = vmatmul.mubr.msk.f32.gmra.mrb[82].mxu1 %vm3407_vm12, %v5593_v20  ;;  %6861 = vmatmul.mubr.msk.f32.gmra.mrb[94].mxu0 %vm3407_vm12, %v5593_v20  ;;  %v6196_v5 = vld [vmem:[%s10153_s14 + $0x10] sm:$0xff] }
 0x87d   : > { %7811 = vmatpush3.bf16.msra.mxu1 %v7810_v13  ;;  %7823 = vmatpush3.bf16.msra.mxu0 %v7822_v8 }
 0x87e   : > { %v5594_v34 = vmax.f32 %v5589_v56, 0.0  ;;  %6838 = vmatprep.mubr.msk.f32.mxu1 %vm8413_vm3, %v8397_v0  ;;  %6863 = vmatprep.mubr.msk.f32.mxu0 %vm8413_vm3, %v8397_v0  ;;  %v6197_v56 = vld [vmem:[%s10153_s14 + $0x18] sm:$0xff] }
 0x87f   : > { %7812 = vmatprep.subr.bf16.mxu1 %v8409_v47  ;;  %7824 = vmatprep.subr.bf16.mxu0 %v8409_v47 }
 0x880   : > { %6839 = vmatmul.mubr.msk.f32.gmra.mrb[84].mxu1 %vm3407_vm12, %v5594_v34  ;;  %6864 = vmatmul.mubr.msk.f32.gmra.mrb[96].mxu0 %vm3407_vm12, %v5594_v34 }
 0x881   : > { %7814 = vmatpush3.bf16.msra.mxu1 %v7813_v60  ;;  %7826 = vmatpush3.bf16.msra.mxu0 %v7825_v58  ;;  %v7843_v60 = vpack.c.bf16 %v6197_v56, %v6196_v5  ;;  %v6215_v58 = vld [vmem:[%s10153_s14 + $0xa8] sm:$0xff] }
 0x882   : > { %7815 = vmatprep.subr.bf16.mxu1 %v8409_v47  ;;  %7827 = vmatprep.subr.bf16.mxu0 %v8409_v47 }
 0x883   : > { %6882 = vmatprep.mubr.msk.f32.mxu1 %vm8413_vm3, %v8397_v0  ;;  %6907 = vmatprep.mubr.msk.f32.mxu0 %vm8413_vm3, %v8397_v0 }
 0x885   : > { %7817 = vmatpush3.bf16.msra.mxu1 %v7816_v21  ;;  %7829 = vmatpush3.bf16.msra.mxu0 %v7828_v40  ;;  %v6217_v21 = vld [vmem:[%s10153_s14 + $0xb8] sm:$0xff] }
 0x886   : > { %7834 = vmatprep.subr.bf16.mxu0 %v8409_v47  ;;  %7831 = vmatprep.subr.bf16.mxu1 %v7830_v37  ;;  %v7849_v40 = vpack.c.bf16 %v6217_v21, %v6216_v39  ;;  %v6226_v37 = vld [vmem:[%s10153_s14 + $0x100] sm:$0xff] }
 0x887   : > { %v7870_v62 = vpack.c.bf16 %v6227_v61, %v6226_v37 }
 0x888   : > { %6883 = vmatmul.mubr.msk.f32.vlgmr.msra.gmra.mrb[86].mxu1 %vm3407_vm12, %v5592_v22  ;;  %6908 = vmatmul.mubr.msk.f32.vlgmr.msra.gmra.mrb[98].mxu0 %vm3407_vm12, %v5592_v22 }
 0x889   : > { %6885 = vmatprep.mubr.msk.f32.mxu1 %vm8413_vm3, %v8397_v0  ;;  %6910 = vmatprep.mubr.msk.f32.mxu0 %vm8413_vm3, %v8397_v0 }
 0x88a   : > { %7833 = vmatpush1.bf16.msra.mxu1 %v7832_v49  ;;  %7836 = vmatpush3.bf16.msra.mxu0 %v7835_v42  ;;  %v6219_v49 = vld [vmem:[%s10153_s14 + $0xc8] sm:$0xff] }
 0x88b   : > { %7869 = vmatprep.subr.bf16.mxu0 %v8409_v47  ;;  %7838 = vmatprep.subr.bf16.mxu1 %v7837_v26  ;;  %v7853_v42 = vpack.c.bf16 %v6219_v49, %v6218_v19  ;;  %v7855_v26 = vpack.c.bf16 %v6203_v63, %v6202_v53 }
 0x88c   : > { %6886 = vmatmul.mubr.msk.f32.gmra.mrb[88].mxu1 %vm3407_vm12, %v5593_v20  ;;  %6911 = vmatmul.mubr.msk.f32.gmra.mrb[100].mxu0 %vm3407_vm12, %v5593_v20 }
 0x88d   : > { %6888 = vmatprep.mubr.msk.f32.mxu1 %vm8413_vm3, %v8397_v0  ;;  %6913 = vmatprep.mubr.msk.f32.mxu0 %vm8413_vm3, %v8397_v0 }
 0x890   : > { %6889 = vmatmul.mubr.msk.f32.gmra.mrb[90].mxu1 %vm3407_vm12, %v5594_v34  ;;  %6914 = vmatmul.mubr.msk.f32.gmra.mrb[102].mxu0 %vm3407_vm12, %v5594_v34  ;;  %v6198_v34 = vld [vmem:[%s10153_s14 + $0x20] sm:$0xff] }
 0x891   : > { %6056 = vmatprep.mubr.f32.mxu1 %v8397_v0  ;;  %6920 = vmatprep.mubr.msk.f32.mxu0 %vm8413_vm3, %v8397_v0  ;;  %v7847_v38 = vpack.c.bf16 %v6199_v24, %v6198_v34  ;;  %v5980_v24 = vld [vmem:[#allocation15 + $0x30] sm:$0xf] }
 0x94b   : > { %v5678_v18 = vpop.f32.mrb[80].mxu1  ;;  %v5767_v14 = vpop.f32.mrb[92].mxu0 }
 0x94c   : > { %v5781_v51 = vmax.f32 %v5678_v18, %v5767_v14  ;;  %v6834_v31 = vpop.f32.mrb[81].mxu1  ;;  %v6859_v57 = vpop.f32.mrb[93].mxu0  ;;  %v6228_v18 = vld [vmem:[%s10153_s14 + $0x110] sm:$0xff]  ;;  %v6229_v14 = vld [vmem:[%s10153_s14 + $0x118] sm:$0xff] }
 0x94d   : > { %v6220_v31 = vld [vmem:[%s10153_s14 + $0xd0] sm:$0xff]  ;;  %v6221_v57 = vld [vmem:[%s10153_s14 + $0xd8] sm:$0xff] }
 0x94f   : > { %v5683_v48 = vpop.f32.mrb[82].mxu1  ;;  %v5772_v59 = vpop.f32.mrb[94].mxu0 }
 0x950   : > { %v5782_v43 = vmax.f32 %v5683_v48, %v5772_v59  ;;  %v6837_v35 = vpop.f32.mrb[83].mxu1  ;;  %v6862_v46 = vpop.f32.mrb[95].mxu0  ;;  %v6204_v48 = vld [vmem:[%s10153_s14 + $0x50] sm:$0xff]  ;;  %v7857_v59 = vpack.c.bf16 %v6221_v57, %v6220_v31 }
 0x951   : > { %v6230_v35 = vld [vmem:[%s10153_s14 + $0x120] sm:$0xff]  ;;  %v6231_v46 = vld [vmem:[%s10153_s14 + $0x128] sm:$0xff] }
 0x953   : > { %v5688_v55 = vpop.f32.mrb[84].mxu1  ;;  %v5777_v50 = vpop.f32.mrb[96].mxu0 }
 0x954   : > { %v5783_v10 = vmax.f32 %v5688_v55, %v5777_v50  ;;  %v6840_v52 = vpop.f32.mrb[85].mxu1  ;;  %v6865_v9 = vpop.f32.mrb[97].mxu0  ;;  %v7876_v50 = vpack.c.bf16 %v6231_v46, %v6230_v35 }
 0x955   : > { %v6223_v52 = vld [vmem:[%s10153_s14 + $0xe8] sm:$0xff]  ;;  %v6206_v9 = vld [vmem:[%s10153_s14 + $0x60] sm:$0xff] }
 0x95b   : > { %v5859_v11 = vpop.f32.mrb[86].mxu1  ;;  %v5951_v12 = vpop.f32.mrb[98].mxu0 }
 0x95c   : > { %v5873_v29 = vmax.f32 %v5781_v51, %v5859_v11  ;;  %v6884_v25 = vpop.f32.mrb[87].mxu1  ;;  %v6909_v1 = vpop.f32.mrb[99].mxu0  ;;  %v7873_v51 = vpack.c.bf16 %v6229_v14, %v6228_v18 }
 0x95d   : > { %v6224_v25 = vld [vmem:[%s10153_s14 + $0xf0] sm:$0xff]  ;;  %v6225_v1 = vld [vmem:[%s10153_s14 + $0xf8] sm:$0xff] }
 0x95e   : > { %v5965_v22 = vmax.f32 %v5873_v29, %v5951_v12  ;;  %v6207_v12 = vld [vmem:[%s10153_s14 + $0x68] sm:$0xff] }
 0x95f   : > { %v5864_v6 = vpop.f32.mrb[88].mxu1  ;;  %v5956_v44 = vpop.f32.mrb[100].mxu0  ;;  %v7863_v29 = vpack.c.bf16 %v6207_v12, %v6206_v9 }
 0x960   : > { %v5874_v7 = vmax.f32 %v5782_v43, %v5864_v6  ;;  %v6887_v45 = vpop.f32.mrb[89].mxu1  ;;  %v6912_v16 = vpop.f32.mrb[101].mxu0  ;;  %6654 = vmatmul.mubr.msk.f32.vlgmr.msra.gmra.mrb[92].mxu1 %vm4803_vm13, %v5965_v22  ;;  %6921 = vmatmul.mubr.msk.f32.vlgmr.msra.gmra.mrb[104].mxu0 %vm4803_vm13, %v5965_v22  ;;  %v6205_v43 = vld [vmem:[%s10153_s14 + $0x58] sm:$0xff]  ;;  %v7865_v22 = vpack.c.bf16 %v6225_v1, %v6224_v25 }
 0x961   : > { %6062 = vmatprep.mubr.f32.mxu1 %v8397_v0  ;;  %6923 = vmatprep.mubr.msk.f32.mxu0 %vm8413_vm3, %v8397_v0  ;;  %v7859_v55 = vpack.c.bf16 %v6205_v43, %v6204_v48  ;;  %v6209_v6 = vld [vmem:[%s10153_s14 + $0x78] sm:$0xff]  ;;  %v5976_v16 = vld [vmem:[#allocation15 + $0x10] sm:$0xff] }
 0x962   : > { %v5966_v32 = vmax.f32 %v5874_v7, %v5956_v44  ;;  %7840 = vmatpush3.bf16.msra.mxu1 %v7839_v2  ;;  %7871 = vmatpush3.bf16.msra.mxu0 %v7870_v62  ;;  %v6208_v2 = vld [vmem:[%s10153_s14 + $0x70] sm:$0xff]  ;;  %v7879_v44 = vpack.c.bf16 %v6233_v15, %v6232_v3 }
 0x963   : > { %v5869_v41 = vpop.f32.mrb[90].mxu1  ;;  %v5961_v13 = vpop.f32.mrb[102].mxu0  ;;  %7842 = vmatprep.subr.bf16.mxu1 %v7841_v30  ;;  %7872 = vmatprep.subr.bf16.mxu0 %v8409_v47  ;;  %v7867_v7 = vpack.c.bf16 %v6209_v6, %v6208_v2 }
 0x964   : > { %v5875_v8 = vmax.f32 %v5783_v10, %v5869_v41  ;;  %v6890_v36 = vpop.f32.mrb[91].mxu1  ;;  %v6915_v20 = vpop.f32.mrb[103].mxu0  ;;  %6655 = vmatmul.mubr.msk.f32.gmra.mrb[94].mxu1 %vm4803_vm13, %v5966_v32  ;;  %6924 = vmatmul.mubr.msk.f32.gmra.mrb[106].mxu0 %vm4803_vm13, %v5966_v32  ;;  %v6222_v10 = vld [vmem:[%s10153_s14 + $0xe0] sm:$0xff] }
 0x965   : > { %6068 = vmatprep.mubr.f32.mxu1 %v8397_v0  ;;  %6926 = vmatprep.mubr.msk.f32.mxu0 %vm8413_vm3, %v8397_v0  ;;  %v7861_v11 = vpack.c.bf16 %v6223_v52, %v6222_v10  ;;  %v5977_v36 = vld [vmem:[#allocation15 + $0x18] sm:$0xff]  ;;  %v5979_v20 = vld [vmem:[#allocation15 + $0x28] sm:$0xff] }
 0x966   : > { %v5967_v33 = vmax.f32 %v5875_v8, %v5961_v13  ;;  %7844 = vmatpush3.bf16.msra.mxu1 %v7843_v60  ;;  %7874 = vmatpush3.bf16.msra.mxu0 %v7873_v51  ;;  %v5974_v8 = vld [vmem:[#allocation15] sm:$0xff] }
 0x967   : > { %7875 = vmatprep.subr.bf16.mxu0 %v8409_v47 }
 0x968   : > { %6656 = vmatmul.mubr.msk.f32.gmra.mrb[96].mxu1 %vm4803_vm13, %v5967_v33  ;;  %6927 = vmatmul.mubr.msk.f32.gmra.mrb[108].mxu0 %vm4803_vm13, %v5967_v33 }
 0x969   : > { %6945 = vmatprep.mubr.msk.f32.mxu0 %vm8413_vm3, %v8397_v0  ;;  %v6214_v0 = vld [vmem:[%s10153_s14 + $0xa0] sm:$0xff] }
 0x96a   : > { %v7845_v23 = vpack.c.bf16 %v6215_v58, %v6214_v0  ;;  %7877 = vmatpush3.bf16.msra.mxu0 %v7876_v50 }
 0x96b   : > { %7878 = vmatprep.subr.bf16.mxu0 %v8409_v47 }
 0x96c   : > { %7846 = vmatprep.subr.bf16.mxu1 %v7845_v23 }
 0x96d   : > { %7848 = vmatpush3.bf16.msra.mxu1 %v7847_v38  ;;  %v5982_v38 = vld [vmem:[#allocation15 + $0x40] sm:$0xf] }
 0x96e   : > { %7850 = vmatprep.subr.bf16.mxu1 %v7849_v40  ;;  %7880 = vmatpush3.bf16.msra.mxu0 %v7879_v44  ;;  %v6234_v44 = vld [vmem:[#allocation16] sm:$0x1] }
 0x971   : > { %7852 = vmatpush3.bf16.msra.mxu1 %v7851_v28 }
 0x972   : > { %7854 = vmatprep.subr.bf16.mxu1 %v7853_v42 }
 0x975   : > { %7856 = vmatpush3.bf16.msra.mxu1 %v7855_v26 }
 0x976   : > { %7858 = vmatprep.subr.bf16.mxu1 %v7857_v59 }
 0x979   : > { %7860 = vmatpush3.bf16.msra.mxu1 %v7859_v55 }
 0x97a   : > { %7862 = vmatprep.subr.bf16.mxu1 %v7861_v11 }
 0x97d   : > { %7864 = vmatpush3.bf16.msra.mxu1 %v7863_v29 }
 0x97e   : > { %7866 = vmatprep.subr.bf16.mxu1 %v7865_v22 }
 0x981   : > { %7868 = vmatpush3.bf16.msra.mxu1 %v7867_v7 }
 0xa33   : > { %v6058_v45 = vpop.f32.mrb[92].mxu1  ;;  %v6141_v32 = vpop.f32.mrb[104].mxu0 }
 0xa34   : > { %v6060_v41 = vpop.f32.mrb[93].mxu1  ;;  %v6922_v13 = vpop.f32.mrb[105].mxu0  ;;  %v6157_v33 = vmul.f32 %v6141_v32, %v5976_v16  ;;  %v6155_v56 = vmul.f32 %v6058_v45, %v5974_v8 }
 0xa35   : > { %v6156_v23 = vmul.f32 %v6060_v41, %v5975_v17 }
 0xa36   : > { %v6182_v39 = vsel %vm3407_vm12, %v6157_v33, 0.0 }
 0xa37   : > { %v6064_v30 = vpop.f32.mrb[94].mxu1  ;;  %v6146_v5 = vpop.f32.mrb[106].mxu0 }
 0xa38   : > { %v6158_v47 = vmul.f32 %v6064_v30, %v5977_v36  ;;  %v6160_v60 = vmul.f32 %v6146_v5, %v5979_v20  ;;  %v6066_v0 = vpop.f32.mrb[95].mxu1  ;;  %v6925_v58 = vpop.f32.mrb[107].mxu0 }
 0xa39   : > { %v6159_v34 = vmul.f32 %v6066_v0, %v5978_v54 }
 0xa3a   : > { %v6164_v21 = vadd.f32 %v6158_v47, %v6155_v56  ;;  %v6183_v40 = vsel %vm3407_vm12, %v6160_v60, 0.0 }
 0xa3b   : > { %v6184_v4 = vadd.f32 %v6183_v40, %v6182_v39  ;;  %v6173_v28 = vadd.f32 %v6159_v34, %v6156_v23  ;;  %v6070_v37 = vpop.f32.mrb[96].mxu1  ;;  %v6151_v61 = vpop.f32.mrb[108].mxu0 }
 0xa3c   : > { %v6161_v62 = vmul.f32 %v6070_v37, %v5980_v24  ;;  %v6163_v19 = vmul.f32 %v6151_v61, %v5982_v38  ;;  %v6072_v49 = vpop.f32.mrb[97].mxu1  ;;  %v6928_v42 = vpop.f32.mrb[109].mxu0 }
 0xa3d   : > { %v6162_v53 = vmul.f32 %v6072_v49, %v5981_v27 }
 0xa3e   : > { %v6165_v63 = vsel %vm932_vm1, %v6161_v62, 0.0  ;;  %v6186_v26 = vsel %vm6185_vm4, %v6163_v19, 0.0 }
 0xa3f   : > { %v6166_v18 = vadd.f32 %v6165_v63, %v6164_v21  ;;  %v6187_v14 = vadd.f32 %v6186_v26, %v6184_v4  ;;  %v6174_v51 = vsel %vm932_vm1, %v6162_v53, 0.0  ;;  %vm6378_vm1 = vcmask 73728  }
 0xa40   : > { %v6175_v31 = vadd.f32 %v6174_v51, %v6173_v28 }
 0xa41   : > { %v6167_v57 = vrot.slane %v6166_v18, 4  ;;  %v6188_v48 = vrot.slane %v6187_v14, 4 }
 0xa42   : > { %v6176_v59 = vrot.slane %v6175_v31, 4 }
 0xa43   : > { %v6168_v43 = vadd.f32 %v6167_v57, %v6166_v18  ;;  %v6189_v35 = vadd.f32 %v6188_v48, %v6187_v14 }
 0xa44   : > { %v6177_v46 = vadd.f32 %v6176_v59, %v6175_v31 }
 0xa45   : > { %v6169_v55 = vrot.slane %v6168_v43, 2  ;;  %v6190_v50 = vrot.slane %v6189_v35, 2 }
 0xa46   : > { %v6178_v10 = vrot.slane %v6177_v46, 2 }
 0xa47   : > { %v6170_v52 = vadd.f32 %v6169_v55, %v6168_v43  ;;  %v6191_v9 = vadd.f32 %v6190_v50, %v6189_v35 }
 0xa48   : > { %v6179_v11 = vadd.f32 %v6178_v10, %v6177_v46 }
 0xa49   : > { %v6171_v12 = vrot.slane %v6170_v52, 1  ;;  %v6192_v3 = vrot.slane %v6191_v9, 1 }
 0xa4a   : > { %v6180_v15 = vrot.slane %v6179_v11, 1 }
 0xa4b   : > { %v6193_v29 = vadd.f32 %v6192_v3, %v6191_v9  ;;  %v6172_v1 = vadd.f32 %v6171_v12, %v6170_v52 }
 0xa4c   : > { %v6181_v25 = vadd.f32 %v6180_v15, %v6179_v11 }
 0xa4d   : > { %6946 = vmatmul.mubr.msk.f32.vlgmr.msra.gmra.mrb[110].mxu0 %vm3407_vm12, %v6193_v29 }
 0xa4e   : > { %6302 = vmatprep.mubr.f32.mxu1 %v6181_v25 }
 0xa4f   : > { %6303 = vmatmul.mubr.f32.vlgmr.msra.gmra.mrb[98].mxu1 %v6172_v1 }
 0xb20   : > { %v6374_v22 = vpop.f32.mrb[110].mxu0 }
 0xb21   : > { %v6947_v2 = vpop.f32.mrb[111].mxu0 }
 0xb22   : > { %v6793_v6 = vpop.f32.mrb[98].mxu1 }
 0xb23   : > { %v6794_v7 = vpop.f32.mrb[99].mxu1 }
 0xb24   : > { %v6795_v45 = vadd.f32 %v6794_v7, %v6793_v6 }
 0xb26   : > { %v6305_v16 = vadd.f32 %v6795_v45, %v6234_v44 }
 0xb28   : > { %v6375_v32 = vadd.f32 %v6374_v22, %v6305_v16 }
 0xb2a   : > { %6379 = vst.msk [vmem:[%s574_s20] sm:$0x1] %vm6378_vm1, %v6375_v32 }
 0xb2b   : > { %8310 = shalt.err (!%p8307_p13)
}
 0xb2c   : > { %s8311_s30 = scalar_lea.hbm %s10036_s15, 16  ;;  %s8315_s24 = scalar_lea.hbm %s10156_s26, 32 }
 0xb2d   : > { %p8312_p12 = scmp.ne.s32.totalorder %s10036_s15, %s8311_s30  ;;  %p8316_p3 = scmp.lt.u32.totalorder %s10036_s15, %s10156_s26 }
 0xb2e   : > { %p8317_p4 = scmp.lt.u32.totalorder %s8315_s24, %s8311_s30  ;;  %p8319_p8 = scmp.lt.u32.totalorder %s8311_s30, %s10036_s15 }
 0xb2f   : > { %p8313_p1 = pnand %p8312_p12, %p10157_p11 }
 0xb30   : > { %p8318_p7 = por %p8317_p4, %p8316_p3 }
 0xb31   : > { %p8314_p2 = pneg %p8313_p1 }
 0xb32   : > { %p8320_p5 = por %p8319_p8, %p8318_p7 }
 0xb34   : > { %p8321_p6 = pnand %p8320_p5, %p8314_p2 }
 0xb36   : > { %8324 = shalt.err (!%p8321_p6)
}
 0xb37   : > { %7949 = dma.vmem_to_hbm [thread:$0]  (%p10157_p11), %s10038_s4, 16, %s10036_s15, %s6381_s18  }
 0xb38 PF: > { %s10158_s27 = sld [smem:[#allocation28_spill]]  ;;  %s10159_s20 = sld [smem:[#allocation25_spill]] }
 0xb39   : > { %s10160_s25 = sld [smem:[#allocation32_spill]] }
 0xb3e   : > { %p7996_p0 = scmp.ge.s32.totalorder %s10158_s27, 2  ;;  %s6405_s28 = sand.u32 1, %s10159_s20  }
 0xb3f   : > { %p10161_p9 = scmp.ne.s32.totalorder %s10160_s25, 0  ;;  %s6406_s29 = scalar_lea.sflag [#allocation6], %s6405_s28 }
 0xb41   : > { %p7977_p10 = pnand %p7996_p0, %p10161_p9 }
 0xb43   : > { %8362 = dma.done.wait (!%p7977_p10), %s6406_s29, 16  }
 0xb44   : > { %8364 = vsyncadd (!%p7977_p10), %s6406_s29, 4294967280  ;;  %s10162_s16 = sld [smem:[#allocation29_spill]]  ;;  %s10163_s29 = sld [smem:[#allocation26_spill]] }
 0xb45   : > { %s10164_s30 = sld [smem:[#allocation27_spill]]  ;;  %s10165_s15 = sld [smem:[#allocation30_spill]] }
 0xb4a   : > { %p29_p13 = scmp.ge.s32.totalorder %s10162_s16, 4  }
 0xb4c   :  { %31 = sbr.rel (!%p29_p13) target bundleno = 13 (0xd), region = 178 }
 0xb53   :  { %6410 = vsyncpa [#allocation5], 1 }
 0xb54   :  { %6412 = vsyncpa [#allocation5 + $0x1], 1 }
 0xb55   :  { %6413 = vsyncpa [#allocation8], 1 }
 0xb56   :  { %6414 = vsyncpa [#allocation11], 1 }
 0xb57   :  { %6415 = vsyncpa [#allocation14], 1 }
 0xb58   :  { %6416 = vsyncpa [#allocation17], 1 }
 0xb59   :  { %6417 = vsyncpa [#allocation6], 1 }
 0xb5a   :  { %6419 = vsyncpa [#allocation6 + $0x1], 1 }

</bundles_post_ra>
